<compile_context>
chip_gen: v6e
topology: v6e:2x2x1
jax: 0.10.0
libtpu: 0.0.40
codegen_flags: <defaults>
</compile_context>

<pallas_src>
import jax
import jax.numpy as jnp
import numpy as np
from jax.experimental import pallas as pl
from jax.experimental.pallas import tpu as pltpu


# ----------------------------- Pallas kernel ------------------------------

def _bias_silu(y, bias):
    # y: (C_out, N) f32, bias: (C_out, 1) -> SiLU(y + bias)
    y = y + bias
    return y * jax.nn.sigmoid(y)


def _depthnet_fused_kernel(x_ref, img_ref,
                           w1_ref, b1_ref,
                           we1_ref, be1_ref,
                           we2_ref, be2_ref,
                           w3a_ref, w3b_ref, b3_ref,
                           o_ref):
    # x_ref:   (1, 3,   N)   point-cloud branch input
    # img_ref: (1, 256, N)   flattened image embedding
    # w*_ref:  BN-scale-folded 1x1 conv weights, b*_ref: folded BN biases (C_out, 1)
    # o_ref:   (1, 256, N)
    x = x_ref[0]                                # (3,   N)
    img = img_ref[0]                            # (256, N)

    # conv1: (64,3) @ (3,N)  — tiny contraction, negligible MXU work.
    x1 = _bias_silu(
        jnp.dot(w1_ref[...], x, preferred_element_type=jnp.float32), b1_ref[...])

    # e_conv1: (128,256) @ (256,N)
    emb = _bias_silu(
        jnp.dot(we1_ref[...], img, preferred_element_type=jnp.float32), be1_ref[...])
    # e_conv2: (64,128) @ (128,N)
    emb = _bias_silu(
        jnp.dot(we2_ref[...], emb, preferred_element_type=jnp.float32), be2_ref[...])

    # conv3 on concat([x1, emb]) without materializing the concat:
    #   W3 @ [x1; emb] == W3[:, :64] @ x1 + W3[:, 64:] @ emb
    y = (jnp.dot(w3a_ref[...], x1, preferred_element_type=jnp.float32)
         + jnp.dot(w3b_ref[...], emb, preferred_element_type=jnp.float32))
    y = y + b3_ref[...]
    o_ref[0] = (y * jax.nn.sigmoid(y)).astype(o_ref.dtype)


def depthnet_forward(params, out_img, x):
    """DepthNet.forward — single fused Pallas kernel.

    out_img: (B, 256, H, W) with H*W == N, x: (B, 3, N).  The final reshape to
    (B, 256, 32, 32) is hard-coded in the PyTorch module, so N must be 1024.
    """
    # TODO(synk): BatchNorm is applied in eval mode (running stats folded into
    # the conv weights); train-mode per-batch statistics are not reproduced.
    B, C_img, H, W = out_img.shape
    N = H * W
    assert x.shape == (B, 3, N)
    assert N == 1024 and C_img == 256, "module hard-codes 256 channels / 32x32"

    img_flat = out_img.reshape(B, C_img, N)

    # Fold BN scale into the conv weights (host-side, traced by XLA, trivial cost).
    def fold(block):
        w, scale, bias = block
        return w * scale, bias            # scale: (C_out,1) broadcasts over C_in

    w1, b1 = fold(params["conv1"])        # (64, 3),   (64, 1)
    we1, be1 = fold(params["e_conv1"])    # (128, 256),(128, 1)
    we2, be2 = fold(params["e_conv2"])    # (64, 128), (64, 1)
    w3, b3 = fold(params["conv3"])        # (256, 128),(256, 1)
    w3a, w3b = w3[:, :64], w3[:, 64:]     # x1-half / emb-half of conv3

    const = lambda b: (0, 0)              # weights/biases resident across grid

    y = pl.pallas_call(
        _depthnet_fused_kernel,
        out_shape=jax.ShapeDtypeStruct((B, 256, N), jnp.float32),
        grid_spec=pl.GridSpec(
            grid=(B,),
            in_specs=[
                pl.BlockSpec((1, 3, N), lambda b: (b, 0, 0)),
                pl.BlockSpec((1, C_img, N), lambda b: (b, 0, 0)),
                pl.BlockSpec((64, 3), const),
                pl.BlockSpec((64, 1), const),
                pl.BlockSpec((128, 256), const),
                pl.BlockSpec((128, 1), const),
                pl.BlockSpec((64, 128), const),
                pl.BlockSpec((64, 1), const),
                pl.BlockSpec((256, 64), const),
                pl.BlockSpec((256, 64), const),
                pl.BlockSpec((256, 1), const),
            ],
            out_specs=pl.BlockSpec((1, 256, N), lambda b: (b, 0, 0)),
        ),
        compiler_params=pltpu.CompilerParams(
            dimension_semantics=("parallel",)),   # v7x: 2 TCs, one batch each
    )(x, img_flat, w1, b1, we1, be1, we2, be2, w3a, w3b, b3)

    return y.reshape(B, 256, 32, 32)


# --------------------------- parameter set-up -----------------------------

def _init_block(key, c_in, c_out, eps=1e-5):
    """Deterministic synthetic params for one CNNBlock (Conv1d k=1 + BN1d)."""
    kw, kg, kb, km, kv = jax.random.split(key, 5)
    w = jax.random.normal(kw, (c_out, c_in), jnp.float32) / np.sqrt(c_in)
    gamma = 1.0 + 0.1 * jax.random.normal(kg, (c_out,), jnp.float32)
    beta = 0.1 * jax.random.normal(kb, (c_out,), jnp.float32)
    run_mean = 0.1 * jax.random.normal(km, (c_out,), jnp.float32)
    run_var = jnp.abs(jax.random.normal(kv, (c_out,), jnp.float32)) + 0.5
    # Fold eval-mode BatchNorm into per-channel scale/bias.
    scale = gamma / jnp.sqrt(run_var + eps)
    bias = beta - run_mean * scale
    return (w, scale.reshape(c_out, 1), bias.reshape(c_out, 1))


def init_depthnet_params(seed=0):
    keys = jax.random.split(jax.random.PRNGKey(seed), 4)
    return {
        "conv1":   _init_block(keys[0], 3, 64),
        "e_conv1": _init_block(keys[1], 256, 128),
        "e_conv2": _init_block(keys[2], 128, 64),
        "conv3":   _init_block(keys[3], 128, 256),
    }


# ------------------------- pure-JAX reference -----------------------------

def _ref_block(x, w, scale, bias):
    y = jnp.einsum("oc,bcn->bon", w, x)
    y = y * scale[None] + bias[None]
    return y * jax.nn.sigmoid(y)


def depthnet_ref(params, out_img, x):
    x1 = _ref_block(x, *params["conv1"])
    bs, di = out_img.shape[0], out_img.shape[1]
    emb = out_img.reshape(bs, di, -1)
    emb = _ref_block(emb, *params["e_conv1"])
    emb = _ref_block(emb, *params["e_conv2"])
    pointfeat = jnp.concatenate([x1, emb], axis=1)
    y = _ref_block(pointfeat, *params["conv3"])
    return y.reshape(y.shape[0], y.shape[1], 32, 32)


# --------------------------------- main ------------------------------------

if __name__ == "__main__":
    key = jax.random.PRNGKey(0)
    k_img, k_x = jax.random.split(key)

    B = 2
    # Channel counts (3, 256) and spatial size 32x32 / N=1024 are fixed by the
    # module (final reshape hard-codes (32, 32)).
    out_img = jax.random.normal(k_img, (B, 256, 32, 32), jnp.float32)
    x = jax.random.normal(k_x, (B, 3, 1024), jnp.float32)

    params = init_depthnet_params(seed=0)

    fwd = jax.jit(depthnet_forward)
    out = jax.block_until_ready(fwd(params, out_img, x))

    ref = jax.block_until_ready(depthnet_ref(params, out_img, x))
    assert out.shape == (B, 256, 32, 32), out.shape
    np.testing.assert_allclose(np.asarray(out), np.asarray(ref),
                               rtol=1e-4, atol=1e-4)

    print("KERNEL_OK")
</pallas_src>

<mosaic_0001>
module attributes {stable_mosaic.version = 11 : i64} {
  func.func @_depthnet_fused_kernel(%arg0: i32, %arg1: memref<1x3x1024xf32, #tpu.memory_space<vmem>>, %arg2: memref<1x256x1024xf32, #tpu.memory_space<vmem>>, %arg3: memref<64x3xf32, #tpu.memory_space<vmem>>, %arg4: memref<64x1xf32, #tpu.memory_space<vmem>>, %arg5: memref<128x256xf32, #tpu.memory_space<vmem>>, %arg6: memref<128x1xf32, #tpu.memory_space<vmem>>, %arg7: memref<64x128xf32, #tpu.memory_space<vmem>>, %arg8: memref<64x1xf32, #tpu.memory_space<vmem>>, %arg9: memref<256x64xf32, #tpu.memory_space<vmem>>, %arg10: memref<256x64xf32, #tpu.memory_space<vmem>>, %arg11: memref<256x1xf32, #tpu.memory_space<vmem>>, %arg12: memref<1x256x1024xf32, #tpu.memory_space<vmem>>) attributes {dimension_semantics = [#tpu.dimension_semantics<parallel>], iteration_bounds = array<i64: 2>, scalar_prefetch = 0 : i64, scratch_operands = 0 : i64, tpu.core_type = #tpu.core_type<tc>, window_params = [{transform_indices = @transform_0, window_bounds = array<i64: 1, 3, 1024>}, {transform_indices = @transform_1, window_bounds = array<i64: 1, 256, 1024>}, {pipeline_mode = #tpu.pipeline_mode<synchronous>, transform_indices = @transform_2, window_bounds = array<i64: 64, 3>}, {pipeline_mode = #tpu.pipeline_mode<synchronous>, transform_indices = @transform_3, window_bounds = array<i64: 64, 1>}, {pipeline_mode = #tpu.pipeline_mode<synchronous>, transform_indices = @transform_4, window_bounds = array<i64: 128, 256>}, {pipeline_mode = #tpu.pipeline_mode<synchronous>, transform_indices = @transform_5, window_bounds = array<i64: 128, 1>}, {pipeline_mode = #tpu.pipeline_mode<synchronous>, transform_indices = @transform_6, window_bounds = array<i64: 64, 128>}, {pipeline_mode = #tpu.pipeline_mode<synchronous>, transform_indices = @transform_7, window_bounds = array<i64: 64, 1>}, {pipeline_mode = #tpu.pipeline_mode<synchronous>, transform_indices = @transform_8, window_bounds = array<i64: 256, 64>}, {pipeline_mode = #tpu.pipeline_mode<synchronous>, transform_indices = @transform_9, window_bounds = array<i64: 256, 64>}, {pipeline_mode = #tpu.pipeline_mode<synchronous>, transform_indices = @transform_10, window_bounds = array<i64: 256, 1>}, {transform_indices = @transform_11, window_bounds = array<i64: 1, 256, 1024>}]} {
    %c0 = arith.constant 0 : index
    %c0_0 = arith.constant 0 : index
    %c0_1 = arith.constant 0 : index
    %0 = vector.load %arg1[%c0, %c0_0, %c0_1] : memref<1x3x1024xf32, #tpu.memory_space<vmem>>, vector<1x3x1024xf32>
    %1 = vector.shape_cast %0 : vector<1x3x1024xf32> to vector<3x1024xf32>
    %c0_2 = arith.constant 0 : index
    %c0_3 = arith.constant 0 : index
    %c0_4 = arith.constant 0 : index
    %2 = vector.load %arg2[%c0_2, %c0_3, %c0_4] : memref<1x256x1024xf32, #tpu.memory_space<vmem>>, vector<1x256x1024xf32>
    %3 = vector.shape_cast %2 : vector<1x256x1024xf32> to vector<256x1024xf32>
    %c0_5 = arith.constant 0 : index
    %c0_6 = arith.constant 0 : index
    %4 = vector.load %arg3[%c0_5, %c0_6] : memref<64x3xf32, #tpu.memory_space<vmem>>, vector<64x3xf32>
    %cst = arith.constant dense<0.000000e+00> : vector<64x1024xf32>
    %5 = tpu.matmul %4, %1, %cst {dimension_numbers = #tpu.dot_dimension_numbers<[1], [0], [0], [1], [0, 0, 1, 1], [], []>} : vector<64x3xf32>, vector<3x1024xf32>, vector<64x1024xf32> -> vector<64x1024xf32>
    %c0_7 = arith.constant 0 : index
    %c0_8 = arith.constant 0 : index
    %6 = vector.load %arg4[%c0_7, %c0_8] : memref<64x1xf32, #tpu.memory_space<vmem>>, vector<64x1xf32>
    %7 = vector.broadcast %6 : vector<64x1xf32> to vector<64x1024xf32>
    %8 = arith.addf %5, %7 : vector<64x1024xf32>
    %9 = arith.negf %8 : vector<64x1024xf32>
    %10 = math.exp %9 : vector<64x1024xf32>
    %cst_9 = arith.constant 1.000000e+00 : f32
    %11 = vector.broadcast %cst_9 : f32 to vector<64x1024xf32>
    %12 = arith.addf %11, %10 : vector<64x1024xf32>
    %13 = arith.divf %11, %12 : vector<64x1024xf32>
    %14 = arith.mulf %8, %13 : vector<64x1024xf32>
    %c0_10 = arith.constant 0 : index
    %c0_11 = arith.constant 0 : index
    %15 = vector.load %arg5[%c0_10, %c0_11] : memref<128x256xf32, #tpu.memory_space<vmem>>, vector<128x256xf32>
    %cst_12 = arith.constant dense<0.000000e+00> : vector<128x1024xf32>
    %16 = tpu.matmul %15, %3, %cst_12 {dimension_numbers = #tpu.dot_dimension_numbers<[1], [0], [0], [1], [0, 0, 1, 1], [], []>} : vector<128x256xf32>, vector<256x1024xf32>, vector<128x1024xf32> -> vector<128x1024xf32>
    %c0_13 = arith.constant 0 : index
    %c0_14 = arith.constant 0 : index
    %17 = vector.load %arg6[%c0_13, %c0_14] : memref<128x1xf32, #tpu.memory_space<vmem>>, vector<128x1xf32>
    %18 = vector.broadcast %17 : vector<128x1xf32> to vector<128x1024xf32>
    %19 = arith.addf %16, %18 : vector<128x1024xf32>
    %20 = arith.negf %19 : vector<128x1024xf32>
    %21 = math.exp %20 : vector<128x1024xf32>
    %cst_15 = arith.constant 1.000000e+00 : f32
    %22 = vector.broadcast %cst_15 : f32 to vector<128x1024xf32>
    %23 = arith.addf %22, %21 : vector<128x1024xf32>
    %24 = arith.divf %22, %23 : vector<128x1024xf32>
    %25 = arith.mulf %19, %24 : vector<128x1024xf32>
    %c0_16 = arith.constant 0 : index
    %c0_17 = arith.constant 0 : index
    %26 = vector.load %arg7[%c0_16, %c0_17] : memref<64x128xf32, #tpu.memory_space<vmem>>, vector<64x128xf32>
    %cst_18 = arith.constant dense<0.000000e+00> : vector<64x1024xf32>
    %27 = tpu.matmul %26, %25, %cst_18 {dimension_numbers = #tpu.dot_dimension_numbers<[1], [0], [0], [1], [0, 0, 1, 1], [], []>} : vector<64x128xf32>, vector<128x1024xf32>, vector<64x1024xf32> -> vector<64x1024xf32>
    %c0_19 = arith.constant 0 : index
    %c0_20 = arith.constant 0 : index
    %28 = vector.load %arg8[%c0_19, %c0_20] : memref<64x1xf32, #tpu.memory_space<vmem>>, vector<64x1xf32>
    %29 = vector.broadcast %28 : vector<64x1xf32> to vector<64x1024xf32>
    %30 = arith.addf %27, %29 : vector<64x1024xf32>
    %31 = arith.negf %30 : vector<64x1024xf32>
    %32 = math.exp %31 : vector<64x1024xf32>
    %cst_21 = arith.constant 1.000000e+00 : f32
    %33 = vector.broadcast %cst_21 : f32 to vector<64x1024xf32>
    %34 = arith.addf %33, %32 : vector<64x1024xf32>
    %35 = arith.divf %33, %34 : vector<64x1024xf32>
    %36 = arith.mulf %30, %35 : vector<64x1024xf32>
    %c0_22 = arith.constant 0 : index
    %c0_23 = arith.constant 0 : index
    %37 = vector.load %arg9[%c0_22, %c0_23] : memref<256x64xf32, #tpu.memory_space<vmem>>, vector<256x64xf32>
    %cst_24 = arith.constant dense<0.000000e+00> : vector<256x1024xf32>
    %38 = tpu.matmul %37, %14, %cst_24 {dimension_numbers = #tpu.dot_dimension_numbers<[1], [0], [0], [1], [0, 0, 1, 1], [], []>} : vector<256x64xf32>, vector<64x1024xf32>, vector<256x1024xf32> -> vector<256x1024xf32>
    %c0_25 = arith.constant 0 : index
    %c0_26 = arith.constant 0 : index
    %39 = vector.load %arg10[%c0_25, %c0_26] : memref<256x64xf32, #tpu.memory_space<vmem>>, vector<256x64xf32>
    %cst_27 = arith.constant dense<0.000000e+00> : vector<256x1024xf32>
    %40 = tpu.matmul %39, %36, %cst_27 {dimension_numbers = #tpu.dot_dimension_numbers<[1], [0], [0], [1], [0, 0, 1, 1], [], []>} : vector<256x64xf32>, vector<64x1024xf32>, vector<256x1024xf32> -> vector<256x1024xf32>
    %41 = arith.addf %38, %40 : vector<256x1024xf32>
    %c0_28 = arith.constant 0 : index
    %c0_29 = arith.constant 0 : index
    %42 = vector.load %arg11[%c0_28, %c0_29] : memref<256x1xf32, #tpu.memory_space<vmem>>, vector<256x1xf32>
    %43 = vector.broadcast %42 : vector<256x1xf32> to vector<256x1024xf32>
    %44 = arith.addf %41, %43 : vector<256x1024xf32>
    %45 = arith.negf %44 : vector<256x1024xf32>
    %46 = math.exp %45 : vector<256x1024xf32>
    %cst_30 = arith.constant 1.000000e+00 : f32
    %47 = vector.broadcast %cst_30 : f32 to vector<256x1024xf32>
    %48 = arith.addf %47, %46 : vector<256x1024xf32>
    %49 = arith.divf %47, %48 : vector<256x1024xf32>
    %50 = arith.mulf %44, %49 : vector<256x1024xf32>
    %c0_31 = arith.constant 0 : index
    %c0_32 = arith.constant 0 : index
    %c0_33 = arith.constant 0 : index
    %51 = vector.load %arg12[%c0_31, %c0_32, %c0_33] : memref<1x256x1024xf32, #tpu.memory_space<vmem>>, vector<1x256x1024xf32>
    %52 = vector.shape_cast %51 : vector<1x256x1024xf32> to vector<256x1024xf32>
    %53 = vector.shape_cast %50 : vector<256x1024xf32> to vector<1x256x1024xf32>
    tpu.vector_store %arg12[%c0_31, %c0_32, %c0_33], %53 {strides = array<i32>} : memref<1x256x1024xf32, #tpu.memory_space<vmem>>, vector<1x256x1024xf32>,
    return
  }
  func.func @transform_0(%arg0: i32) -> (i32, i32, i32) {
    %c0_i32 = arith.constant 0 : i32
    %c0_i32_0 = arith.constant 0 : i32
    %c0_i32_1 = arith.constant 0 : i32
    return %arg0, %c0_i32, %c0_i32_0 : i32, i32, i32
  }
  func.func @transform_1(%arg0: i32) -> (i32, i32, i32) {
    %c0_i32 = arith.constant 0 : i32
    %c0_i32_0 = arith.constant 0 : i32
    %c0_i32_1 = arith.constant 0 : i32
    return %arg0, %c0_i32, %c0_i32_0 : i32, i32, i32
  }
  func.func @transform_2(%arg0: i32) -> (i32, i32) {
    %c0_i32 = arith.constant 0 : i32
    %c0_i32_0 = arith.constant 0 : i32
    %c0_i32_1 = arith.constant 0 : i32
    return %c0_i32, %c0_i32_0 : i32, i32
  }
  func.func @transform_3(%arg0: i32) -> (i32, i32) {
    %c0_i32 = arith.constant 0 : i32
    %c0_i32_0 = arith.constant 0 : i32
    %c0_i32_1 = arith.constant 0 : i32
    return %c0_i32, %c0_i32_0 : i32, i32
  }
  func.func @transform_4(%arg0: i32) -> (i32, i32) {
    %c0_i32 = arith.constant 0 : i32
    %c0_i32_0 = arith.constant 0 : i32
    %c0_i32_1 = arith.constant 0 : i32
    return %c0_i32, %c0_i32_0 : i32, i32
  }
  func.func @transform_5(%arg0: i32) -> (i32, i32) {
    %c0_i32 = arith.constant 0 : i32
    %c0_i32_0 = arith.constant 0 : i32
    %c0_i32_1 = arith.constant 0 : i32
    return %c0_i32, %c0_i32_0 : i32, i32
  }
  func.func @transform_6(%arg0: i32) -> (i32, i32) {
    %c0_i32 = arith.constant 0 : i32
    %c0_i32_0 = arith.constant 0 : i32
    %c0_i32_1 = arith.constant 0 : i32
    return %c0_i32, %c0_i32_0 : i32, i32
  }
  func.func @transform_7(%arg0: i32) -> (i32, i32) {
    %c0_i32 = arith.constant 0 : i32
    %c0_i32_0 = arith.constant 0 : i32
    %c0_i32_1 = arith.constant 0 : i32
    return %c0_i32, %c0_i32_0 : i32, i32
  }
  func.func @transform_8(%arg0: i32) -> (i32, i32) {
    %c0_i32 = arith.constant 0 : i32
    %c0_i32_0 = arith.constant 0 : i32
    %c0_i32_1 = arith.constant 0 : i32
    return %c0_i32, %c0_i32_0 : i32, i32
  }
  func.func @transform_9(%arg0: i32) -> (i32, i32) {
    %c0_i32 = arith.constant 0 : i32
    %c0_i32_0 = arith.constant 0 : i32
    %c0_i32_1 = arith.constant 0 : i32
    return %c0_i32, %c0_i32_0 : i32, i32
  }
  func.func @transform_10(%arg0: i32) -> (i32, i32) {
    %c0_i32 = arith.constant 0 : i32
    %c0_i32_0 = arith.constant 0 : i32
    %c0_i32_1 = arith.constant 0 : i32
    return %c0_i32, %c0_i32_0 : i32, i32
  }
  func.func @transform_11(%arg0: i32) -> (i32, i32, i32) {
    %c0_i32 = arith.constant 0 : i32
    %c0_i32_0 = arith.constant 0 : i32
    %c0_i32_1 = arith.constant 0 : i32
    return %arg0, %c0_i32, %c0_i32_0 : i32, i32, i32
  }
}

</mosaic_0001>

<bundles_post_ra>
// kernel: depthnet_forward.1
= control target key start
LH: loop header
LB: loop body
LE: loop exit
PB: predicated region body
PF: predicated region fallthrough
CT: control target
= control target key end

     0   :  { %s12166_s17 = smov 0   ;;  %s18913_s0 = inlined_call_operand.vmem [shape: f32[2,3,1024], index: 0, kind: input, shape index: {}]   ;;  %s18914_s1 = inlined_call_operand.vmem [shape: f32[2,256,1024], index: 1, kind: input, shape index: {}]   ;;  %s18915_s2 = inlined_call_operand.vmem [shape: f32[64,3], index: 2, kind: input, shape index: {}]   ;;  %s18916_s3 = inlined_call_operand.vmem [shape: f32[64,1], index: 3, kind: input, shape index: {}]   ;;  %s18917_s4 = inlined_call_operand.vmem [shape: f32[128,256], index: 4, kind: input, shape index: {}]   ;;  %s18918_s5 = inlined_call_operand.vmem [shape: f32[128,1], index: 5, kind: input, shape index: {}]   ;;  %s18919_s6 = inlined_call_operand.vmem [shape: f32[64,128], index: 6, kind: input, shape index: {}]   ;;  %s18920_s7 = inlined_call_operand.vmem [shape: f32[64,1], index: 7, kind: input, shape index: {}]   ;;  %s18921_s8 = inlined_call_operand.vmem [shape: f32[256,64], index: 8, kind: input, shape index: {}]   ;;  %s18922_s9 = inlined_call_operand.vmem [shape: f32[256,64], index: 9, kind: input, shape index: {}]   ;;  %s18923_s10 = inlined_call_operand.vmem [shape: f32[256,1], index: 10, kind: input, shape index: {}]   ;;  %s18924_s11 = inlined_call_operand.vmem [shape: f32[2,256,1024], index: 11, kind: output, shape index: {}]  }
   0x1 LB: > { %s9173_s18 = sadd.s32 4294967295, %s12102_s17   ;;  %p9177_p0 = scmp.ge.s32.totalorder %s12102_s17, 1  ;;  %s12102_s17 = sphi %s12166_s17, %s21_s17  }
   0x2   : > { %p347_p1 = scmp.lt.s32.totalorder %s12102_s17, 3 }
   0x4   : > { %p348_p2 = pnand %p9177_p0, %p347_p1 }
   0x6   : > { %351 = sbr.rel (%p348_p2) target bundleno = 1808 (0x710), region = 64 }
   0xb   : > { %p392_p3 = scmp.lt.s32.totalorder %s9173_s18, 1  ;;  %v18925_v0 = vmov 0.0   ;;  %v1718_v1 = vld [vmem:[%s18918_s5 + $0x68] sm:$0xff]  ;;  %v12105_v2 = vmov 0   ;;  %v1720_v3 = vld [vmem:[%s18918_s5 + $0x78] sm:$0xff]  ;;  %v1717_v4 = vld [vmem:[%s18918_s5 + $0x60] sm:$0xff] }
   0xc   : > { %837 = vmatprep.mubr.f32.mxu0 %v18925_v0  ;;  %950 = vmatprep.mubr.f32.mxu1 %v18925_v0  ;;  %v1719_v5 = vld [vmem:[%s18918_s5 + $0x70] sm:$0xff]  ;;  %vm756_vm0 = vcmask 1042432   ;;  %v12197_v12 = vld [vmem:[%s18915_s2] sm:$0xff]  ;;  %vm731_vm1 = vcmask 23552   ;;  %v1716_v14 = vld [vmem:[%s18918_s5 + $0x58] sm:$0xff]  ;;  %vm4361_vm2 = vcmask 523264  }
   0xd   : > { %s20302_s18 = smov (!%p392_p3, %s9173_s18), 1  ;;  %10008 = vset.pattern.permute.xlu1 %v12105_v2  ;;  %10007 = vset.pattern.permute.xlu0 %v12105_v2  ;;  %v1715_v13 = vld [vmem:[%s18918_s5 + $0x50] sm:$0xff]  ;;  %v12218_v17 = vld [vmem:[%s18915_s2 + $0x8] sm:$0xff]  ;;  %v1713_v18 = vld [vmem:[%s18918_s5 + $0x40] sm:$0xff] }
   0xe   : > { %1788 = vperm.xlu1 %10008, %v1718_v1   ;;  %1798 = vperm.xlu0 %10007, %v1720_v3   ;;  %s9994_s23 = sshll.u32 %s20302_s18, 5  ;;  %s9995_s22 = sshll.u32 %s20302_s18, 11  ;;  %v1714_v19 = vld [vmem:[%s18918_s5 + $0x48] sm:$0xff]  ;;  %v12245_v20 = vld [vmem:[%s18915_s2 + $0x10] sm:$0xff]  ;;  %v1712_v22 = vld [vmem:[%s18918_s5 + $0x38] sm:$0xff] }
   0xf   : > { %s396_s30 = scalar_lea.vmem %s18913_s0, %s9994_s23  ;;  %s12238_s29 = scalar_lea.vmem %s18914_s1, %s9995_s22  ;;  %v1711_v21 = vld [vmem:[%s18918_s5 + $0x30] sm:$0xff]  ;;  %v12266_v25 = vld [vmem:[%s18915_s2 + $0x18] sm:$0xff]  ;;  %v1709_v26 = vld [vmem:[%s18918_s5 + $0x20] sm:$0xff] }
  0x10   : > { %v407_v6 = vld [vmem:[%s396_s30] sm:$0x77]  ;;  %v408_v7 = vld [vmem:[%s396_s30 + $0x8] sm:$0x77]  ;;  %v409_v10 = vld [vmem:[%s396_s30 + $0x10] sm:$0x77]  ;;  %s17111_s23 = scalar_lea.vmem %s18924_s11, %s9995_s22 }
  0x11   : > { %v727_v8 = vcombine.high %v407_v6, %v407_v6  ;;  %v728_v9 = vcombine.high %v408_v7, %v408_v7  ;;  %v410_v11 = vld [vmem:[%s396_s30 + $0x18] sm:$0x77]  ;;  %v729_v15 = vcombine.high %v409_v10, %v409_v10  ;;  %v532_v23 = vld [vmem:[%s12238_s29 + $0x3c8] sm:$0xff]  ;;  %v12283_v28 = vld [vmem:[%s18915_s2 + $0x20] sm:$0xff] }
  0x12   : > { %1783 = vperm.xlu1 %10008, %v1717_v4   ;;  %1793 = vperm.xlu0 %10007, %v1719_v5   ;;  %v730_v16 = vcombine.high %v410_v11, %v410_v11  ;;  %v534_v24 = vld [vmem:[%s12238_s29 + $0x3d8] sm:$0xff]  ;;  %v1710_v27 = vld [vmem:[%s18918_s5 + $0x28] sm:$0xff]  ;;  %v1707_v29 = vld [vmem:[%s18918_s5 + $0x10] sm:$0xff] }
  0x13   : > { %9184 = vmatprep.subr.msk.mxu0 %vm756_vm0, %v727_v8  ;;  %9194 = vmatprep.subr.msk.mxu1 %vm756_vm0, %v728_v9  ;;  %v1708_v30 = vld [vmem:[%s18918_s5 + $0x18] sm:$0xff]  ;;  %v12300_v31 = vld [vmem:[%s18915_s2 + $0x28] sm:$0xff]  ;;  %v1705_v32 = vld [vmem:[%s18918_s5] sm:$0xff] }
  0x14   : > { %9185 = vmatpush1.msk.msra.mxu0 %vm756_vm0, %v407_v6  ;;  %9195 = vmatpush1.msk.msra.mxu1 %vm756_vm0, %v408_v7  ;;  %v1706_v33 = vld [vmem:[%s18918_s5 + $0x8] sm:$0xff]  ;;  %v12317_v34 = vld [vmem:[%s18915_s2 + $0x30] sm:$0xff]  ;;  %v3356_v36 = vld [vmem:[%s18920_s7 + $0x38] sm:$0xff] }
  0x15   : > { %9186 = vmatmul.mubr.msk.f32.vlgmr.msra.gmra.mxu0 %vm731_vm1, %v12197_v12  ;;  %9196 = vmatmul.mubr.msk.f32.vlgmr.msra.gmra.mxu1 %vm731_vm1, %v12197_v12  ;;  %v3355_v35 = vld [vmem:[%s18920_s7 + $0x30] sm:$0xff]  ;;  %v12334_v37 = vld [vmem:[%s18915_s2 + $0x38] sm:$0xff]  ;;  %v3353_v38 = vld [vmem:[%s18920_s7 + $0x20] sm:$0xff] }
  0x16   : > { %843 = vmatprep.mubr.f32.mxu0 %v18925_v0  ;;  %956 = vmatprep.mubr.f32.mxu1 %v18925_v0  ;;  %v3354_v39 = vld [vmem:[%s18920_s7 + $0x28] sm:$0xff]  ;;  %v531_v40 = vld [vmem:[%s12238_s29 + $0x3c0] sm:$0xff]  ;;  %v533_v41 = vld [vmem:[%s12238_s29 + $0x3d0] sm:$0xff] }
  0x17   : > { %1773 = vperm.xlu1 %10008, %v1715_v13   ;;  %1778 = vperm.xlu0 %10007, %v1716_v14   ;;  %v524_v42 = vld [vmem:[%s12238_s29 + $0x388] sm:$0xff]  ;;  %v526_v43 = vld [vmem:[%s12238_s29 + $0x398] sm:$0xff]  ;;  %v523_v44 = vld [vmem:[%s12238_s29 + $0x380] sm:$0xff] }
  0x18   : > { %9204 = vmatprep.subr.msk.mxu0 %vm756_vm0, %v729_v15  ;;  %9214 = vmatprep.subr.msk.mxu1 %vm756_vm0, %v730_v16  ;;  %v525_v45 = vld [vmem:[%s12238_s29 + $0x390] sm:$0xff]  ;;  %v516_v46 = vld [vmem:[%s12238_s29 + $0x348] sm:$0xff]  ;;  %v518_v47 = vld [vmem:[%s12238_s29 + $0x358] sm:$0xff] }
  0x19   : > { %9187 = vmatmul.mubr.msk.f32.gmra.mxu0 %vm731_vm1, %v12218_v17  ;;  %9197 = vmatmul.mubr.msk.f32.gmra.mxu1 %vm731_vm1, %v12218_v17  ;;  %v515_v48 = vld [vmem:[%s12238_s29 + $0x340] sm:$0xff]  ;;  %v517_v49 = vld [vmem:[%s12238_s29 + $0x350] sm:$0xff]  ;;  %v508_v50 = vld [vmem:[%s12238_s29 + $0x308] sm:$0xff] }
  0x1a   : > { %849 = vmatprep.mubr.f32.mxu0 %v18925_v0  ;;  %962 = vmatprep.mubr.f32.mxu1 %v18925_v0  ;;  %v510_v51 = vld [vmem:[%s12238_s29 + $0x318] sm:$0xff]  ;;  %v507_v52 = vld [vmem:[%s12238_s29 + $0x300] sm:$0xff]  ;;  %v509_v53 = vld [vmem:[%s12238_s29 + $0x310] sm:$0xff] }
  0x1b   : > { %1763 = vperm.xlu1 %10008, %v1713_v18   ;;  %1768 = vperm.xlu0 %10007, %v1714_v19   ;;  %v500_v54 = vld [vmem:[%s12238_s29 + $0x2c8] sm:$0xff]  ;;  %v502_v55 = vld [vmem:[%s12238_s29 + $0x2d8] sm:$0xff]  ;;  %v499_v56 = vld [vmem:[%s12238_s29 + $0x2c0] sm:$0xff] }
  0x1c   : > { %9205 = vmatpush1.msk.msra.mxu0 %vm756_vm0, %v409_v10  ;;  %9215 = vmatpush1.msk.msra.mxu1 %vm756_vm0, %v410_v11  ;;  %v501_v57 = vld [vmem:[%s12238_s29 + $0x2d0] sm:$0xff]  ;;  %v492_v58 = vld [vmem:[%s12238_s29 + $0x288] sm:$0xff]  ;;  %v494_v59 = vld [vmem:[%s12238_s29 + $0x298] sm:$0xff] }
  0x1d   : > { %9188 = vmatmul.mubr.msk.f32.gmra.mxu0 %vm731_vm1, %v12245_v20  ;;  %9198 = vmatmul.mubr.msk.f32.gmra.mxu1 %vm731_vm1, %v12245_v20  ;;  %v491_v60 = vld [vmem:[%s12238_s29 + $0x280] sm:$0xff]  ;;  %v493_v61 = vld [vmem:[%s12238_s29 + $0x290] sm:$0xff]  ;;  %v484_v62 = vld [vmem:[%s12238_s29 + $0x248] sm:$0xff] }
  0x1e   : > { %855 = vmatprep.mubr.f32.mxu0 %v18925_v0  ;;  %968 = vmatprep.mubr.f32.mxu1 %v18925_v0  ;;  %v486_v63 = vld [vmem:[%s12238_s29 + $0x258] sm:$0xff]  ;;  %v483_v1 = vld [vmem:[%s12238_s29 + $0x240] sm:$0xff]  ;;  %v485_v2 = vld [vmem:[%s12238_s29 + $0x250] sm:$0xff] }
  0x1f   : > { %1753 = vperm.xlu1 %10008, %v1711_v21   ;;  %1758 = vperm.xlu0 %10007, %v1712_v22   ;;  %v476_v3 = vld [vmem:[%s12238_s29 + $0x208] sm:$0xff]  ;;  %v478_v4 = vld [vmem:[%s12238_s29 + $0x218] sm:$0xff]  ;;  %v475_v5 = vld [vmem:[%s12238_s29 + $0x200] sm:$0xff] }
  0x20   : > { %1801 = vmatprep.subr.mxu0 %v532_v23  ;;  %1962 = vmatprep.subr.mxu1 %v534_v24  ;;  %v477_v6 = vld [vmem:[%s12238_s29 + $0x210] sm:$0xff]  ;;  %v468_v7 = vld [vmem:[%s12238_s29 + $0x1c8] sm:$0xff]  ;;  %v470_v8 = vld [vmem:[%s12238_s29 + $0x1d8] sm:$0xff] }
  0x21   : > { %9189 = vmatmul.mubr.msk.f32.gmra.mxu0 %vm731_vm1, %v12266_v25  ;;  %9199 = vmatmul.mubr.msk.f32.gmra.mxu1 %vm731_vm1, %v12266_v25  ;;  %v467_v9 = vld [vmem:[%s12238_s29 + $0x1c0] sm:$0xff]  ;;  %v469_v10 = vld [vmem:[%s12238_s29 + $0x1d0] sm:$0xff]  ;;  %v462_v13 = vld [vmem:[%s12238_s29 + $0x198] sm:$0xff] }
  0x22   : > { %861 = vmatprep.mubr.f32.mxu0 %v18925_v0  ;;  %974 = vmatprep.mubr.f32.mxu1 %v18925_v0  ;;  %v3351_v11 = vld [vmem:[%s18920_s7 + $0x10] sm:$0xff]  ;;  %v459_v14 = vld [vmem:[%s12238_s29 + $0x180] sm:$0xff]  ;;  %v452_v16 = vld [vmem:[%s12238_s29 + $0x148] sm:$0xff] }
  0x23   : > { %1743 = vperm.xlu1 %10008, %v1709_v26   ;;  %1748 = vperm.xlu0 %10007, %v1710_v27   ;;  %v461_v15 = vld [vmem:[%s12238_s29 + $0x190] sm:$0xff]  ;;  %v451_v18 = vld [vmem:[%s12238_s29 + $0x140] sm:$0xff]  ;;  %v3352_v21 = vld [vmem:[%s18920_s7 + $0x18] sm:$0xff] }
  0x24   : > { %v453_v19 = vld [vmem:[%s12238_s29 + $0x150] sm:$0xff]  ;;  %v444_v22 = vld [vmem:[%s12238_s29 + $0x108] sm:$0xff]  ;;  %v446_v23 = vld [vmem:[%s12238_s29 + $0x118] sm:$0xff] }
  0x25   : > { %9190 = vmatmul.mubr.msk.f32.gmra.mxu0 %vm731_vm1, %v12283_v28  ;;  %9200 = vmatmul.mubr.msk.f32.gmra.mxu1 %vm731_vm1, %v12283_v28  ;;  %v443_v24 = vld [vmem:[%s12238_s29 + $0x100] sm:$0xff]  ;;  %v436_v26 = vld [vmem:[%s12238_s29 + $0xc8] sm:$0xff]  ;;  %v438_v27 = vld [vmem:[%s12238_s29 + $0xd8] sm:$0xff] }
  0x26   : > { %867 = vmatprep.mubr.f32.mxu0 %v18925_v0  ;;  %980 = vmatprep.mubr.f32.mxu1 %v18925_v0 }
  0x27   : > { %1733 = vperm.xlu1 %10008, %v1707_v29   ;;  %1738 = vperm.xlu0 %10007, %v1708_v30   ;;  %v437_v29 = vld [vmem:[%s12238_s29 + $0xd0] sm:$0xff]  ;;  %v3350_v30 = vld [vmem:[%s18920_s7 + $0x8] sm:$0xff] }
  0x29   : > { %9191 = vmatmul.mubr.msk.f32.gmra.mxu0 %vm731_vm1, %v12300_v31  ;;  %9201 = vmatmul.mubr.msk.f32.gmra.mxu1 %vm731_vm1, %v12300_v31 }
  0x2a   : > { %873 = vmatprep.mubr.f32.mxu0 %v18925_v0  ;;  %986 = vmatprep.mubr.f32.mxu1 %v18925_v0 }
  0x2b   : > { %1723 = vperm.xlu1 %10008, %v1705_v32   ;;  %1728 = vperm.xlu0 %10007, %v1706_v33   ;;  %v428_v32 = vld [vmem:[%s12238_s29 + $0x88] sm:$0xff]  ;;  %v430_v33 = vld [vmem:[%s12238_s29 + $0x98] sm:$0xff] }
  0x2d   : > { %9192 = vmatmul.mubr.msk.f32.gmra.mxu0 %vm731_vm1, %v12317_v34  ;;  %9202 = vmatmul.mubr.msk.f32.gmra.mxu1 %vm731_vm1, %v12317_v34 }
  0x2e   : > { %879 = vmatprep.mubr.f32.mxu0 %v18925_v0  ;;  %992 = vmatprep.mubr.f32.mxu1 %v18925_v0 }
  0x2f   : > { %3389 = vperm.xlu1 %10008, %v3355_v35   ;;  %3394 = vperm.xlu0 %10007, %v3356_v36   ;;  %v427_v35 = vld [vmem:[%s12238_s29 + $0x80] sm:$0xff]  ;;  %v429_v36 = vld [vmem:[%s12238_s29 + $0x90] sm:$0xff] }
  0x31   : > { %9193 = vmatmul.mubr.msk.f32.gmra.mxu0 %vm731_vm1, %v12334_v37  ;;  %9203 = vmatmul.mubr.msk.f32.gmra.mxu1 %vm731_vm1, %v12334_v37 }
  0x32   : > { %1063 = vmatprep.mubr.f32.mxu0 %v18925_v0  ;;  %1176 = vmatprep.mubr.f32.mxu1 %v18925_v0 }
  0x33   : > { %3379 = vperm.xlu1 %10008, %v3353_v38   ;;  %3384 = vperm.xlu0 %10007, %v3354_v39   ;;  %v420_v38 = vld [vmem:[%s12238_s29 + $0x48] sm:$0xff]  ;;  %v422_v39 = vld [vmem:[%s12238_s29 + $0x58] sm:$0xff] }
  0x35   : > { %9206 = vmatmul.mubr.msk.f32.vlgmr.msra.gmra.mxu0 %vm731_vm1, %v12197_v12  ;;  %9216 = vmatmul.mubr.msk.f32.vlgmr.msra.gmra.mxu1 %vm731_vm1, %v12197_v12  ;;  %v460_v12 = vld [vmem:[%s12238_s29 + $0x188] sm:$0xff] }
  0x36   : > { %1802 = vmatpush1.msra.mxu0 %v531_v40  ;;  %1963 = vmatpush1.msra.mxu1 %v533_v41  ;;  %v421_v40 = vld [vmem:[%s12238_s29 + $0x50] sm:$0xff]  ;;  %v682_v41 = vld [vmem:[%s18916_s3 + $0x38] sm:$0xff] }
  0x37   : > { %1803 = vmatprep.subr.mxu0 %v524_v42  ;;  %1964 = vmatprep.subr.mxu1 %v526_v43  ;;  %v679_v42 = vld [vmem:[%s18916_s3 + $0x20] sm:$0xff]  ;;  %v412_v43 = vld [vmem:[%s12238_s29 + $0x8] sm:$0xff] }
  0x38   : > { %1804 = vmatpush1.msra.mxu0 %v523_v44  ;;  %1965 = vmatpush1.msra.mxu1 %v525_v45  ;;  %v414_v44 = vld [vmem:[%s12238_s29 + $0x18] sm:$0xff]  ;;  %v411_v45 = vld [vmem:[%s12238_s29] sm:$0xff] }
  0x39   : > { %1069 = vmatprep.mubr.f32.mxu0 %v18925_v0  ;;  %1182 = vmatprep.mubr.f32.mxu1 %v18925_v0 }
  0x3a   : > { %1805 = vmatprep.subr.mxu0 %v516_v46  ;;  %1966 = vmatprep.subr.mxu1 %v518_v47  ;;  %v413_v46 = vld [vmem:[%s12238_s29 + $0x10] sm:$0xff]  ;;  %v660_v47 = vld [vmem:[%s12238_s29 + $0x7c8] sm:$0xff] }
  0x3b   : > { %9207 = vmatmul.mubr.msk.f32.gmra.mxu0 %vm731_vm1, %v12218_v17  ;;  %9217 = vmatmul.mubr.msk.f32.gmra.mxu1 %vm731_vm1, %v12218_v17  ;;  %v454_v17 = vld [vmem:[%s12238_s29 + $0x158] sm:$0xff] }
  0x3c   : > { %1806 = vmatpush1.msra.mxu0 %v515_v48  ;;  %1967 = vmatpush1.msra.mxu1 %v517_v49  ;;  %v662_v48 = vld [vmem:[%s12238_s29 + $0x7d8] sm:$0xff]  ;;  %v659_v49 = vld [vmem:[%s12238_s29 + $0x7c0] sm:$0xff] }
  0x3d   : > { %1807 = vmatprep.subr.mxu0 %v508_v50  ;;  %1968 = vmatprep.subr.mxu1 %v510_v51  ;;  %v661_v50 = vld [vmem:[%s12238_s29 + $0x7d0] sm:$0xff] }
  0x3e   : > { %1808 = vmatpush1.msra.mxu0 %v507_v52  ;;  %1969 = vmatpush1.msra.mxu1 %v509_v53  ;;  %v677_v51 = vld [vmem:[%s18916_s3 + $0x10] sm:$0xff]  ;;  %v652_v52 = vld [vmem:[%s12238_s29 + $0x788] sm:$0xff]  ;;  %v654_v53 = vld [vmem:[%s12238_s29 + $0x798] sm:$0xff] }
  0x3f   : > { %1075 = vmatprep.mubr.f32.mxu0 %v18925_v0  ;;  %1188 = vmatprep.mubr.f32.mxu1 %v18925_v0 }
  0x40   : > { %1809 = vmatprep.subr.mxu0 %v500_v54  ;;  %1970 = vmatprep.subr.mxu1 %v502_v55  ;;  %v651_v54 = vld [vmem:[%s12238_s29 + $0x780] sm:$0xff]  ;;  %v653_v55 = vld [vmem:[%s12238_s29 + $0x790] sm:$0xff] }
  0x41   : > { %9208 = vmatmul.mubr.msk.f32.gmra.mxu0 %vm731_vm1, %v12245_v20  ;;  %9218 = vmatmul.mubr.msk.f32.gmra.mxu1 %vm731_vm1, %v12245_v20  ;;  %v3349_v20 = vld [vmem:[%s18920_s7] sm:$0xff] }
  0x42   : > { %1810 = vmatpush1.msra.mxu0 %v499_v56  ;;  %1971 = vmatpush1.msra.mxu1 %v501_v57  ;;  %v644_v56 = vld [vmem:[%s12238_s29 + $0x748] sm:$0xff]  ;;  %v646_v57 = vld [vmem:[%s12238_s29 + $0x758] sm:$0xff] }
  0x43   : > { %1811 = vmatprep.subr.mxu0 %v492_v58  ;;  %1972 = vmatprep.subr.mxu1 %v494_v59  ;;  %v643_v58 = vld [vmem:[%s12238_s29 + $0x740] sm:$0xff]  ;;  %v645_v59 = vld [vmem:[%s12238_s29 + $0x750] sm:$0xff] }
  0x44   : > { %1812 = vmatpush1.msra.mxu0 %v491_v60  ;;  %1973 = vmatpush1.msra.mxu1 %v493_v61  ;;  %v678_v60 = vld [vmem:[%s18916_s3 + $0x18] sm:$0xff]  ;;  %v675_v61 = vld [vmem:[%s18916_s3] sm:$0xff] }
  0x45   : > { %1081 = vmatprep.mubr.f32.mxu0 %v18925_v0  ;;  %1194 = vmatprep.mubr.f32.mxu1 %v18925_v0 }
  0x46   : > { %1813 = vmatprep.subr.mxu0 %v484_v62  ;;  %1974 = vmatprep.subr.mxu1 %v486_v63  ;;  %v636_v62 = vld [vmem:[%s12238_s29 + $0x708] sm:$0xff]  ;;  %v638_v63 = vld [vmem:[%s12238_s29 + $0x718] sm:$0xff] }
  0x47   : > { %9209 = vmatmul.mubr.msk.f32.gmra.mxu0 %vm731_vm1, %v12266_v25  ;;  %9219 = vmatmul.mubr.msk.f32.gmra.mxu1 %vm731_vm1, %v12266_v25  ;;  %v445_v25 = vld [vmem:[%s12238_s29 + $0x110] sm:$0xff] }
  0x48   : > { %1814 = vmatpush1.msra.mxu0 %v483_v1  ;;  %1975 = vmatpush1.msra.mxu1 %v485_v2  ;;  %v635_v1 = vld [vmem:[%s12238_s29 + $0x700] sm:$0xff]  ;;  %v637_v2 = vld [vmem:[%s12238_s29 + $0x710] sm:$0xff] }
  0x49   : > { %1815 = vmatprep.subr.mxu0 %v476_v3  ;;  %1976 = vmatprep.subr.mxu1 %v478_v4  ;;  %v628_v3 = vld [vmem:[%s12238_s29 + $0x6c8] sm:$0xff]  ;;  %v630_v4 = vld [vmem:[%s12238_s29 + $0x6d8] sm:$0xff] }
  0x4a   : > { %1816 = vmatpush1.msra.mxu0 %v475_v5  ;;  %1977 = vmatpush1.msra.mxu1 %v477_v6  ;;  %v627_v5 = vld [vmem:[%s12238_s29 + $0x6c0] sm:$0xff]  ;;  %v629_v6 = vld [vmem:[%s12238_s29 + $0x6d0] sm:$0xff] }
  0x4b   : > { %1087 = vmatprep.mubr.f32.mxu0 %v18925_v0  ;;  %1200 = vmatprep.mubr.f32.mxu1 %v18925_v0 }
  0x4c   : > { %1817 = vmatprep.subr.mxu0 %v468_v7  ;;  %1978 = vmatprep.subr.mxu1 %v470_v8  ;;  %v676_v7 = vld [vmem:[%s18916_s3 + $0x8] sm:$0xff] }
  0x4d   : > { %9210 = vmatmul.mubr.msk.f32.gmra.mxu0 %vm731_vm1, %v12283_v28  ;;  %9220 = vmatmul.mubr.msk.f32.gmra.mxu1 %vm731_vm1, %v12283_v28  ;;  %v435_v28 = vld [vmem:[%s12238_s29 + $0xc0] sm:$0xff]  ;;  %v620_v8 = vld [vmem:[%s12238_s29 + $0x688] sm:$0xff] }
  0x4e   : > { %1818 = vmatpush1.msra.mxu0 %v467_v9  ;;  %1979 = vmatpush1.msra.mxu1 %v469_v10  ;;  %v622_v9 = vld [vmem:[%s12238_s29 + $0x698] sm:$0xff]  ;;  %v619_v10 = vld [vmem:[%s12238_s29 + $0x680] sm:$0xff] }
  0x4f   : > { %3369 = vperm.xlu1 %10008, %v3351_v11   ;;  %1819 = vmatprep.subr.mxu0 %v460_v12  ;;  %v621_v11 = vld [vmem:[%s12238_s29 + $0x690] sm:$0xff]  ;;  %v612_v12 = vld [vmem:[%s12238_s29 + $0x648] sm:$0xff] }
  0x50   : > { %1980 = vmatprep.subr.mxu1 %v462_v13  ;;  %1820 = vmatpush1.msra.mxu0 %v459_v14  ;;  %v614_v13 = vld [vmem:[%s12238_s29 + $0x658] sm:$0xff]  ;;  %v611_v14 = vld [vmem:[%s12238_s29 + $0x640] sm:$0xff] }
  0x51   : > { %1981 = vmatpush1.msra.mxu1 %v461_v15  ;;  %1093 = vmatprep.mubr.f32.mxu0 %v18925_v0  ;;  %v613_v15 = vld [vmem:[%s12238_s29 + $0x650] sm:$0xff] }
  0x52   : > { %1206 = vmatprep.mubr.f32.mxu1 %v18925_v0  ;;  %1821 = vmatprep.subr.mxu0 %v452_v16  ;;  %v604_v16 = vld [vmem:[%s12238_s29 + $0x608] sm:$0xff] }
  0x53   : > { %1982 = vmatprep.subr.mxu1 %v454_v17  ;;  %9211 = vmatmul.mubr.msk.f32.gmra.mxu0 %vm731_vm1, %v12300_v31  ;;  %v606_v17 = vld [vmem:[%s12238_s29 + $0x618] sm:$0xff] }
  0x54   : > { %9221 = vmatmul.mubr.msk.f32.gmra.mxu1 %vm731_vm1, %v12300_v31  ;;  %1822 = vmatpush1.msra.mxu0 %v451_v18  ;;  %v681_v31 = vld [vmem:[%s18916_s3 + $0x30] sm:$0xff]  ;;  %v603_v18 = vld [vmem:[%s12238_s29 + $0x600] sm:$0xff] }
  0x55   : > { %1983 = vmatpush1.msra.mxu1 %v453_v19  ;;  %3359 = vperm.xlu1 %10008, %v3349_v20   ;;  %v605_v19 = vld [vmem:[%s12238_s29 + $0x610] sm:$0xff]  ;;  %v596_v20 = vld [vmem:[%s12238_s29 + $0x5c8] sm:$0xff] }
  0x56   : > { %3374 = vperm.xlu0 %10007, %v3352_v21   ;;  %1823 = vmatprep.subr.mxu0 %v444_v22  ;;  %v598_v21 = vld [vmem:[%s12238_s29 + $0x5d8] sm:$0xff]  ;;  %v595_v22 = vld [vmem:[%s12238_s29 + $0x5c0] sm:$0xff] }
  0x57   : > { %1984 = vmatprep.subr.mxu1 %v446_v23  ;;  %1824 = vmatpush1.msra.mxu0 %v443_v24  ;;  %v597_v23 = vld [vmem:[%s12238_s29 + $0x5d0] sm:$0xff]  ;;  %v588_v24 = vld [vmem:[%s12238_s29 + $0x588] sm:$0xff] }
  0x58   : > { %1985 = vmatpush1.msra.mxu1 %v445_v25  ;;  %1099 = vmatprep.mubr.f32.mxu0 %v18925_v0  ;;  %v590_v25 = vld [vmem:[%s12238_s29 + $0x598] sm:$0xff] }
  0x59   : > { %1212 = vmatprep.mubr.f32.mxu1 %v18925_v0  ;;  %1825 = vmatprep.subr.mxu0 %v436_v26  ;;  %v587_v26 = vld [vmem:[%s12238_s29 + $0x580] sm:$0xff] }
  0x5a   : > { %1986 = vmatprep.subr.mxu1 %v438_v27  ;;  %9212 = vmatmul.mubr.msk.f32.gmra.mxu0 %vm731_vm1, %v12317_v34  ;;  %v589_v27 = vld [vmem:[%s12238_s29 + $0x590] sm:$0xff] }
  0x5b   : > { %9222 = vmatmul.mubr.msk.f32.gmra.mxu1 %vm731_vm1, %v12317_v34  ;;  %1826 = vmatpush1.msra.mxu0 %v435_v28  ;;  %v419_v34 = vld [vmem:[%s12238_s29 + $0x40] sm:$0xff]  ;;  %v580_v28 = vld [vmem:[%s12238_s29 + $0x548] sm:$0xff] }
  0x5c   : > { %1987 = vmatpush1.msra.mxu1 %v437_v29  ;;  %3364 = vperm.xlu0 %10007, %v3350_v30   ;;  %v582_v29 = vld [vmem:[%s12238_s29 + $0x558] sm:$0xff]  ;;  %v579_v30 = vld [vmem:[%s12238_s29 + $0x540] sm:$0xff] }
  0x5d   : > { %715 = vperm.xlu1 %10008, %v681_v31   ;;  %1827 = vmatprep.subr.mxu0 %v428_v32  ;;  %v581_v31 = vld [vmem:[%s12238_s29 + $0x550] sm:$0xff]  ;;  %v572_v32 = vld [vmem:[%s12238_s29 + $0x508] sm:$0xff] }
  0x5e   : > { %1988 = vmatprep.subr.mxu1 %v430_v33  ;;  %1828 = vmatpush1.msra.mxu0 %v427_v35  ;;  %v574_v33 = vld [vmem:[%s12238_s29 + $0x518] sm:$0xff]  ;;  %v571_v35 = vld [vmem:[%s12238_s29 + $0x500] sm:$0xff] }
  0x5f   : > { %1989 = vmatpush1.msra.mxu1 %v429_v36  ;;  %1105 = vmatprep.mubr.f32.mxu0 %v18925_v0  ;;  %v573_v36 = vld [vmem:[%s12238_s29 + $0x510] sm:$0xff] }
  0x60   : > { %1218 = vmatprep.mubr.f32.mxu1 %v18925_v0  ;;  %1829 = vmatprep.subr.mxu0 %v420_v38  ;;  %v564_v38 = vld [vmem:[%s12238_s29 + $0x4c8] sm:$0xff] }
  0x61   : > { %1990 = vmatprep.subr.mxu1 %v422_v39  ;;  %9213 = vmatmul.mubr.msk.f32.gmra.mxu0 %vm731_vm1, %v12334_v37  ;;  %v566_v39 = vld [vmem:[%s12238_s29 + $0x4d8] sm:$0xff] }
  0x62   : > { %9223 = vmatmul.mubr.msk.f32.gmra.mxu1 %vm731_vm1, %v12334_v37  ;;  %1830 = vmatpush1.msra.mxu0 %v419_v34  ;;  %v680_v37 = vld [vmem:[%s18916_s3 + $0x28] sm:$0xff]  ;;  %v563_v34 = vld [vmem:[%s12238_s29 + $0x4c0] sm:$0xff] }
  0x63   : > { %1991 = vmatpush1.msra.mxu1 %v421_v40  ;;  %720 = vperm.xlu0 %10007, %v682_v41   ;;  %v565_v40 = vld [vmem:[%s12238_s29 + $0x4d0] sm:$0xff]  ;;  %v556_v41 = vld [vmem:[%s12238_s29 + $0x488] sm:$0xff] }
  0x64   : > { %705 = vperm.xlu1 %10008, %v679_v42   ;;  %1831 = vmatprep.subr.mxu0 %v412_v43  ;;  %v558_v42 = vld [vmem:[%s12238_s29 + $0x498] sm:$0xff]  ;;  %v555_v43 = vld [vmem:[%s12238_s29 + $0x480] sm:$0xff] }
  0x65   : > { %1992 = vmatprep.subr.mxu1 %v414_v44  ;;  %1832 = vmatpush1.msra.mxu0 %v411_v45  ;;  %v557_v44 = vld [vmem:[%s12238_s29 + $0x490] sm:$0xff]  ;;  %v548_v45 = vld [vmem:[%s12238_s29 + $0x448] sm:$0xff] }
  0x66   : > { %1993 = vmatpush1.msra.mxu1 %v413_v46  ;;  %1833 = vmatprep.subr.mxu0 %v660_v47  ;;  %v550_v46 = vld [vmem:[%s12238_s29 + $0x458] sm:$0xff]  ;;  %v547_v47 = vld [vmem:[%s12238_s29 + $0x440] sm:$0xff] }
  0x67   : > { %1994 = vmatprep.subr.mxu1 %v662_v48  ;;  %1834 = vmatpush2.msra.mxu0 %v659_v49  ;;  %v549_v48 = vld [vmem:[%s12238_s29 + $0x450] sm:$0xff]  ;;  %v540_v49 = vld [vmem:[%s12238_s29 + $0x408] sm:$0xff] }
  0x68   : > { %1995 = vmatpush2.msra.mxu1 %v661_v50  ;;  %710 = vperm.xlu0 %10007, %v680_v37   ;;  %v542_v50 = vld [vmem:[%s12238_s29 + $0x418] sm:$0xff]  ;;  %v539_v37 = vld [vmem:[%s12238_s29 + $0x400] sm:$0xff] }
  0x69   : > { %695 = vperm.xlu1 %10008, %v677_v51   ;;  %1835 = vmatprep.subr.mxu0 %v652_v52  ;;  %v12558_v51 = vld [vmem:[%s18917_s4 + $0x8] sm:$0xff]  ;;  %v541_v52 = vld [vmem:[%s12238_s29 + $0x410] sm:$0xff] }
  0x6a   : > { %1996 = vmatprep.subr.mxu1 %v654_v53  ;;  %1836 = vmatpush2.msra.mxu0 %v651_v54  ;;  %v12564_v53 = vld [vmem:[%s18917_s4] sm:$0xff]  ;;  %v536_v54 = vld [vmem:[%s12238_s29 + $0x3e8] sm:$0xff] }
  0x6b   : > { %1997 = vmatpush2.msra.mxu1 %v653_v55  ;;  %1837 = vmatprep.subr.mxu0 %v644_v56  ;;  %v538_v55 = vld [vmem:[%s12238_s29 + $0x3f8] sm:$0xff]  ;;  %v535_v56 = vld [vmem:[%s12238_s29 + $0x3e0] sm:$0xff] }
  0x6c   : > { %1998 = vmatprep.subr.mxu1 %v646_v57  ;;  %1838 = vmatpush2.msra.mxu0 %v643_v58  ;;  %v537_v57 = vld [vmem:[%s12238_s29 + $0x3f0] sm:$0xff]  ;;  %v528_v58 = vld [vmem:[%s12238_s29 + $0x3a8] sm:$0xff] }
  0x6d   : > { %1999 = vmatpush2.msra.mxu1 %v645_v59  ;;  %700 = vperm.xlu0 %10007, %v678_v60   ;;  %v530_v59 = vld [vmem:[%s12238_s29 + $0x3b8] sm:$0xff] }
  0x6e   : > { %685 = vperm.xlu1 %10008, %v675_v61   ;;  %1839 = vmatprep.subr.mxu0 %v636_v62  ;;  %v12579_v60 = vld [vmem:[%s18917_s4 + $0x18] sm:$0xff]  ;;  %v527_v61 = vld [vmem:[%s12238_s29 + $0x3a0] sm:$0xff]  ;;  %v529_v62 = vld [vmem:[%s12238_s29 + $0x3b0] sm:$0xff] }
  0x6f   : > { %2000 = vmatprep.subr.mxu1 %v638_v63  ;;  %1840 = vmatpush2.msra.mxu0 %v635_v1  ;;  %v12586_v63 = vld [vmem:[%s18917_s4 + $0x10] sm:$0xff]  ;;  %v520_v1 = vld [vmem:[%s12238_s29 + $0x368] sm:$0xff] }
  0x70   : > { %2001 = vmatpush2.msra.mxu1 %v637_v2  ;;  %1841 = vmatprep.subr.mxu0 %v628_v3  ;;  %v522_v2 = vld [vmem:[%s12238_s29 + $0x378] sm:$0xff]  ;;  %v519_v3 = vld [vmem:[%s12238_s29 + $0x360] sm:$0xff] }
  0x71   : > { %2002 = vmatprep.subr.mxu1 %v630_v4  ;;  %1842 = vmatpush2.msra.mxu0 %v627_v5  ;;  %v521_v4 = vld [vmem:[%s12238_s29 + $0x370] sm:$0xff]  ;;  %v512_v5 = vld [vmem:[%s12238_s29 + $0x328] sm:$0xff] }
  0x72   : > { %2003 = vmatpush2.msra.mxu1 %v629_v6  ;;  %690 = vperm.xlu0 %10007, %v676_v7   ;;  %v514_v6 = vld [vmem:[%s12238_s29 + $0x338] sm:$0xff]  ;;  %v12601_v7 = vld [vmem:[%s18917_s4 + $0x28] sm:$0xff] }
  0x73   : > { %1843 = vmatprep.subr.mxu0 %v620_v8  ;;  %2004 = vmatprep.subr.mxu1 %v622_v9  ;;  %v511_v8 = vld [vmem:[%s12238_s29 + $0x320] sm:$0xff]  ;;  %v513_v9 = vld [vmem:[%s12238_s29 + $0x330] sm:$0xff] }
  0x74   : > { %1844 = vmatpush2.msra.mxu0 %v619_v10  ;;  %2005 = vmatpush2.msra.mxu1 %v621_v11  ;;  %v12608_v10 = vld [vmem:[%s18917_s4 + $0x20] sm:$0xff]  ;;  %v504_v11 = vld [vmem:[%s12238_s29 + $0x2e8] sm:$0xff] }
  0x75   : > { %1845 = vmatprep.subr.mxu0 %v612_v12  ;;  %2006 = vmatprep.subr.mxu1 %v614_v13  ;;  %v506_v12 = vld [vmem:[%s12238_s29 + $0x2f8] sm:$0xff]  ;;  %v503_v13 = vld [vmem:[%s12238_s29 + $0x2e0] sm:$0xff] }
  0x76   : > { %1846 = vmatpush2.msra.mxu0 %v611_v14  ;;  %2007 = vmatpush2.msra.mxu1 %v613_v15  ;;  %v505_v14 = vld [vmem:[%s12238_s29 + $0x2f0] sm:$0xff]  ;;  %v496_v15 = vld [vmem:[%s12238_s29 + $0x2a8] sm:$0xff] }
  0x77   : > { %1847 = vmatprep.subr.mxu0 %v604_v16  ;;  %2008 = vmatprep.subr.mxu1 %v606_v17  ;;  %v498_v16 = vld [vmem:[%s12238_s29 + $0x2b8] sm:$0xff] }
  0x78   : > { %1848 = vmatpush2.msra.mxu0 %v603_v18  ;;  %2009 = vmatpush2.msra.mxu1 %v605_v19  ;;  %v12623_v17 = vld [vmem:[%s18917_s4 + $0x38] sm:$0xff]  ;;  %v495_v18 = vld [vmem:[%s12238_s29 + $0x2a0] sm:$0xff]  ;;  %v497_v19 = vld [vmem:[%s12238_s29 + $0x2b0] sm:$0xff] }
  0x79   : > { %1849 = vmatprep.subr.mxu0 %v596_v20  ;;  %2010 = vmatprep.subr.mxu1 %v598_v21  ;;  %v12630_v20 = vld [vmem:[%s18917_s4 + $0x30] sm:$0xff]  ;;  %v488_v21 = vld [vmem:[%s12238_s29 + $0x268] sm:$0xff] }
  0x7a   : > { %1850 = vmatpush2.msra.mxu0 %v595_v22  ;;  %2011 = vmatpush2.msra.mxu1 %v597_v23  ;;  %v490_v22 = vld [vmem:[%s12238_s29 + $0x278] sm:$0xff]  ;;  %v487_v23 = vld [vmem:[%s12238_s29 + $0x260] sm:$0xff] }
  0x7b   : > { %1851 = vmatprep.subr.mxu0 %v588_v24  ;;  %2012 = vmatprep.subr.mxu1 %v590_v25  ;;  %v489_v24 = vld [vmem:[%s12238_s29 + $0x270] sm:$0xff]  ;;  %v480_v25 = vld [vmem:[%s12238_s29 + $0x228] sm:$0xff] }
  0x7c   : > { %1852 = vmatpush2.msra.mxu0 %v587_v26  ;;  %2013 = vmatpush2.msra.mxu1 %v589_v27  ;;  %v482_v26 = vld [vmem:[%s12238_s29 + $0x238] sm:$0xff]  ;;  %v12645_v27 = vld [vmem:[%s18917_s4 + $0x48] sm:$0xff] }
  0x7d   : > { %1853 = vmatprep.subr.mxu0 %v580_v28  ;;  %2014 = vmatprep.subr.mxu1 %v582_v29  ;;  %v479_v28 = vld [vmem:[%s12238_s29 + $0x220] sm:$0xff]  ;;  %v481_v29 = vld [vmem:[%s12238_s29 + $0x230] sm:$0xff] }
  0x7e   : > { %1854 = vmatpush2.msra.mxu0 %v579_v30  ;;  %2015 = vmatpush2.msra.mxu1 %v581_v31  ;;  %v12652_v30 = vld [vmem:[%s18917_s4 + $0x40] sm:$0xff]  ;;  %v472_v31 = vld [vmem:[%s12238_s29 + $0x1e8] sm:$0xff] }
  0x7f   : > { %1855 = vmatprep.subr.mxu0 %v572_v32  ;;  %2016 = vmatprep.subr.mxu1 %v574_v33  ;;  %v474_v32 = vld [vmem:[%s12238_s29 + $0x1f8] sm:$0xff]  ;;  %v471_v33 = vld [vmem:[%s12238_s29 + $0x1e0] sm:$0xff] }
  0x80   : > { %1856 = vmatpush2.msra.mxu0 %v571_v35  ;;  %2017 = vmatpush2.msra.mxu1 %v573_v36  ;;  %v473_v35 = vld [vmem:[%s12238_s29 + $0x1f0] sm:$0xff]  ;;  %v464_v36 = vld [vmem:[%s12238_s29 + $0x1a8] sm:$0xff] }
  0x81   : > { %1857 = vmatprep.subr.mxu0 %v564_v38  ;;  %2018 = vmatprep.subr.mxu1 %v566_v39  ;;  %v466_v38 = vld [vmem:[%s12238_s29 + $0x1b8] sm:$0xff] }
  0x82   : > { %1858 = vmatpush2.msra.mxu0 %v563_v34  ;;  %2019 = vmatpush2.msra.mxu1 %v565_v40  ;;  %v12667_v39 = vld [vmem:[%s18917_s4 + $0x58] sm:$0xff]  ;;  %v463_v34 = vld [vmem:[%s12238_s29 + $0x1a0] sm:$0xff]  ;;  %v465_v40 = vld [vmem:[%s12238_s29 + $0x1b0] sm:$0xff] }
  0x83   : > { %1859 = vmatprep.subr.mxu0 %v556_v41  ;;  %2020 = vmatprep.subr.mxu1 %v558_v42  ;;  %v12674_v41 = vld [vmem:[%s18917_s4 + $0x50] sm:$0xff]  ;;  %v456_v42 = vld [vmem:[%s12238_s29 + $0x168] sm:$0xff] }
  0x84   : > { %1860 = vmatpush2.msra.mxu0 %v555_v43  ;;  %2021 = vmatpush2.msra.mxu1 %v557_v44  ;;  %v458_v43 = vld [vmem:[%s12238_s29 + $0x178] sm:$0xff]  ;;  %v455_v44 = vld [vmem:[%s12238_s29 + $0x160] sm:$0xff] }
  0x85   : > { %1861 = vmatprep.subr.mxu0 %v548_v45  ;;  %2022 = vmatprep.subr.mxu1 %v550_v46  ;;  %v457_v45 = vld [vmem:[%s12238_s29 + $0x170] sm:$0xff]  ;;  %v448_v46 = vld [vmem:[%s12238_s29 + $0x128] sm:$0xff] }
  0x86   : > { %1862 = vmatpush2.msra.mxu0 %v547_v47  ;;  %2023 = vmatpush2.msra.mxu1 %v549_v48  ;;  %v450_v47 = vld [vmem:[%s12238_s29 + $0x138] sm:$0xff]  ;;  %v12689_v48 = vld [vmem:[%s18917_s4 + $0x68] sm:$0xff] }
  0x87   : > { %1863 = vmatprep.subr.mxu0 %v540_v49  ;;  %2024 = vmatprep.subr.mxu1 %v542_v50  ;;  %v447_v49 = vld [vmem:[%s12238_s29 + $0x120] sm:$0xff]  ;;  %v449_v50 = vld [vmem:[%s12238_s29 + $0x130] sm:$0xff] }
  0x88   : > { %1864 = vmatpush2.msra.mxu0 %v539_v37  ;;  %1865 = vmatprep.mubr.f32.mxu0 %v12558_v51  ;;  %v12696_v37 = vld [vmem:[%s18917_s4 + $0x60] sm:$0xff] }
  0x89   : > { %2025 = vmatpush2.msra.mxu1 %v541_v52  ;;  %2026 = vmatprep.mubr.f32.mxu1 %v12558_v51  ;;  %v440_v52 = vld [vmem:[%s12238_s29 + $0xe8] sm:$0xff] }
  0x8a   : > { %1866 = vmatmul.mubr.f32.vlgmr.msra.gmra.mxu0 %v12564_v53  ;;  %2027 = vmatmul.mubr.f32.vlgmr.msra.gmra.mxu1 %v12564_v53 }
  0x8b   : > { %2123 = vmatprep.subr.mxu0 %v536_v54  ;;  %2284 = vmatprep.subr.mxu1 %v538_v55  ;;  %v442_v54 = vld [vmem:[%s12238_s29 + $0xf8] sm:$0xff]  ;;  %v439_v55 = vld [vmem:[%s12238_s29 + $0xe0] sm:$0xff] }
  0x8c   : > { %2124 = vmatpush1.msra.mxu0 %v535_v56  ;;  %2285 = vmatpush1.msra.mxu1 %v537_v57  ;;  %v441_v56 = vld [vmem:[%s12238_s29 + $0xf0] sm:$0xff]  ;;  %v432_v57 = vld [vmem:[%s12238_s29 + $0xa8] sm:$0xff] }
  0x8d   : > { %2125 = vmatprep.subr.mxu0 %v528_v58  ;;  %2286 = vmatprep.subr.mxu1 %v530_v59  ;;  %v434_v58 = vld [vmem:[%s12238_s29 + $0xb8] sm:$0xff]  ;;  %v12708_v59 = vpop.permute.xlu1 %1788 }
  0x8e   : > { %1871 = vmatprep.mubr.f32.mxu0 %v12579_v60  ;;  %2032 = vmatprep.mubr.f32.mxu1 %v12579_v60  ;;  %19164 = vst [vmem:[#allocation2_spill] sm:$0xff] %v12708_v59 }
  0x8f   : > { %2126 = vmatpush1.msra.mxu0 %v527_v61  ;;  %2287 = vmatpush1.msra.mxu1 %v529_v62  ;;  %v12713_v61 = vld [vmem:[%s18917_s4 + $0x78] sm:$0xff]  ;;  %v431_v62 = vld [vmem:[%s12238_s29 + $0xa0] sm:$0xff] }
  0x90   : > { %1872 = vmatmul.mubr.f32.gmra.mxu0 %v12586_v63  ;;  %2033 = vmatmul.mubr.f32.gmra.mxu1 %v12586_v63 }
  0x91   : > { %2127 = vmatprep.subr.mxu0 %v520_v1  ;;  %2288 = vmatprep.subr.mxu1 %v522_v2  ;;  %v433_v1 = vld [vmem:[%s12238_s29 + $0xb0] sm:$0xff] }
  0x92   : > { %2128 = vmatpush1.msra.mxu0 %v519_v3  ;;  %2289 = vmatpush1.msra.mxu1 %v521_v4  ;;  %v12720_v2 = vld [vmem:[%s18917_s4 + $0x70] sm:$0xff]  ;;  %v424_v3 = vld [vmem:[%s12238_s29 + $0x68] sm:$0xff]  ;;  %v426_v4 = vld [vmem:[%s12238_s29 + $0x78] sm:$0xff] }
  0x93   : > { %2129 = vmatprep.subr.mxu0 %v512_v5  ;;  %2290 = vmatprep.subr.mxu1 %v514_v6  ;;  %v423_v5 = vld [vmem:[%s12238_s29 + $0x60] sm:$0xff]  ;;  %v425_v6 = vld [vmem:[%s12238_s29 + $0x70] sm:$0xff] }
  0x94   : > { %1877 = vmatprep.mubr.f32.mxu0 %v12601_v7  ;;  %2038 = vmatprep.mubr.f32.mxu1 %v12601_v7 }
  0x95   : > { %2130 = vmatpush1.msra.mxu0 %v511_v8  ;;  %2291 = vmatpush1.msra.mxu1 %v513_v9  ;;  %v12728_v8 = vpop.permute.xlu0 %1798  ;;  %v416_v9 = vld [vmem:[%s12238_s29 + $0x28] sm:$0xff] }
  0x96   : > { %1878 = vmatmul.mubr.f32.gmra.mxu0 %v12608_v10  ;;  %2039 = vmatmul.mubr.f32.gmra.mxu1 %v12608_v10  ;;  %19165 = vst [vmem:[#allocation3_spill] sm:$0xff] %v12728_v8 }
  0x97   : > { %2131 = vmatprep.subr.mxu0 %v504_v11  ;;  %2292 = vmatprep.subr.mxu1 %v506_v12  ;;  %v418_v11 = vld [vmem:[%s12238_s29 + $0x38] sm:$0xff]  ;;  %v12734_v12 = vpop.permute.xlu1 %1783 }
  0x98   : > { %2132 = vmatpush1.msra.mxu0 %v503_v13  ;;  %2293 = vmatpush1.msra.mxu1 %v505_v14  ;;  %19166 = vst [vmem:[#allocation4_spill] sm:$0xff] %v12734_v12  ;;  %v12739_v13 = vld [vmem:[%s18917_s4 + $0x88] sm:$0xff]  ;;  %v415_v14 = vld [vmem:[%s12238_s29 + $0x20] sm:$0xff] }
  0x99   : > { %2133 = vmatprep.subr.mxu0 %v496_v15  ;;  %2294 = vmatprep.subr.mxu1 %v498_v16  ;;  %v417_v15 = vld [vmem:[%s12238_s29 + $0x30] sm:$0xff]  ;;  %v12746_v16 = vld [vmem:[%s18917_s4 + $0x80] sm:$0xff] }
  0x9a   : > { %1883 = vmatprep.mubr.f32.mxu0 %v12623_v17  ;;  %2044 = vmatprep.mubr.f32.mxu1 %v12623_v17 }
  0x9b   : > { %2134 = vmatpush1.msra.mxu0 %v495_v18  ;;  %2295 = vmatpush1.msra.mxu1 %v497_v19  ;;  %v664_v18 = vld [vmem:[%s12238_s29 + $0x7e8] sm:$0xff]  ;;  %v666_v19 = vld [vmem:[%s12238_s29 + $0x7f8] sm:$0xff] }
  0x9c   : > { %1884 = vmatmul.mubr.f32.gmra.mxu0 %v12630_v20  ;;  %2045 = vmatmul.mubr.f32.gmra.mxu1 %v12630_v20 }
  0x9d   : > { %2135 = vmatprep.subr.mxu0 %v488_v21  ;;  %2296 = vmatprep.subr.mxu1 %v490_v22  ;;  %v663_v21 = vld [vmem:[%s12238_s29 + $0x7e0] sm:$0xff]  ;;  %v665_v22 = vld [vmem:[%s12238_s29 + $0x7f0] sm:$0xff] }
  0x9e   : > { %2136 = vmatpush1.msra.mxu0 %v487_v23  ;;  %2297 = vmatpush1.msra.mxu1 %v489_v24  ;;  %v12754_v23 = vpop.permute.xlu0 %1793  ;;  %v656_v24 = vld [vmem:[%s12238_s29 + $0x7a8] sm:$0xff] }
  0x9f   : > { %2137 = vmatprep.subr.mxu0 %v480_v25  ;;  %2298 = vmatprep.subr.mxu1 %v482_v26  ;;  %19167 = vst [vmem:[#allocation5_spill] sm:$0xff] %v12754_v23  ;;  %v658_v25 = vld [vmem:[%s12238_s29 + $0x7b8] sm:$0xff]  ;;  %v12760_v26 = vpop.permute.xlu1 %1773 }
  0xa0   : > { %1889 = vmatprep.mubr.f32.mxu0 %v12645_v27  ;;  %2050 = vmatprep.mubr.f32.mxu1 %v12645_v27  ;;  %19168 = vst [vmem:[#allocation6_spill] sm:$0xff] %v12760_v26 }
  0xa1   : > { %2138 = vmatpush1.msra.mxu0 %v479_v28  ;;  %2299 = vmatpush1.msra.mxu1 %v481_v29  ;;  %v12765_v28 = vld [vmem:[%s18917_s4 + $0x98] sm:$0xff]  ;;  %v655_v29 = vld [vmem:[%s12238_s29 + $0x7a0] sm:$0xff] }
  0xa2   : > { %1890 = vmatmul.mubr.f32.gmra.mxu0 %v12652_v30  ;;  %2051 = vmatmul.mubr.f32.gmra.mxu1 %v12652_v30 }
  0xa3   : > { %2139 = vmatprep.subr.mxu0 %v472_v31  ;;  %2300 = vmatprep.subr.mxu1 %v474_v32  ;;  %v657_v31 = vld [vmem:[%s12238_s29 + $0x7b0] sm:$0xff] }
  0xa4   : > { %2140 = vmatpush1.msra.mxu0 %v471_v33  ;;  %2301 = vmatpush1.msra.mxu1 %v473_v35  ;;  %v12772_v32 = vld [vmem:[%s18917_s4 + $0x90] sm:$0xff]  ;;  %v648_v33 = vld [vmem:[%s12238_s29 + $0x768] sm:$0xff]  ;;  %v650_v35 = vld [vmem:[%s12238_s29 + $0x778] sm:$0xff] }
  0xa5   : > { %2141 = vmatprep.subr.mxu0 %v464_v36  ;;  %2302 = vmatprep.subr.mxu1 %v466_v38  ;;  %v647_v36 = vld [vmem:[%s12238_s29 + $0x760] sm:$0xff]  ;;  %v649_v38 = vld [vmem:[%s12238_s29 + $0x770] sm:$0xff] }
  0xa6   : > { %1895 = vmatprep.mubr.f32.mxu0 %v12667_v39  ;;  %2056 = vmatprep.mubr.f32.mxu1 %v12667_v39 }
  0xa7   : > { %2142 = vmatpush1.msra.mxu0 %v463_v34  ;;  %2303 = vmatpush1.msra.mxu1 %v465_v40  ;;  %v12780_v34 = vpop.permute.xlu0 %1778  ;;  %v640_v40 = vld [vmem:[%s12238_s29 + $0x728] sm:$0xff] }
  0xa8   : > { %1896 = vmatmul.mubr.f32.gmra.mxu0 %v12674_v41  ;;  %2057 = vmatmul.mubr.f32.gmra.mxu1 %v12674_v41  ;;  %19169 = vst [vmem:[#allocation7_spill] sm:$0xff] %v12780_v34 }
  0xa9   : > { %2143 = vmatprep.subr.mxu0 %v456_v42  ;;  %2304 = vmatprep.subr.mxu1 %v458_v43  ;;  %v642_v42 = vld [vmem:[%s12238_s29 + $0x738] sm:$0xff]  ;;  %v12786_v43 = vpop.permute.xlu1 %1763 }
  0xaa   : > { %2144 = vmatpush1.msra.mxu0 %v455_v44  ;;  %2305 = vmatpush1.msra.mxu1 %v457_v45  ;;  %19170 = vst [vmem:[#allocation8_spill] sm:$0xff] %v12786_v43  ;;  %v12791_v44 = vld [vmem:[%s18917_s4 + $0xa8] sm:$0xff]  ;;  %v639_v45 = vld [vmem:[%s12238_s29 + $0x720] sm:$0xff] }
  0xab   : > { %2145 = vmatprep.subr.mxu0 %v448_v46  ;;  %2306 = vmatprep.subr.mxu1 %v450_v47  ;;  %v641_v46 = vld [vmem:[%s12238_s29 + $0x730] sm:$0xff]  ;;  %v12798_v47 = vld [vmem:[%s18917_s4 + $0xa0] sm:$0xff] }
  0xac   : > { %1901 = vmatprep.mubr.f32.mxu0 %v12689_v48  ;;  %2062 = vmatprep.mubr.f32.mxu1 %v12689_v48 }
  0xad   : > { %2146 = vmatpush1.msra.mxu0 %v447_v49  ;;  %2307 = vmatpush1.msra.mxu1 %v449_v50  ;;  %v632_v49 = vld [vmem:[%s12238_s29 + $0x6e8] sm:$0xff]  ;;  %v634_v50 = vld [vmem:[%s12238_s29 + $0x6f8] sm:$0xff] }
  0xae   : > { %1902 = vmatmul.mubr.f32.gmra.mxu0 %v12696_v37  ;;  %2063 = vmatmul.mubr.f32.gmra.mxu1 %v12696_v37 }
  0xaf   : > { %2147 = vmatprep.subr.mxu0 %v440_v52  ;;  %2308 = vmatprep.subr.mxu1 %v442_v54  ;;  %v631_v52 = vld [vmem:[%s12238_s29 + $0x6e0] sm:$0xff]  ;;  %v633_v54 = vld [vmem:[%s12238_s29 + $0x6f0] sm:$0xff] }
  0xb0   : > { %2148 = vmatpush1.msra.mxu0 %v439_v55  ;;  %2309 = vmatpush1.msra.mxu1 %v441_v56  ;;  %v12806_v55 = vpop.permute.xlu0 %1768  ;;  %v624_v56 = vld [vmem:[%s12238_s29 + $0x6a8] sm:$0xff] }
  0xb1   : > { %2149 = vmatprep.subr.mxu0 %v432_v57  ;;  %2310 = vmatprep.subr.mxu1 %v434_v58  ;;  %19171 = vst [vmem:[#allocation9_spill] sm:$0xff] %v12806_v55  ;;  %v626_v57 = vld [vmem:[%s12238_s29 + $0x6b8] sm:$0xff]  ;;  %v12812_v58 = vpop.permute.xlu1 %1753 }
  0xb2   : > { %1907 = vmatprep.mubr.f32.mxu0 %v12713_v61  ;;  %2068 = vmatprep.mubr.f32.mxu1 %v12713_v61  ;;  %19172 = vst [vmem:[#allocation10_spill] sm:$0xff] %v12812_v58 }
  0xb3   : > { %2150 = vmatpush1.msra.mxu0 %v431_v62  ;;  %2311 = vmatpush1.msra.mxu1 %v433_v1  ;;  %v12817_v62 = vld [vmem:[%s18917_s4 + $0xb8] sm:$0xff]  ;;  %v623_v1 = vld [vmem:[%s12238_s29 + $0x6a0] sm:$0xff] }
  0xb4   : > { %1908 = vmatmul.mubr.f32.gmra.mxu0 %v12720_v2  ;;  %2069 = vmatmul.mubr.f32.gmra.mxu1 %v12720_v2 }
  0xb5   : > { %2151 = vmatprep.subr.mxu0 %v424_v3  ;;  %2312 = vmatprep.subr.mxu1 %v426_v4  ;;  %v625_v3 = vld [vmem:[%s12238_s29 + $0x6b0] sm:$0xff] }
  0xb6   : > { %2152 = vmatpush1.msra.mxu0 %v423_v5  ;;  %2313 = vmatpush1.msra.mxu1 %v425_v6  ;;  %v12824_v4 = vld [vmem:[%s18917_s4 + $0xb0] sm:$0xff]  ;;  %v616_v5 = vld [vmem:[%s12238_s29 + $0x668] sm:$0xff]  ;;  %v618_v6 = vld [vmem:[%s12238_s29 + $0x678] sm:$0xff] }
  0xb7   : > { %2153 = vmatprep.subr.mxu0 %v416_v9  ;;  %2314 = vmatprep.subr.mxu1 %v418_v11  ;;  %v615_v9 = vld [vmem:[%s12238_s29 + $0x660] sm:$0xff]  ;;  %v617_v11 = vld [vmem:[%s12238_s29 + $0x670] sm:$0xff] }
  0xb8   : > { %1913 = vmatprep.mubr.f32.mxu0 %v12739_v13  ;;  %2074 = vmatprep.mubr.f32.mxu1 %v12739_v13 }
  0xb9   : > { %2154 = vmatpush1.msra.mxu0 %v415_v14  ;;  %2315 = vmatpush1.msra.mxu1 %v417_v15  ;;  %v12832_v14 = vpop.permute.xlu0 %1758  ;;  %v608_v15 = vld [vmem:[%s12238_s29 + $0x628] sm:$0xff] }
  0xba   : > { %1914 = vmatmul.mubr.f32.gmra.mxu0 %v12746_v16  ;;  %2075 = vmatmul.mubr.f32.gmra.mxu1 %v12746_v16  ;;  %19173 = vst [vmem:[#allocation11_spill] sm:$0xff] %v12832_v14 }
  0xbb   : > { %2155 = vmatprep.subr.mxu0 %v664_v18  ;;  %2316 = vmatprep.subr.mxu1 %v666_v19  ;;  %v610_v18 = vld [vmem:[%s12238_s29 + $0x638] sm:$0xff]  ;;  %v12838_v19 = vpop.permute.xlu1 %1743 }
  0xbc   : > { %2156 = vmatpush2.msra.mxu0 %v663_v21  ;;  %2317 = vmatpush2.msra.mxu1 %v665_v22  ;;  %19174 = vst [vmem:[#allocation12_spill] sm:$0xff] %v12838_v19  ;;  %v12843_v21 = vld [vmem:[%s18917_s4 + $0xc8] sm:$0xff]  ;;  %v607_v22 = vld [vmem:[%s12238_s29 + $0x620] sm:$0xff] }
  0xbd   : > { %2157 = vmatprep.subr.mxu0 %v656_v24  ;;  %2318 = vmatprep.subr.mxu1 %v658_v25  ;;  %v609_v24 = vld [vmem:[%s12238_s29 + $0x630] sm:$0xff]  ;;  %v12850_v25 = vld [vmem:[%s18917_s4 + $0xc0] sm:$0xff] }
  0xbe   : > { %1919 = vmatprep.mubr.f32.mxu0 %v12765_v28  ;;  %2080 = vmatprep.mubr.f32.mxu1 %v12765_v28 }
  0xbf   : > { %2158 = vmatpush2.msra.mxu0 %v655_v29  ;;  %2319 = vmatpush2.msra.mxu1 %v657_v31  ;;  %v600_v29 = vld [vmem:[%s12238_s29 + $0x5e8] sm:$0xff]  ;;  %v602_v31 = vld [vmem:[%s12238_s29 + $0x5f8] sm:$0xff] }
  0xc0   : > { %1920 = vmatmul.mubr.f32.gmra.mxu0 %v12772_v32  ;;  %2081 = vmatmul.mubr.f32.gmra.mxu1 %v12772_v32 }
  0xc1   : > { %2159 = vmatprep.subr.mxu0 %v648_v33  ;;  %2320 = vmatprep.subr.mxu1 %v650_v35  ;;  %v599_v33 = vld [vmem:[%s12238_s29 + $0x5e0] sm:$0xff]  ;;  %v601_v35 = vld [vmem:[%s12238_s29 + $0x5f0] sm:$0xff] }
  0xc2   : > { %2160 = vmatpush2.msra.mxu0 %v647_v36  ;;  %2321 = vmatpush2.msra.mxu1 %v649_v38  ;;  %v12858_v36 = vpop.permute.xlu0 %1748  ;;  %v592_v38 = vld [vmem:[%s12238_s29 + $0x5a8] sm:$0xff] }
  0xc3   : > { %2161 = vmatprep.subr.mxu0 %v640_v40  ;;  %2322 = vmatprep.subr.mxu1 %v642_v42  ;;  %19175 = vst [vmem:[#allocation13_spill] sm:$0xff] %v12858_v36  ;;  %v594_v40 = vld [vmem:[%s12238_s29 + $0x5b8] sm:$0xff]  ;;  %v12864_v42 = vpop.permute.xlu1 %1733 }
  0xc4   : > { %1925 = vmatprep.mubr.f32.mxu0 %v12791_v44  ;;  %2086 = vmatprep.mubr.f32.mxu1 %v12791_v44  ;;  %19176 = vst [vmem:[#allocation14_spill] sm:$0xff] %v12864_v42 }
  0xc5   : > { %2162 = vmatpush2.msra.mxu0 %v639_v45  ;;  %2323 = vmatpush2.msra.mxu1 %v641_v46  ;;  %v12869_v45 = vld [vmem:[%s18917_s4 + $0xd8] sm:$0xff]  ;;  %v591_v46 = vld [vmem:[%s12238_s29 + $0x5a0] sm:$0xff] }
  0xc6   : > { %1926 = vmatmul.mubr.f32.gmra.mxu0 %v12798_v47  ;;  %2087 = vmatmul.mubr.f32.gmra.mxu1 %v12798_v47 }
  0xc7   : > { %2163 = vmatprep.subr.mxu0 %v632_v49  ;;  %2324 = vmatprep.subr.mxu1 %v634_v50  ;;  %v593_v49 = vld [vmem:[%s12238_s29 + $0x5b0] sm:$0xff] }
  0xc8   : > { %2164 = vmatpush2.msra.mxu0 %v631_v52  ;;  %2325 = vmatpush2.msra.mxu1 %v633_v54  ;;  %v12876_v50 = vld [vmem:[%s18917_s4 + $0xd0] sm:$0xff] }
  0xc9   : > { %2165 = vmatprep.subr.mxu0 %v624_v56  ;;  %2326 = vmatprep.subr.mxu1 %v626_v57  ;;  %v584_v56 = vld [vmem:[%s12238_s29 + $0x568] sm:$0xff]  ;;  %v586_v57 = vld [vmem:[%s12238_s29 + $0x578] sm:$0xff] }
  0xca   : > { %1931 = vmatprep.mubr.f32.mxu0 %v12817_v62  ;;  %2092 = vmatprep.mubr.f32.mxu1 %v12817_v62 }
  0xcb   : > { %2166 = vmatpush2.msra.mxu0 %v623_v1  ;;  %2327 = vmatpush2.msra.mxu1 %v625_v3  ;;  %v583_v1 = vld [vmem:[%s12238_s29 + $0x560] sm:$0xff]  ;;  %v585_v3 = vld [vmem:[%s12238_s29 + $0x570] sm:$0xff] }
  0xcc   : > { %1932 = vmatmul.mubr.f32.gmra.mxu0 %v12824_v4  ;;  %2093 = vmatmul.mubr.f32.gmra.mxu1 %v12824_v4 }
  0xcd   : > { %2167 = vmatprep.subr.mxu0 %v616_v5  ;;  %2328 = vmatprep.subr.mxu1 %v618_v6  ;;  %v12888_v5 = vpop.permute.xlu0 %1738 }
  0xce   : > { %2168 = vmatpush2.msra.mxu0 %v615_v9  ;;  %2329 = vmatpush2.msra.mxu1 %v617_v11  ;;  %19179 = vst [vmem:[#allocation17_spill] sm:$0xff] %v12888_v5  ;;  %v576_v9 = vld [vmem:[%s12238_s29 + $0x528] sm:$0xff]  ;;  %v578_v11 = vld [vmem:[%s12238_s29 + $0x538] sm:$0xff] }
  0xcf   : > { %2169 = vmatprep.subr.mxu0 %v608_v15  ;;  %2330 = vmatprep.subr.mxu1 %v610_v18  ;;  %v12896_v15 = vpop.permute.xlu1 %1723 }
  0xd0   : > { %1937 = vmatprep.mubr.f32.mxu0 %v12843_v21  ;;  %2098 = vmatprep.mubr.f32.mxu1 %v12843_v21 }
  0xd1   : > { %2170 = vmatpush2.msra.mxu0 %v607_v22  ;;  %2331 = vmatpush2.msra.mxu1 %v609_v24  ;;  %v12903_v22 = vld [vmem:[%s18917_s4 + $0xe8] sm:$0xff] }
  0xd2   : > { %1938 = vmatmul.mubr.f32.gmra.mxu0 %v12850_v25  ;;  %2099 = vmatmul.mubr.f32.gmra.mxu1 %v12850_v25 }
  0xd3   : > { %2171 = vmatprep.subr.mxu0 %v600_v29  ;;  %2332 = vmatprep.subr.mxu1 %v602_v31  ;;  %v575_v29 = vld [vmem:[%s12238_s29 + $0x520] sm:$0xff]  ;;  %v577_v31 = vld [vmem:[%s12238_s29 + $0x530] sm:$0xff]  ;;  %v12934_v0 = vpop.permute.xlu1 %3389 }
  0xd4   : > { %2172 = vmatpush2.msra.mxu0 %v599_v33  ;;  %2333 = vmatpush2.msra.mxu1 %v601_v35  ;;  %v12914_v35 = vld [vmem:[%s18917_s4 + $0xe0] sm:$0xff]  ;;  %19187 = vst [vmem:[#allocation25_spill] sm:$0xff] %v12934_v0 }
  0xd5   : > { %2173 = vmatprep.subr.mxu0 %v592_v38  ;;  %2334 = vmatprep.subr.mxu1 %v594_v40  ;;  %v12878_v52 = vpop.f32.mrf.mxu0  ;;  %v12880_v54 = vpop.f32.mrf.mxu1  ;;  %v568_v40 = vld [vmem:[%s12238_s29 + $0x4e8] sm:$0xff] }
  0xd6   : > { %19177 = vst [vmem:[#allocation15_spill] sm:$0xff] %v12878_v52  ;;  %19178 = vst [vmem:[#allocation16_spill] sm:$0xff] %v12880_v54  ;;  %1943 = vmatprep.mubr.f32.mxu0 %v12869_v45  ;;  %2104 = vmatprep.mubr.f32.mxu1 %v12869_v45  ;;  %v544_v52 = vld [vmem:[%s12238_s29 + $0x428] sm:$0xff] }
  0xd7   : > { %2174 = vmatpush2.msra.mxu0 %v591_v46  ;;  %2335 = vmatpush2.msra.mxu1 %v593_v49  ;;  %v12890_v6 = vpop.f32.mrf.mxu0  ;;  %v12898_v18 = vpop.f32.mrf.mxu1  ;;  %v570_v46 = vld [vmem:[%s12238_s29 + $0x4f8] sm:$0xff] }
  0xd8   : > { %19180 = vst [vmem:[#allocation18_spill] sm:$0xff] %v12890_v6  ;;  %1944 = vmatmul.mubr.f32.gmra.mxu0 %v12876_v50  ;;  %2105 = vmatmul.mubr.f32.gmra.mxu1 %v12876_v50  ;;  %19181 = vst [vmem:[#allocation19_spill] sm:$0xff] %v12898_v18 }
  0xd9   : > { %2175 = vmatprep.subr.mxu0 %v584_v56  ;;  %2336 = vmatprep.subr.mxu1 %v586_v57  ;;  %v12905_v24 = vpop.f32.mrf.mxu0  ;;  %v12909_v33 = vpop.f32.mrf.mxu1  ;;  %v567_v56 = vld [vmem:[%s12238_s29 + $0x4e0] sm:$0xff]  ;;  %v569_v57 = vld [vmem:[%s12238_s29 + $0x4f0] sm:$0xff] }
  0xda   : > { %19182 = vst [vmem:[#allocation20_spill] sm:$0xff] %v12905_v24  ;;  %2176 = vmatpush2.msra.mxu0 %v583_v1  ;;  %2337 = vmatpush2.msra.mxu1 %v585_v3  ;;  %19183 = vst [vmem:[#allocation21_spill] sm:$0xff] %v12909_v33  ;;  %v12926_v1 = vpop.permute.xlu0 %1728  ;;  %v561_v33 = vld [vmem:[%s12238_s29 + $0x4b0] sm:$0xff] }
  0xdb   : > { %2177 = vmatprep.subr.mxu0 %v576_v9  ;;  %2338 = vmatprep.subr.mxu1 %v578_v11  ;;  %v12916_v38 = vpop.f32.mrf.mxu0  ;;  %v12922_v49 = vpop.f32.mrf.mxu1  ;;  %v560_v9 = vld [vmem:[%s12238_s29 + $0x4a8] sm:$0xff]  ;;  %v562_v11 = vld [vmem:[%s12238_s29 + $0x4b8] sm:$0xff] }
  0xdc   : > { %19184 = vst [vmem:[#allocation22_spill] sm:$0xff] %v12916_v38  ;;  %1949 = vmatprep.mubr.f32.mxu0 %v12903_v22  ;;  %2110 = vmatprep.mubr.f32.mxu1 %v12903_v22  ;;  %19185 = vst [vmem:[#allocation23_spill] sm:$0xff] %v12922_v49  ;;  %v559_v49 = vld [vmem:[%s12238_s29 + $0x4a0] sm:$0xff] }
  0xdd   : > { %2178 = vmatpush2.msra.mxu0 %v575_v29  ;;  %2339 = vmatpush2.msra.mxu1 %v577_v31  ;;  %v12928_v3 = vpop.f32.mrf.mxu0  ;;  %v12936_v38 = vpop.f32.mrf.mxu1  ;;  %v12941_v29 = vld [vmem:[%s18917_s4 + $0xf8] sm:$0xff] }
  0xde   : > { %19186 = vst [vmem:[#allocation24_spill] sm:$0xff] %v12928_v3  ;;  %1950 = vmatmul.mubr.f32.gmra.mxu0 %v12914_v35  ;;  %2111 = vmatmul.mubr.f32.gmra.mxu1 %v12914_v35  ;;  %19188 = vst [vmem:[#allocation26_spill] sm:$0xff] %v12936_v38  ;;  %v12964_v6 = vpop.permute.xlu0 %3394 }
  0xdf   : > { %2179 = vmatprep.subr.mxu0 %v568_v40  ;;  %2340 = vmatprep.subr.mxu1 %v570_v46  ;;  %v12943_v31 = vpop.f32.mrf.mxu0  ;;  %v12947_v24 = vpop.f32.mrf.mxu1  ;;  %v12952_v40 = vld [vmem:[%s18917_s4 + $0xf0] sm:$0xff]  ;;  %19193 = vst [vmem:[#allocation31_spill] sm:$0xff] %v12964_v6 }
  0xe0   : > { %19189 = vst [vmem:[#allocation27_spill] sm:$0xff] %v12943_v31  ;;  %2180 = vmatpush2.msra.mxu0 %v567_v56  ;;  %2341 = vmatpush2.msra.mxu1 %v569_v57  ;;  %19190 = vst [vmem:[#allocation28_spill] sm:$0xff] %v12947_v24  ;;  %v552_v56 = vld [vmem:[%s12238_s29 + $0x468] sm:$0xff]  ;;  %v554_v57 = vld [vmem:[%s12238_s29 + $0x478] sm:$0xff]  ;;  %v12972_v24 = vpop.permute.xlu1 %3379 }
  0xe1   : > { %2181 = vmatprep.subr.mxu0 %v560_v9  ;;  %2342 = vmatprep.subr.mxu1 %v562_v11  ;;  %v12954_v46 = vpop.f32.mrf.mxu0  ;;  %v12960_v18 = vpop.f32.mrf.mxu1  ;;  %v551_v9 = vld [vmem:[%s12238_s29 + $0x460] sm:$0xff]  ;;  %v553_v11 = vld [vmem:[%s12238_s29 + $0x470] sm:$0xff]  ;;  %19195 = vst [vmem:[#allocation33_spill] sm:$0xff] %v12972_v24 }
  0xe2   : > { %19191 = vst [vmem:[#allocation29_spill] sm:$0xff] %v12954_v46  ;;  %1955 = vmatprep.mubr.f32.mxu0 %v12941_v29  ;;  %2116 = vmatprep.mubr.f32.mxu1 %v12941_v29  ;;  %19192 = vst [vmem:[#allocation30_spill] sm:$0xff] %v12960_v18  ;;  %v546_v46 = vld [vmem:[%s12238_s29 + $0x438] sm:$0xff]  ;;  %v545_v18 = vld [vmem:[%s12238_s29 + $0x430] sm:$0xff] }
  0xe3   : > { %2182 = vmatpush2.msra.mxu0 %v559_v49  ;;  %2343 = vmatpush2.msra.mxu1 %v561_v33  ;;  %v12966_v54 = vpop.f32.mrf.mxu0  ;;  %v12974_v31 = vpop.f32.mrf.mxu1  ;;  %v543_v33 = vld [vmem:[%s12238_s29 + $0x420] sm:$0xff] }
  0xe4   : > { %19194 = vst [vmem:[#allocation32_spill] sm:$0xff] %v12966_v54  ;;  %1956 = vmatmul.mubr.f32.gmra.mxu0 %v12952_v40  ;;  %2117 = vmatmul.mubr.f32.gmra.mxu1 %v12952_v40  ;;  %19196 = vst [vmem:[#allocation34_spill] sm:$0xff] %v12974_v31 }
  0xe5   : > { %2183 = vmatprep.subr.mxu0 %v552_v56  ;;  %2344 = vmatprep.subr.mxu1 %v554_v57  ;;  %v12977_v49 = vpop.f32.mrf.mxu0  ;;  %v12980_v38 = vpop.f32.mrf.mxu1  ;;  %v6610_v57 = vld [vmem:[%s18923_s10] sm:$0xff] }
  0xe6   : > { %19197 = vst [vmem:[#allocation35_spill] sm:$0xff] %v12977_v49  ;;  %2184 = vmatpush2.msra.mxu0 %v551_v9  ;;  %2345 = vmatpush2.msra.mxu1 %v553_v11  ;;  %19198 = vst [vmem:[#allocation36_spill] sm:$0xff] %v12980_v38  ;;  %v12988_v56 = vpop.permute.xlu0 %3384  ;;  %v13000_v9 = vpop.permute.xlu1 %3369 }
  0xe7   : > { %2185 = vmatprep.subr.mxu0 %v544_v52  ;;  %2346 = vmatprep.subr.mxu1 %v546_v46  ;;  %v12982_v54 = vpop.f32.mrf.mxu0  ;;  %v12985_v3 = vpop.f32.mrf.mxu1  ;;  %19201 = vst [vmem:[#allocation39_spill] sm:$0xff] %v12988_v56  ;;  %v6611_v52 = vld [vmem:[%s18923_s10 + $0x8] sm:$0xff]  ;;  %19203 = vst [vmem:[#allocation41_spill] sm:$0xff] %v13000_v9 }
  0xe8   : > { %19199 = vst [vmem:[#allocation37_spill] sm:$0xff] %v12982_v54  ;;  %2186 = vmatpush2.msra.mxu0 %v543_v33  ;;  %2187 = vmatprep.mubr.f32.mxu0 %v12558_v51  ;;  %19200 = vst [vmem:[#allocation38_spill] sm:$0xff] %v12985_v3  ;;  %v6612_v33 = vld [vmem:[%s18923_s10 + $0x10] sm:$0xff] }
  0xe9   : > { %2347 = vmatpush2.msra.mxu1 %v545_v18  ;;  %2348 = vmatprep.mubr.f32.mxu1 %v12558_v51  ;;  %v12996_v46 = vpop.f32.mrf.mxu0  ;;  %v13002_v18 = vpop.f32.mrf.mxu1 }
  0xea   : > { %19202 = vst [vmem:[#allocation40_spill] sm:$0xff] %v12996_v46  ;;  %2188 = vmatmul.mubr.f32.vlgmr.msra.gmra.mxu0 %v12564_v53  ;;  %2349 = vmatmul.mubr.f32.vlgmr.msra.gmra.mxu1 %v12564_v53  ;;  %19204 = vst [vmem:[#allocation42_spill] sm:$0xff] %v13002_v18  ;;  %v6613_v53 = vld [vmem:[%s18923_s10 + $0x18] sm:$0xff]  ;;  %v13028_v3 = vpop.permute.xlu1 %3359  ;;  %v6615_v46 = vld [vmem:[%s18923_s10 + $0x28] sm:$0xff] }
  0xeb   : > { %2193 = vmatprep.mubr.f32.mxu0 %v12579_v60  ;;  %2354 = vmatprep.mubr.f32.mxu1 %v12579_v60  ;;  %v13006_v51 = vpop.f32.mrf.mxu0  ;;  %v13008_v11 = vpop.f32.mrf.mxu1  ;;  %19211 = vst [vmem:[#allocation49_spill] sm:$0xff] %v13028_v3 }
  0xec   : > { %19205 = vst [vmem:[#allocation43_spill] sm:$0xff] %v13006_v51  ;;  %6644 = vperm.xlu0 %10007, %v6610_v57   ;;  %6649 = vperm.xlu1 %10008, %v6611_v52   ;;  %19206 = vst [vmem:[#allocation44_spill] sm:$0xff] %v13008_v11  ;;  %v13024_v57 = vpop.permute.xlu0 %3374 }
  0xed   : > { %v13016_v38 = vpop.f32.mrf.mxu0  ;;  %v13020_v60 = vpop.f32.mrf.mxu1  ;;  %19209 = vst [vmem:[#allocation47_spill] sm:$0xff] %v13024_v57 }
  0xee   : > { %19207 = vst [vmem:[#allocation45_spill] sm:$0xff] %v13016_v38  ;;  %2194 = vmatmul.mubr.f32.gmra.mxu0 %v12586_v63  ;;  %2355 = vmatmul.mubr.f32.gmra.mxu1 %v12586_v63  ;;  %19208 = vst [vmem:[#allocation46_spill] sm:$0xff] %v13020_v60  ;;  %v6614_v63 = vld [vmem:[%s18923_s10 + $0x20] sm:$0xff] }
  0xef   : > { %2199 = vmatprep.mubr.f32.mxu0 %v12601_v7  ;;  %2360 = vmatprep.mubr.f32.mxu1 %v12601_v7  ;;  %v13026_v52 = vpop.f32.mrf.mxu0  ;;  %v13030_v18 = vpop.f32.mrf.mxu1 }
  0xf0   : > { %19210 = vst [vmem:[#allocation48_spill] sm:$0xff] %v13026_v52  ;;  %6654 = vperm.xlu0 %10007, %v6612_v33   ;;  %6659 = vperm.xlu1 %10008, %v6613_v53   ;;  %19212 = vst [vmem:[#allocation50_spill] sm:$0xff] %v13030_v18  ;;  %v13050_v18 = vpop.permute.xlu0 %3364 }
  0xf1   : > { %v13038_v60 = vpop.f32.mrf.mxu0  ;;  %v13042_v7 = vpop.f32.mrf.mxu1  ;;  %19217 = vst [vmem:[#allocation55_spill] sm:$0xff] %v13050_v18 }
  0xf2   : > { %19213 = vst [vmem:[#allocation51_spill] sm:$0xff] %v13038_v60  ;;  %2200 = vmatmul.mubr.f32.gmra.mxu0 %v12608_v10  ;;  %2361 = vmatmul.mubr.f32.gmra.mxu1 %v12608_v10  ;;  %19214 = vst [vmem:[#allocation52_spill] sm:$0xff] %v13042_v7  ;;  %v6616_v60 = vld [vmem:[%s18923_s10 + $0x30] sm:$0xff]  ;;  %v6617_v10 = vld [vmem:[%s18923_s10 + $0x38] sm:$0xff] }
  0xf3   : > { %2205 = vmatprep.mubr.f32.mxu0 %v12623_v17  ;;  %2366 = vmatprep.mubr.f32.mxu1 %v12623_v17  ;;  %v13046_v33 = vpop.f32.mrf.mxu0  ;;  %v13048_v53 = vpop.f32.mrf.mxu1 }
  0xf4   : > { %19215 = vst [vmem:[#allocation53_spill] sm:$0xff] %v13046_v33  ;;  %6664 = vperm.xlu0 %10007, %v6614_v63   ;;  %6669 = vperm.xlu1 %10008, %v6615_v46   ;;  %19216 = vst [vmem:[#allocation54_spill] sm:$0xff] %v13048_v53  ;;  %v13062_v17 = vpop.permute.xlu1 %715 }
  0xf5   : > { %v13058_v7 = vpop.f32.mrf.mxu0  ;;  %19219 = vst [vmem:[#allocation57_spill] sm:$0xff] %v13062_v17  ;;  %v13064_v46 = vpop.f32.mrf.mxu1 }
  0xf6   : > { %19218 = vst [vmem:[#allocation56_spill] sm:$0xff] %v13058_v7  ;;  %2206 = vmatmul.mubr.f32.gmra.mxu0 %v12630_v20  ;;  %2367 = vmatmul.mubr.f32.gmra.mxu1 %v12630_v20  ;;  %19220 = vst [vmem:[#allocation58_spill] sm:$0xff] %v13064_v46  ;;  %v6618_v7 = vld [vmem:[%s18923_s10 + $0x40] sm:$0xff]  ;;  %v6619_v20 = vld [vmem:[%s18923_s10 + $0x48] sm:$0xff] }
  0xf7   : > { %2211 = vmatprep.mubr.f32.mxu0 %v12645_v27  ;;  %2372 = vmatprep.mubr.f32.mxu1 %v12645_v27  ;;  %v13068_v63 = vpop.f32.mrf.mxu0  ;;  %v13070_v53 = vpop.f32.mrf.mxu1 }
  0xf8   : > { %19221 = vst [vmem:[#allocation59_spill] sm:$0xff] %v13068_v63  ;;  %6674 = vperm.xlu0 %10007, %v6616_v60   ;;  %6679 = vperm.xlu1 %10008, %v6617_v10   ;;  %19222 = vst [vmem:[#allocation60_spill] sm:$0xff] %v13070_v53  ;;  %v13086_v10 = vpop.permute.xlu0 %720  ;;  %v13088_v53 = vpop.permute.xlu1 %705  ;;  %v6620_v63 = vld [vmem:[%s18923_s10 + $0x50] sm:$0xff] }
  0xf9   : > { %19225 = vst [vmem:[#allocation63_spill] sm:$0xff] %v13086_v10  ;;  %19226 = vst [vmem:[#allocation64_spill] sm:$0xff] %v13088_v53 }
  0xfa   : > { %2212 = vmatmul.mubr.f32.gmra.mxu0 %v12652_v30  ;;  %2373 = vmatmul.mubr.f32.gmra.mxu1 %v12652_v30  ;;  %v6621_v30 = vld [vmem:[%s18923_s10 + $0x58] sm:$0xff] }
  0xfb   : > { %2217 = vmatprep.mubr.f32.mxu0 %v12667_v39  ;;  %2378 = vmatprep.mubr.f32.mxu1 %v12667_v39  ;;  %v13082_v27 = vpop.f32.mrf.mxu0  ;;  %v13084_v60 = vpop.f32.mrf.mxu1 }
  0xfc   : > { %19223 = vst [vmem:[#allocation61_spill] sm:$0xff] %v13082_v27  ;;  %19224 = vst [vmem:[#allocation62_spill] sm:$0xff] %v13084_v60  ;;  %6684 = vperm.xlu0 %10007, %v6618_v7   ;;  %6689 = vperm.xlu1 %10008, %v6619_v20   ;;  %v6622_v7 = vld [vmem:[%s18923_s10 + $0x60] sm:$0xff]  ;;  %v6623_v20 = vld [vmem:[%s18923_s10 + $0x68] sm:$0xff]  ;;  %v13114_v60 = vpop.permute.xlu1 %695 }
  0xfd   : > { %v13096_v46 = vpop.f32.mrf.mxu0  ;;  %v13098_v39 = vpop.f32.mrf.mxu1  ;;  %19230 = vst [vmem:[#allocation68_spill] sm:$0xff] %v13114_v60 }
  0xfe   : > { %19227 = vst [vmem:[#allocation65_spill] sm:$0xff] %v13096_v46  ;;  %19228 = vst [vmem:[#allocation66_spill] sm:$0xff] %v13098_v39  ;;  %2218 = vmatmul.mubr.f32.gmra.mxu0 %v12674_v41  ;;  %2379 = vmatmul.mubr.f32.gmra.mxu1 %v12674_v41  ;;  %v13112_v41 = vpop.permute.xlu0 %710 }
  0xff   : > { %2223 = vmatprep.mubr.f32.mxu0 %v12689_v48  ;;  %2384 = vmatprep.mubr.f32.mxu1 %v12689_v48  ;;  %19229 = vst [vmem:[#allocation67_spill] sm:$0xff] %v13112_v41 }
 0x100   : > { %6694 = vperm.xlu0 %10007, %v6620_v63   ;;  %6699 = vperm.xlu1 %10008, %v6621_v30  }
 0x101   : > { %v1077_v46 = vpop.f32.mrf.mxu0  ;;  %v1190_v39 = vpop.f32.mrf.mxu1 }
 0x102   : > { %2224 = vmatmul.mubr.f32.gmra.mxu0 %v12696_v37  ;;  %2385 = vmatmul.mubr.f32.gmra.mxu1 %v12696_v37  ;;  %v13119_v48 = vadd.f32 %v1077_v46, %v13114_v60  ;;  %v13122_v63 = vadd.f32 %v1190_v39, %v13114_v60  ;;  %v6624_v37 = vld [vmem:[%s18923_s10 + $0x70] sm:$0xff] }
 0x103   : > { %2229 = vmatprep.mubr.f32.mxu0 %v12713_v61  ;;  %2390 = vmatprep.mubr.f32.mxu1 %v12713_v61  ;;  %v13124_v30 = vpop.f32.mrf.mxu0  ;;  %v13126_v27 = vpop.f32.mrf.mxu1  ;;  %v6625_v61 = vld [vmem:[%s18923_s10 + $0x78] sm:$0xff] }
 0x104   : > { %19231 = vst [vmem:[#allocation69_spill] sm:$0xff] %v13119_v48  ;;  %19232 = vst [vmem:[#allocation70_spill] sm:$0xff] %v13122_v63  ;;  %6704 = vperm.xlu0 %10007, %v6622_v7   ;;  %6709 = vperm.xlu1 %10008, %v6623_v20   ;;  %v13138_v7 = vpop.permute.xlu0 %700  ;;  %v6626_v20 = vld [vmem:[%s18923_s10 + $0x80] sm:$0xff]  ;;  %v6627_v63 = vld [vmem:[%s18923_s10 + $0x88] sm:$0xff] }
 0x105   : > { %19233 = vst [vmem:[#allocation71_spill] sm:$0xff] %v13124_v30  ;;  %19234 = vst [vmem:[#allocation72_spill] sm:$0xff] %v13126_v27 }
 0x106   : > { %2230 = vmatmul.mubr.f32.gmra.mxu0 %v12720_v2  ;;  %2391 = vmatmul.mubr.f32.gmra.mxu1 %v12720_v2  ;;  %19235 = vst [vmem:[#allocation73_spill] sm:$0xff] %v13138_v7 }
 0x107   : > { %2235 = vmatprep.mubr.f32.mxu0 %v12739_v13  ;;  %2396 = vmatprep.mubr.f32.mxu1 %v12739_v13  ;;  %v1083_v46 = vpop.f32.mrf.mxu0  ;;  %v1196_v39 = vpop.f32.mrf.mxu1 }
 0x108   : > { %6714 = vperm.xlu0 %10007, %v6624_v37   ;;  %6719 = vperm.xlu1 %10008, %v6625_v61   ;;  %v13147_v2 = vadd.f32 %v1083_v46, %v13138_v7  ;;  %v13150_v48 = vadd.f32 %v1196_v39, %v13138_v7  ;;  %v6628_v37 = vld [vmem:[%s18923_s10 + $0x90] sm:$0xff]  ;;  %v6629_v61 = vld [vmem:[%s18923_s10 + $0x98] sm:$0xff] }
 0x109   : > { %v13152_v13 = vpop.f32.mrf.mxu0  ;;  %v13154_v27 = vpop.f32.mrf.mxu1 }
 0x10a   : > { %19236 = vst [vmem:[#allocation74_spill] sm:$0xff] %v13147_v2  ;;  %19237 = vst [vmem:[#allocation75_spill] sm:$0xff] %v13150_v48  ;;  %2236 = vmatmul.mubr.f32.gmra.mxu0 %v12746_v16  ;;  %2397 = vmatmul.mubr.f32.gmra.mxu1 %v12746_v16 }
 0x10b   : > { %19238 = vst [vmem:[#allocation76_spill] sm:$0xff] %v13152_v13  ;;  %19239 = vst [vmem:[#allocation77_spill] sm:$0xff] %v13154_v27  ;;  %2241 = vmatprep.mubr.f32.mxu0 %v12765_v28  ;;  %2402 = vmatprep.mubr.f32.mxu1 %v12765_v28 }
 0x10c   : > { %6724 = vperm.xlu0 %10007, %v6626_v20   ;;  %6729 = vperm.xlu1 %10008, %v6627_v63  }
 0x10d   : > { %v1089_v46 = vpop.f32.mrf.mxu0  ;;  %v1202_v39 = vpop.f32.mrf.mxu1 }
 0x10e   : > { %2242 = vmatmul.mubr.f32.gmra.mxu0 %v12772_v32  ;;  %2403 = vmatmul.mubr.f32.gmra.mxu1 %v12772_v32  ;;  %v13169_v16 = vadd.f32 %v1089_v46, %v13088_v53  ;;  %v13172_v28 = vadd.f32 %v1202_v39, %v13088_v53  ;;  %v6630_v32 = vld [vmem:[%s18923_s10 + $0xa0] sm:$0xff]  ;;  %v6631_v46 = vld [vmem:[%s18923_s10 + $0xa8] sm:$0xff]  ;;  %v6632_v39 = vld [vmem:[%s18923_s10 + $0xb0] sm:$0xff] }
 0x10f   : > { %2247 = vmatprep.mubr.f32.mxu0 %v12791_v44  ;;  %2408 = vmatprep.mubr.f32.mxu1 %v12791_v44  ;;  %v13176_v63 = vpop.f32.mrf.mxu0  ;;  %v13178_v20 = vpop.f32.mrf.mxu1 }
 0x110   : > { %19240 = vst [vmem:[#allocation78_spill] sm:$0xff] %v13169_v16  ;;  %19241 = vst [vmem:[#allocation79_spill] sm:$0xff] %v13172_v28  ;;  %6734 = vperm.xlu0 %10007, %v6628_v37   ;;  %6739 = vperm.xlu1 %10008, %v6629_v61   ;;  %v6633_v28 = vld [vmem:[%s18923_s10 + $0xb8] sm:$0xff] }
 0x111   : > { %19242 = vst [vmem:[#allocation80_spill] sm:$0xff] %v13176_v63  ;;  %19243 = vst [vmem:[#allocation81_spill] sm:$0xff] %v13178_v20 }
 0x112   : > { %2248 = vmatmul.mubr.f32.gmra.mxu0 %v12798_v47  ;;  %2409 = vmatmul.mubr.f32.gmra.mxu1 %v12798_v47 }
 0x113   : > { %2253 = vmatprep.mubr.f32.mxu0 %v12817_v62  ;;  %2414 = vmatprep.mubr.f32.mxu1 %v12817_v62  ;;  %v1095_v44 = vpop.f32.mrf.mxu0 }
 0x114   : > { %6744 = vperm.xlu0 %10007, %v6630_v32   ;;  %6749 = vperm.xlu1 %10008, %v6631_v46   ;;  %v13191_v37 = vadd.f32 %v1095_v44, %v13112_v41  ;;  %v1208_v61 = vpop.f32.mrf.mxu1  ;;  %v6634_v46 = vld [vmem:[%s18923_s10 + $0xc0] sm:$0xff]  ;;  %v6635_v44 = vld [vmem:[%s18923_s10 + $0xc8] sm:$0xff] }
 0x115   : > { %v13200_v47 = vadd.f32 %v1208_v61, %v13112_v41  ;;  %v13204_v62 = vpop.f32.mrf.mxu0 }
 0x116   : > { %19244 = vst [vmem:[#allocation82_spill] sm:$0xff] %v13191_v37  ;;  %2254 = vmatmul.mubr.f32.gmra.mxu0 %v12824_v4  ;;  %2415 = vmatmul.mubr.f32.gmra.mxu1 %v12824_v4  ;;  %19246 = vst [vmem:[#allocation84_spill] sm:$0xff] %v13204_v62  ;;  %v13208_v32 = vpop.f32.mrf.mxu1 }
 0x117   : > { %19245 = vst [vmem:[#allocation83_spill] sm:$0xff] %v13200_v47  ;;  %2259 = vmatprep.mubr.f32.mxu0 %v12843_v21  ;;  %2420 = vmatprep.mubr.f32.mxu1 %v12843_v21  ;;  %19247 = vst [vmem:[#allocation85_spill] sm:$0xff] %v13208_v32 }
 0x118   : > { %6754 = vperm.xlu0 %10007, %v6632_v39   ;;  %6759 = vperm.xlu1 %10008, %v6633_v28   ;;  %v6636_v39 = vld [vmem:[%s18923_s10 + $0xd0] sm:$0xff] }
 0x11a   : > { %2260 = vmatmul.mubr.f32.gmra.mxu0 %v12850_v25  ;;  %2421 = vmatmul.mubr.f32.gmra.mxu1 %v12850_v25  ;;  %v1101_v4 = vpop.f32.mrf.mxu0  ;;  %v6637_v25 = vld [vmem:[%s18923_s10 + $0xd8] sm:$0xff] }
 0x11b   : > { %2265 = vmatprep.mubr.f32.mxu0 %v12869_v45  ;;  %2426 = vmatprep.mubr.f32.mxu1 %v12869_v45  ;;  %v13221_v21 = vadd.f32 %v1101_v4, %v13062_v17  ;;  %v1214_v28 = vpop.f32.mrf.mxu1  ;;  %v6638_v45 = vld [vmem:[%s18923_s10 + $0xe0] sm:$0xff] }
 0x11c   : > { %6764 = vperm.xlu0 %10007, %v6634_v46   ;;  %6769 = vperm.xlu1 %10008, %v6635_v44   ;;  %v13224_v61 = vadd.f32 %v1214_v28, %v13062_v17  ;;  %v6639_v46 = vld [vmem:[%s18923_s10 + $0xe8] sm:$0xff]  ;;  %v19250_v44 = vmov 0.0  }
 0x11d   : > { %19248 = vst [vmem:[#allocation86_spill] sm:$0xff] %v13221_v21 }
 0x11e   : > { %19249 = vst [vmem:[#allocation87_spill] sm:$0xff] %v13224_v61  ;;  %2266 = vmatmul.mubr.f32.gmra.mxu0 %v12876_v50  ;;  %2427 = vmatmul.mubr.f32.gmra.mxu1 %v12876_v50  ;;  %v6640_v50 = vld [vmem:[%s18923_s10 + $0xf0] sm:$0xff] }
 0x11f   : > { %2271 = vmatprep.mubr.f32.mxu0 %v12903_v22  ;;  %2432 = vmatprep.mubr.f32.mxu1 %v12903_v22  ;;  %v6641_v22 = vld [vmem:[%s18923_s10 + $0xf8] sm:$0xff] }
 0x120   : > { %6774 = vperm.xlu0 %10007, %v6636_v39   ;;  %6779 = vperm.xlu1 %10008, %v6637_v25  }
 0x122   : > { %2272 = vmatmul.mubr.f32.gmra.mxu0 %v12914_v35  ;;  %2433 = vmatmul.mubr.f32.gmra.mxu1 %v12914_v35  ;;  %v13256_v35 = vpop.f32.mrf.mxu0 }
 0x123   : > { %2277 = vmatprep.mubr.f32.mxu0 %v12941_v29  ;;  %2438 = vmatprep.mubr.f32.mxu1 %v12941_v29  ;;  %19251 = vst [vmem:[#allocation88_spill] sm:$0xff] %v13256_v35  ;;  %v13258_v29 = vpop.f32.mrf.mxu1 }
 0x124   : > { %6784 = vperm.xlu0 %10007, %v6638_v45   ;;  %6789 = vperm.xlu1 %10008, %v6639_v46   ;;  %19252 = vst [vmem:[#allocation89_spill] sm:$0xff] %v13258_v29  ;;  %v13260_v4 = vpop.f32.mrf.mxu0 }
 0x125   : > { %19253 = vst [vmem:[#allocation90_spill] sm:$0xff] %v13260_v4  ;;  %v13262_v28 = vpop.f32.mrf.mxu1 }
 0x126   : > { %2278 = vmatmul.mubr.f32.gmra.mxu0 %v12952_v40  ;;  %2439 = vmatmul.mubr.f32.gmra.mxu1 %v12952_v40  ;;  %19254 = vst [vmem:[#allocation91_spill] sm:$0xff] %v13262_v28  ;;  %v13264_v39 = vpop.f32.mrf.mxu0 }
 0x127   : > { %3461 = vmatprep.mubr.f32.mxu0 %v19250_v44  ;;  %3574 = vmatprep.mubr.f32.mxu1 %v19250_v44  ;;  %19255 = vst [vmem:[#allocation92_spill] sm:$0xff] %v13264_v39  ;;  %v13266_v25 = vpop.f32.mrf.mxu1 }
 0x128   : > { %6794 = vperm.xlu0 %10007, %v6640_v50   ;;  %6799 = vperm.xlu1 %10008, %v6641_v22   ;;  %19256 = vst [vmem:[#allocation93_spill] sm:$0xff] %v13266_v25 }
 0x14a   : > { %v1867_v45 = vpop.f32.mrf.mxu0  ;;  %v2028_v40 = vpop.f32.mrf.mxu1 }
 0x14b   : > { %v13273_v35 = vadd.f32 %v1867_v45, %v12896_v15  ;;  %v13276_v48 = vadd.f32 %v2028_v40, %v12896_v15 }
 0x14c   : > { %v1869_v46 = vpop.f32.mrf.mxu0  ;;  %v2030_v47 = vpop.f32.mrf.mxu1 }
 0x14d   : > { %19257 = vst [vmem:[#allocation94_spill] sm:$0xff] %v13276_v48  ;;  %v13279_v2 = vadd.f32 %v1869_v46, %v12896_v15  ;;  %v13284_v30 = vadd.f32 %v2030_v47, %v12896_v15  ;;  %v9288_v39 = vmul.f32 -1.442695, %v13273_v35  ;;  %v9290_v45 = vmul.f32 -1.442695, %v13276_v48 }
 0x14f   : > { %19258 = vst [vmem:[#allocation95_spill] sm:$0xff] %v13284_v30  ;;  %v9289_v46 = vmul.f32 -1.442695, %v13279_v2  ;;  %v9291_v47 = vmul.f32 -1.442695, %v13284_v30  ;;  %10013 = vpow2.f32 %v9288_v39 }
 0x150   : > { %v1873_v27 = vpop.f32.mrf.mxu0  ;;  %v2034_v37 = vpop.f32.mrf.mxu1  ;;  %10015 = vpow2.f32 %v9290_v45 }
 0x151   : > { %v13290_v52 = vadd.f32 %v1873_v27, %v12926_v1  ;;  %v13294_v40 = vadd.f32 %v2034_v37, %v12926_v1  ;;  %10017 = vpow2.f32 %v9289_v46 }
 0x152   : > { %v1875_v50 = vpop.f32.mrf.mxu0  ;;  %v2036_v22 = vpop.f32.mrf.mxu1  ;;  %10019 = vpow2.f32 %v9291_v47 }
 0x153   : > { %19259 = vst [vmem:[#allocation96_spill] sm:$0xff] %v13294_v40  ;;  %v13298_v38 = vadd.f32 %v1875_v50, %v12926_v1  ;;  %v13304_v11 = vadd.f32 %v2036_v22, %v12926_v1  ;;  %v9296_v27 = vmul.f32 -1.442695, %v13290_v52  ;;  %v9298_v41 = vmul.f32 -1.442695, %v13294_v40 }
 0x155   : > { %19260 = vst [vmem:[#allocation97_spill] sm:$0xff] %v13298_v38  ;;  %19261 = vst [vmem:[#allocation98_spill] sm:$0xff] %v13304_v11  ;;  %v9297_v54 = vmul.f32 -1.442695, %v13298_v38  ;;  %v9299_v39 = vmul.f32 -1.442695, %v13304_v11  ;;  %10021 = vpow2.f32 %v9296_v27 }
 0x156   : > { %v1879_v13 = vpop.f32.mrf.mxu0  ;;  %v2040_v20 = vpop.f32.mrf.mxu1  ;;  %10023 = vpow2.f32 %v9298_v41 }
 0x157   : > { %v13310_v37 = vadd.f32 %v1879_v13, %v12864_v42  ;;  %v13314_v50 = vadd.f32 %v2040_v20, %v12864_v42  ;;  %10025 = vpow2.f32 %v9297_v54 }
 0x158   : > { %v1881_v61 = vpop.f32.mrf.mxu0  ;;  %v2042_v32 = vpop.f32.mrf.mxu1  ;;  %10027 = vpow2.f32 %v9299_v39 }
 0x159   : > { %19262 = vst [vmem:[#allocation99_spill] sm:$0xff] %v13310_v37  ;;  %19263 = vst [vmem:[#allocation100_spill] sm:$0xff] %v13314_v50  ;;  %v13318_v22 = vadd.f32 %v1881_v61, %v12864_v42  ;;  %v13324_v13 = vadd.f32 %v2042_v32, %v12864_v42  ;;  %v9304_v20 = vmul.f32 -1.442695, %v13310_v37  ;;  %v9306_v46 = vmul.f32 -1.442695, %v13314_v50 }
 0x15b   : > { %19264 = vst [vmem:[#allocation101_spill] sm:$0xff] %v13318_v22  ;;  %19265 = vst [vmem:[#allocation102_spill] sm:$0xff] %v13324_v13  ;;  %v9305_v61 = vmul.f32 -1.442695, %v13318_v22  ;;  %v9307_v47 = vmul.f32 -1.442695, %v13324_v13  ;;  %10029 = vpow2.f32 %v9304_v20 }
 0x15c   : > { %v1885_v62 = vpop.f32.mrf.mxu0  ;;  %v2046_v29 = vpop.f32.mrf.mxu1  ;;  %10031 = vpow2.f32 %v9306_v46 }
 0x15d   : > { %v13337_v32 = vadd.f32 %v1885_v62, %v12888_v5  ;;  %v13340_v27 = vadd.f32 %v2046_v29, %v12888_v5  ;;  %10033 = vpow2.f32 %v9305_v61  ;;  %v10014_v62 = vpop.eup %10013 }
 0x15e   : > { %v1887_v21 = vpop.f32.mrf.mxu0  ;;  %v2048_v28 = vpop.f32.mrf.mxu1  ;;  %10035 = vpow2.f32 %v9307_v47 }
 0x15f   : > { %19266 = vst [vmem:[#allocation103_spill] sm:$0xff] %v13337_v32  ;;  %19267 = vst [vmem:[#allocation104_spill] sm:$0xff] %v13340_v27  ;;  %v13343_v54 = vadd.f32 %v1887_v21, %v12888_v5  ;;  %v13348_v39 = vadd.f32 %v2048_v28, %v12888_v5  ;;  %v9312_v20 = vmul.f32 -1.442695, %v13337_v32  ;;  %v9314_v46 = vmul.f32 -1.442695, %v13340_v27  ;;  %v10016_v10 = vpop.eup %10015 }
 0x160   : > { %v10018_v21 = vpop.eup %10017  ;;  %v2829_v28 = vadd.f32 1.0, %v10014_v62  ;;  %v2831_v0 = vadd.f32 1.0, %v10016_v10 }
 0x161   : > { %19268 = vst [vmem:[#allocation105_spill] sm:$0xff] %v13343_v54  ;;  %19269 = vst [vmem:[#allocation106_spill] sm:$0xff] %v13348_v39  ;;  %v9313_v29 = vmul.f32 -1.442695, %v13343_v54  ;;  %v9315_v7 = vmul.f32 -1.442695, %v13348_v39  ;;  %v10020_v47 = vpop.eup %10019  ;;  %10037 = vpow2.f32 %v9312_v20 }
 0x162   : > { %v13268_v4 = vpop.f32.mrf.mxu0  ;;  %v13270_v16 = vpop.f32.mrf.mxu1  ;;  %10039 = vpow2.f32 %v9314_v46  ;;  %v2830_v24 = vadd.f32 1.0, %v10018_v21  ;;  %v2832_v18 = vadd.f32 1.0, %v10020_v47 }
 0x163   : > { %v10022_v6 = vpop.eup %10021  ;;  %10041 = vpow2.f32 %v9313_v29 }
 0x164   : > { %v13281_v63 = vpop.f32.mrf.mxu0  ;;  %v13286_v25 = vpop.f32.mrf.mxu1  ;;  %10043 = vpow2.f32 %v9315_v7  ;;  %v2837_v48 = vadd.f32 1.0, %v10022_v6 }
 0x165   : > { %v10024_v56 = vpop.eup %10023  ;;  %10045 = vrcp.f32 %v2829_v28  ;;  %v13370_v28 = vadd.f32 %v13268_v4, %v12838_v19  ;;  %v13374_v6 = vadd.f32 %v13281_v63, %v12838_v19 }
 0x166   : > { %v10026_v9 = vpop.eup %10025  ;;  %10047 = vrcp.f32 %v2831_v0  ;;  %v2839_v62 = vadd.f32 1.0, %v10024_v56 }
 0x167   : > { %v10028_v44 = vpop.eup %10027  ;;  %10049 = vrcp.f32 %v2830_v24  ;;  %v2838_v10 = vadd.f32 1.0, %v10026_v9  ;;  %19270 = vst [vmem:[#allocation107_spill] sm:$0xff] %v13370_v28  ;;  %19271 = vst [vmem:[#allocation108_spill] sm:$0xff] %v13374_v6  ;;  %v9320_v63 = vmul.f32 -1.442695, %v13370_v28 }
 0x168   : > { %v13300_v17 = vpop.f32.mrf.mxu0  ;;  %v13306_v51 = vpop.f32.mrf.mxu1  ;;  %10051 = vrcp.f32 %v2832_v18  ;;  %v2840_v29 = vadd.f32 1.0, %v10028_v44  ;;  %v9321_v4 = vmul.f32 -1.442695, %v13374_v6 }
 0x169   : > { %v10030_v30 = vpop.eup %10029  ;;  %10053 = vrcp.f32 %v2837_v48  ;;  %v13378_v56 = vadd.f32 %v13300_v17, %v12858_v36 }
 0x16a   : > { %v13320_v49 = vpop.f32.mrf.mxu0  ;;  %v13326_v45 = vpop.f32.mrf.mxu1  ;;  %v2845_v7 = vadd.f32 1.0, %v10030_v30  ;;  %10055 = vrcp.f32 %v2839_v62 }
 0x16b   : > { %v10032_v20 = vpop.eup %10031  ;;  %10057 = vrcp.f32 %v2838_v10  ;;  %19272 = vst [vmem:[#allocation109_spill] sm:$0xff] %v13378_v56  ;;  %v13384_v48 = vadd.f32 %v13320_v49, %v12858_v36  ;;  %v9328_v17 = vmul.f32 -1.442695, %v13378_v56 }
 0x16c   : > { %v10034_v21 = vpop.eup %10033  ;;  %v2847_v0 = vadd.f32 1.0, %v10032_v20  ;;  %10059 = vrcp.f32 %v2840_v29 }
 0x16d   : > { %v10036_v47 = vpop.eup %10035  ;;  %v2846_v24 = vadd.f32 1.0, %v10034_v21  ;;  %19273 = vst [vmem:[#allocation110_spill] sm:$0xff] %v13384_v48  ;;  %10061 = vrcp.f32 %v2845_v7  ;;  %v9329_v49 = vmul.f32 -1.442695, %v13384_v48 }
 0x16e   : > { %v13331_v53 = vpop.f32.mrf.mxu0  ;;  %v13334_v31 = vpop.f32.mrf.mxu1  ;;  %v2848_v18 = vadd.f32 1.0, %v10036_v47  ;;  %10063 = vrcp.f32 %v2847_v0 }
 0x16f   : > { %v10038_v44 = vpop.eup %10037  ;;  %10065 = vrcp.f32 %v2846_v24  ;;  %v13398_v7 = vadd.f32 %v13331_v53, %v12812_v58 }
 0x170   : > { %v13345_v41 = vpop.f32.mrf.mxu0  ;;  %v13350_v33 = vpop.f32.mrf.mxu1  ;;  %10067 = vrcp.f32 %v2848_v18  ;;  %v2853_v47 = vadd.f32 1.0, %v10038_v44 }
 0x171   : > { %v10040_v62 = vpop.eup %10039  ;;  %10069 = vpow2.f32 %v9320_v63  ;;  %19274 = vst [vmem:[#allocation111_spill] sm:$0xff] %v13398_v7  ;;  %v13404_v11 = vadd.f32 %v13345_v41, %v12812_v58 }
 0x172   : > { %v10042_v10 = vpop.eup %10041  ;;  %v2855_v24 = vadd.f32 1.0, %v10040_v62  ;;  %10071 = vpow2.f32 %v9321_v4 }
 0x173   : > { %v10044_v29 = vpop.eup %10043  ;;  %19275 = vst [vmem:[#allocation112_spill] sm:$0xff] %v13404_v11  ;;  %v2854_v50 = vadd.f32 1.0, %v10042_v10  ;;  %10073 = vpow2.f32 %v9328_v17  ;;  %v13426_v17 = vadd.f32 %v13270_v16, %v12838_v19 }
 0x174   : > { %v13355_v61 = vpop.f32.mrf.mxu0  ;;  %v13358_v60 = vpop.f32.mrf.mxu1  ;;  %v2856_v38 = vadd.f32 1.0, %v10044_v29  ;;  %10075 = vpow2.f32 %v9329_v49  ;;  %v13433_v49 = vadd.f32 %v13286_v25, %v12838_v19  ;;  %v13449_v25 = vadd.f32 %v13326_v45, %v12858_v36 }
 0x175   : > { %v13400_v0 = vpop.eup %10045  ;;  %v13410_v44 = vadd.f32 %v13355_v61, %v12832_v14  ;;  %10077 = vrcp.f32 %v2853_v47  ;;  %19280 = vst [vmem:[#allocation117_spill] sm:$0xff] %v13426_v17  ;;  %v9336_v61 = vmul.f32 -1.442695, %v13398_v7  ;;  %v13440_v47 = vadd.f32 %v13306_v51, %v12858_v36 }
 0x176   : > { %v13360_v57 = vpop.f32.mrf.mxu0  ;;  %v13362_v3 = vpop.f32.mrf.mxu1  ;;  %19281 = vst [vmem:[#allocation118_spill] sm:$0xff] %v13433_v49  ;;  %19285 = vst [vmem:[#allocation122_spill] sm:$0xff] %v13449_v25  ;;  %v9322_v51 = vmul.f32 -1.442695, %v13426_v17  ;;  %v13466_v45 = vadd.f32 %v13350_v33, %v12812_v58 }
 0x177   : > { %v13406_v18 = vpop.eup %10047  ;;  %19277 = vst [vmem:[#allocation114_spill] sm:$0xff] %v13410_v44  ;;  %v13418_v4 = vadd.f32 %v13360_v57, %v12832_v14  ;;  %10079 = vrcp.f32 %v2855_v24  ;;  %v9337_v57 = vmul.f32 -1.442695, %v13404_v11  ;;  %19283 = vst [vmem:[#allocation120_spill] sm:$0xff] %v13440_v47  ;;  %v9344_v16 = vmul.f32 -1.442695, %v13410_v44 }
 0x178   : > { %19276 = vst [vmem:[#allocation113_spill] sm:$0xff] %v13406_v18  ;;  %v13414_v53 = vpop.eup %10049  ;;  %10081 = vrcp.f32 %v2854_v50  ;;  %19289 = vst [vmem:[#allocation126_spill] sm:$0xff] %v13466_v45  ;;  %v13482_v33 = vadd.f32 %v13362_v3, %v12832_v14 }
 0x179   : > { %19278 = vst [vmem:[#allocation115_spill] sm:$0xff] %v13418_v4  ;;  %v13422_v62 = vpop.eup %10051  ;;  %10083 = vrcp.f32 %v2856_v38  ;;  %v9345_v24 = vmul.f32 -1.442695, %v13418_v4  ;;  %v9323_v38 = vmul.f32 -1.442695, %v13433_v49 }
 0x17a   : > { %v13364_v46 = vpop.f32.mrf.mxu0  ;;  %v13366_v40 = vpop.f32.mrf.mxu1  ;;  %19279 = vst [vmem:[#allocation116_spill] sm:$0xff] %v13422_v62  ;;  %19293 = vst [vmem:[#allocation130_spill] sm:$0xff] %v13482_v33  ;;  %v9347_v3 = vmul.f32 -1.442695, %v13482_v33 }
 0x17b   : > { %v13429_v10 = vpop.eup %10053  ;;  %10085 = vpow2.f32 %v9336_v61  ;;  %v13473_v61 = vadd.f32 %v13358_v60, %v12832_v14 }
 0x17c   : > { %v13380_v9 = vpop.f32.mrf.mxu0  ;;  %v13386_v30 = vpop.f32.mrf.mxu1 }
 0x17d   : > { %v13436_v29 = vpop.eup %10055  ;;  %10087 = vpow2.f32 %v9337_v57  ;;  %19291 = vst [vmem:[#allocation128_spill] sm:$0xff] %v13473_v61  ;;  %v9346_v27 = vmul.f32 -1.442695, %v13473_v61  ;;  %v13504_v39 = vadd.f32 %v13380_v9, %v12786_v43 }
 0x17e   : > { %19282 = vst [vmem:[#allocation119_spill] sm:$0xff] %v13436_v29  ;;  %v13445_v62 = vpop.eup %10057  ;;  %v13459_v29 = vadd.f32 %v13334_v31, %v12812_v58  ;;  %10089 = vpow2.f32 %v9344_v16 }
 0x17f   : > { %19284 = vst [vmem:[#allocation121_spill] sm:$0xff] %v13445_v62  ;;  %v13454_v50 = vpop.eup %10059  ;;  %10091 = vpow2.f32 %v9345_v24  ;;  %19297 = vst [vmem:[#allocation134_spill] sm:$0xff] %v13504_v39 }
 0x180   : > { %v13391_v20 = vpop.f32.mrf.mxu0  ;;  %v13394_v21 = vpop.f32.mrf.mxu1  ;;  %19286 = vst [vmem:[#allocation123_spill] sm:$0xff] %v13454_v50  ;;  %19287 = vst [vmem:[#allocation124_spill] sm:$0xff] %v13459_v29  ;;  %v9330_v50 = vmul.f32 -1.442695, %v13440_v47  ;;  %v9338_v16 = vmul.f32 -1.442695, %v13459_v29 }
 0x181   : > { %v13461_v13 = vpop.eup %10061  ;;  %10093 = vpow2.f32 %v9322_v51 }
 0x182   : > { %v13412_v63 = vpop.f32.mrf.mxu0  ;;  %v13420_v41 = vpop.f32.mrf.mxu1  ;;  %19288 = vst [vmem:[#allocation125_spill] sm:$0xff] %v13461_v13  ;;  %v9331_v13 = vmul.f32 -1.442695, %v13449_v25  ;;  %v13540_v25 = vadd.f32 %v13386_v30, %v12786_v43 }
 0x183   : > { %v13468_v36 = vpop.eup %10063  ;;  %10095 = vpow2.f32 %v9323_v38  ;;  %v13498_v38 = vadd.f32 %v13364_v46, %v12786_v43 }
 0x184   : > { %19290 = vst [vmem:[#allocation127_spill] sm:$0xff] %v13468_v36  ;;  %v13477_v62 = vpop.eup %10065  ;;  %v9339_v36 = vmul.f32 -1.442695, %v13466_v45  ;;  %10097 = vpow2.f32 %v9330_v50  ;;  %19304 = vst [vmem:[#allocation141_spill] sm:$0xff] %v13540_v25 }
 0x185   : > { %19292 = vst [vmem:[#allocation129_spill] sm:$0xff] %v13477_v62  ;;  %v13486_v58 = vpop.eup %10067  ;;  %10099 = vpow2.f32 %v9331_v13  ;;  %19295 = vst [vmem:[#allocation132_spill] sm:$0xff] %v13498_v38 }
 0x186   : > { %v13443_v18 = vpop.f32.mrf.mxu0  ;;  %v13452_v19 = vpop.f32.mrf.mxu1  ;;  %19294 = vst [vmem:[#allocation131_spill] sm:$0xff] %v13486_v58 }
 0x187   : > { %v10070_v60 = vpop.eup %10069  ;;  %10101 = vpow2.f32 %v9338_v16 }
 0x188   : > { %v13475_v31 = vpop.f32.mrf.mxu0  ;;  %v13484_v57 = vpop.f32.mrf.mxu1  ;;  %v2861_v51 = vadd.f32 1.0, %v10070_v60  ;;  %v13510_v60 = vadd.f32 %v13391_v20, %v12806_v55  ;;  %v9353_v20 = vmul.f32 -1.442695, %v13504_v39 }
 0x189   : > { %v10072_v37 = vpop.eup %10071  ;;  %10103 = vpow2.f32 %v9339_v36  ;;  %v13518_v36 = vadd.f32 %v13412_v63, %v12806_v55  ;;  %v13582_v45 = vadd.f32 %v13484_v57, %v12760_v26 }
 0x18a   : > { %v10074_v62 = vpop.eup %10073  ;;  %v2862_v50 = vadd.f32 1.0, %v10072_v37  ;;  %10105 = vpow2.f32 %v9346_v27  ;;  %19299 = vst [vmem:[#allocation136_spill] sm:$0xff] %v13510_v60  ;;  %v9352_v27 = vmul.f32 -1.442695, %v13498_v38 }
 0x18b   : > { %v10076_v58 = vpop.eup %10075  ;;  %v2869_v32 = vadd.f32 1.0, %v10074_v62  ;;  %10107 = vpow2.f32 %v9347_v3  ;;  %19301 = vst [vmem:[#allocation138_spill] sm:$0xff] %v13518_v36  ;;  %v9361_v63 = vmul.f32 -1.442695, %v13518_v36  ;;  %19310 = vst [vmem:[#allocation147_spill] sm:$0xff] %v13582_v45 }
 0x18c   : > { %v13491_v24 = vpop.f32.mrf.mxu0  ;;  %v13494_v14 = vpop.f32.mrf.mxu1  ;;  %v2870_v17 = vadd.f32 1.0, %v10076_v58  ;;  %v9360_v58 = vmul.f32 -1.442695, %v13510_v60 }
 0x18d   : > { %v13500_v22 = vpop.eup %10077  ;;  %10109 = vrcp.f32 %v2861_v51  ;;  %v13596_v11 = vadd.f32 %v13494_v14, %v12780_v34 }
 0x18e   : > { %19296 = vst [vmem:[#allocation133_spill] sm:$0xff] %v13500_v22  ;;  %v13506_v13 = vpop.eup %10079  ;;  %v13512_v16 = vpop.f32.mrf.mxu0  ;;  %10111 = vrcp.f32 %v2862_v50  ;;  %v13534_v50 = vadd.f32 %v13366_v40, %v12786_v43 }
 0x18f   : > { %19298 = vst [vmem:[#allocation135_spill] sm:$0xff] %v13506_v13  ;;  %v13514_v46 = vpop.eup %10081  ;;  %v13520_v37 = vpop.f32.mrf.mxu1  ;;  %10113 = vrcp.f32 %v2869_v32  ;;  %19313 = vst [vmem:[#allocation150_spill] sm:$0xff] %v13596_v11 }
 0x190   : > { %19300 = vst [vmem:[#allocation137_spill] sm:$0xff] %v13514_v46  ;;  %v13522_v9 = vpop.eup %10083  ;;  %10115 = vrcp.f32 %v2870_v17  ;;  %19303 = vst [vmem:[#allocation140_spill] sm:$0xff] %v13534_v50  ;;  %v13610_v44 = vadd.f32 %v13520_v37, %v12780_v34 }
 0x191   : > { %19302 = vst [vmem:[#allocation139_spill] sm:$0xff] %v13522_v9  ;;  %v10086_v62 = vpop.eup %10085  ;;  %10117 = vpow2.f32 %v9352_v27 }
 0x192   : > { %v10088_v13 = vpop.eup %10087  ;;  %v13527_v3 = vpop.f32.mrf.mxu0  ;;  %v2877_v51 = vadd.f32 1.0, %v10086_v62  ;;  %10119 = vpow2.f32 %v9353_v20  ;;  %v13546_v62 = vadd.f32 %v13394_v21, %v12806_v55  ;;  %v13561_v21 = vadd.f32 %v13443_v18, %v12760_v26  ;;  %19316 = vst [vmem:[#allocation153_spill] sm:$0xff] %v13610_v44 }
 0x193   : > { %v10090_v22 = vpop.eup %10089  ;;  %v13530_v49 = vpop.f32.mrf.mxu1  ;;  %v2878_v32 = vadd.f32 1.0, %v10088_v13  ;;  %10121 = vpow2.f32 %v9360_v58  ;;  %v13554_v13 = vadd.f32 %v13420_v41, %v12806_v55  ;;  %v13575_v55 = vadd.f32 %v13475_v31, %v12760_v26 }
 0x194   : > { %v10092_v9 = vpop.eup %10091  ;;  %v2885_v29 = vadd.f32 1.0, %v10090_v22  ;;  %19305 = vst [vmem:[#allocation142_spill] sm:$0xff] %v13546_v62  ;;  %v13548_v27 = vpop.f32.mrf.mxu0  ;;  %10123 = vpow2.f32 %v9361_v63  ;;  %v9354_v22 = vmul.f32 -1.442695, %v13534_v50  ;;  %19307 = vst [vmem:[#allocation144_spill] sm:$0xff] %v13561_v21  ;;  %v13568_v63 = vadd.f32 %v13452_v19, %v12760_v26 }
 0x195   : > { %v13536_v47 = vpop.eup %10093  ;;  %v2886_v48 = vadd.f32 1.0, %v10092_v9  ;;  %19306 = vst [vmem:[#allocation143_spill] sm:$0xff] %v13554_v13  ;;  %v2102_v30 = vpop.f32.mrf.mxu1  ;;  %10125 = vrcp.f32 %v2877_v51  ;;  %v9355_v9 = vmul.f32 -1.442695, %v13540_v25  ;;  %v9362_v51 = vmul.f32 -1.442695, %v13546_v62 }
 0x196   : > { %v13542_v17 = vpop.eup %10095  ;;  %10127 = vrcp.f32 %v2878_v32  ;;  %19308 = vst [vmem:[#allocation145_spill] sm:$0xff] %v13568_v63  ;;  %19309 = vst [vmem:[#allocation146_spill] sm:$0xff] %v13575_v55  ;;  %v9363_v32 = vmul.f32 -1.442695, %v13554_v13  ;;  %v13589_v31 = vadd.f32 %v13491_v24, %v12780_v34  ;;  %v13603_v26 = vadd.f32 %v13512_v16, %v12780_v34 }
 0x197   : > { %v13550_v40 = vpop.eup %10097  ;;  %10129 = vrcp.f32 %v2885_v29  ;;  %v9368_v29 = vmul.f32 -1.442695, %v13561_v21  ;;  %v9378_v16 = vmul.f32 -1.442695, %v13596_v11  ;;  %v9379_v37 = vmul.f32 -1.442695, %v13610_v44 }
 0x198   : > { %v13556_v20 = vpop.eup %10099  ;;  %v1945_v18 = vpop.f32.mrf.mxu0  ;;  %10131 = vrcp.f32 %v2886_v48  ;;  %19311 = vst [vmem:[#allocation148_spill] sm:$0xff] %v13589_v31  ;;  %v9370_v48 = vmul.f32 -1.442695, %v13568_v63  ;;  %v13631_v13 = vadd.f32 %v2102_v30, %v12734_v12 }
 0x199   : > { %v13563_v58 = vpop.eup %10101  ;;  %v2106_v19 = vpop.f32.mrf.mxu1  ;;  %10133 = vpow2.f32 %v9354_v22  ;;  %v9369_v22 = vmul.f32 -1.442695, %v13575_v55 }
 0x19a   : > { %v13570_v41 = vpop.eup %10103  ;;  %10135 = vpow2.f32 %v9355_v9  ;;  %v1947_v24 = vpop.f32.mrf.mxu0  ;;  %v9371_v9 = vmul.f32 -1.442695, %v13582_v45 }
 0x19b   : > { %v13577_v43 = vpop.eup %10105  ;;  %10137 = vpow2.f32 %v9362_v51  ;;  %v2108_v14 = vpop.f32.mrf.mxu1  ;;  %v9376_v51 = vmul.f32 -1.442695, %v13589_v31 }
 0x19c   : > { %v13584_v7 = vpop.eup %10107  ;;  %10139 = vpow2.f32 %v9363_v32  ;;  %v9377_v32 = vmul.f32 -1.442695, %v13603_v26 }
 0x19d   : > { %v13591_v61 = vpop.eup %10109  ;;  %10141 = vpow2.f32 %v9368_v29  ;;  %v13620_v29 = vadd.f32 %v13527_v3, %v12734_v12 }
 0x19e   : > { %19312 = vst [vmem:[#allocation149_spill] sm:$0xff] %v13591_v61  ;;  %v13598_v57 = vpop.eup %10111  ;;  %10143 = vpow2.f32 %v9370_v48  ;;  %v1951_v25 = vpop.f32.mrf.mxu0 }
 0x19f   : > { %19314 = vst [vmem:[#allocation151_spill] sm:$0xff] %v13598_v57  ;;  %v13605_v33 = vpop.eup %10113  ;;  %10145 = vpow2.f32 %v9369_v22  ;;  %v2112_v34 = vpop.f32.mrf.mxu1  ;;  %v13626_v22 = vadd.f32 %v13548_v27, %v12734_v12  ;;  %v9384_v27 = vmul.f32 -1.442695, %v13620_v29 }
 0x1a0   : > { %19315 = vst [vmem:[#allocation152_spill] sm:$0xff] %v13605_v33  ;;  %v13612_v50 = vpop.eup %10115  ;;  %10147 = vpow2.f32 %v9371_v9  ;;  %v13666_v60 = vadd.f32 %v2112_v34, %v12754_v23 }
 0x1a1   : > { %19317 = vst [vmem:[#allocation154_spill] sm:$0xff] %v13612_v50  ;;  %v10118_v4 = vpop.eup %10117  ;;  %10149 = vpow2.f32 %v9376_v51  ;;  %v9385_v30 = vmul.f32 -1.442695, %v13626_v22 }
 0x1a2   : > { %v10120_v5 = vpop.eup %10119  ;;  %v2893_v39 = vadd.f32 1.0, %v10118_v4  ;;  %10151 = vpow2.f32 %v9378_v16  ;;  %v1953_v4 = vpop.f32.mrf.mxu0 }
 0x1a3   : > { %v10122_v38 = vpop.eup %10121  ;;  %v2894_v50 = vadd.f32 1.0, %v10120_v5  ;;  %10153 = vpow2.f32 %v9377_v32  ;;  %v2114_v5 = vpop.f32.mrf.mxu1 }
 0x1a4   : > { %v10124_v62 = vpop.eup %10123  ;;  %v2901_v9 = vadd.f32 1.0, %v10122_v38  ;;  %10155 = vpow2.f32 %v9379_v37  ;;  %v13642_v38 = vadd.f32 %v2106_v19, %v12708_v59  ;;  %v13676_v36 = vadd.f32 %v2114_v5, %v12754_v23 }
 0x1a5   : > { %v13622_v48 = vpop.eup %10125  ;;  %v2902_v3 = vadd.f32 1.0, %v10124_v62  ;;  %10157 = vrcp.f32 %v2893_v39  ;;  %v13648_v62 = vadd.f32 %v1947_v24, %v12708_v59  ;;  %v13654_v39 = vadd.f32 %v2108_v14, %v12708_v59 }
 0x1a6   : > { %19318 = vst [vmem:[#allocation155_spill] sm:$0xff] %v13622_v48  ;;  %v13628_v42 = vpop.eup %10127  ;;  %v13636_v48 = vadd.f32 %v1945_v18, %v12708_v59  ;;  %10159 = vrcp.f32 %v2894_v50  ;;  %v9387_v18 = vmul.f32 -1.442695, %v13631_v13  ;;  %v13660_v50 = vadd.f32 %v1951_v25, %v12754_v23 }
 0x1a7   : > { %19319 = vst [vmem:[#allocation156_spill] sm:$0xff] %v13628_v42  ;;  %v13633_v51 = vpop.eup %10129  ;;  %10161 = vrcp.f32 %v2901_v9  ;;  %v1957_v42 = vpop.f32.mrf.mxu0  ;;  %v9394_v9 = vmul.f32 -1.442695, %v13642_v38  ;;  %v9393_v59 = vmul.f32 -1.442695, %v13648_v62 }
 0x1a8   : > { %19320 = vst [vmem:[#allocation157_spill] sm:$0xff] %v13633_v51  ;;  %v13638_v16 = vpop.eup %10131  ;;  %10163 = vrcp.f32 %v2902_v3  ;;  %v9392_v19 = vmul.f32 -1.442695, %v13636_v48  ;;  %v13670_v3 = vadd.f32 %v1953_v4, %v12754_v23  ;;  %v9395_v25 = vmul.f32 -1.442695, %v13654_v39 }
 0x1a9   : > { %19321 = vst [vmem:[#allocation158_spill] sm:$0xff] %v13638_v16  ;;  %v13644_v32 = vpop.eup %10133  ;;  %v2118_v16 = vpop.f32.mrf.mxu1  ;;  %10165 = vpow2.f32 %v9384_v27  ;;  %v9400_v34 = vmul.f32 -1.442695, %v13660_v50  ;;  %v9402_v4 = vmul.f32 -1.442695, %v13666_v60 }
 0x1aa   : > { %v13650_v37 = vpop.eup %10135  ;;  %10167 = vpow2.f32 %v9385_v30  ;;  %v1959_v27 = vpop.f32.mrf.mxu0  ;;  %v13680_v30 = vadd.f32 %v1957_v42, %v12728_v8  ;;  %v9401_v5 = vmul.f32 -1.442695, %v13670_v3  ;;  %v9403_v42 = vmul.f32 -1.442695, %v13676_v36 }
 0x1ab   : > { %v13656_v51 = vpop.eup %10137  ;;  %10169 = vpow2.f32 %v9387_v18  ;;  %v2120_v56 = vpop.f32.mrf.mxu1  ;;  %v13686_v18 = vadd.f32 %v2118_v16, %v12728_v8  ;;  %v13702_v16 = vadd.f32 %v13530_v49, %v12734_v12 }
 0x1ac   : > { %v13662_v24 = vpop.eup %10139  ;;  %10171 = vpow2.f32 %v9392_v19  ;;  %v13690_v19 = vadd.f32 %v1959_v27, %v12728_v8  ;;  %v13696_v57 = vadd.f32 %v2120_v56, %v12728_v8 }
 0x1ad   : > { %v10142_v14 = vpop.eup %10141  ;;  %10173 = vpow2.f32 %v9394_v9  ;;  %v13698_v9 = vpop.f32.mrf.mxu0  ;;  %19322 = vst [vmem:[#allocation159_spill] sm:$0xff] %v13702_v16 }
 0x1ae   : > { %v13672_v63 = vpop.eup %10143  ;;  %10175 = vpow2.f32 %v9393_v59  ;;  %v9408_v59 = vmul.f32 -1.442695, %v13680_v30  ;;  %v13705_v27 = vpop.f32.mrf.mxu1  ;;  %v9409_v56 = vmul.f32 -1.442695, %v13690_v19  ;;  %v9411_v49 = vmul.f32 -1.442695, %v13696_v57 }
 0x1af   : > { %v10146_v33 = vpop.eup %10145  ;;  %10177 = vpow2.f32 %v9395_v25  ;;  %19323 = vst [vmem:[#allocation160_spill] sm:$0xff] %v13705_v27  ;;  %v9410_v25 = vmul.f32 -1.442695, %v13686_v18  ;;  %v9386_v27 = vmul.f32 -1.442695, %v13702_v16 }
 0x1b0   : > { %v13682_v45 = vpop.eup %10147  ;;  %10179 = vpow2.f32 %v9400_v34  ;;  %v13716_v34 = vpop.f32.mrf.mxu0  ;;  %v2910_v28 = vadd.f32 1.0, %v10146_v33 }
 0x1b1   : > { %v10150_v21 = vpop.eup %10149  ;;  %10181 = vpow2.f32 %v9402_v4  ;;  %v13721_v4 = vpop.f32.mrf.mxu1 }
 0x1b2   : > { %v13692_v23 = vpop.eup %10151  ;;  %10183 = vpow2.f32 %v9401_v5  ;;  %19327 = vst [vmem:[#allocation164_spill] sm:$0xff] %v13721_v4  ;;  %v13725_v44 = vpop.f32.mrf.mxu0 }
 0x1b3   : > { %v10154_v6 = vpop.eup %10153  ;;  %10185 = vpow2.f32 %v9403_v42  ;;  %v2917_v42 = vadd.f32 1.0, %v10150_v21 }
 0x1b4   : > { %v13707_v11 = vpop.eup %10155  ;;  %10187 = vpow2.f32 %v9408_v59  ;;  %v2918_v46 = vadd.f32 1.0, %v10154_v6 }
 0x1b5   : > { %v13710_v55 = vpop.eup %10157  ;;  %10189 = vpow2.f32 %v9410_v25 }
 0x1b6   : > { %19324 = vst [vmem:[#allocation161_spill] sm:$0xff] %v13710_v55  ;;  %v13713_v8 = vpop.eup %10159  ;;  %v2909_v55 = vadd.f32 1.0, %v10142_v14  ;;  %10191 = vpow2.f32 %v9409_v56  ;;  %v13729_v56 = vpop.f32.mrf.mxu0 }
 0x1b7   : > { %19325 = vst [vmem:[#allocation162_spill] sm:$0xff] %v13713_v8  ;;  %v13718_v12 = vpop.eup %10161  ;;  %10193 = vpow2.f32 %v9411_v49  ;;  %19330 = vst [vmem:[#allocation167_spill] sm:$0xff] %v13729_v56 }
 0x1b8   : > { %19326 = vst [vmem:[#allocation163_spill] sm:$0xff] %v13718_v12  ;;  %v13723_v61 = vpop.eup %10163  ;;  %10195 = vpow2.f32 %v9386_v27  ;;  %v13727_v12 = vpop.f32.mrf.mxu1 }
 0x1b9   : > { %19328 = vst [vmem:[#allocation165_spill] sm:$0xff] %v13723_v61  ;;  %v10166_v5 = vpop.eup %10165  ;;  %19329 = vst [vmem:[#allocation166_spill] sm:$0xff] %v13727_v12  ;;  %10197 = vrcp.f32 %v2909_v55 }
 0x1ba   : > { %v10168_v8 = vpop.eup %10167  ;;  %v2925_v4 = vadd.f32 1.0, %v10166_v5  ;;  %10199 = vrcp.f32 %v2910_v28  ;;  %v13731_v61 = vpop.f32.mrf.mxu1 }
 0x1bb   : > { %v10170_v31 = vpop.eup %10169  ;;  %v2926_v14 = vadd.f32 1.0, %v10168_v8  ;;  %10201 = vrcp.f32 %v2917_v42  ;;  %19331 = vst [vmem:[#allocation168_spill] sm:$0xff] %v13731_v61  ;;  %v13733_v5 = vpop.f32.mrf.mxu0 }
 0x1bc   : > { %v10172_v59 = vpop.eup %10171  ;;  %10203 = vrcp.f32 %v2918_v46  ;;  %19332 = vst [vmem:[#allocation169_spill] sm:$0xff] %v13733_v5  ;;  %v13735_v42 = vpop.f32.mrf.mxu1 }
 0x1bd   : > { %v10174_v54 = vpop.eup %10173  ;;  %v2933_v33 = vadd.f32 1.0, %v10172_v59  ;;  %10205 = vrcp.f32 %v2925_v4  ;;  %19333 = vst [vmem:[#allocation170_spill] sm:$0xff] %v13735_v42 }
 0x1be   : > { %v10176_v25 = vpop.eup %10175  ;;  %10207 = vrcp.f32 %v2926_v14  ;;  %v13737_v14 = vpop.f32.mrf.mxu0 }
 0x1bf   : > { %v10178_v21 = vpop.eup %10177  ;;  %v2934_v49 = vadd.f32 1.0, %v10176_v25  ;;  %10209 = vrcp.f32 %v2933_v33  ;;  %v13739_v16 = vpop.f32.mrf.mxu1 }
 0x1c0   : > { %v10180_v6 = vpop.eup %10179  ;;  %19334 = vst [vmem:[#allocation171_spill] sm:$0xff] %v13739_v16 }
 0x1c1   : > { %v10182_v27 = vpop.eup %10181  ;;  %v2941_v12 = vadd.f32 1.0, %v10180_v6  ;;  %10211 = vrcp.f32 %v2934_v49 }
 0x1c2   : > { %v10184_v55 = vpop.eup %10183  ;;  %v2943_v33 = vadd.f32 1.0, %v10182_v27 }
 0x1c3   : > { %v10186_v8 = vpop.eup %10185  ;;  %v2942_v28 = vadd.f32 1.0, %v10184_v55  ;;  %10213 = vrcp.f32 %v2941_v12  ;;  %v2936_v55 = vadd.f32 1.0, %v10178_v21  ;;  %v2920_v21 = vadd.f32 1.0, %v13707_v11 }
 0x1c4   : > { %v10188_v59 = vpop.eup %10187  ;;  %v2944_v46 = vadd.f32 1.0, %v10186_v8  ;;  %v2935_v8 = vadd.f32 1.0, %v10174_v54  ;;  %v2919_v54 = vadd.f32 1.0, %v13692_v23 }
 0x1c5   : > { %v10190_v25 = vpop.eup %10189  ;;  %10215 = vrcp.f32 %v2942_v28  ;;  %v2949_v61 = vadd.f32 1.0, %v10188_v59  ;;  %v2928_v59 = vadd.f32 1.0, %v10170_v31 }
 0x1c6   : > { %v10192_v56 = vpop.eup %10191  ;;  %10217 = vrcp.f32 %v2944_v46  ;;  %v2951_v4 = vadd.f32 1.0, %v10190_v25  ;;  %v13745_v46 = vpop.f32.mrf.mxu0 }
 0x1c7   : > { %v10194_v6 = vpop.eup %10193  ;;  %10219 = vrcp.f32 %v2949_v61  ;;  %v2950_v5 = vadd.f32 1.0, %v10192_v56  ;;  %v13749_v56 = vpop.f32.mrf.mxu1 }
 0x1c8   : > { %v10196_v49 = vpop.eup %10195  ;;  %10221 = vrcp.f32 %v2951_v4  ;;  %v2952_v42 = vadd.f32 1.0, %v10194_v6  ;;  %19335 = vst [vmem:[#allocation172_spill] sm:$0xff] %v13749_v56 }
 0x1c9   : > { %v13741_v12 = vpop.eup %10197  ;;  %10223 = vrcp.f32 %v2950_v5  ;;  %v2927_v61 = vadd.f32 1.0, %v10196_v49  ;;  %v2912_v5 = vadd.f32 1.0, %v13682_v45  ;;  %v13765_v49 = vpop.f32.mrf.mxu1  ;;  %v2896_v45 = vadd.f32 1.0, %v13650_v37 }
 0x1ca   : > { %v13743_v28 = vpop.eup %10199  ;;  %10225 = vrcp.f32 %v2952_v42  ;;  %v13760_v42 = vpop.f32.mrf.mxu0  ;;  %19336 = vst [vmem:[#allocation173_spill] sm:$0xff] %v13765_v49  ;;  %v13779_v37 = vmul.f32 %v13400_v0, %v13273_v35 }
 0x1cb   : > { %v13747_v25 = vpop.eup %10201  ;;  %10227 = vrcp.f32 %v2943_v33  ;;  %v2911_v33 = vadd.f32 1.0, %v13672_v63  ;;  %v2895_v63 = vadd.f32 1.0, %v13644_v32  ;;  %v2880_v32 = vadd.f32 1.0, %v13570_v41 }
 0x1cc   : > { %v13751_v27 = vpop.eup %10203  ;;  %10229 = vrcp.f32 %v2936_v55  ;;  %v2904_v55 = vadd.f32 1.0, %v13662_v24  ;;  %v2888_v24 = vadd.f32 1.0, %v13584_v7 }
 0x1cd   : > { %v13754_v4 = vpop.eup %10205  ;;  %10231 = vrcp.f32 %v2935_v8  ;;  %v2903_v8 = vadd.f32 1.0, %v13656_v51  ;;  %v2887_v51 = vadd.f32 1.0, %v13577_v43  ;;  %v2879_v43 = vadd.f32 1.0, %v13563_v58 }
 0x1ce   : > { %v13757_v31 = vpop.eup %10207  ;;  %10233 = vrcp.f32 %v2928_v59  ;;  %v13770_v59 = vpop.f32.mrf.mxu0 }
 0x1cf   : > { %v13762_v6 = vpop.eup %10209  ;;  %10235 = vrcp.f32 %v2927_v61  ;;  %v13773_v61 = vpop.f32.mrf.mxu1 }
 0x1d0   : > { %v10212_v11 = vpop.eup %10211  ;;  %10237 = vrcp.f32 %v2920_v21  ;;  %19337 = vst [vmem:[#allocation174_spill] sm:$0xff] %v13773_v61  ;;  %v2871_v61 = vadd.f32 1.0, %v13550_v40  ;;  %v2863_v40 = vadd.f32 1.0, %v13536_v47 }
 0x1d1   : > { %v10214_v23 = vpop.eup %10213  ;;  %10239 = vrcp.f32 %v2919_v54  ;;  %v13794_v0 = vpop.f32.mrf.mxu1 }
 0x1d2   : > { %v10216_v56 = vpop.eup %10215  ;;  %10241 = vrcp.f32 %v2912_v5  ;;  %v13783_v5 = vmul.f32 %v13414_v53, %v13279_v2  ;;  %v2872_v2 = vadd.f32 1.0, %v13556_v20  ;;  %v3325_v20 = vmul.f32 %v10214_v23, %v13660_v50  ;;  %v19342_v23 = vld [vmem:[#allocation167_spill] sm:$0xff] }
 0x1d3   : > { %v10218_v16 = vpop.eup %10217  ;;  %10243 = vrcp.f32 %v2911_v33  ;;  %v13786_v33 = vpop.f32.mrf.mxu0 }
 0x1d4   : > { %v10220_v49 = vpop.eup %10219  ;;  %10245 = vrcp.f32 %v2904_v55  ;;  %v13790_v55 = vmul.f32 %v13429_v10, %v13290_v52  ;;  %v3326_v52 = vmul.f32 %v10216_v56, %v13670_v3  ;;  %v3318_v3 = vmul.f32 %v10212_v11, %v13648_v62  ;;  %v13810_v56 = vpop.f32.mrf.mxu1 }
 0x1d5   : > { %v10222_v21 = vpop.eup %10221  ;;  %10247 = vrcp.f32 %v2903_v8  ;;  %v3333_v53 = vmul.f32 %v10220_v49, %v13680_v30  ;;  %v13805_v30 = vpop.f32.mrf.mxu0  ;;  %v13824_v49 = vadd.f32 %v13716_v34, %v12896_v15  ;;  %v3302_v34 = vmul.f32 %v13751_v27, %v13603_v26 }
 0x1d6   : > { %v10224_v54 = vpop.eup %10223  ;;  %10249 = vrcp.f32 %v2896_v45  ;;  %v3335_v10 = vmul.f32 %v10222_v21, %v13686_v18  ;;  %v19346_v21 = vld [vmem:[#allocation148_spill] sm:$0xff] }
 0x1d7   : > { %v10226_v7 = vpop.eup %10225  ;;  %10251 = vrcp.f32 %v2895_v63  ;;  %v3334_v35 = vmul.f32 %v10224_v54, %v13690_v19  ;;  %v2864_v19 = vadd.f32 1.0, %v13542_v17  ;;  %v3328_v63 = vmul.f32 %v10218_v16, %v13676_v36  ;;  %19339 = vst [vmem:[#allocation176_spill] sm:$0xff] %v13824_v49  ;;  %v19347_v54 = vld [vmem:[#allocation153_spill] sm:$0xff] }
 0x1d8   : > { %v10228_v8 = vpop.eup %10227  ;;  %10253 = vrcp.f32 %v2888_v24  ;;  %v3336_v41 = vmul.f32 %v10226_v7, %v13696_v57  ;;  %v3317_v36 = vmul.f32 %v13762_v6, %v13636_v48  ;;  %v13817_v16 = vadd.f32 %v13698_v9, %v12896_v15  ;;  %v19348_v7 = vld [vmem:[#allocation107_spill] sm:$0xff] }
 0x1d9   : > { %v10230_v45 = vpop.eup %10229  ;;  %10255 = vrcp.f32 %v2887_v51  ;;  %3397 = vmatprep.subr.mxu0 %v3334_v35  ;;  %v3327_v18 = vmul.f32 %v10228_v8, %v13666_v60  ;;  %v3310_v60 = vmul.f32 %v13757_v31, %v13626_v22  ;;  %v13831_v6 = vadd.f32 %v13725_v44, %v12926_v1  ;;  %v13833_v22 = vpop.f32.mrf.mxu0  ;;  %v19341_v31 = vld [vmem:[#allocation159_spill] sm:$0xff]  ;;  %v19350_v8 = vld [vmem:[#allocation146_spill] sm:$0xff] }
 0x1da   : > { %v10232_v58 = vpop.eup %10231  ;;  %10257 = vrcp.f32 %v2880_v32  ;;  %3510 = vmatprep.subr.mxu1 %v3336_v41  ;;  %3398 = vmatpush1.msra.mxu0 %v3333_v53  ;;  %v3320_v50 = vmul.f32 %v10230_v45, %v13654_v39  ;;  %19338 = vst [vmem:[#allocation175_spill] sm:$0xff] %v13817_v16  ;;  %v3309_v39 = vmul.f32 %v13754_v4, %v13620_v29  ;;  %v19344_v4 = vld [vmem:[#allocation105_spill] sm:$0xff]  ;;  %v9292_v27 = vmul.f32 -1.442695, %v13817_v16  ;;  %v19351_v53 = vld [vmem:[#allocation150_spill] sm:$0xff] }
 0x1db   : > { %v10234_v57 = vpop.eup %10233  ;;  %10259 = vrcp.f32 %v2879_v43  ;;  %3511 = vmatpush1.msra.mxu1 %v3335_v10  ;;  %3399 = vmatprep.subr.mxu0 %v3326_v52  ;;  %v3319_v62 = vmul.f32 %v10232_v58, %v13642_v38  ;;  %19340 = vst [vmem:[#allocation177_spill] sm:$0xff] %v13831_v6  ;;  %v13840_v29 = vadd.f32 %v19342_v23, %v12926_v1  ;;  %v19349_v43 = vld [vmem:[#allocation149_spill] sm:$0xff]  ;;  %v9293_v45 = vmul.f32 -1.442695, %v13824_v49  ;;  %v19352_v52 = vld [vmem:[#allocation108_spill] sm:$0xff]  ;;  %v19353_v10 = vld [vmem:[#allocation151_spill] sm:$0xff] }
 0x1dc   : > { %v10236_v17 = vpop.eup %10235  ;;  %10261 = vrcp.f32 %v2872_v2  ;;  %3512 = vmatprep.subr.mxu1 %v3328_v63  ;;  %3400 = vmatpush1.msra.mxu0 %v3325_v20  ;;  %v3312_v9 = vmul.f32 %v10234_v57, %v13631_v13  ;;  %v13842_v13 = vpop.f32.mrf.mxu1  ;;  %v3301_v51 = vmul.f32 %v13747_v25, %v19346_v21  ;;  %v13854_v35 = vmul.f32 %v19349_v43, %v19348_v7  ;;  %v19355_v63 = vld [vmem:[#allocation147_spill] sm:$0xff]  ;;  %v19369_v7 = vld [vmem:[#allocation142_spill] sm:$0xff] }
 0x1dd   : > { %v10238_v47 = vpop.eup %10237  ;;  %10263 = vrcp.f32 %v2871_v61  ;;  %3513 = vmatpush1.msra.mxu1 %v3327_v18  ;;  %3401 = vmatprep.subr.mxu0 %v3318_v3  ;;  %v3311_v11 = vmul.f32 %v10236_v17, %v19341_v31  ;;  %19343 = vst [vmem:[#allocation159_spill] sm:$0xff] %v13840_v29  ;;  %v19345_v61 = vld [vmem:[#allocation137_spill] sm:$0xff]  ;;  %v3294_v2 = vmul.f32 %v13743_v28, %v19350_v8  ;;  %v13868_v3 = vpop.f32.mrf.mxu0  ;;  %v19357_v17 = vld [vmem:[#allocation152_spill] sm:$0xff] }
 0x1de   : > { %v10240_v48 = vpop.eup %10239  ;;  %10265 = vrcp.f32 %v2864_v19  ;;  %3514 = vmatprep.subr.mxu1 %v3320_v50  ;;  %3402 = vmatpush1.msra.mxu0 %v3317_v36  ;;  %v13846_v24 = vmul.f32 %v19345_v61, %v19344_v4  ;;  %v3304_v26 = vmul.f32 %v10238_v47, %v19347_v54  ;;  %v13862_v58 = vmul.f32 %v19353_v10, %v19352_v52  ;;  %v19354_v19 = vld [vmem:[#allocation144_spill] sm:$0xff]  ;;  %v19356_v18 = vld [vmem:[#allocation109_spill] sm:$0xff]  ;;  %v19358_v50 = vld [vmem:[#allocation138_spill] sm:$0xff] }
 0x1df   : > { %v10242_v38 = vpop.eup %10241  ;;  %10267 = vrcp.f32 %v2863_v40  ;;  %3515 = vmatpush1.msra.mxu1 %v3319_v62  ;;  %3403 = vmatprep.subr.mxu0 %v3310_v60  ;;  %v3303_v41 = vmul.f32 %v10240_v48, %v19351_v53  ;;  %v3293_v20 = vmul.f32 %v13741_v12, %v19354_v19  ;;  %v9300_v40 = vmul.f32 -1.442695, %v13831_v6  ;;  %v19359_v47 = vld [vmem:[#allocation165_spill] sm:$0xff]  ;;  %v19364_v4 = vld [vmem:[#allocation14_spill] sm:$0xff] }
 0x1e0   : > { %v10244_v44 = vpop.eup %10243  ;;  %3516 = vmatprep.subr.mxu1 %v3312_v9  ;;  %3404 = vmatpush1.msra.mxu0 %v3309_v39  ;;  %v3296_v57 = vmul.f32 %v10242_v38, %v19355_v63  ;;  %v13872_v36 = vmul.f32 %v19357_v17, %v19356_v18  ;;  %v3286_v60 = vmul.f32 %v19359_v47, %v19358_v50  ;;  %v19360_v62 = vld [vmem:[#allocation145_spill] sm:$0xff]  ;;  %v9301_v12 = vmul.f32 -1.442695, %v13840_v29  ;;  %v13878_v39 = vpop.f32.mrf.mxu1  ;;  %v19361_v38 = vld [vmem:[#allocation136_spill] sm:$0xff]  ;;  %v19368_v54 = vld [vmem:[#allocation162_spill] sm:$0xff] }
 0x1e1   : > { %v10246_v32 = vpop.eup %10245  ;;  %3517 = vmatpush1.msra.mxu1 %v3311_v11  ;;  %3405 = vmatprep.subr.mxu0 %v3302_v34  ;;  %v3295_v48 = vmul.f32 %v10244_v44, %v19360_v62  ;;  %v19362_v34 = vld [vmem:[#allocation163_spill] sm:$0xff]  ;;  %10269 = vpow2.f32 %v9292_v27  ;;  %v19365_v61 = vld [vmem:[#allocation169_spill] sm:$0xff]  ;;  %v13892_v8 = vadd.f32 %v13737_v14, %v19364_v4 }
 0x1e2   : > { %v10248_v25 = vpop.eup %10247  ;;  %3518 = vmatprep.subr.mxu1 %v3304_v26  ;;  %3406 = vmatpush1.msra.mxu0 %v3301_v51  ;;  %v3285_v31 = vmul.f32 %v19362_v34, %v19361_v38  ;;  %v19363_v11 = vld [vmem:[#allocation143_spill] sm:$0xff]  ;;  %v13885_v21 = vadd.f32 %v19365_v61, %v19364_v4  ;;  %v19367_v51 = vld [vmem:[#allocation134_spill] sm:$0xff]  ;;  %10271 = vpow2.f32 %v9293_v45  ;;  %v19374_v10 = vld [vmem:[#allocation17_spill] sm:$0xff] }
 0x1e3   : > { %v10250_v28 = vpop.eup %10249  ;;  %3519 = vmatpush1.msra.mxu1 %v3303_v41  ;;  %3407 = vmatprep.subr.mxu0 %v3294_v2  ;;  %v3288_v23 = vmul.f32 %v10246_v32, %v19363_v11  ;;  %v3278_v26 = vmul.f32 %v19368_v54, %v19367_v51  ;;  %v3287_v43 = vmul.f32 %v10248_v25, %v19369_v7  ;;  %v19371_v32 = vld [vmem:[#allocation132_spill] sm:$0xff]  ;;  %v19372_v2 = vld [vmem:[#allocation161_spill] sm:$0xff]  ;;  %10273 = vpow2.f32 %v9300_v40  ;;  %v19376_v14 = vld [vmem:[#allocation115_spill] sm:$0xff]  ;;  %v13910_v40 = vpop.f32.mrf.mxu1 }
 0x1e4   : > { %v10252_v9 = vpop.eup %10251  ;;  %19366 = vst [vmem:[#allocation167_spill] sm:$0xff] %v13885_v21  ;;  %3520 = vmatprep.subr.mxu1 %v3296_v57  ;;  %3408 = vmatpush1.msra.mxu0 %v3293_v20  ;;  %19370 = vst [vmem:[#allocation105_spill] sm:$0xff] %v13892_v8  ;;  %v3277_v53 = vmul.f32 %v19372_v2, %v19371_v32  ;;  %v19373_v41 = vld [vmem:[#allocation141_spill] sm:$0xff]  ;;  %v13899_v19 = vadd.f32 %v13745_v46, %v19374_v10  ;;  %v13901_v20 = vpop.f32.mrf.mxu0  ;;  %v19377_v25 = vld [vmem:[#allocation158_spill] sm:$0xff]  ;;  %10275 = vpow2.f32 %v9301_v12 }
 0x1e5   : > { %v10254_v44 = vpop.eup %10253  ;;  %3521 = vmatpush1.msra.mxu1 %v3295_v48  ;;  %3409 = vmatprep.subr.mxu0 %v3286_v60  ;;  %v3280_v52 = vmul.f32 %v10250_v28, %v19373_v41  ;;  %v3270_v63 = vmul.f32 %v19377_v25, %v19376_v14  ;;  %v19378_v57 = vld [vmem:[#allocation140_spill] sm:$0xff]  ;;  %v13908_v17 = vadd.f32 %v13760_v42, %v19374_v10  ;;  %v19380_v28 = vld [vmem:[#allocation114_spill] sm:$0xff]  ;;  %v19381_v50 = vld [vmem:[#allocation157_spill] sm:$0xff]  ;;  %v9308_v12 = vmul.f32 -1.442695, %v13885_v21 }
 0x1e6   : > { %v10256_v27 = vpop.eup %10255  ;;  %19375 = vst [vmem:[#allocation137_spill] sm:$0xff] %v13899_v19  ;;  %3522 = vmatprep.subr.mxu1 %v3288_v23  ;;  %3410 = vmatpush1.msra.mxu0 %v3285_v31  ;;  %v3279_v18 = vmul.f32 %v10252_v9, %v19378_v57  ;;  %v3269_v47 = vmul.f32 %v19381_v50, %v19380_v28  ;;  %v19382_v60 = vld [vmem:[#allocation130_spill] sm:$0xff]  ;;  %v19383_v48 = vld [vmem:[#allocation160_spill] sm:$0xff]  ;;  %v19391_v7 = vld [vmem:[#allocation155_spill] sm:$0xff] }
 0x1e7   : > { %v10258_v45 = vpop.eup %10257  ;;  %19379 = vst [vmem:[#allocation148_spill] sm:$0xff] %v13908_v17  ;;  %3523 = vmatpush1.msra.mxu1 %v3287_v43  ;;  %3411 = vmatprep.subr.mxu0 %v3278_v26  ;;  %v3272_v62 = vmul.f32 %v10254_v44, %v19382_v60  ;;  %v13917_v38 = vadd.f32 %v19383_v48, %v12896_v15  ;;  %v19385_v9 = vld [vmem:[#allocation112_spill] sm:$0xff]  ;;  %v9309_v44 = vmul.f32 -1.442695, %v13892_v8  ;;  %v19390_v26 = vld [vmem:[#allocation111_spill] sm:$0xff]  ;;  %v19392_v32 = vld [vmem:[#allocation126_spill] sm:$0xff]  ;;  %v13946_v60 = vpop.f32.mrf.mxu1  ;;  %10277 = vpow2.f32 %v9308_v12 }
 0x1e8   : > { %v10260_v46 = vpop.eup %10259  ;;  %3524 = vmatprep.subr.mxu1 %v3280_v52  ;;  %3412 = vmatpush1.msra.mxu0 %v3277_v53  ;;  %v19386_v34 = vld [vmem:[#allocation156_spill] sm:$0xff]  ;;  %v3261_v43 = vmul.f32 %v19391_v7, %v19390_v26  ;;  %v3264_v2 = vmul.f32 %v10258_v45, %v19392_v32  ;;  %v19393_v53 = vld [vmem:[#allocation166_spill] sm:$0xff]  ;;  %v13936_v52 = vpop.f32.mrf.mxu0  ;;  %v9317_v45 = vmul.f32 -1.442695, %v13908_v17 }
 0x1e9   : > { %19384 = vst [vmem:[#allocation153_spill] sm:$0xff] %v13917_v38  ;;  %v10262_v42 = vpop.eup %10261  ;;  %v3262_v31 = vmul.f32 %v19386_v34, %v19385_v9  ;;  %v19387_v11 = vld [vmem:[#allocation128_spill] sm:$0xff]  ;;  %3525 = vmatpush1.msra.mxu1 %v3279_v18  ;;  %3413 = vmatprep.subr.mxu0 %v3270_v63  ;;  %v13933_v41 = vadd.f32 %v19393_v53, %v12926_v1  ;;  %v19395_v14 = vld [vmem:[#allocation110_spill] sm:$0xff]  ;;  %10279 = vpow2.f32 %v9309_v44  ;;  %v19409_v44 = vld [vmem:[#allocation117_spill] sm:$0xff] }
 0x1ea   : > { %v3271_v23 = vmul.f32 %v10256_v27, %v19387_v11  ;;  %v19388_v61 = vld [vmem:[#allocation164_spill] sm:$0xff]  ;;  %v10264_v54 = vpop.eup %10263  ;;  %v9316_v27 = vmul.f32 -1.442695, %v13899_v19  ;;  %3526 = vmatprep.subr.mxu1 %v3272_v62  ;;  %3414 = vmatpush1.msra.mxu0 %v3269_v47  ;;  %v19396_v25 = vld [vmem:[#allocation154_spill] sm:$0xff]  ;;  %v9294_v47 = vmul.f32 -1.442695, %v13917_v38 }
 0x1eb   : > { %v13925_v51 = vadd.f32 %v19388_v61, %v12896_v15  ;;  %19394 = vst [vmem:[#allocation149_spill] sm:$0xff] %v13933_v41  ;;  %v10266_v15 = vpop.eup %10265  ;;  %v3254_v63 = vmul.f32 %v19396_v25, %v19395_v14  ;;  %v19397_v57 = vld [vmem:[#allocation124_spill] sm:$0xff]  ;;  %3415 = vmatprep.subr.mxu0 %v3262_v31  ;;  %v19400_v9 = vld [vmem:[#allocation122_spill] sm:$0xff]  ;;  %v9302_v12 = vmul.f32 -1.442695, %v13933_v41  ;;  %v19413_v14 = vld [vmem:[#allocation133_spill] sm:$0xff] }
 0x1ec   : > { %v3263_v18 = vmul.f32 %v10260_v46, %v19397_v57  ;;  %v19398_v28 = vld [vmem:[#allocation168_spill] sm:$0xff]  ;;  %3527 = vmatpush1.msra.mxu1 %v3271_v23  ;;  %v10268_v48 = vpop.eup %10267  ;;  %v3256_v62 = vmul.f32 %v10262_v42, %v19400_v9  ;;  %v19401_v34 = vld [vmem:[#allocation170_spill] sm:$0xff]  ;;  %3416 = vmatpush1.msra.mxu0 %v3261_v43  ;;  %v19404_v23 = vld [vmem:[#allocation171_spill] sm:$0xff]  ;;  %10281 = vpow2.f32 %v9316_v27  ;;  %v13966_v43 = vpop.f32.mrf.mxu0 }
 0x1ed   : > { %19389 = vst [vmem:[#allocation107_spill] sm:$0xff] %v13925_v51  ;;  %v13943_v50 = vadd.f32 %v19398_v28, %v12926_v1  ;;  %v13952_v11 = vadd.f32 %v19401_v34, %v19364_v4  ;;  %3528 = vmatprep.subr.mxu1 %v3264_v2  ;;  %v19403_v1 = vld [vmem:[#allocation120_spill] sm:$0xff]  ;;  %v9295_v61 = vmul.f32 -1.442695, %v13925_v51  ;;  %v13958_v31 = vadd.f32 %v19404_v23, %v19364_v4  ;;  %v19406_v42 = vld [vmem:[#allocation118_spill] sm:$0xff]  ;;  %v19410_v2 = vld [vmem:[#allocation173_spill] sm:$0xff] }
 0x1ee   : > { %v3255_v46 = vmul.f32 %v10264_v54, %v19403_v1  ;;  %3529 = vmatpush1.msra.mxu1 %v3263_v18  ;;  %3417 = vmatprep.subr.mxu0 %v3254_v63  ;;  %v3248_v26 = vmul.f32 %v10266_v15, %v19406_v42  ;;  %v19407_v7 = vld [vmem:[#allocation172_spill] sm:$0xff]  ;;  %v3247_v54 = vmul.f32 %v10268_v48, %v19409_v44  ;;  %10283 = vpow2.f32 %v9317_v45  ;;  %v13975_v15 = vpop.f32.mrf.mxu1  ;;  %v19412_v27 = vld [vmem:[#allocation103_spill] sm:$0xff]  ;;  %v19414_v63 = vld [vmem:[#allocation106_spill] sm:$0xff]  ;;  %v10270_v28 = vpop.eup %10269 }
 0x1ef   : > { %19399 = vst [vmem:[#allocation146_spill] sm:$0xff] %v13943_v50  ;;  %19402 = vst [vmem:[#allocation150_spill] sm:$0xff] %v13952_v11  ;;  %v13964_v32 = vadd.f32 %v19407_v7, %v19374_v10  ;;  %3530 = vmatprep.subr.mxu1 %v3256_v62  ;;  %3418 = vmatpush1.msra.mxu0 %v13872_v36  ;;  %v9303_v4 = vmul.f32 -1.442695, %v13943_v50  ;;  %v13973_v53 = vadd.f32 %v19410_v2, %v19374_v10  ;;  %v19415_v57 = vld [vmem:[#allocation139_spill] sm:$0xff]  ;;  %v19416_v10 = vld [vmem:[#allocation101_spill] sm:$0xff]  ;;  %v10272_v1 = vpop.eup %10271  ;;  %v13995_v44 = vpop.f32.mrf.mxu0 }
 0x1f0   : > { %19405 = vst [vmem:[#allocation108_spill] sm:$0xff] %v13958_v31  ;;  %3531 = vmatpush1.msra.mxu1 %v3255_v46  ;;  %3419 = vmatprep.subr.mxu0 %v13862_v58  ;;  %v3237_v25 = vmul.f32 %v19413_v14, %v19412_v27  ;;  %v3240_v36 = vmul.f32 %v19415_v57, %v19414_v63  ;;  %10285 = vpow2.f32 %v9294_v47  ;;  %v9310_v18 = vmul.f32 -1.442695, %v13952_v11  ;;  %v19417_v45 = vld [vmem:[#allocation129_spill] sm:$0xff]  ;;  %v19418_v9 = vld [vmem:[#allocation104_spill] sm:$0xff]  ;;  %v19419_v62 = vld [vmem:[#allocation135_spill] sm:$0xff] }
 0x1f1   : > { %19408 = vst [vmem:[#allocation151_spill] sm:$0xff] %v13964_v32  ;;  %19411 = vst [vmem:[#allocation144_spill] sm:$0xff] %v13973_v53  ;;  %3532 = vmatprep.subr.mxu1 %v3248_v26  ;;  %3420 = vmatpush1.msra.mxu0 %v13854_v35  ;;  %v3230_v48 = vmul.f32 %v19417_v45, %v19416_v10  ;;  %v3239_v34 = vmul.f32 %v19419_v62, %v19418_v9  ;;  %10287 = vpow2.f32 %v9295_v61  ;;  %v19420_v47 = vld [vmem:[#allocation99_spill] sm:$0xff]  ;;  %v19421_v46 = vld [vmem:[#allocation125_spill] sm:$0xff]  ;;  %v10274_v61 = vpop.eup %10273  ;;  %v14002_v10 = vpop.f32.mrf.mxu1 }
 0x1f2   : > { %v9311_v58 = vmul.f32 -1.442695, %v13958_v31  ;;  %3533 = vmatpush1.msra.mxu1 %v3247_v54  ;;  %3421 = vmatprep.subr.mxu0 %v13846_v24  ;;  %v3229_v23 = vmul.f32 %v19421_v46, %v19420_v47  ;;  %v19422_v42 = vld [vmem:[#allocation102_spill] sm:$0xff]  ;;  %v19423_v26 = vld [vmem:[#allocation131_spill] sm:$0xff]  ;;  %10289 = vpow2.f32 %v9302_v12  ;;  %v9318_v7 = vmul.f32 -1.442695, %v13964_v32  ;;  %v10276_v12 = vpop.eup %10275 }
 0x1f3   : > { %v3232_v35 = vmul.f32 %v19423_v26, %v19422_v42  ;;  %3534 = vmatprep.subr.mxu1 %v3240_v36  ;;  %3422 = vmatpush1.msra.mxu0 %v3237_v25  ;;  %v19424_v2 = vld [vmem:[#allocation97_spill] sm:$0xff]  ;;  %v19426_v14 = vld [vmem:[#allocation100_spill] sm:$0xff]  ;;  %v19427_v24 = vld [vmem:[#allocation127_spill] sm:$0xff]  ;;  %10291 = vpow2.f32 %v9303_v4  ;;  %v9319_v57 = vmul.f32 -1.442695, %v13973_v53  ;;  %v2833_v36 = vadd.f32 1.0, %v10270_v28 }
 0x1f4   : > { %v19425_v27 = vld [vmem:[#allocation121_spill] sm:$0xff]  ;;  %v3231_v63 = vmul.f32 %v19427_v24, %v19426_v14  ;;  %3535 = vmatpush1.msra.mxu1 %v3239_v34  ;;  %3423 = vmatprep.subr.mxu0 %v3230_v48  ;;  %v19428_v45 = vld [vmem:[#allocation98_spill] sm:$0xff]  ;;  %v19429_v9 = vld [vmem:[#allocation123_spill] sm:$0xff]  ;;  %10293 = vpow2.f32 %v9310_v18  ;;  %v2834_v26 = vadd.f32 1.0, %v10272_v1 }
 0x1f5   : > { %v3222_v54 = vmul.f32 %v19425_v27, %v19424_v2  ;;  %v3224_v62 = vmul.f32 %v19429_v9, %v19428_v45  ;;  %v19430_v25 = vld [vmem:[#allocation12_spill] sm:$0xff]  ;;  %3536 = vmatprep.subr.mxu1 %v3232_v35  ;;  %3424 = vmatpush1.msra.mxu0 %v3229_v23  ;;  %v19433_v4 = vld [vmem:[#allocation119_spill] sm:$0xff]  ;;  %10295 = vpow2.f32 %v9311_v58  ;;  %v2841_v2 = vadd.f32 1.0, %v10274_v61  ;;  %v14022_v23 = vpop.f32.mrf.mxu0  ;;  %v19439_v58 = vld [vmem:[#allocation94_spill] sm:$0xff]  ;;  %v10278_v61 = vpop.eup %10277 }
 0x1f6   : > { %v14008_v47 = vadd.f32 %v13770_v59, %v19430_v25  ;;  %v19432_v46 = vld [vmem:[#allocation96_spill] sm:$0xff]  ;;  %v14014_v48 = vadd.f32 %v13786_v33, %v19430_v25  ;;  %3537 = vmatpush1.msra.mxu1 %v3231_v63  ;;  %v19435_v34 = vld [vmem:[#allocation95_spill] sm:$0xff]  ;;  %10297 = vpow2.f32 %v9318_v7  ;;  %v19437_v59 = vld [vmem:[#allocation13_spill] sm:$0xff]  ;;  %v10280_v24 = vpop.eup %10279 }
 0x1f7   : > { %v3223_v42 = vmul.f32 %v19433_v4, %v19432_v46  ;;  %3425 = vmatprep.subr.mxu0 %v3222_v54  ;;  %v19436_v28 = vld [vmem:[#allocation116_spill] sm:$0xff]  ;;  %v14020_v35 = vadd.f32 %v13805_v30, %v19437_v59  ;;  %3538 = vmatprep.subr.mxu1 %v3224_v62  ;;  %v3341_v33 = vld [vmem:[%s18919_s6] sm:$0xff]  ;;  %v19440_v1 = vld [vmem:[#allocation113_spill] sm:$0xff]  ;;  %v2842_v54 = vadd.f32 1.0, %v10276_v12  ;;  %10299 = vpow2.f32 %v9319_v57  ;;  %v14034_v30 = vpop.f32.mrf.mxu1  ;;  %v14041_v63 = vpop.f32.mrf.mxu0 }
 0x1f8   : > { %19431 = vst [vmem:[#allocation147_spill] sm:$0xff] %v14008_v47  ;;  %19434 = vst [vmem:[#allocation109_spill] sm:$0xff] %v14014_v48  ;;  %v3216_v18 = vmul.f32 %v19436_v28, %v19435_v34  ;;  %3426 = vmatpush1.msra.mxu0 %v13790_v55  ;;  %v3215_v27 = vmul.f32 %v19440_v1, %v19439_v58  ;;  %v14032_v7 = vadd.f32 %v13833_v22, %v19437_v59  ;;  %v3342_v57 = vld [vmem:[%s18919_s6 + $0x8] sm:$0xff]  ;;  %v19465_v50 = vld [vmem:[#allocation8_spill] sm:$0xff] }
 0x1f9   : > { %19438 = vst [vmem:[#allocation152_spill] sm:$0xff] %v14020_v35  ;;  %3539 = vmatpush1.msra.mxu1 %v3223_v42  ;;  %3427 = vmatprep.subr.mxu0 %v13783_v5  ;;  %10301 = vrcp.f32 %v2833_v36  ;;  %v9324_v55 = vmul.f32 -1.442695, %v14008_v47  ;;  %v9325_v14 = vmul.f32 -1.442695, %v14014_v48  ;;  %v19442_v5 = vmov 0.0   ;;  %v14048_v45 = vpop.f32.mrf.mxu1 }
 0x1fa   : > { %19441 = vst [vmem:[#allocation138_spill] sm:$0xff] %v14032_v7  ;;  %3540 = vmatprep.subr.mxu1 %v3216_v18  ;;  %3428 = vmatpush1.msra.mxu0 %v13779_v37  ;;  %10303 = vrcp.f32 %v2834_v26  ;;  %v9332_v22 = vmul.f32 -1.442695, %v14020_v35  ;;  %v10282_v37 = vpop.eup %10281  ;;  %v9333_v12 = vmul.f32 -1.442695, %v14032_v7  ;;  %v2849_v62 = vadd.f32 1.0, %v10278_v61 }
 0x1fb   : > { %3541 = vmatpush1.msra.mxu1 %v3215_v27  ;;  %3462 = vmatmul.mubr.f32.vlgmr.msra.gmra.mxu0 %v3341_v33  ;;  %10305 = vrcp.f32 %v2841_v2  ;;  %v10284_v9 = vpop.eup %10283  ;;  %v19443_v36 = vld [vmem:[#allocation10_spill] sm:$0xff]  ;;  %v2850_v42 = vadd.f32 1.0, %v10280_v24  ;;  %v2857_v28 = vadd.f32 1.0, %v10282_v37  ;;  %v19448_v18 = vld [vmem:[#allocation11_spill] sm:$0xff]  ;;  %v14079_v27 = vpop.f32.mrf.mxu1 }
 0x1fc   : > { %3575 = vmatmul.mubr.f32.vlgmr.msra.gmra.mxu1 %v3341_v33  ;;  %3467 = vmatprep.mubr.f32.mxu0 %v19442_v5  ;;  %10307 = vrcp.f32 %v2842_v54  ;;  %v14053_v46 = vadd.f32 %v13868_v3, %v19443_v36  ;;  %v14059_v26 = vadd.f32 %v13901_v20, %v19443_v36  ;;  %v14065_v2 = vadd.f32 %v13936_v52, %v19448_v18  ;;  %v14067_v33 = vpop.f32.mrf.mxu0  ;;  %v3343_v3 = vld [vmem:[%s18919_s6 + $0x10] sm:$0xff]  ;;  %v19451_v54 = vld [vmem:[#allocation174_spill] sm:$0xff] }
 0x1fd   : > { %3580 = vmatprep.mubr.f32.mxu1 %v19442_v5  ;;  %10309 = vpow2.f32 %v9324_v55  ;;  %v14055_v4 = vpop.eup %10285  ;;  %v2858_v58 = vadd.f32 1.0, %v10284_v9  ;;  %v14077_v1 = vadd.f32 %v13966_v43, %v19448_v18  ;;  %v14086_v55 = vadd.f32 %v19451_v54, %v19430_v25 }
 0x1fe   : > { %19444 = vst [vmem:[#allocation165_spill] sm:$0xff] %v14053_v46  ;;  %19445 = vst [vmem:[#allocation145_spill] sm:$0xff] %v14055_v4  ;;  %10311 = vpow2.f32 %v9325_v14  ;;  %v14061_v34 = vpop.eup %10287  ;;  %v9340_v61 = vmul.f32 -1.442695, %v14053_v46  ;;  %v14093_v43 = vadd.f32 %v13794_v0, %v19430_v25  ;;  %v9341_v24 = vmul.f32 -1.442695, %v14059_v26 }
 0x1ff   : > { %19446 = vst [vmem:[#allocation136_spill] sm:$0xff] %v14059_v26  ;;  %3468 = vmatmul.mubr.f32.gmra.mxu0 %v3342_v57  ;;  %19447 = vst [vmem:[#allocation163_spill] sm:$0xff] %v14061_v34  ;;  %10313 = vpow2.f32 %v9332_v22  ;;  %v14073_v20 = vpop.eup %10289  ;;  %v9348_v37 = vmul.f32 -1.442695, %v14065_v2  ;;  %v3344_v0 = vld [vmem:[%s18919_s6 + $0x18] sm:$0xff]  ;;  %v14113_v9 = vadd.f32 %v13842_v13, %v19437_v59 }
 0x200   : > { %19449 = vst [vmem:[#allocation143_spill] sm:$0xff] %v14065_v2  ;;  %3581 = vmatmul.mubr.f32.gmra.mxu1 %v3342_v57  ;;  %3473 = vmatprep.mubr.f32.mxu0 %v19442_v5  ;;  %10315 = vpow2.f32 %v9333_v12  ;;  %19450 = vst [vmem:[#allocation14_spill] sm:$0xff] %v14077_v1  ;;  %v14082_v52 = vpop.eup %10291  ;;  %v14100_v57 = vadd.f32 %v13810_v56, %v19437_v59  ;;  %v14103_v12 = vpop.f32.mrf.mxu0  ;;  %v9349_v56 = vmul.f32 -1.442695, %v14077_v1  ;;  %v9327_v13 = vmul.f32 -1.442695, %v14093_v43 }
 0x201   : > { %3586 = vmatprep.mubr.f32.mxu1 %v19442_v5  ;;  %10317 = vrcp.f32 %v2849_v62  ;;  %19452 = vst [vmem:[#allocation169_spill] sm:$0xff] %v14086_v55  ;;  %v14089_v14 = vpop.eup %10293  ;;  %19453 = vst [vmem:[#allocation134_spill] sm:$0xff] %v14093_v43  ;;  %v14116_v62 = vpop.f32.mrf.mxu1  ;;  %v14131_v59 = vadd.f32 %v13910_v40, %v19443_v36  ;;  %v3345_v40 = vld [vmem:[%s18919_s6 + $0x20] sm:$0xff] }
 0x202   : > { %10319 = vrcp.f32 %v2850_v42  ;;  %v14096_v22 = vpop.eup %10295  ;;  %19454 = vst [vmem:[#allocation162_spill] sm:$0xff] %v14100_v57  ;;  %19455 = vst [vmem:[#allocation142_spill] sm:$0xff] %v14113_v9  ;;  %v9334_v38 = vmul.f32 -1.442695, %v14100_v57 }
 0x203   : > { %3474 = vmatmul.mubr.f32.gmra.mxu0 %v3343_v3  ;;  %10321 = vrcp.f32 %v2857_v28  ;;  %v14109_v25 = vpop.eup %10297  ;;  %v9326_v28 = vmul.f32 -1.442695, %v14086_v55  ;;  %19458 = vst [vmem:[#allocation141_spill] sm:$0xff] %v14131_v59  ;;  %v9343_v16 = vmul.f32 -1.442695, %v14131_v59 }
 0x204   : > { %3587 = vmatmul.mubr.f32.gmra.mxu1 %v3343_v3  ;;  %3479 = vmatprep.mubr.f32.mxu0 %v19442_v5  ;;  %10323 = vrcp.f32 %v2858_v58  ;;  %v14119_v42 = vpop.eup %10299  ;;  %v14124_v3 = vadd.f32 %v13878_v39, %v19443_v36  ;;  %v14140_v39 = vpop.f32.mrf.mxu0 }
 0x205   : > { %3592 = vmatprep.mubr.f32.mxu1 %v19442_v5  ;;  %10325 = vpow2.f32 %v9340_v61  ;;  %v14138_v61 = vadd.f32 %v13946_v60, %v19448_v18  ;;  %v14153_v60 = vpop.f32.mrf.mxu1 }
 0x206   : > { %19456 = vst [vmem:[#allocation132_spill] sm:$0xff] %v14124_v3  ;;  %v14126_v58 = vpop.eup %10301  ;;  %10327 = vpow2.f32 %v9341_v24  ;;  %v9335_v24 = vmul.f32 -1.442695, %v14113_v9  ;;  %v9342_v51 = vmul.f32 -1.442695, %v14124_v3 }
 0x207   : > { %19457 = vst [vmem:[#allocation161_spill] sm:$0xff] %v14126_v58  ;;  %3480 = vmatmul.mubr.f32.gmra.mxu0 %v3344_v0  ;;  %v14133_v54 = vpop.eup %10303  ;;  %10329 = vpow2.f32 %v9348_v37  ;;  %19460 = vst [vmem:[#allocation115_spill] sm:$0xff] %v14138_v61  ;;  %v14151_v37 = vadd.f32 %v13975_v15, %v19448_v18  ;;  %v14161_v15 = vpop.f32.mrf.mxu0  ;;  %v14167_v18 = vld [vmem:[%s18919_s6 + $0x28] sm:$0xff] }
 0x208   : > { %19459 = vst [vmem:[#allocation17_spill] sm:$0xff] %v14133_v54  ;;  %3593 = vmatmul.mubr.f32.gmra.mxu1 %v3344_v0  ;;  %3485 = vmatprep.mubr.f32.mxu0 %v19442_v5  ;;  %v14146_v36 = vpop.eup %10305  ;;  %10331 = vpow2.f32 %v9349_v56  ;;  %v9350_v56 = vmul.f32 -1.442695, %v14138_v61  ;;  %19464 = vst [vmem:[#allocation157_spill] sm:$0xff] %v14167_v18  ;;  %v14170_v54 = vpop.f32.mrf.mxu1 }
 0x209   : > { %19461 = vst [vmem:[#allocation158_spill] sm:$0xff] %v14146_v36  ;;  %19462 = vst [vmem:[#allocation140_spill] sm:$0xff] %v14151_v37  ;;  %3598 = vmatprep.mubr.f32.mxu1 %v19442_v5  ;;  %v14156_v0 = vpop.eup %10307  ;;  %10333 = vpow2.f32 %v9326_v28 }
 0x20a   : > { %19463 = vst [vmem:[#allocation114_spill] sm:$0xff] %v14156_v0  ;;  %v10310_v58 = vpop.eup %10309  ;;  %10335 = vpow2.f32 %v9327_v13  ;;  %v9351_v13 = vmul.f32 -1.442695, %v14151_v37 }
 0x20b   : > { %3486 = vmatmul.mubr.f32.gmra.mxu0 %v3345_v40  ;;  %v10312_v41 = vpop.eup %10311  ;;  %10337 = vpow2.f32 %v9334_v38  ;;  %v2865_v49 = vadd.f32 1.0, %v10310_v58  ;;  %v19470_v58 = vld [vmem:[#allocation9_spill] sm:$0xff] }
 0x20c   : > { %3599 = vmatmul.mubr.f32.gmra.mxu1 %v3345_v40  ;;  %3491 = vmatprep.mubr.f32.mxu0 %v19442_v5  ;;  %v10314_v28 = vpop.eup %10313  ;;  %10339 = vpow2.f32 %v9335_v24  ;;  %v14175_v40 = vadd.f32 %v13995_v44, %v19465_v50  ;;  %v2866_v6 = vadd.f32 1.0, %v10312_v41  ;;  %v14181_v24 = vadd.f32 %v14022_v23, %v19465_v50  ;;  %v14190_v44 = vpop.f32.mrf.mxu0 }
 0x20d   : > { %3604 = vmatprep.mubr.f32.mxu1 %v19442_v5  ;;  %v10316_v38 = vpop.eup %10315  ;;  %10341 = vpow2.f32 %v9342_v51  ;;  %v2873_v0 = vadd.f32 1.0, %v10314_v28  ;;  %v14188_v51 = vadd.f32 %v14041_v63, %v19470_v58  ;;  %v14205_v63 = vpop.f32.mrf.mxu1 }
 0x20e   : > { %19466 = vst [vmem:[#allocation130_spill] sm:$0xff] %v14175_v40  ;;  %v14177_v36 = vpop.eup %10317  ;;  %10343 = vpow2.f32 %v9343_v16  ;;  %19468 = vst [vmem:[#allocation112_spill] sm:$0xff] %v14181_v24  ;;  %v14197_v16 = vld [vmem:[%s18919_s6 + $0x30] sm:$0xff]  ;;  %v2874_v23 = vadd.f32 1.0, %v10316_v38  ;;  %v9357_v31 = vmul.f32 -1.442695, %v14181_v24  ;;  %v14214_v38 = vpop.f32.mrf.mxu0 }
 0x20f   : > { %19467 = vst [vmem:[#allocation160_spill] sm:$0xff] %v14177_v36  ;;  %3492 = vmatmul.mubr.f32.gmra.mxu0 %v14167_v18  ;;  %v14184_v11 = vpop.eup %10319  ;;  %10345 = vpow2.f32 %v9350_v56  ;;  %19471 = vst [vmem:[#allocation128_spill] sm:$0xff] %v14188_v51  ;;  %v14203_v56 = vadd.f32 %v14067_v33, %v19470_v58  ;;  %v9364_v33 = vmul.f32 -1.442695, %v14188_v51  ;;  %v14224_v21 = vpop.f32.mrf.mxu1 }
 0x210   : > { %19469 = vst [vmem:[#allocation156_spill] sm:$0xff] %v14184_v11  ;;  %3605 = vmatmul.mubr.f32.gmra.mxu1 %v14167_v18  ;;  %3497 = vmatprep.mubr.f32.mxu0 %v19442_v5  ;;  %19472 = vst [vmem:[#allocation164_spill] sm:$0xff] %v14197_v16  ;;  %v14199_v41 = vpop.eup %10321  ;;  %10347 = vpow2.f32 %v9351_v13  ;;  %v9356_v18 = vmul.f32 -1.442695, %v14175_v40 }
 0x211   : > { %19473 = vst [vmem:[#allocation111_spill] sm:$0xff] %v14199_v41  ;;  %19474 = vst [vmem:[#allocation155_spill] sm:$0xff] %v14203_v56  ;;  %3610 = vmatprep.mubr.f32.mxu1 %v19442_v5  ;;  %v14208_v28 = vpop.eup %10323  ;;  %10349 = vrcp.f32 %v2865_v49  ;;  %v14221_v49 = vld [vmem:[%s18919_s6 + $0x38] sm:$0xff]  ;;  %v9365_v36 = vmul.f32 -1.442695, %v14203_v56 }
 0x212   : > { %19475 = vst [vmem:[#allocation126_spill] sm:$0xff] %v14208_v28  ;;  %v10326_v29 = vpop.eup %10325  ;;  %10351 = vrcp.f32 %v2866_v6  ;;  %19476 = vst [vmem:[#allocation166_spill] sm:$0xff] %v14221_v49  ;;  %v19485_v28 = vld [vmem:[#allocation7_spill] sm:$0xff] }
 0x213   : > { %3498 = vmatmul.mubr.f32.gmra.mxu0 %v14197_v16  ;;  %v10328_v13 = vpop.eup %10327  ;;  %10353 = vrcp.f32 %v2873_v0  ;;  %v2881_v32 = vadd.f32 1.0, %v10326_v29  ;;  %v14242_v29 = vadd.f32 %v14048_v45, %v19470_v58  ;;  %v14297_v43 = vadd.f32 %v14170_v54, %v19485_v28 }
 0x214   : > { %3611 = vmatmul.mubr.f32.gmra.mxu1 %v14197_v16  ;;  %3503 = vmatprep.mubr.f32.mxu0 %v19442_v5  ;;  %v10330_v6 = vpop.eup %10329  ;;  %10355 = vrcp.f32 %v2874_v23  ;;  %v14229_v16 = vadd.f32 %v14002_v10, %v19465_v50  ;;  %v2882_v8 = vadd.f32 1.0, %v10328_v13  ;;  %v14235_v23 = vadd.f32 %v14034_v30, %v19465_v50  ;;  %v14244_v10 = vpop.f32.mrf.mxu0 }
 0x215   : > { %3616 = vmatprep.mubr.f32.mxu1 %v19442_v5  ;;  %v10332_v0 = vpop.eup %10331  ;;  %10357 = vpow2.f32 %v9356_v18  ;;  %v2889_v41 = vadd.f32 1.0, %v10330_v6  ;;  %19479 = vst [vmem:[#allocation124_spill] sm:$0xff] %v14242_v29  ;;  %v14252_v30 = vadd.f32 %v14079_v27, %v19470_v58  ;;  %v14254_v18 = vpop.f32.mrf.mxu1  ;;  %19487 = vst [vmem:[#allocation118_spill] sm:$0xff] %v14297_v43 }
 0x216   : > { %19477 = vst [vmem:[#allocation110_spill] sm:$0xff] %v14229_v16  ;;  %v14231_v11 = vpop.eup %10333  ;;  %10359 = vpow2.f32 %v9357_v31  ;;  %19478 = vst [vmem:[#allocation154_spill] sm:$0xff] %v14235_v23  ;;  %v2890_v50 = vadd.f32 1.0, %v10332_v0  ;;  %v9358_v13 = vmul.f32 -1.442695, %v14229_v16 }
 0x217   : > { %3504 = vmatmul.mubr.f32.gmra.mxu0 %v14221_v49  ;;  %v14238_v53 = vpop.eup %10335  ;;  %10361 = vpow2.f32 %v9364_v33  ;;  %19480 = vst [vmem:[#allocation168_spill] sm:$0xff] %v14252_v30  ;;  %v19481_v33 = vld [vmem:[#allocation6_spill] sm:$0xff] }
 0x218   : > { %3617 = vmatmul.mubr.f32.gmra.mxu1 %v14221_v49  ;;  %3687 = vmatprep.mubr.f32.mxu0 %v19442_v5  ;;  %v14248_v31 = vpop.eup %10337  ;;  %10363 = vpow2.f32 %v9365_v36  ;;  %v14262_v6 = vadd.f32 %v14103_v12, %v19481_v33  ;;  %v9359_v36 = vmul.f32 -1.442695, %v14235_v23  ;;  %v14269_v27 = vadd.f32 %v14116_v62, %v19481_v33  ;;  %v2267_v12 = vpop.f32.mrf.mxu0  ;;  %v19498_v23 = vld [vmem:[#allocation3_spill] sm:$0xff] }
 0x219   : > { %3800 = vmatprep.mubr.f32.mxu1 %v19442_v5  ;;  %v14257_v45 = vpop.eup %10339  ;;  %10365 = vrcp.f32 %v2881_v32  ;;  %v9366_v32 = vmul.f32 -1.442695, %v14242_v29  ;;  %v14276_v0 = vadd.f32 %v14140_v39, %v19481_v33  ;;  %v14283_v19 = vadd.f32 %v14153_v60, %v19481_v33  ;;  %v2428_v62 = vpop.f32.mrf.mxu1 }
 0x21a   : > { %19482 = vst [vmem:[#allocation122_spill] sm:$0xff] %v14262_v6  ;;  %v14264_v49 = vpop.eup %10341  ;;  %10367 = vrcp.f32 %v2882_v8  ;;  %19483 = vst [vmem:[#allocation170_spill] sm:$0xff] %v14269_v27  ;;  %v9367_v8 = vmul.f32 -1.442695, %v14252_v30  ;;  %v14290_v39 = vadd.f32 %v14161_v15, %v19485_v28  ;;  %v14304_v33 = vadd.f32 %v14190_v44, %v19485_v28  ;;  %v2269_v15 = vpop.f32.mrf.mxu0 }
 0x21b   : > { %v14271_v58 = vpop.eup %10343  ;;  %10369 = vrcp.f32 %v2889_v41  ;;  %19484 = vst [vmem:[#allocation120_spill] sm:$0xff] %v14283_v19  ;;  %v9372_v41 = vmul.f32 -1.442695, %v14262_v6  ;;  %v2430_v54 = vpop.f32.mrf.mxu1  ;;  %v9382_v44 = vmul.f32 -1.442695, %v14297_v43 }
 0x21c   : > { %v14278_v5 = vpop.eup %10345  ;;  %10371 = vrcp.f32 %v2890_v50  ;;  %v9374_v50 = vmul.f32 -1.442695, %v14269_v27  ;;  %v2273_v9 = vpop.f32.mrf.mxu0 }
 0x21d   : > { %v14285_v55 = vpop.eup %10347  ;;  %10373 = vpow2.f32 %v9358_v13  ;;  %v9373_v13 = vmul.f32 -1.442695, %v14276_v0 }
 0x21e   : > { %v14292_v17 = vpop.eup %10349  ;;  %10375 = vpow2.f32 %v9359_v36  ;;  %v9375_v36 = vmul.f32 -1.442695, %v14283_v19 }
 0x21f   : > { %19486 = vst [vmem:[#allocation171_spill] sm:$0xff] %v14292_v17  ;;  %v14299_v60 = vpop.eup %10351  ;;  %10377 = vpow2.f32 %v9366_v32  ;;  %v14311_v17 = vadd.f32 %v14205_v63, %v19485_v28  ;;  %v9380_v32 = vmul.f32 -1.442695, %v14290_v39  ;;  %v2434_v28 = vpop.f32.mrf.mxu1 }
 0x220   : > { %19488 = vst [vmem:[#allocation172_spill] sm:$0xff] %v14299_v60  ;;  %v14306_v47 = vpop.eup %10353  ;;  %10379 = vpow2.f32 %v9367_v8  ;;  %v9381_v8 = vmul.f32 -1.442695, %v14304_v33 }
 0x221   : > { %19489 = vst [vmem:[#allocation117_spill] sm:$0xff] %v14306_v47  ;;  %v14313_v57 = vpop.eup %10355  ;;  %10381 = vpow2.f32 %v9372_v41  ;;  %v9383_v63 = vmul.f32 -1.442695, %v14311_v17  ;;  %v19491_v41 = vld [vmem:[#allocation4_spill] sm:$0xff] }
 0x222   : > { %19490 = vst [vmem:[#allocation173_spill] sm:$0xff] %v14313_v57  ;;  %v10358_v60 = vpop.eup %10357  ;;  %10383 = vpow2.f32 %v9374_v50  ;;  %v14321_v57 = vadd.f32 %v14214_v38, %v19491_v41 }
 0x223   : > { %v10360_v48 = vpop.eup %10359  ;;  %10385 = vpow2.f32 %v9373_v13  ;;  %v2897_v3 = vadd.f32 1.0, %v10358_v60  ;;  %v14327_v13 = vadd.f32 %v14244_v10, %v19491_v41  ;;  %v14333_v60 = vadd.f32 %v14254_v18, %v19491_v41 }
 0x224   : > { %v10362_v47 = vpop.eup %10361  ;;  %10387 = vpow2.f32 %v9375_v36  ;;  %v2898_v7 = vadd.f32 1.0, %v10360_v48  ;;  %v9388_v10 = vmul.f32 -1.442695, %v14321_v57 }
 0x225   : > { %v10364_v35 = vpop.eup %10363  ;;  %10389 = vpow2.f32 %v9380_v32  ;;  %v2905_v36 = vadd.f32 1.0, %v10362_v47  ;;  %v2275_v32 = vpop.f32.mrf.mxu0  ;;  %v9389_v18 = vmul.f32 -1.442695, %v14327_v13 }
 0x226   : > { %v14323_v50 = vpop.eup %10365  ;;  %10391 = vpow2.f32 %v9382_v44  ;;  %v2906_v38 = vadd.f32 1.0, %v10364_v35  ;;  %v2436_v44 = vpop.f32.mrf.mxu1 }
 0x227   : > { %19492 = vst [vmem:[#allocation103_spill] sm:$0xff] %v14323_v50  ;;  %v14329_v59 = vpop.eup %10367  ;;  %10393 = vpow2.f32 %v9381_v8  ;;  %v19495_v50 = vld [vmem:[#allocation2_spill] sm:$0xff] }
 0x228   : > { %19493 = vst [vmem:[#allocation133_spill] sm:$0xff] %v14329_v59  ;;  %v14335_v46 = vpop.eup %10369  ;;  %10395 = vpow2.f32 %v9383_v63  ;;  %v14338_v48 = vadd.f32 %v2267_v12, %v19495_v50  ;;  %v14344_v47 = vadd.f32 %v2428_v62, %v19495_v50  ;;  %v14350_v35 = vadd.f32 %v2269_v15, %v19495_v50  ;;  %v2279_v59 = vpop.f32.mrf.mxu0 }
 0x229   : > { %19494 = vst [vmem:[#allocation106_spill] sm:$0xff] %v14335_v46  ;;  %v14340_v61 = vpop.eup %10371  ;;  %10397 = vrcp.f32 %v2897_v3  ;;  %v9391_v12 = vmul.f32 -1.442695, %v14333_v60  ;;  %v14356_v3 = vadd.f32 %v2430_v54, %v19495_v50  ;;  %v2440_v46 = vpop.f32.mrf.mxu1 }
 0x22a   : > { %19496 = vst [vmem:[#allocation139_spill] sm:$0xff] %v14340_v61  ;;  %v14346_v8 = vpop.eup %10373  ;;  %10399 = vrcp.f32 %v2898_v7  ;;  %v9396_v62 = vmul.f32 -1.442695, %v14338_v48  ;;  %v19497_v7 = vld [vmem:[#allocation5_spill] sm:$0xff]  ;;  %v9397_v50 = vmul.f32 -1.442695, %v14350_v35 }
 0x22b   : > { %v14352_v63 = vpop.eup %10375  ;;  %10401 = vrcp.f32 %v2905_v36  ;;  %v14362_v37 = vadd.f32 %v2273_v9, %v19497_v7  ;;  %v9398_v36 = vmul.f32 -1.442695, %v14344_v47  ;;  %v14368_v2 = vadd.f32 %v2434_v28, %v19497_v7  ;;  %v2442_v40 = vpop.f32.mrf.mxu1 }
 0x22c   : > { %v14358_v26 = vpop.eup %10377  ;;  %10403 = vrcp.f32 %v2906_v38  ;;  %v14372_v38 = vadd.f32 %v2275_v32, %v19497_v7  ;;  %v9399_v9 = vmul.f32 -1.442695, %v14356_v3  ;;  %v14378_v61 = vadd.f32 %v2436_v44, %v19497_v7 }
 0x22d   : > { %v14364_v15 = vpop.eup %10379  ;;  %10405 = vpow2.f32 %v9388_v10  ;;  %v2281_v10 = vpop.f32.mrf.mxu0  ;;  %v9404_v28 = vmul.f32 -1.442695, %v14362_v37  ;;  %v9406_v32 = vmul.f32 -1.442695, %v14368_v2  ;;  %v14398_v30 = vadd.f32 %v2442_v40, %v19498_v23 }
 0x22e   : > { %v10382_v54 = vpop.eup %10381  ;;  %10407 = vpow2.f32 %v9389_v18  ;;  %v14382_v18 = vadd.f32 %v2279_v59, %v19498_v23  ;;  %v9405_v44 = vmul.f32 -1.442695, %v14372_v38  ;;  %v9407_v59 = vmul.f32 -1.442695, %v14378_v61 }
 0x22f   : > { %v14374_v16 = vpop.eup %10383  ;;  %10409 = vpow2.f32 %v9391_v12  ;;  %v14388_v12 = vadd.f32 %v2440_v46, %v19498_v23  ;;  %v14402_v46 = vadd.f32 %v14224_v21, %v19491_v41 }
 0x230   : > { %v10386_v1 = vpop.eup %10385  ;;  %10411 = vpow2.f32 %v9396_v62  ;;  %v14392_v62 = vadd.f32 %v2281_v10, %v19498_v23  ;;  %v9415_v23 = vmul.f32 -1.442695, %v14398_v30 }
 0x231   : > { %v14384_v29 = vpop.eup %10387  ;;  %10413 = vpow2.f32 %v9398_v36  ;;  %v9414_v10 = vmul.f32 -1.442695, %v14388_v12  ;;  %v9390_v41 = vmul.f32 -1.442695, %v14402_v46  ;;  %v2914_v4 = vadd.f32 1.0, %v10386_v1 }
 0x232   : > { %v10390_v24 = vpop.eup %10389  ;;  %10415 = vpow2.f32 %v9397_v50  ;;  %v9412_v50 = vmul.f32 -1.442695, %v14382_v18 }
 0x233   : > { %v14394_v7 = vpop.eup %10391  ;;  %10417 = vpow2.f32 %v9399_v9  ;;  %v9413_v9 = vmul.f32 -1.442695, %v14392_v62 }
 0x234   : > { %v10394_v36 = vpop.eup %10393  ;;  %10419 = vpow2.f32 %v9404_v28 }
 0x235   : > { %v14405_v51 = vpop.eup %10395  ;;  %10421 = vpow2.f32 %v9406_v32  ;;  %v2913_v32 = vadd.f32 1.0, %v10382_v54 }
 0x236   : > { %v14408_v27 = vpop.eup %10397  ;;  %10423 = vpow2.f32 %v9405_v44 }
 0x237   : > { %19499 = vst [vmem:[#allocation101_spill] sm:$0xff] %v14408_v27  ;;  %v14411_v40 = vpop.eup %10399  ;;  %10425 = vpow2.f32 %v9407_v59  ;;  %v2921_v27 = vadd.f32 1.0, %v10390_v24 }
 0x238   : > { %19500 = vst [vmem:[#allocation129_spill] sm:$0xff] %v14411_v40  ;;  %v14414_v21 = vpop.eup %10401  ;;  %10427 = vpow2.f32 %v9412_v50  ;;  %v2922_v40 = vadd.f32 1.0, %v10394_v36 }
 0x239   : > { %19501 = vst [vmem:[#allocation104_spill] sm:$0xff] %v14414_v21  ;;  %v14417_v28 = vpop.eup %10403  ;;  %10429 = vpow2.f32 %v9414_v10 }
 0x23a   : > { %19502 = vst [vmem:[#allocation135_spill] sm:$0xff] %v14417_v28  ;;  %v10406_v56 = vpop.eup %10405  ;;  %10431 = vpow2.f32 %v9413_v9 }
 0x23b   : > { %v10408_v44 = vpop.eup %10407  ;;  %10433 = vpow2.f32 %v9415_v23  ;;  %v2929_v6 = vadd.f32 1.0, %v10406_v56 }
 0x23c   : > { %v10410_v19 = vpop.eup %10409  ;;  %10435 = vpow2.f32 %v9390_v41  ;;  %v2930_v34 = vadd.f32 1.0, %v10408_v44 }
 0x23d   : > { %v10412_v59 = vpop.eup %10411  ;;  %10437 = vrcp.f32 %v2913_v32 }
 0x23e   : > { %v10414_v21 = vpop.eup %10413  ;;  %10439 = vrcp.f32 %v2914_v4  ;;  %v2937_v28 = vadd.f32 1.0, %v10412_v59 }
 0x23f   : > { %v10416_v50 = vpop.eup %10415  ;;  %10441 = vrcp.f32 %v2921_v27 }
 0x240   : > { %v10418_v54 = vpop.eup %10417  ;;  %10443 = vrcp.f32 %v2922_v40  ;;  %v2938_v10 = vadd.f32 1.0, %v10416_v50 }
 0x241   : > { %v10420_v1 = vpop.eup %10419  ;;  %10445 = vrcp.f32 %v2929_v6 }
 0x242   : > { %v10422_v9 = vpop.eup %10421  ;;  %10447 = vrcp.f32 %v2930_v34  ;;  %v2945_v24 = vadd.f32 1.0, %v10420_v1  ;;  %v2940_v1 = vadd.f32 1.0, %v10418_v54 }
 0x243   : > { %v10424_v23 = vpop.eup %10423  ;;  %10449 = vrcp.f32 %v2937_v28  ;;  %v2947_v50 = vadd.f32 1.0, %v10422_v9  ;;  %v2924_v9 = vadd.f32 1.0, %v14405_v51 }
 0x244   : > { %v10426_v36 = vpop.eup %10425  ;;  %10451 = vrcp.f32 %v2938_v10  ;;  %v2946_v41 = vadd.f32 1.0, %v10424_v23  ;;  %v2939_v10 = vadd.f32 1.0, %v10414_v21  ;;  %v2932_v23 = vadd.f32 1.0, %v10410_v19 }
 0x245   : > { %v10428_v56 = vpop.eup %10427  ;;  %10453 = vrcp.f32 %v2945_v24  ;;  %v2948_v4 = vadd.f32 1.0, %v10426_v36 }
 0x246   : > { %v10430_v32 = vpop.eup %10429  ;;  %10455 = vrcp.f32 %v2946_v41  ;;  %v2953_v27 = vadd.f32 1.0, %v10428_v56 }
 0x247   : > { %v10432_v44 = vpop.eup %10431  ;;  %10457 = vrcp.f32 %v2948_v4  ;;  %v2955_v40 = vadd.f32 1.0, %v10430_v32  ;;  %v2923_v4 = vadd.f32 1.0, %v14394_v7  ;;  %v2916_v32 = vadd.f32 1.0, %v14384_v29 }
 0x248   : > { %v10434_v59 = vpop.eup %10433  ;;  %10459 = vrcp.f32 %v2953_v27  ;;  %v2954_v6 = vadd.f32 1.0, %v10432_v44  ;;  %v2915_v27 = vadd.f32 1.0, %v14374_v16  ;;  %v2900_v7 = vadd.f32 1.0, %v14352_v63 }
 0x249   : > { %v10436_v34 = vpop.eup %10435  ;;  %10461 = vrcp.f32 %v2955_v40  ;;  %v2956_v28 = vadd.f32 1.0, %v10434_v59  ;;  %v2908_v40 = vadd.f32 1.0, %v14364_v15  ;;  %v2907_v59 = vadd.f32 1.0, %v14358_v26 }
 0x24a   : > { %v14419_v43 = vpop.eup %10437  ;;  %10463 = vrcp.f32 %v2954_v6  ;;  %v2931_v41 = vadd.f32 1.0, %v10436_v34  ;;  %v2899_v29 = vadd.f32 1.0, %v14346_v8  ;;  %v2892_v16 = vadd.f32 1.0, %v14285_v55 }
 0x24b   : > { %v14421_v24 = vpop.eup %10439  ;;  %10465 = vrcp.f32 %v2956_v28  ;;  %v2891_v15 = vadd.f32 1.0, %v14278_v5  ;;  %v2884_v26 = vadd.f32 1.0, %v14271_v58  ;;  %v2883_v63 = vadd.f32 1.0, %v14264_v49 }
 0x24c   : > { %v14423_v36 = vpop.eup %10441  ;;  %10467 = vrcp.f32 %v2947_v50 }
 0x24d   : > { %v14425_v56 = vpop.eup %10443  ;;  %10469 = vrcp.f32 %v2940_v1 }
 0x24e   : > { %v14428_v54 = vpop.eup %10445  ;;  %10471 = vrcp.f32 %v2939_v10 }
 0x24f   : > { %v14431_v21 = vpop.eup %10447  ;;  %10473 = vrcp.f32 %v2932_v23 }
 0x250   : > { %v10450_v19 = vpop.eup %10449  ;;  %10475 = vrcp.f32 %v2931_v41  ;;  %v2876_v41 = vadd.f32 1.0, %v14257_v45 }
 0x251   : > { %v10452_v44 = vpop.eup %10451  ;;  %10477 = vrcp.f32 %v2924_v9 }
 0x252   : > { %v10454_v51 = vpop.eup %10453  ;;  %10479 = vrcp.f32 %v2923_v4  ;;  %v2875_v4 = vadd.f32 1.0, %v14248_v31  ;;  %v3322_v31 = vmul.f32 %v10452_v44, %v14350_v35  ;;  %v3314_v35 = vmul.f32 %v14431_v21, %v14327_v13 }
 0x253   : > { %v10456_v50 = vpop.eup %10455  ;;  %10481 = vrcp.f32 %v2916_v32  ;;  %v3329_v45 = vmul.f32 %v10454_v51, %v14362_v37  ;;  %v3321_v37 = vmul.f32 %v10450_v19, %v14338_v48  ;;  %v3313_v48 = vmul.f32 %v14428_v54, %v14321_v57  ;;  %v19504_v51 = vld [vmem:[#allocation163_spill] sm:$0xff] }
 0x254   : > { %v10458_v6 = vpop.eup %10457  ;;  %10483 = vrcp.f32 %v2915_v27  ;;  %v3330_v58 = vmul.f32 %v10456_v50, %v14372_v38  ;;  %v2851_v19 = vadd.f32 1.0, %v14089_v14  ;;  %v3306_v13 = vmul.f32 %v14425_v56, %v14304_v33 }
 0x255   : > { %v10460_v34 = vpop.eup %10459  ;;  %10485 = vrcp.f32 %v2908_v40  ;;  %v3332_v27 = vmul.f32 %v10458_v6, %v14378_v61  ;;  %v2844_v21 = vadd.f32 1.0, %v14082_v52  ;;  %v3305_v57 = vmul.f32 %v14423_v36, %v14290_v39  ;;  %v19505_v39 = vld [vmem:[#allocation122_spill] sm:$0xff]  ;;  %v19506_v36 = vld [vmem:[#allocation120_spill] sm:$0xff] }
 0x256   : > { %v10462_v1 = vpop.eup %10461  ;;  %10487 = vrcp.f32 %v2907_v59  ;;  %v3337_v55 = vmul.f32 %v10460_v34, %v14382_v18  ;;  %v2867_v18 = vadd.f32 1.0, %v14231_v11  ;;  %v2859_v11 = vadd.f32 1.0, %v14109_v25  ;;  %v19510_v34 = vld [vmem:[#allocation170_spill] sm:$0xff] }
 0x257   : > { %v10464_v28 = vpop.eup %10463  ;;  %10489 = vrcp.f32 %v2900_v7  ;;  %v3339_v32 = vmul.f32 %v10462_v1, %v14388_v12  ;;  %v2843_v54 = vadd.f32 1.0, %v14073_v20  ;;  %v3298_v33 = vmul.f32 %v14421_v24, %v14276_v0  ;;  %v19507_v7 = vld [vmem:[#allocation145_spill] sm:$0xff]  ;;  %v19508_v0 = vld [vmem:[#allocation155_spill] sm:$0xff] }
 0x258   : > { %v10466_v10 = vpop.eup %10465  ;;  %10491 = vrcp.f32 %v2899_v29  ;;  %v3338_v23 = vmul.f32 %v10464_v28, %v14392_v62  ;;  %v2868_v62 = vadd.f32 1.0, %v14238_v53  ;;  %v2860_v53 = vadd.f32 1.0, %v14119_v42  ;;  %v19509_v24 = vld [vmem:[#allocation135_spill] sm:$0xff]  ;;  %v19512_v28 = vld [vmem:[#allocation104_spill] sm:$0xff] }
 0x259   : > { %v10468_v8 = vpop.eup %10467  ;;  %10493 = vrcp.f32 %v2892_v16  ;;  %v3340_v9 = vmul.f32 %v10466_v10, %v14398_v30  ;;  %v2852_v42 = vadd.f32 1.0, %v14096_v22  ;;  %v2836_v59 = vadd.f32 1.0, %v19504_v51  ;;  %v19536_v51 = vld [vmem:[#allocation117_spill] sm:$0xff] }
 0x25a   : > { %v10470_v5 = vpop.eup %10469  ;;  %10495 = vrcp.f32 %v2891_v15  ;;  %3623 = vmatprep.subr.mxu0 %v3338_v23  ;;  %v3331_v38 = vmul.f32 %v10468_v8, %v14368_v2  ;;  %v2835_v6 = vadd.f32 1.0, %v19507_v7  ;;  %v3290_v29 = vmul.f32 %v19509_v24, %v19508_v0  ;;  %v19511_v15 = vld [vmem:[#allocation128_spill] sm:$0xff]  ;;  %v19515_v8 = vld [vmem:[#allocation129_spill] sm:$0xff] }
 0x25b   : > { %v10472_v49 = vpop.eup %10471  ;;  %10497 = vrcp.f32 %v2884_v26  ;;  %3736 = vmatprep.subr.mxu1 %v3340_v9  ;;  %3624 = vmatpush1.msra.mxu0 %v3337_v55  ;;  %v3324_v61 = vmul.f32 %v10470_v5, %v14356_v3  ;;  %v19513_v26 = vld [vmem:[#allocation168_spill] sm:$0xff] }
 0x25c   : > { %v10474_v30 = vpop.eup %10473  ;;  %10499 = vrcp.f32 %v2883_v63  ;;  %3737 = vmatpush1.msra.mxu1 %v3339_v32  ;;  %3625 = vmatprep.subr.mxu0 %v3330_v58  ;;  %v3323_v2 = vmul.f32 %v10472_v49, %v14344_v47  ;;  %v19514_v23 = vld [vmem:[#allocation112_spill] sm:$0xff]  ;;  %v19518_v58 = vld [vmem:[#allocation101_spill] sm:$0xff]  ;;  %v19519_v49 = vld [vmem:[#allocation154_spill] sm:$0xff] }
 0x25d   : > { %v10476_v12 = vpop.eup %10475  ;;  %10501 = vrcp.f32 %v2876_v41  ;;  %3738 = vmatprep.subr.mxu1 %v3332_v27  ;;  %3626 = vmatpush1.msra.mxu0 %v3329_v45  ;;  %v3316_v3 = vmul.f32 %v10474_v30, %v14333_v60  ;;  %v3282_v41 = vmul.f32 %v19515_v8, %v19514_v23  ;;  %v19516_v55 = vld [vmem:[#allocation124_spill] sm:$0xff]  ;;  %v19520_v27 = vld [vmem:[#allocation14_spill] sm:$0xff]  ;;  %v19521_v30 = vld [vmem:[#allocation139_spill] sm:$0xff] }
 0x25e   : > { %v10478_v40 = vpop.eup %10477  ;;  %10503 = vrcp.f32 %v2875_v4  ;;  %3739 = vmatpush1.msra.mxu1 %v3331_v38  ;;  %3627 = vmatprep.subr.mxu0 %v3322_v31  ;;  %v3315_v47 = vmul.f32 %v10476_v12, %v14402_v46  ;;  %v19503_v46 = vld [vmem:[#allocation118_spill] sm:$0xff] }
 0x25f   : > { %v10480_v44 = vpop.eup %10479  ;;  %10505 = vrcp.f32 %v2868_v62  ;;  %3740 = vmatprep.subr.mxu1 %v3324_v61  ;;  %3628 = vmatpush1.msra.mxu0 %v3321_v37  ;;  %v3308_v60 = vmul.f32 %v10478_v40, %v14311_v17  ;;  %v3297_v17 = vmul.f32 %v14419_v43, %v19505_v39  ;;  %v3289_v43 = vmul.f32 %v19512_v28, %v19511_v15  ;;  %v19517_v4 = vld [vmem:[#allocation130_spill] sm:$0xff]  ;;  %v19525_v40 = vld [vmem:[#allocation140_spill] sm:$0xff] }
 0x260   : > { %v10482_v25 = vpop.eup %10481  ;;  %10507 = vrcp.f32 %v2867_v18  ;;  %3741 = vmatpush1.msra.mxu1 %v3323_v2  ;;  %3629 = vmatprep.subr.mxu0 %v3314_v35  ;;  %v3307_v56 = vmul.f32 %v10480_v44, %v19503_v46  ;;  %v3281_v32 = vmul.f32 %v19518_v58, %v19517_v4  ;;  %v3274_v18 = vmul.f32 %v19521_v30, %v19520_v27  ;;  %v19522_v31 = vld [vmem:[#allocation110_spill] sm:$0xff]  ;;  %v19526_v2 = vld [vmem:[#allocation136_spill] sm:$0xff]  ;;  %v19527_v44 = vld [vmem:[#allocation133_spill] sm:$0xff] }
 0x261   : > { %v10484_v22 = vpop.eup %10483  ;;  %10509 = vrcp.f32 %v2860_v53  ;;  %3742 = vmatprep.subr.mxu1 %v3316_v3  ;;  %3630 = vmatpush1.msra.mxu0 %v3313_v48  ;;  %v3300_v50 = vmul.f32 %v10482_v25, %v19506_v36  ;;  %v19523_v53 = vld [vmem:[#allocation143_spill] sm:$0xff]  ;;  %v19524_v37 = vld [vmem:[#allocation106_spill] sm:$0xff] }
 0x262   : > { %v10486_v14 = vpop.eup %10485  ;;  %10511 = vrcp.f32 %v2859_v11  ;;  %3743 = vmatpush1.msra.mxu1 %v3315_v47  ;;  %3631 = vmatprep.subr.mxu0 %v3306_v13  ;;  %v3299_v16 = vmul.f32 %v10484_v22, %v19510_v34  ;;  %v3273_v61 = vmul.f32 %v19524_v37, %v19523_v53  ;;  %v19528_v48 = vld [vmem:[#allocation115_spill] sm:$0xff]  ;;  %v19531_v22 = vld [vmem:[#allocation141_spill] sm:$0xff]  ;;  %v19537_v39 = vld [vmem:[#allocation142_spill] sm:$0xff] }
 0x263   : > { %v10488_v52 = vpop.eup %10487  ;;  %10513 = vrcp.f32 %v2852_v42  ;;  %3744 = vmatprep.subr.mxu1 %v3308_v60  ;;  %3632 = vmatpush1.msra.mxu0 %v3305_v57  ;;  %v3292_v10 = vmul.f32 %v10486_v14, %v19513_v26  ;;  %v3266_v42 = vmul.f32 %v19527_v44, %v19526_v2  ;;  %v19530_v13 = vld [vmem:[#allocation103_spill] sm:$0xff]  ;;  %v19532_v60 = vld [vmem:[#allocation138_spill] sm:$0xff]  ;;  %v19533_v14 = vld [vmem:[#allocation173_spill] sm:$0xff] }
 0x264   : > { %v10490_v20 = vpop.eup %10489  ;;  %10515 = vrcp.f32 %v2851_v19  ;;  %3745 = vmatpush1.msra.mxu1 %v3307_v56  ;;  %3633 = vmatprep.subr.mxu0 %v3298_v33  ;;  %v3291_v9 = vmul.f32 %v10488_v52, %v19516_v55  ;;  %v19529_v19 = vld [vmem:[#allocation165_spill] sm:$0xff]  ;;  %v19534_v33 = vld [vmem:[#allocation132_spill] sm:$0xff]  ;;  %v19542_v34 = vld [vmem:[#allocation171_spill] sm:$0xff] }
 0x265   : > { %v10492_v1 = vpop.eup %10491  ;;  %10517 = vrcp.f32 %v2844_v21  ;;  %3746 = vmatprep.subr.mxu1 %v3300_v50  ;;  %3634 = vmatpush1.msra.mxu0 %v3297_v17  ;;  %v3284_v62 = vmul.f32 %v10490_v20, %v19519_v49  ;;  %v3265_v47 = vmul.f32 %v19530_v13, %v19529_v19  ;;  %v19535_v52 = vld [vmem:[#allocation152_spill] sm:$0xff]  ;;  %v19538_v50 = vld [vmem:[#allocation109_spill] sm:$0xff]  ;;  %v19545_v26 = vld [vmem:[#allocation126_spill] sm:$0xff] }
 0x266   : > { %v10494_v63 = vpop.eup %10493  ;;  %10519 = vrcp.f32 %v2843_v54  ;;  %3747 = vmatpush1.msra.mxu1 %v3299_v16  ;;  %3635 = vmatprep.subr.mxu0 %v3290_v29  ;;  %v3283_v38 = vmul.f32 %v10492_v1, %v19522_v31  ;;  %v3258_v54 = vmul.f32 %v19533_v14, %v19532_v60  ;;  %v19539_v20 = vld [vmem:[#allocation172_spill] sm:$0xff]  ;;  %v19541_v29 = vld [vmem:[#allocation147_spill] sm:$0xff]  ;;  %v19543_v1 = vld [vmem:[#allocation134_spill] sm:$0xff] }
 0x267   : > { %v10496_v5 = vpop.eup %10495  ;;  %10521 = vrcp.f32 %v2836_v59  ;;  %3748 = vmatprep.subr.mxu1 %v3292_v10  ;;  %3636 = vmatpush1.msra.mxu0 %v3289_v43  ;;  %v3276_v11 = vmul.f32 %v10494_v63, %v19525_v40  ;;  %v3257_v59 = vmul.f32 %v19536_v51, %v19535_v52  ;;  %v3250_v7 = vmul.f32 %v19539_v20, %v19538_v50  ;;  %v19544_v43 = vld [vmem:[#allocation148_spill] sm:$0xff]  ;;  %v19546_v63 = vld [vmem:[#allocation169_spill] sm:$0xff]  ;;  %v19548_v55 = vld [vmem:[#allocation111_spill] sm:$0xff] }
 0x268   : > { %v10498_v45 = vpop.eup %10497  ;;  %10523 = vrcp.f32 %v2835_v6  ;;  %3749 = vmatpush1.msra.mxu1 %v3291_v9  ;;  %3637 = vmatprep.subr.mxu0 %v3282_v41  ;;  %v3275_v3 = vmul.f32 %v10496_v5, %v19528_v48  ;;  %v19540_v6 = vld [vmem:[#allocation162_spill] sm:$0xff]  ;;  %v3249_v16 = vmul.f32 %v19542_v34, %v19541_v29  ;;  %v3242_v10 = vmul.f32 %v19545_v26, %v19544_v43  ;;  %v19547_v41 = vld [vmem:[#allocation137_spill] sm:$0xff]  ;;  %v19549_v5 = vld [vmem:[#allocation144_spill] sm:$0xff] }
 0x269   : > { %v10500_v12 = vpop.eup %10499  ;;  %3750 = vmatprep.subr.mxu1 %v3284_v62  ;;  %3638 = vmatpush1.msra.mxu0 %v3281_v32  ;;  %v3268_v21 = vmul.f32 %v10498_v45, %v19531_v22  ;;  %v3241_v9 = vmul.f32 %v19548_v55, %v19547_v41  ;;  %v19550_v32 = vld [vmem:[#allocation105_spill] sm:$0xff]  ;;  %v19551_v49 = vld [vmem:[#allocation156_spill] sm:$0xff]  ;;  %v19552_v45 = vld [vmem:[#allocation151_spill] sm:$0xff] }
 0x26a   : > { %v10502_v35 = vpop.eup %10501  ;;  %3751 = vmatpush1.msra.mxu1 %v3283_v38  ;;  %3639 = vmatprep.subr.mxu0 %v3274_v18  ;;  %v3267_v46 = vmul.f32 %v10500_v12, %v19534_v33  ;;  %v3234_v62 = vmul.f32 %v19551_v49, %v19550_v32  ;;  %v19553_v18 = vld [vmem:[#allocation167_spill] sm:$0xff]  ;;  %v19554_v31 = vld [vmem:[#allocation160_spill] sm:$0xff]  ;;  %v19557_v40 = vld [vmem:[#allocation114_spill] sm:$0xff] }
 0x26b   : > { %v10504_v25 = vpop.eup %10503  ;;  %3752 = vmatprep.subr.mxu1 %v3276_v11  ;;  %3640 = vmatpush1.msra.mxu0 %v3273_v61  ;;  %v3260_v17 = vmul.f32 %v10502_v35, %v19537_v39  ;;  %v3233_v38 = vmul.f32 %v19554_v31, %v19553_v18  ;;  %v19555_v12 = vld [vmem:[#allocation108_spill] sm:$0xff]  ;;  %v19556_v61 = vld [vmem:[#allocation159_spill] sm:$0xff]  ;;  %v19558_v35 = vld [vmem:[#allocation150_spill] sm:$0xff] }
 0x26c   : > { %v10506_v57 = vpop.eup %10505  ;;  %3753 = vmatpush1.msra.mxu1 %v3275_v3  ;;  %3641 = vmatprep.subr.mxu0 %v3266_v42  ;;  %v3259_v0 = vmul.f32 %v10504_v25, %v19540_v6  ;;  %v3226_v11 = vmul.f32 %v19557_v40, %v19556_v61  ;;  %v19559_v42 = vld [vmem:[#allocation177_spill] sm:$0xff]  ;;  %v19560_v48 = vld [vmem:[#allocation158_spill] sm:$0xff]  ;;  %v19562_v13 = vld [vmem:[#allocation176_spill] sm:$0xff] }
 0x26d   : > { %v10508_v56 = vpop.eup %10507  ;;  %3754 = vmatprep.subr.mxu1 %v3268_v21  ;;  %3642 = vmatpush1.msra.mxu0 %v3265_v47  ;;  %v3252_v15 = vmul.f32 %v10506_v57, %v19543_v1  ;;  %v3225_v3 = vmul.f32 %v19560_v48, %v19559_v42  ;;  %v19561_v25 = vld [vmem:[#allocation146_spill] sm:$0xff]  ;;  %v19563_v47 = vld [vmem:[#allocation17_spill] sm:$0xff]  ;;  %v19565_v60 = vld [vmem:[#allocation175_spill] sm:$0xff] }
 0x26e   : > { %v10510_v36 = vpop.eup %10509  ;;  %3755 = vmatpush1.msra.mxu1 %v3267_v46  ;;  %3643 = vmatprep.subr.mxu0 %v3258_v54  ;;  %v3251_v23 = vmul.f32 %v10508_v56, %v19546_v63  ;;  %v3218_v22 = vmul.f32 %v19563_v47, %v19562_v13  ;;  %v19564_v21 = vld [vmem:[#allocation149_spill] sm:$0xff]  ;;  %v19567_v33 = vld [vmem:[#allocation107_spill] sm:$0xff]  ;;  %v12061_v51 = vld [vmem:[%s18919_s6] sm:$0xff] }
 0x26f   : > { %v10512_v24 = vpop.eup %10511  ;;  %3756 = vmatprep.subr.mxu1 %v3260_v17  ;;  %3644 = vmatpush1.msra.mxu0 %v3257_v59  ;;  %v3244_v4 = vmul.f32 %v10510_v36, %v19549_v5  ;;  %v19566_v14 = vld [vmem:[#allocation161_spill] sm:$0xff]  ;;  %v19569_v59 = vmov 0.0   ;;  %v12062_v39 = vld [vmem:[%s18919_s6 + $0x8] sm:$0xff]  ;;  %v12063_v17 = vld [vmem:[%s18919_s6 + $0x10] sm:$0xff] }
 0x270   : > { %v10514_v28 = vpop.eup %10513  ;;  %3757 = vmatpush1.msra.mxu1 %v3259_v0  ;;  %3645 = vmatprep.subr.mxu0 %v3250_v7  ;;  %v3243_v27 = vmul.f32 %v10512_v24, %v19552_v45  ;;  %v3217_v54 = vmul.f32 %v19566_v14, %v19565_v60  ;;  %v19568_v56 = vld [vmem:[#allocation153_spill] sm:$0xff]  ;;  %v12065_v50 = vld [vmem:[%s18919_s6 + $0x20] sm:$0xff]  ;;  %v19571_v7 = vld [vmem:[#allocation164_spill] sm:$0xff] }
 0x271   : > { %v10516_v8 = vpop.eup %10515  ;;  %3758 = vmatprep.subr.mxu1 %v3252_v15  ;;  %3646 = vmatpush1.msra.mxu0 %v3249_v16  ;;  %v3236_v53 = vmul.f32 %v10514_v28, %v19555_v12  ;;  %v12064_v36 = vld [vmem:[%s18919_s6 + $0x18] sm:$0xff]  ;;  %v19572_v6 = vld [vmem:[#allocation166_spill] sm:$0xff]  ;;  %v19574_v63 = vld [vmem:[#allocation55_spill] sm:$0xff] }
 0x272   : > { %v10518_v58 = vpop.eup %10517  ;;  %3759 = vmatpush1.msra.mxu1 %v3251_v23  ;;  %3647 = vmatprep.subr.mxu0 %v3242_v10  ;;  %v3235_v2 = vmul.f32 %v10516_v8, %v19558_v35  ;;  %v19570_v20 = vld [vmem:[#allocation157_spill] sm:$0xff] }
 0x273   : > { %v10520_v30 = vpop.eup %10519  ;;  %3760 = vmatprep.subr.mxu1 %v3244_v4  ;;  %3648 = vmatpush1.msra.mxu0 %v3241_v9  ;;  %v3228_v19 = vmul.f32 %v10518_v58, %v19561_v25  ;;  %v19573_v15 = vld [vmem:[#allocation49_spill] sm:$0xff] }
 0x274   : > { %v10522_v37 = vpop.eup %10521  ;;  %3761 = vmatpush1.msra.mxu1 %v3243_v27  ;;  %3649 = vmatprep.subr.mxu0 %v3234_v62  ;;  %v3227_v57 = vmul.f32 %v10520_v30, %v19564_v21  ;;  %v19577_v40 = vld [vmem:[#allocation41_spill] sm:$0xff]  ;;  %v19578_v21 = vld [vmem:[#allocation47_spill] sm:$0xff] }
 0x275   : > { %v10524_v44 = vpop.eup %10523  ;;  %3762 = vmatprep.subr.mxu1 %v3236_v53  ;;  %3650 = vmatpush1.msra.mxu0 %v3233_v38  ;;  %v3220_v46 = vmul.f32 %v10522_v37, %v19567_v33 }
 0x276   : > { %3763 = vmatpush1.msra.mxu1 %v3235_v2  ;;  %3651 = vmatprep.subr.mxu0 %v3226_v11  ;;  %v3219_v52 = vmul.f32 %v10524_v44, %v19568_v56 }
 0x277   : > { %3764 = vmatprep.subr.mxu1 %v3228_v19  ;;  %3652 = vmatpush1.msra.mxu0 %v3225_v3 }
 0x278   : > { %3765 = vmatpush1.msra.mxu1 %v3227_v57  ;;  %3653 = vmatprep.subr.mxu0 %v3218_v22 }
 0x279   : > { %3766 = vmatprep.subr.mxu1 %v3220_v46  ;;  %3654 = vmatpush1.msra.mxu0 %v3217_v54 }
 0x27a   : > { %3767 = vmatpush1.msra.mxu1 %v3219_v52  ;;  %3688 = vmatmul.mubr.f32.vlgmr.msra.gmra.mxu0 %v12061_v51 }
 0x27b   : > { %3801 = vmatmul.mubr.f32.vlgmr.msra.gmra.mxu1 %v12061_v51  ;;  %3693 = vmatprep.mubr.f32.mxu0 %v19569_v59 }
 0x27c   : > { %3806 = vmatprep.mubr.f32.mxu1 %v19569_v59 }
 0x27e   : > { %3694 = vmatmul.mubr.f32.gmra.mxu0 %v12062_v39 }
 0x27f   : > { %3807 = vmatmul.mubr.f32.gmra.mxu1 %v12062_v39  ;;  %3699 = vmatprep.mubr.f32.mxu0 %v19569_v59 }
 0x280   : > { %3812 = vmatprep.mubr.f32.mxu1 %v19569_v59 }
 0x282   : > { %3700 = vmatmul.mubr.f32.gmra.mxu0 %v12063_v17 }
 0x283   : > { %3813 = vmatmul.mubr.f32.gmra.mxu1 %v12063_v17  ;;  %3705 = vmatprep.mubr.f32.mxu0 %v19569_v59 }
 0x284   : > { %3818 = vmatprep.mubr.f32.mxu1 %v19569_v59 }
 0x286   : > { %3706 = vmatmul.mubr.f32.gmra.mxu0 %v12064_v36 }
 0x287   : > { %3819 = vmatmul.mubr.f32.gmra.mxu1 %v12064_v36  ;;  %3711 = vmatprep.mubr.f32.mxu0 %v19569_v59 }
 0x288   : > { %3824 = vmatprep.mubr.f32.mxu1 %v19569_v59 }
 0x28a   : > { %3712 = vmatmul.mubr.f32.gmra.mxu0 %v12065_v50 }
 0x28b   : > { %3825 = vmatmul.mubr.f32.gmra.mxu1 %v12065_v50  ;;  %3717 = vmatprep.mubr.f32.mxu0 %v19569_v59 }
 0x28c   : > { %3830 = vmatprep.mubr.f32.mxu1 %v19569_v59 }
 0x28e   : > { %3718 = vmatmul.mubr.f32.gmra.mxu0 %v19570_v20 }
 0x28f   : > { %3831 = vmatmul.mubr.f32.gmra.mxu1 %v19570_v20  ;;  %3723 = vmatprep.mubr.f32.mxu0 %v19569_v59 }
 0x290   : > { %3836 = vmatprep.mubr.f32.mxu1 %v19569_v59 }
 0x292   : > { %3724 = vmatmul.mubr.f32.gmra.mxu0 %v19571_v7 }
 0x293   : > { %3837 = vmatmul.mubr.f32.gmra.mxu1 %v19571_v7  ;;  %3729 = vmatprep.mubr.f32.mxu0 %v19569_v59 }
 0x294   : > { %3842 = vmatprep.mubr.f32.mxu1 %v19569_v59 }
 0x296   : > { %3730 = vmatmul.mubr.f32.gmra.mxu0 %v19572_v6 }
 0x297   : > { %3843 = vmatmul.mubr.f32.gmra.mxu1 %v19572_v6  ;;  %4522 = vmatprep.mubr.f32.mxu0 %v19569_v59 }
 0x298   : > { %4779 = vmatprep.mubr.f32.mxu1 %v19569_v59 }
 0x2bb   : > { %v3463_v0 = vpop.f32.mrf.mxu0 }
 0x2bc   : > { %v3576_v24 = vpop.f32.mrf.mxu1  ;;  %v14583_v28 = vadd.f32 %v3463_v0, %v19573_v15 }
 0x2bd   : > { %v3465_v29 = vpop.f32.mrf.mxu0  ;;  %v14599_v27 = vadd.f32 %v3576_v24, %v19573_v15 }
 0x2be   : > { %v3578_v34 = vpop.f32.mrf.mxu1  ;;  %v14586_v26 = vadd.f32 %v3465_v29, %v19573_v15  ;;  %v9416_v9 = vmul.f32 -1.442695, %v14583_v28 }
 0x2bf   : > { %v3469_v16 = vpop.f32.mrf.mxu0  ;;  %19575 = vst [vmem:[#allocation99_spill] sm:$0xff] %v14599_v27  ;;  %v14602_v18 = vadd.f32 %v3578_v34, %v19573_v15  ;;  %v9418_v61 = vmul.f32 -1.442695, %v14599_v27 }
 0x2c0   : > { %v3582_v1 = vpop.f32.mrf.mxu1  ;;  %v14589_v23 = vadd.f32 %v3469_v16, %v19574_v63  ;;  %v9417_v4 = vmul.f32 -1.442695, %v14586_v26  ;;  %10525 = vpow2.f32 %v9416_v9  ;;  %v19579_v16 = vld [vmem:[#allocation33_spill] sm:$0xff] }
 0x2c1   : > { %v3471_v43 = vpop.f32.mrf.mxu0  ;;  %19576 = vst [vmem:[#allocation125_spill] sm:$0xff] %v14602_v18  ;;  %v14605_v38 = vadd.f32 %v3582_v1, %v19574_v63  ;;  %v9419_v2 = vmul.f32 -1.442695, %v14602_v18 }
 0x2c2   : > { %v3584_v10 = vpop.f32.mrf.mxu1  ;;  %v14592_v41 = vadd.f32 %v3471_v43, %v19574_v63  ;;  %v9424_v32 = vmul.f32 -1.442695, %v14589_v23  ;;  %10527 = vpow2.f32 %v9417_v4  ;;  %v19580_v4 = vld [vmem:[#allocation39_spill] sm:$0xff] }
 0x2c3   : > { %v3475_v8 = vpop.f32.mrf.mxu0  ;;  %v14608_v53 = vadd.f32 %v3584_v10, %v19574_v63  ;;  %v9426_v48 = vmul.f32 -1.442695, %v14605_v38 }
 0x2c4   : > { %v3588_v55 = vpop.f32.mrf.mxu1  ;;  %v9425_v62 = vmul.f32 -1.442695, %v14592_v41  ;;  %10529 = vpow2.f32 %v9424_v32  ;;  %v14614_v11 = vadd.f32 %v3475_v8, %v19577_v40 }
 0x2c5   : > { %v3477_v5 = vpop.f32.mrf.mxu0  ;;  %v14618_v44 = vadd.f32 %v3588_v55, %v19577_v40  ;;  %v9427_v19 = vmul.f32 -1.442695, %v14608_v53 }
 0x2c6   : > { %v3590_v58 = vpop.f32.mrf.mxu1  ;;  %10531 = vpow2.f32 %v9425_v62  ;;  %v14622_v3 = vadd.f32 %v3477_v5, %v19577_v40  ;;  %v9432_v22 = vmul.f32 -1.442695, %v14614_v11 }
 0x2c7   : > { %v3481_v49 = vpop.f32.mrf.mxu0  ;;  %v14626_v13 = vadd.f32 %v3590_v58, %v19577_v40  ;;  %10533 = vpow2.f32 %v9418_v61  ;;  %v9434_v60 = vmul.f32 -1.442695, %v14618_v44 }
 0x2c8   : > { %v3594_v45 = vpop.f32.mrf.mxu1  ;;  %v14630_v57 = vadd.f32 %v3481_v49, %v19578_v21  ;;  %10535 = vpow2.f32 %v9419_v2  ;;  %v9433_v54 = vmul.f32 -1.442695, %v14622_v3 }
 0x2c9   : > { %v3483_v30 = vpop.f32.mrf.mxu0  ;;  %v14634_v14 = vadd.f32 %v3594_v45, %v19578_v21  ;;  %10537 = vpow2.f32 %v9426_v48  ;;  %v9435_v56 = vmul.f32 -1.442695, %v14626_v13 }
 0x2ca   : > { %v3596_v31 = vpop.f32.mrf.mxu1  ;;  %v14638_v33 = vadd.f32 %v3483_v30, %v19578_v21  ;;  %10539 = vpow2.f32 %v9427_v19  ;;  %v9440_v39 = vmul.f32 -1.442695, %v14630_v57 }
 0x2cb   : > { %v3487_v12 = vpop.f32.mrf.mxu0  ;;  %v14642_v52 = vadd.f32 %v3596_v31, %v19578_v21  ;;  %10541 = vpow2.f32 %v9432_v22  ;;  %v9442_v36 = vmul.f32 -1.442695, %v14634_v14 }
 0x2cc   : > { %v14610_v37 = vpop.f32.mrf.mxu1  ;;  %10543 = vpow2.f32 %v9434_v60  ;;  %v9441_v20 = vmul.f32 -1.442695, %v14638_v33  ;;  %v14649_v1 = vadd.f32 %v3487_v12, %v19579_v16 }
 0x2cd   : > { %v3489_v35 = vpop.f32.mrf.mxu0  ;;  %v10526_v17 = vpop.eup %10525  ;;  %10545 = vpow2.f32 %v9433_v54  ;;  %v9443_v0 = vmul.f32 -1.442695, %v14642_v52 }
 0x2ce   : > { %v3602_v42 = vpop.f32.mrf.mxu1  ;;  %10547 = vpow2.f32 %v9435_v56  ;;  %v4041_v34 = vadd.f32 1.0, %v10526_v17  ;;  %v14652_v10 = vadd.f32 %v3489_v35, %v19579_v16  ;;  %v9448_v49 = vmul.f32 -1.442695, %v14649_v1 }
 0x2cf   : > { %v3493_v25 = vpop.f32.mrf.mxu0  ;;  %v10528_v50 = vpop.eup %10527  ;;  %10549 = vpow2.f32 %v9440_v39  ;;  %v14655_v55 = vadd.f32 %v3602_v42, %v19579_v16 }
 0x2d0   : > { %v3606_v47 = vpop.f32.mrf.mxu1  ;;  %v4042_v43 = vadd.f32 1.0, %v10528_v50  ;;  %10551 = vpow2.f32 %v9442_v36  ;;  %v14658_v58 = vadd.f32 %v3493_v25, %v19580_v4  ;;  %v9449_v30 = vmul.f32 -1.442695, %v14652_v10  ;;  %v19581_v25 = vld [vmem:[#allocation25_spill] sm:$0xff] }
 0x2d1   : > { %v3495_v46 = vpop.f32.mrf.mxu0  ;;  %v10530_v6 = vpop.eup %10529  ;;  %10553 = vpow2.f32 %v9441_v20  ;;  %v14662_v62 = vadd.f32 %v3606_v47, %v19580_v4  ;;  %v9451_v61 = vmul.f32 -1.442695, %v14655_v55 }
 0x2d2   : > { %v3608_v51 = vpop.f32.mrf.mxu1  ;;  %v4049_v8 = vadd.f32 1.0, %v10530_v6  ;;  %10555 = vpow2.f32 %v9443_v0  ;;  %v14668_v31 = vadd.f32 %v3495_v46, %v19580_v4  ;;  %v9456_v48 = vmul.f32 -1.442695, %v14658_v58  ;;  %v19582_v6 = vld [vmem:[#allocation31_spill] sm:$0xff] }
 0x2d3   : > { %v3499_v7 = vpop.f32.mrf.mxu0  ;;  %v10532_v29 = vpop.eup %10531  ;;  %10557 = vrcp.f32 %v4041_v34  ;;  %v14674_v35 = vadd.f32 %v3608_v51, %v19580_v4  ;;  %v9458_v60 = vmul.f32 -1.442695, %v14662_v62 }
 0x2d4   : > { %v3612_v24 = vpop.f32.mrf.mxu1  ;;  %v4050_v5 = vadd.f32 1.0, %v10532_v29  ;;  %v14664_v45 = vpop.eup %10533  ;;  %10559 = vrcp.f32 %v4042_v43  ;;  %v14680_v19 = vadd.f32 %v3499_v7, %v19581_v25  ;;  %v9457_v56 = vmul.f32 -1.442695, %v14668_v31 }
 0x2d5   : > { %v3501_v9 = vpop.f32.mrf.mxu0  ;;  %v14670_v12 = vpop.eup %10535  ;;  %10561 = vrcp.f32 %v4049_v8  ;;  %v14686_v54 = vadd.f32 %v3612_v24, %v19581_v25  ;;  %v9459_v17 = vmul.f32 -1.442695, %v14674_v35 }
 0x2d6   : > { %v3614_v32 = vpop.f32.mrf.mxu1  ;;  %v14676_v42 = vpop.eup %10537  ;;  %10563 = vrcp.f32 %v4050_v5  ;;  %v14690_v51 = vadd.f32 %v3501_v9, %v19581_v25  ;;  %v9464_v7 = vmul.f32 -1.442695, %v14680_v19 }
 0x2d7   : > { %v3505_v2 = vpop.f32.mrf.mxu0  ;;  %v14682_v22 = vpop.eup %10539  ;;  %10565 = vpow2.f32 %v9448_v49  ;;  %v14696_v36 = vadd.f32 %v3614_v32, %v19581_v25  ;;  %v9466_v34 = vmul.f32 -1.442695, %v14686_v54 }
 0x2d8   : > { %v3618_v47 = vpop.f32.mrf.mxu1  ;;  %v10542_v46 = vpop.eup %10541  ;;  %10567 = vpow2.f32 %v9449_v30  ;;  %v14700_v0 = vadd.f32 %v3505_v2, %v19582_v6  ;;  %v9465_v9 = vmul.f32 -1.442695, %v14690_v51  ;;  %v14720_v2 = vadd.f32 %v14610_v37, %v19579_v16 }
 0x2d9   : > { %v14692_v39 = vpop.eup %10543  ;;  %10569 = vpow2.f32 %v9451_v61  ;;  %v3507_v50 = vpop.f32.mrf.mxu0  ;;  %v14706_v43 = vadd.f32 %v3618_v47, %v19582_v6  ;;  %v9467_v49 = vmul.f32 -1.442695, %v14696_v36 }
 0x2da   : > { %v10546_v20 = vpop.eup %10545  ;;  %10571 = vpow2.f32 %v9456_v48  ;;  %v3620_v24 = vpop.f32.mrf.mxu1  ;;  %v14710_v5 = vadd.f32 %v3507_v50, %v19582_v6  ;;  %v9472_v48 = vmul.f32 -1.442695, %v14700_v0 }
 0x2db   : > { %v14702_v29 = vpop.eup %10547  ;;  %10573 = vpow2.f32 %v9458_v60  ;;  %v14716_v30 = vadd.f32 %v3620_v24, %v19582_v6  ;;  %v9474_v60 = vmul.f32 -1.442695, %v14706_v43  ;;  %v4058_v4 = vadd.f32 1.0, %v10546_v20 }
 0x2dc   : > { %v10550_v8 = vpop.eup %10549  ;;  %10575 = vpow2.f32 %v9457_v56 }
 0x2dd   : > { %v14712_v32 = vpop.eup %10551  ;;  %10577 = vpow2.f32 %v9459_v17  ;;  %v9473_v17 = vmul.f32 -1.442695, %v14710_v5  ;;  %v9475_v24 = vmul.f32 -1.442695, %v14716_v30  ;;  %v4065_v16 = vadd.f32 1.0, %v10550_v8 }
 0x2de   : > { %v10554_v61 = vpop.eup %10553  ;;  %10579 = vpow2.f32 %v9464_v7  ;;  %v9450_v7 = vmul.f32 -1.442695, %v14720_v2 }
 0x2df   : > { %v14723_v47 = vpop.eup %10555  ;;  %10581 = vpow2.f32 %v9466_v34  ;;  %v4057_v34 = vadd.f32 1.0, %v10542_v46  ;;  %v4066_v40 = vadd.f32 1.0, %v10554_v61 }
 0x2e0   : > { %v14726_v56 = vpop.eup %10557  ;;  %10583 = vpow2.f32 %v9465_v9 }
 0x2e1   : > { %v14729_v50 = vpop.eup %10559  ;;  %10585 = vpow2.f32 %v9467_v49 }
 0x2e2   : > { %v14732_v37 = vpop.eup %10561  ;;  %10587 = vpow2.f32 %v9472_v48 }
 0x2e3   : > { %v14735_v6 = vpop.eup %10563  ;;  %10589 = vpow2.f32 %v9474_v60 }
 0x2e4   : > { %v10566_v25 = vpop.eup %10565  ;;  %10591 = vpow2.f32 %v9473_v17 }
 0x2e5   : > { %v10568_v9 = vpop.eup %10567  ;;  %10593 = vpow2.f32 %v9475_v24  ;;  %v4073_v63 = vadd.f32 1.0, %v10566_v25 }
 0x2e6   : > { %v10570_v21 = vpop.eup %10569  ;;  %10595 = vpow2.f32 %v9450_v7  ;;  %v4074_v59 = vadd.f32 1.0, %v10568_v9 }
 0x2e7   : > { %v10572_v49 = vpop.eup %10571  ;;  %10597 = vrcp.f32 %v4057_v34 }
 0x2e8   : > { %v10574_v15 = vpop.eup %10573  ;;  %10599 = vrcp.f32 %v4058_v4  ;;  %v4081_v27 = vadd.f32 1.0, %v10572_v49 }
 0x2e9   : > { %v10576_v48 = vpop.eup %10575  ;;  %10601 = vrcp.f32 %v4065_v16 }
 0x2ea   : > { %v10578_v46 = vpop.eup %10577  ;;  %10603 = vrcp.f32 %v4066_v40  ;;  %v4082_v60 = vadd.f32 1.0, %v10576_v48 }
 0x2eb   : > { %v10580_v20 = vpop.eup %10579  ;;  %10605 = vrcp.f32 %v4073_v63 }
 0x2ec   : > { %v10582_v17 = vpop.eup %10581  ;;  %10607 = vrcp.f32 %v4074_v59  ;;  %v4089_v8 = vadd.f32 1.0, %v10580_v20  ;;  %v4084_v20 = vadd.f32 1.0, %v10578_v46 }
 0x2ed   : > { %v10584_v24 = vpop.eup %10583  ;;  %10609 = vrcp.f32 %v4081_v27  ;;  %v4091_v48 = vadd.f32 1.0, %v10582_v17  ;;  %v4068_v17 = vadd.f32 1.0, %v14723_v47  ;;  %v4051_v47 = vadd.f32 1.0, %v14676_v42 }
 0x2ee   : > { %v10586_v61 = vpop.eup %10585  ;;  %10611 = vrcp.f32 %v4082_v60  ;;  %v4090_v7 = vadd.f32 1.0, %v10584_v24  ;;  %v4083_v60 = vadd.f32 1.0, %v10574_v15  ;;  %v4076_v24 = vadd.f32 1.0, %v10570_v21 }
 0x2ef   : > { %v10588_v25 = vpop.eup %10587  ;;  %10613 = vrcp.f32 %v4089_v8  ;;  %v4092_v4 = vadd.f32 1.0, %v10586_v61  ;;  %v4060_v15 = vadd.f32 1.0, %v14702_v29  ;;  %v4059_v21 = vadd.f32 1.0, %v14692_v39 }
 0x2f0   : > { %v10590_v34 = vpop.eup %10589  ;;  %10615 = vrcp.f32 %v4090_v7  ;;  %v4097_v16 = vadd.f32 1.0, %v10588_v25  ;;  %v4043_v29 = vadd.f32 1.0, %v14664_v45 }
 0x2f1   : > { %v10592_v9 = vpop.eup %10591  ;;  %10617 = vrcp.f32 %v4092_v4  ;;  %v4099_v40 = vadd.f32 1.0, %v10590_v34  ;;  %v4067_v4 = vadd.f32 1.0, %v14712_v32  ;;  %v4044_v32 = vadd.f32 1.0, %v14670_v12 }
 0x2f2   : > { %v10594_v49 = vpop.eup %10593  ;;  %10619 = vrcp.f32 %v4097_v16  ;;  %v4098_v63 = vadd.f32 1.0, %v10592_v9 }
 0x2f3   : > { %v10596_v59 = vpop.eup %10595  ;;  %10621 = vrcp.f32 %v4099_v40  ;;  %v4100_v27 = vadd.f32 1.0, %v10594_v49  ;;  %v4052_v40 = vadd.f32 1.0, %v14682_v22 }
 0x2f4   : > { %v14737_v18 = vpop.eup %10597  ;;  %10623 = vrcp.f32 %v4098_v63  ;;  %v4075_v7 = vadd.f32 1.0, %v10596_v59 }
 0x2f5   : > { %v14739_v8 = vpop.eup %10599  ;;  %10625 = vrcp.f32 %v4100_v27 }
 0x2f6   : > { %v14741_v61 = vpop.eup %10601  ;;  %10627 = vrcp.f32 %v4091_v48 }
 0x2f7   : > { %v14743_v25 = vpop.eup %10603  ;;  %10629 = vrcp.f32 %v4084_v20 }
 0x2f8   : > { %v10606_v46 = vpop.eup %10605  ;;  %10631 = vrcp.f32 %v4083_v60 }
 0x2f9   : > { %v10608_v34 = vpop.eup %10607  ;;  %10633 = vrcp.f32 %v4076_v24 }
 0x2fa   : > { %v10610_v16 = vpop.eup %10609  ;;  %10635 = vrcp.f32 %v4075_v7 }
 0x2fb   : > { %v10612_v9 = vpop.eup %10611  ;;  %10637 = vrcp.f32 %v4068_v17 }
 0x2fc   : > { %v10614_v49 = vpop.eup %10613  ;;  %10639 = vrcp.f32 %v4067_v4 }
 0x2fd   : > { %v10616_v48 = vpop.eup %10615  ;;  %10641 = vrcp.f32 %v4060_v15  ;;  %v4281_v4 = vmul.f32 %v10614_v49, %v14680_v19  ;;  %v4266_v19 = vmul.f32 %v10608_v34, %v14652_v10 }
 0x2fe   : > { %v10618_v63 = vpop.eup %10617  ;;  %10643 = vrcp.f32 %v4059_v21  ;;  %v4282_v7 = vmul.f32 %v10616_v48, %v14690_v51  ;;  %v4273_v51 = vmul.f32 %v10610_v16, %v14658_v58  ;;  %v4258_v58 = vmul.f32 %v14743_v25, %v14638_v33  ;;  %v19589_v16 = vld [vmem:[#allocation26_spill] sm:$0xff] }
 0x2ff   : > { %v10620_v59 = vpop.eup %10619  ;;  %10645 = vrcp.f32 %v4052_v40  ;;  %v4284_v15 = vmul.f32 %v10618_v63, %v14696_v36  ;;  %v14825_v63 = vpop.permute.xlu1 %685 }
 0x300   : > { %v10622_v39 = vpop.eup %10621  ;;  %10647 = vrcp.f32 %v4051_v47  ;;  %v4289_v60 = vmul.f32 %v10620_v59, %v14700_v0  ;;  %19591 = vst [vmem:[#allocation97_spill] sm:$0xff] %v14825_v63  ;;  %v19592_v59 = vld [vmem:[#allocation27_spill] sm:$0xff] }
 0x301   : > { %v10624_v20 = vpop.eup %10623  ;;  %10649 = vrcp.f32 %v4044_v32  ;;  %v4291_v45 = vmul.f32 %v10622_v39, %v14706_v43  ;;  %v4332_v32 = vld [vmem:[%s18922_s9 + $0x18] sm:$0xff] }
 0x302   : > { %v10626_v22 = vpop.eup %10625  ;;  %10651 = vrcp.f32 %v4043_v29  ;;  %v4290_v27 = vmul.f32 %v10624_v20, %v14710_v5  ;;  %v4274_v5 = vmul.f32 %v10612_v9, %v14668_v31  ;;  %v4265_v31 = vmul.f32 %v10606_v46, %v14649_v1  ;;  %v19594_v20 = vld [vmem:[#allocation28_spill] sm:$0xff] }
 0x303   : > { %v10628_v42 = vpop.eup %10627  ;;  %v4292_v12 = vmul.f32 %v10626_v22, %v14716_v30 }
 0x304   : > { %v10630_v24 = vpop.eup %10629  ;;  %4474 = vmatprep.subr.mxu0 %v4290_v27  ;;  %v4283_v0 = vmul.f32 %v10628_v42, %v14686_v54  ;;  %v19596_v27 = vld [vmem:[#allocation73_spill] sm:$0xff] }
 0x305   : > { %v10632_v17 = vpop.eup %10631  ;;  %4731 = vmatprep.subr.mxu1 %v4292_v12  ;;  %4475 = vmatpush1.msra.mxu0 %v4289_v60  ;;  %v4276_v43 = vmul.f32 %v10630_v24, %v14674_v35  ;;  %v19597_v42 = vld [vmem:[#allocation29_spill] sm:$0xff]  ;;  %v19599_v12 = vld [vmem:[#allocation15_spill] sm:$0xff] }
 0x306   : > { %v10634_v21 = vpop.eup %10633  ;;  %4732 = vmatpush1.msra.mxu1 %v4291_v45  ;;  %4476 = vmatprep.subr.mxu0 %v4282_v7  ;;  %v4275_v36 = vmul.f32 %v10632_v17, %v14662_v62  ;;  %v4257_v62 = vmul.f32 %v14741_v61, %v14630_v57  ;;  %v14839_v60 = vadd.f32 %v19597_v42, %v19596_v27  ;;  %v4333_v7 = vld [vmem:[%s18922_s9 + $0x20] sm:$0xff]  ;;  %v19601_v45 = vld [vmem:[#allocation16_spill] sm:$0xff]  ;;  %v19631_v42 = vld [vmem:[#allocation43_spill] sm:$0xff] }
 0x307   : > { %v10636_v30 = vpop.eup %10635  ;;  %4733 = vmatprep.subr.mxu1 %v4284_v15  ;;  %4477 = vmatpush1.msra.mxu0 %v4281_v4  ;;  %v4268_v54 = vmul.f32 %v10634_v21, %v14655_v55  ;;  %v4250_v55 = vmul.f32 %v14739_v8, %v14622_v3  ;;  %v14844_v24 = vadd.f32 %v19599_v12, %v14825_v63  ;;  %v14855_v4 = vpop.permute.xlu0 %690  ;;  %v19604_v21 = vld [vmem:[#allocation18_spill] sm:$0xff] }
 0x308   : > { %v10638_v40 = vpop.eup %10637  ;;  %4734 = vmatpush1.msra.mxu1 %v4283_v0  ;;  %4478 = vmatprep.subr.mxu0 %v4274_v5  ;;  %v4267_v35 = vmul.f32 %v10636_v30, %v14720_v2  ;;  %v4249_v2 = vmul.f32 %v14737_v18, %v14614_v11  ;;  %v4234_v18 = vmul.f32 %v14729_v50, %v14586_v26  ;;  %v4330_v26 = vld [vmem:[%s18922_s9 + $0x8] sm:$0xff] }
 0x309   : > { %v10640_v49 = vpop.eup %10639  ;;  %4735 = vmatprep.subr.mxu1 %v4276_v43  ;;  %4479 = vmatpush1.msra.mxu0 %v4273_v51  ;;  %v4260_v34 = vmul.f32 %v10638_v40, %v14642_v52  ;;  %v4242_v52 = vmul.f32 %v14735_v6, %v14592_v41  ;;  %v4233_v41 = vmul.f32 %v14726_v56, %v14583_v28  ;;  %v19585_v28 = vmov 0.0   ;;  %v19587_v56 = vld [vmem:[#allocation24_spill] sm:$0xff]  ;;  %v19606_v30 = vld [vmem:[#allocation19_spill] sm:$0xff] }
 0x30a   : > { %v10642_v9 = vpop.eup %10641  ;;  %4736 = vmatpush1.msra.mxu1 %v4275_v36  ;;  %4480 = vmatprep.subr.mxu0 %v4266_v19  ;;  %v4259_v46 = vmul.f32 %v10640_v49, %v14634_v14  ;;  %v4241_v14 = vmul.f32 %v14732_v37, %v14589_v23  ;;  %v4329_v23 = vld [vmem:[%s18922_s9] sm:$0xff]  ;;  %v4331_v37 = vld [vmem:[%s18922_s9 + $0x10] sm:$0xff]  ;;  %19598 = vst [vmem:[#allocation127_spill] sm:$0xff] %v14839_v60  ;;  %19600 = vst [vmem:[#allocation98_spill] sm:$0xff] %v14844_v24  ;;  %v9248_v43 = vmul.f32 -1.442695, %v14839_v60 }
 0x30b   : > { %v10644_v10 = vpop.eup %10643  ;;  %4737 = vmatprep.subr.mxu1 %v4268_v54  ;;  %4481 = vmatpush1.msra.mxu0 %v4265_v31  ;;  %v4252_v25 = vmul.f32 %v10642_v9, %v14626_v13  ;;  %v14853_v17 = vadd.f32 %v19601_v45, %v14825_v63  ;;  %19603 = vst [vmem:[#allocation12_spill] sm:$0xff] %v14855_v4  ;;  %v9224_v40 = vmul.f32 -1.442695, %v14844_v24  ;;  %v19608_v19 = vld [vmem:[#allocation20_spill] sm:$0xff]  ;;  %v4334_v49 = vld [vmem:[%s18922_s9 + $0x28] sm:$0xff]  ;;  %v19610_v54 = vld [vmem:[#allocation21_spill] sm:$0xff] }
 0x30c   : > { %v10646_v1 = vpop.eup %10645  ;;  %4738 = vmatpush1.msra.mxu1 %v4267_v35  ;;  %4482 = vmatprep.subr.mxu0 %v4258_v58  ;;  %v4251_v61 = vmul.f32 %v10644_v10, %v14618_v44  ;;  %v19583_v44 = vld [vmem:[#allocation125_spill] sm:$0xff]  ;;  %v14861_v5 = vadd.f32 %v19604_v21, %v14825_v63  ;;  %v14866_v51 = vadd.f32 %v19606_v30, %v14825_v63  ;;  %v19612_v35 = vld [vmem:[#allocation22_spill] sm:$0xff]  ;;  %v19633_v21 = vld [vmem:[#allocation44_spill] sm:$0xff] }
 0x30d   : > { %v10648_v33 = vpop.eup %10647  ;;  %4739 = vmatprep.subr.mxu1 %v4260_v34  ;;  %4483 = vmatpush1.msra.mxu0 %v4257_v62  ;;  %v4244_v8 = vmul.f32 %v10646_v1, %v14608_v53  ;;  %v19584_v53 = vld [vmem:[#allocation99_spill] sm:$0xff]  ;;  %19602 = vst [vmem:[#allocation123_spill] sm:$0xff] %v14853_v17  ;;  %v14873_v36 = vadd.f32 %v19608_v19, %v14855_v4  ;;  %v9226_v31 = vmul.f32 -1.442695, %v14853_v17  ;;  %v4337_v45 = vld [vmem:[%s18922_s9 + $0x40] sm:$0xff]  ;;  %v19635_v19 = vld [vmem:[#allocation57_spill] sm:$0xff] }
 0x30e   : > { %v10650_v57 = vpop.eup %10649  ;;  %4740 = vmatpush1.msra.mxu1 %v4259_v46  ;;  %4484 = vmatprep.subr.mxu0 %v4250_v55  ;;  %v4243_v11 = vmul.f32 %v10648_v33, %v14605_v38  ;;  %v19586_v38 = vld [vmem:[#allocation68_spill] sm:$0xff]  ;;  %19605 = vst [vmem:[#allocation96_spill] sm:$0xff] %v14861_v5  ;;  %19607 = vst [vmem:[#allocation119_spill] sm:$0xff] %v14866_v51  ;;  %v14883_v9 = vadd.f32 %v19610_v54, %v14855_v4  ;;  %v9225_v58 = vmul.f32 -1.442695, %v14861_v5  ;;  %v19614_v34 = vld [vmem:[#allocation23_spill] sm:$0xff] }
 0x30f   : > { %v10652_v3 = vpop.eup %10651  ;;  %4741 = vmatprep.subr.mxu1 %v4252_v25  ;;  %4485 = vmatpush1.msra.mxu0 %v4249_v2  ;;  %v4236_v13 = vmul.f32 %v10650_v57, %v19583_v44  ;;  %v14806_v50 = vadd.f32 %v19587_v56, %v19586_v38  ;;  %v14815_v47 = vadd.f32 %v19589_v16, %v19586_v38  ;;  %v9227_v62 = vmul.f32 -1.442695, %v14866_v51  ;;  %v19616_v46 = vld [vmem:[#allocation30_spill] sm:$0xff]  ;;  %v4335_v2 = vld [vmem:[%s18922_s9 + $0x30] sm:$0xff]  ;;  %v19618_v57 = vld [vmem:[#allocation63_spill] sm:$0xff] }
 0x310   : > { %4742 = vmatpush1.msra.mxu1 %v4251_v61  ;;  %4486 = vmatprep.subr.mxu0 %v4242_v52  ;;  %v4235_v6 = vmul.f32 %v10652_v3, %v19584_v53  ;;  %v14830_v39 = vadd.f32 %v19592_v59, %v19586_v38  ;;  %v14835_v22 = vadd.f32 %v19594_v20, %v19586_v38  ;;  %v9232_v55 = vmul.f32 -1.442695, %v14873_v36  ;;  %v19619_v52 = vld [vmem:[#allocation53_spill] sm:$0xff]  ;;  %v19625_v56 = vld [vmem:[#allocation64_spill] sm:$0xff]  ;;  %v19630_v20 = vld [vmem:[#allocation67_spill] sm:$0xff] }
 0x311   : > { %4743 = vmatprep.subr.mxu1 %v4244_v8  ;;  %4487 = vmatpush1.msra.mxu0 %v4241_v14  ;;  %19588 = vst [vmem:[#allocation102_spill] sm:$0xff] %v14806_v50  ;;  %19590 = vst [vmem:[#allocation131_spill] sm:$0xff] %v14815_v47  ;;  %v9240_v48 = vmul.f32 -1.442695, %v14806_v50  ;;  %v9242_v29 = vmul.f32 -1.442695, %v14815_v47  ;;  %v14889_v10 = vadd.f32 %v19612_v35, %v14855_v4 }
 0x312   : > { %4744 = vmatpush1.msra.mxu1 %v4243_v11  ;;  %4488 = vmatprep.subr.mxu0 %v4234_v18  ;;  %19593 = vst [vmem:[#allocation121_spill] sm:$0xff] %v14830_v39  ;;  %19595 = vst [vmem:[#allocation100_spill] sm:$0xff] %v14835_v22  ;;  %v9241_v15 = vmul.f32 -1.442695, %v14830_v39  ;;  %v9243_v0 = vmul.f32 -1.442695, %v14835_v22  ;;  %v14894_v1 = vadd.f32 %v19614_v34, %v14855_v4 }
 0x313   : > { %4745 = vmatprep.subr.mxu1 %v4236_v13  ;;  %4489 = vmatpush1.msra.mxu0 %v4233_v41  ;;  %10653 = vpow2.f32 %v9240_v48  ;;  %19609 = vst [vmem:[#allocation95_spill] sm:$0xff] %v14873_v36  ;;  %19611 = vst [vmem:[#allocation116_spill] sm:$0xff] %v14883_v9  ;;  %v14900_v33 = vadd.f32 %v19616_v46, %v19596_v27  ;;  %v9234_v25 = vmul.f32 -1.442695, %v14883_v9  ;;  %v9233_v3 = vmul.f32 -1.442695, %v14889_v10 }
 0x314   : > { %4746 = vmatpush1.msra.mxu1 %v4235_v6  ;;  %9480 = vmatmul.mubr.msk.f32.vlgmr.msra.gmra.mxu0 %vm4361_vm2, %v4329_v23  ;;  %10655 = vpow2.f32 %v9242_v29  ;;  %19613 = vst [vmem:[#allocation13_spill] sm:$0xff] %v14889_v10  ;;  %19615 = vst [vmem:[#allocation94_spill] sm:$0xff] %v14894_v1  ;;  %v14910_v61 = vadd.f32 %v19619_v52, %v19618_v57  ;;  %v19621_v14 = vld [vmem:[#allocation32_spill] sm:$0xff]  ;;  %v9235_v18 = vmul.f32 -1.442695, %v14894_v1  ;;  %v19623_v11 = vld [vmem:[#allocation34_spill] sm:$0xff] }
 0x315   : > { %9512 = vmatmul.mubr.msk.f32.vlgmr.msra.gmra.mxu1 %vm4361_vm2, %v4329_v23  ;;  %4528 = vmatprep.mubr.f32.mxu0 %v19585_v28  ;;  %10657 = vpow2.f32 %v9241_v15  ;;  %19617 = vst [vmem:[#allocation113_spill] sm:$0xff] %v14900_v33  ;;  %v14916_v8 = vadd.f32 %v19621_v14, %v19596_v27  ;;  %v14921_v41 = vadd.f32 %v19623_v11, %v19596_v27  ;;  %v9250_v44 = vmul.f32 -1.442695, %v14900_v33  ;;  %v4336_v13 = vld [vmem:[%s18922_s9 + $0x38] sm:$0xff]  ;;  %v4338_v14 = vld [vmem:[%s18922_s9 + $0x48] sm:$0xff] }
 0x316   : > { %4785 = vmatprep.mubr.f32.mxu1 %v19585_v28  ;;  %10659 = vpow2.f32 %v9243_v0  ;;  %19620 = vst [vmem:[#allocation10_spill] sm:$0xff] %v14910_v61  ;;  %v9281_v53 = vmul.f32 -1.442695, %v14910_v61  ;;  %v14945_v12 = vadd.f32 %v19631_v42, %v19630_v20  ;;  %v14954_v0 = vadd.f32 %v19633_v21, %v19630_v20  ;;  %v19674_v39 = vld [vmem:[#allocation41_spill] sm:$0xff] }
 0x317   : > { %10661 = vpow2.f32 %v9248_v43  ;;  %19622 = vst [vmem:[#allocation11_spill] sm:$0xff] %v14916_v8  ;;  %19624 = vst [vmem:[#allocation174_spill] sm:$0xff] %v14921_v41  ;;  %v9251_v48 = vmul.f32 -1.442695, %v14921_v41 }
 0x318   : > { %9481 = vmatmul.mubr.msk.f32.gmra.mxu0 %vm4361_vm2, %v4330_v26  ;;  %10663 = vpow2.f32 %v9224_v40  ;;  %19632 = vst [vmem:[#allocation6_spill] sm:$0xff] %v14945_v12  ;;  %19634 = vst [vmem:[#allocation7_spill] sm:$0xff] %v14954_v0  ;;  %v9267_v11 = vmul.f32 -1.442695, %v14954_v0 }
 0x319   : > { %9513 = vmatmul.mubr.msk.f32.gmra.mxu1 %vm4361_vm2, %v4330_v26  ;;  %4534 = vmatprep.mubr.f32.mxu0 %v19585_v28  ;;  %10665 = vpow2.f32 %v9226_v31  ;;  %v9249_v26 = vmul.f32 -1.442695, %v14916_v8 }
 0x31a   : > { %4791 = vmatprep.mubr.f32.mxu1 %v19585_v28  ;;  %10667 = vpow2.f32 %v9225_v58 }
 0x31b   : > { %10669 = vpow2.f32 %v9227_v62  ;;  %v19638_v62 = vld [vmem:[#allocation46_spill] sm:$0xff] }
 0x31c   : > { %9482 = vmatmul.mubr.msk.f32.gmra.mxu0 %vm4361_vm2, %v4331_v37  ;;  %10671 = vpow2.f32 %v9232_v55  ;;  %v14971_v34 = vadd.f32 %v19638_v62, %v19635_v19 }
 0x31d   : > { %9514 = vmatmul.mubr.msk.f32.gmra.mxu1 %vm4361_vm2, %v4331_v37  ;;  %4540 = vmatprep.mubr.f32.mxu0 %v19585_v28  ;;  %10673 = vpow2.f32 %v9234_v25  ;;  %v19626_v37 = vld [vmem:[#allocation35_spill] sm:$0xff]  ;;  %v19641_v25 = vld [vmem:[#allocation48_spill] sm:$0xff] }
 0x31e   : > { %4797 = vmatprep.mubr.f32.mxu1 %v19585_v28  ;;  %10675 = vpow2.f32 %v9233_v3  ;;  %v14935_v16 = vadd.f32 %v19626_v37, %v19625_v56  ;;  %19639 = vst [vmem:[#allocation2_spill] sm:$0xff] %v14971_v34  ;;  %v14981_v52 = vadd.f32 %v19641_v25, %v19635_v19 }
 0x31f   : > { %10677 = vpow2.f32 %v9235_v18 }
 0x320   : > { %9483 = vmatmul.mubr.msk.f32.gmra.mxu0 %vm4361_vm2, %v4332_v32  ;;  %v10654_v23 = vpop.eup %10653  ;;  %19627 = vst [vmem:[#allocation8_spill] sm:$0xff] %v14935_v16  ;;  %10679 = vpow2.f32 %v9250_v44  ;;  %v9256_v40 = vmul.f32 -1.442695, %v14935_v16  ;;  %19642 = vst [vmem:[#allocation3_spill] sm:$0xff] %v14981_v52  ;;  %v19644_v44 = vld [vmem:[#allocation50_spill] sm:$0xff] }
 0x321   : > { %9515 = vmatmul.mubr.msk.f32.gmra.mxu1 %vm4361_vm2, %v4332_v32  ;;  %4546 = vmatprep.mubr.f32.mxu0 %v19585_v28  ;;  %v10656_v6 = vpop.eup %10655  ;;  %v19628_v32 = vld [vmem:[#allocation37_spill] sm:$0xff]  ;;  %v1433_v59 = vadd.f32 1.0, %v10654_v23  ;;  %10681 = vpow2.f32 %v9281_v53  ;;  %v9273_v21 = vmul.f32 -1.442695, %v14981_v52 }
 0x322   : > { %4803 = vmatprep.mubr.f32.mxu1 %v19585_v28  ;;  %v14940_v29 = vadd.f32 %v19628_v32, %v19625_v56  ;;  %v1435_v15 = vadd.f32 1.0, %v10656_v6  ;;  %v14959_v43 = vpop.eup %10657  ;;  %10683 = vpow2.f32 %v9249_v26  ;;  %v19647_v26 = vld [vmem:[#allocation49_spill] sm:$0xff] }
 0x323   : > { %v14966_v58 = vpop.eup %10659  ;;  %10685 = vpow2.f32 %v9251_v48 }
 0x324   : > { %9484 = vmatmul.mubr.msk.f32.gmra.mxu0 %vm4361_vm2, %v4333_v7  ;;  %19629 = vst [vmem:[#allocation9_spill] sm:$0xff] %v14940_v29  ;;  %v9257_v35 = vmul.f32 -1.442695, %v14940_v29  ;;  %v14976_v46 = vpop.eup %10661  ;;  %10687 = vrcp.f32 %v1433_v59  ;;  %v9274_v59 = vmul.f32 -1.442695, %v14971_v34  ;;  %v19677_v29 = vld [vmem:[#allocation47_spill] sm:$0xff] }
 0x325   : > { %9516 = vmatmul.mubr.msk.f32.gmra.mxu1 %vm4361_vm2, %v4333_v7  ;;  %4552 = vmatprep.mubr.f32.mxu0 %v19585_v28  ;;  %19640 = vst [vmem:[#allocation5_spill] sm:$0xff] %v14976_v46  ;;  %v14988_v18 = vpop.eup %10663  ;;  %10689 = vrcp.f32 %v1435_v15 }
 0x326   : > { %4809 = vmatprep.mubr.f32.mxu1 %v19585_v28  ;;  %19643 = vst [vmem:[#allocation118_spill] sm:$0xff] %v14988_v18  ;;  %v14998_v53 = vpop.eup %10665  ;;  %10691 = vpow2.f32 %v9256_v40  ;;  %v19652_v40 = vld [vmem:[#allocation55_spill] sm:$0xff] }
 0x327   : > { %19646 = vst [vmem:[#allocation122_spill] sm:$0xff] %v14998_v53  ;;  %v15004_v32 = vpop.eup %10667  ;;  %10693 = vpow2.f32 %v9257_v35 }
 0x328   : > { %9485 = vmatmul.mubr.msk.f32.gmra.mxu0 %vm4361_vm2, %v4334_v49  ;;  %19649 = vst [vmem:[#allocation145_spill] sm:$0xff] %v15004_v32  ;;  %v15011_v15 = vpop.eup %10669 }
 0x329   : > { %9517 = vmatmul.mubr.msk.f32.gmra.mxu1 %vm4361_vm2, %v4334_v49  ;;  %4558 = vmatprep.mubr.f32.mxu0 %v19585_v28  ;;  %v19636_v49 = vld [vmem:[#allocation45_spill] sm:$0xff]  ;;  %19651 = vst [vmem:[#allocation135_spill] sm:$0xff] %v15011_v15  ;;  %v15022_v35 = vpop.eup %10671 }
 0x32a   : > { %4815 = vmatprep.mubr.f32.mxu1 %v19585_v28  ;;  %v14964_v31 = vadd.f32 %v19636_v49, %v19635_v19  ;;  %19654 = vst [vmem:[#allocation128_spill] sm:$0xff] %v15022_v35 }
 0x32c   : > { %9486 = vmatmul.mubr.msk.f32.gmra.mxu0 %vm4361_vm2, %v4335_v2  ;;  %19637 = vst [vmem:[#allocation4_spill] sm:$0xff] %v14964_v31  ;;  %v9272_v6 = vmul.f32 -1.442695, %v14964_v31 }
 0x32d   : > { %9518 = vmatmul.mubr.msk.f32.gmra.mxu1 %vm4361_vm2, %v4335_v2  ;;  %4564 = vmatprep.mubr.f32.mxu0 %v19585_v28  ;;  %v9265_v2 = vmul.f32 -1.442695, %v14945_v12 }
 0x32e   : > { %4821 = vmatprep.mubr.f32.mxu1 %v19585_v28 }
 0x32f   : > { %10695 = vpow2.f32 %v9265_v2 }
 0x330   : > { %9487 = vmatmul.mubr.msk.f32.gmra.mxu0 %vm4361_vm2, %v4336_v13  ;;  %10697 = vpow2.f32 %v9267_v11  ;;  %v19660_v11 = vld [vmem:[#allocation52_spill] sm:$0xff] }
 0x331   : > { %9519 = vmatmul.mubr.msk.f32.gmra.mxu1 %vm4361_vm2, %v4336_v13  ;;  %4570 = vmatprep.mubr.f32.mxu0 %v19585_v28  ;;  %v14993_v13 = vadd.f32 %v19644_v44, %v19635_v19  ;;  %10699 = vpow2.f32 %v9272_v6 }
 0x332   : > { %4827 = vmatprep.mubr.f32.mxu1 %v19585_v28  ;;  %10701 = vpow2.f32 %v9274_v59  ;;  %v4340_v59 = vld [vmem:[%s18922_s9 + $0x58] sm:$0xff] }
 0x333   : > { %19645 = vst [vmem:[#allocation163_spill] sm:$0xff] %v14993_v13  ;;  %v9275_v62 = vmul.f32 -1.442695, %v14993_v13  ;;  %10703 = vpow2.f32 %v9273_v21 }
 0x334   : > { %9488 = vmatmul.mubr.msk.f32.gmra.mxu0 %vm4361_vm2, %v4337_v45 }
 0x335   : > { %9520 = vmatmul.mubr.msk.f32.gmra.mxu1 %vm4361_vm2, %v4337_v45  ;;  %4576 = vmatprep.mubr.f32.mxu0 %v19585_v28 }
 0x336   : > { %4833 = vmatprep.mubr.f32.mxu1 %v19585_v28 }
 0x338   : > { %9489 = vmatmul.mubr.msk.f32.gmra.mxu0 %vm4361_vm2, %v4338_v14 }
 0x339   : > { %9521 = vmatmul.mubr.msk.f32.gmra.mxu1 %vm4361_vm2, %v4338_v14  ;;  %4582 = vmatprep.mubr.f32.mxu0 %v19585_v28  ;;  %v19657_v14 = vld [vmem:[#allocation51_spill] sm:$0xff] }
 0x33a   : > { %v3689_v7 = vpop.f32.mrf.mxu0  ;;  %4839 = vmatprep.mubr.f32.mxu1 %v19585_v28  ;;  %v15033_v44 = vadd.f32 %v19657_v14, %v19618_v57  ;;  %v19663_v14 = vld [vmem:[#allocation54_spill] sm:$0xff] }
 0x33b   : > { %v14956_v30 = vpop.f32.mrf.mxu1  ;;  %v15002_v37 = vadd.f32 %v3689_v7, %v19647_v26  ;;  %v15048_v17 = vadd.f32 %v19663_v14, %v19618_v57 }
 0x33c   : > { %v3691_v54 = vpop.f32.mrf.mxu0  ;;  %19658 = vst [vmem:[#allocation112_spill] sm:$0xff] %v15033_v44  ;;  %v9280_v5 = vmul.f32 -1.442695, %v15033_v44 }
 0x33d   : > { %v14973_v55 = vpop.f32.mrf.mxu1  ;;  %19648 = vst [vmem:[#allocation120_spill] sm:$0xff] %v15002_v37  ;;  %v15008_v42 = vadd.f32 %v3691_v54, %v19647_v26  ;;  %v4339_v54 = vld [vmem:[%s18922_s9 + $0x50] sm:$0xff]  ;;  %v9420_v27 = vmul.f32 -1.442695, %v15002_v37  ;;  %19664 = vst [vmem:[#allocation101_spill] sm:$0xff] %v15048_v17 }
 0x33e   : > { %v3695_v3 = vpop.f32.mrf.mxu0  ;;  %9490 = vmatmul.mubr.msk.f32.gmra.mxu0 %vm4361_vm2, %v4339_v54  ;;  %9522 = vmatmul.mubr.msk.f32.gmra.mxu1 %vm4361_vm2, %v4339_v54  ;;  %v15063_v54 = vadd.f32 %v14956_v30, %v19647_v26 }
 0x33f   : > { %v14995_v23 = vpop.f32.mrf.mxu1  ;;  %19650 = vst [vmem:[#allocation155_spill] sm:$0xff] %v15008_v42  ;;  %v15015_v7 = vadd.f32 %v3695_v3, %v19652_v40  ;;  %v15029_v3 = vpop.eup %10673  ;;  %v9421_v4 = vmul.f32 -1.442695, %v15008_v42  ;;  %4588 = vmatprep.mubr.f32.mxu0 %v19585_v28  ;;  %10705 = vpow2.f32 %v9275_v62  ;;  %4845 = vmatprep.mubr.f32.mxu1 %v19585_v28  ;;  %v15070_v62 = vadd.f32 %v14973_v55, %v19647_v26 }
 0x340   : > { %v3697_v48 = vpop.f32.mrf.mxu0  ;;  %19656 = vst [vmem:[#allocation168_spill] sm:$0xff] %v15029_v3  ;;  %v15036_v38 = vpop.eup %10675  ;;  %10707 = vpow2.f32 %v9420_v27  ;;  %19666 = vst [vmem:[#allocation14_spill] sm:$0xff] %v15063_v54  ;;  %v9283_v27 = vmul.f32 -1.442695, %v15048_v17  ;;  %v15078_v30 = vadd.f32 %v14995_v23, %v19652_v40  ;;  %v19679_v3 = vld [vmem:[#allocation33_spill] sm:$0xff] }
 0x341   : > { %v3810_v45 = vpop.f32.mrf.mxu1  ;;  %19653 = vst [vmem:[#allocation170_spill] sm:$0xff] %v15015_v7  ;;  %v15026_v2 = vadd.f32 %v3697_v48, %v19652_v40  ;;  %19659 = vst [vmem:[#allocation129_spill] sm:$0xff] %v15036_v38  ;;  %v15040_v48 = vadd.f32 %v19660_v11, %v19618_v57  ;;  %v15044_v6 = vpop.eup %10677  ;;  %v9428_v51 = vmul.f32 -1.442695, %v15015_v7  ;;  %10709 = vpow2.f32 %v9421_v4  ;;  %v4341_v4 = vld [vmem:[%s18922_s9 + $0x60] sm:$0xff] }
 0x342   : > { %v3701_v49 = vpop.f32.mrf.mxu0  ;;  %19662 = vst [vmem:[#allocation130_spill] sm:$0xff] %v15044_v6  ;;  %v15056_v11 = vpop.eup %10679  ;;  %19668 = vst [vmem:[#allocation110_spill] sm:$0xff] %v15070_v62  ;;  %9491 = vmatmul.mubr.msk.f32.gmra.mxu0 %vm4361_vm2, %v4340_v59  ;;  %9523 = vmatmul.mubr.msk.f32.gmra.mxu1 %vm4361_vm2, %v4340_v59  ;;  %v9422_v59 = vmul.f32 -1.442695, %v15063_v54 }
 0x343   : > { %19655 = vst [vmem:[#allocation104_spill] sm:$0xff] %v15026_v2  ;;  %v3814_v25 = vpop.f32.mrf.mxu1  ;;  %19661 = vst [vmem:[#allocation124_spill] sm:$0xff] %v15040_v48  ;;  %v9429_v21 = vmul.f32 -1.442695, %v15026_v2  ;;  %v10682_v14 = vpop.eup %10681  ;;  %v9282_v10 = vmul.f32 -1.442695, %v15040_v48  ;;  %10711 = vpow2.f32 %v9428_v51  ;;  %4594 = vmatprep.mubr.f32.mxu0 %v19585_v28  ;;  %v15090_v51 = vadd.f32 %v3810_v45, %v19652_v40  ;;  %4851 = vmatprep.mubr.f32.mxu1 %v19585_v28 }
 0x344   : > { %v3703_v19 = vpop.f32.mrf.mxu0  ;;  %19665 = vst [vmem:[#allocation154_spill] sm:$0xff] %v15056_v11  ;;  %v15065_v1 = vpop.eup %10683  ;;  %19670 = vst [vmem:[#allocation106_spill] sm:$0xff] %v15078_v30  ;;  %v1474_v26 = vadd.f32 1.0, %v10682_v14  ;;  %v15099_v60 = vadd.f32 %v3701_v49, %v19674_v39  ;;  %v9423_v45 = vmul.f32 -1.442695, %v15070_v62  ;;  %v15107_v40 = vadd.f32 %v3814_v25, %v19674_v39 }
 0x345   : > { %v3816_v63 = vpop.f32.mrf.mxu1  ;;  %19667 = vst [vmem:[#allocation139_spill] sm:$0xff] %v15065_v1  ;;  %v15073_v22 = vpop.eup %10685  ;;  %10713 = vpow2.f32 %v9429_v21  ;;  %19672 = vst [vmem:[#allocation136_spill] sm:$0xff] %v15090_v51  ;;  %v9430_v49 = vmul.f32 -1.442695, %v15078_v30  ;;  %v15116_v14 = vadd.f32 %v3703_v19, %v19674_v39 }
 0x346   : > { %v3707_v24 = vpop.f32.mrf.mxu0  ;;  %19669 = vst [vmem:[#allocation143_spill] sm:$0xff] %v15073_v22  ;;  %v15087_v55 = vpop.eup %10687  ;;  %10715 = vpow2.f32 %v9280_v5  ;;  %19675 = vst [vmem:[#allocation115_spill] sm:$0xff] %v15107_v40  ;;  %9492 = vmatmul.mubr.msk.f32.gmra.mxu0 %vm4361_vm2, %v4341_v4  ;;  %9524 = vmatmul.mubr.msk.f32.gmra.mxu1 %vm4361_vm2, %v4341_v4  ;;  %v15129_v8 = vadd.f32 %v3816_v63, %v19674_v39  ;;  %v9436_v4 = vmul.f32 -1.442695, %v15099_v60 }
 0x347   : > { %v3820_v9 = vpop.f32.mrf.mxu1  ;;  %19671 = vst [vmem:[#allocation140_spill] sm:$0xff] %v15087_v55  ;;  %v15095_v23 = vpop.eup %10689  ;;  %10717 = vpow2.f32 %v9282_v10  ;;  %4600 = vmatprep.mubr.f32.mxu0 %v19585_v28  ;;  %v4342_v10 = vld [vmem:[%s18922_s9 + $0x68] sm:$0xff]  ;;  %4857 = vmatprep.mubr.f32.mxu1 %v19585_v28  ;;  %v15138_v0 = vadd.f32 %v3707_v24, %v19677_v29 }
 0x348   : > { %v3709_v36 = vpop.f32.mrf.mxu0  ;;  %19673 = vst [vmem:[#allocation133_spill] sm:$0xff] %v15095_v23  ;;  %v15103_v55 = vpop.eup %10691  ;;  %10719 = vpow2.f32 %v9283_v27  ;;  %v9431_v27 = vmul.f32 -1.442695, %v15090_v51  ;;  %v15144_v63 = vadd.f32 %v3820_v9, %v19677_v29  ;;  %v4343_v9 = vld [vmem:[%s18922_s9 + $0x70] sm:$0xff]  ;;  %v9439_v13 = vmul.f32 -1.442695, %v15129_v8 }
 0x349   : > { %v3822_v47 = vpop.f32.mrf.mxu1  ;;  %v15112_v5 = vpop.eup %10693  ;;  %10721 = vrcp.f32 %v1474_v26  ;;  %v9438_v26 = vmul.f32 -1.442695, %v15107_v40  ;;  %v15151_v12 = vadd.f32 %v3709_v36, %v19677_v29 }
 0x34a   : > { %v15080_v50 = vpop.f32.mrf.mxu0  ;;  %v15125_v25 = vpop.eup %10695  ;;  %10723 = vpow2.f32 %v9422_v59  ;;  %9493 = vmatmul.mubr.msk.f32.gmra.mxu0 %vm4361_vm2, %v4342_v10  ;;  %v9437_v59 = vmul.f32 -1.442695, %v15116_v14  ;;  %9525 = vmatmul.mubr.msk.f32.gmra.mxu1 %vm4361_vm2, %v4342_v10  ;;  %v9444_v10 = vmul.f32 -1.442695, %v15138_v0  ;;  %v9446_v52 = vmul.f32 -1.442695, %v15144_v63 }
 0x34b   : > { %v15092_v33 = vpop.f32.mrf.mxu1  ;;  %v15134_v16 = vpop.eup %10697  ;;  %10725 = vpow2.f32 %v9423_v45  ;;  %4606 = vmatprep.mubr.f32.mxu0 %v19585_v28  ;;  %4863 = vmatprep.mubr.f32.mxu1 %v19585_v28  ;;  %v9445_v53 = vmul.f32 -1.442695, %v15151_v12  ;;  %v15180_v35 = vadd.f32 %v15080_v50, %v19679_v3 }
 0x34c   : > { %v15101_v41 = vpop.f32.mrf.mxu0  ;;  %19676 = vst [vmem:[#allocation165_spill] sm:$0xff] %v15134_v16  ;;  %v15140_v34 = vpop.eup %10699  ;;  %10727 = vpow2.f32 %v9430_v49  ;;  %v15162_v49 = vadd.f32 %v3822_v47, %v19677_v29  ;;  %v4344_v29 = vld [vmem:[%s18922_s9 + $0x78] sm:$0xff] }
 0x34d   : > { %v15109_v21 = vpop.f32.mrf.mxu1  ;;  %v15147_v39 = vpop.eup %10701  ;;  %10729 = vpow2.f32 %v9431_v27  ;;  %v15186_v38 = vadd.f32 %v15101_v41, %v19679_v3  ;;  %v4345_v41 = vld [vmem:[%s18922_s9 + $0x80] sm:$0xff] }
 0x34e   : > { %v15118_v23 = vpop.f32.mrf.mxu0  ;;  %19678 = vst [vmem:[#allocation103_spill] sm:$0xff] %v15147_v39  ;;  %v15158_v45 = vpop.eup %10703  ;;  %10731 = vpow2.f32 %v9436_v4  ;;  %9494 = vmatmul.mubr.msk.f32.gmra.mxu0 %vm4361_vm2, %v4343_v9  ;;  %9526 = vmatmul.mubr.msk.f32.gmra.mxu1 %vm4361_vm2, %v4343_v9  ;;  %v19685_v39 = vld [vmem:[#allocation31_spill] sm:$0xff] }
 0x34f   : > { %v15131_v19 = vpop.f32.mrf.mxu1  ;;  %v15165_v36 = vpop.eup %10705  ;;  %10733 = vpow2.f32 %v9438_v26  ;;  %4612 = vmatprep.mubr.f32.mxu0 %v19585_v28  ;;  %v9447_v26 = vmul.f32 -1.442695, %v15162_v49  ;;  %4869 = vmatprep.mubr.f32.mxu1 %v19585_v28 }
 0x350   : > { %v3721_v24 = vpop.f32.mrf.mxu0  ;;  %v10708_v31 = vpop.eup %10707  ;;  %10735 = vpow2.f32 %v9437_v59 }
 0x351   : > { %v3834_v48 = vpop.f32.mrf.mxu1  ;;  %v10710_v27 = vpop.eup %10709  ;;  %10737 = vpow2.f32 %v9439_v13  ;;  %v4045_v59 = vadd.f32 1.0, %v10708_v31  ;;  %v15193_v31 = vadd.f32 %v15109_v21, %v19679_v3 }
 0x352   : > { %v3725_v47 = vpop.f32.mrf.mxu0  ;;  %v10712_v4 = vpop.eup %10711  ;;  %10739 = vpow2.f32 %v9444_v10  ;;  %v4046_v6 = vadd.f32 1.0, %v10710_v27  ;;  %9495 = vmatmul.mubr.msk.f32.gmra.mxu0 %vm4361_vm2, %v4344_v29  ;;  %9527 = vmatmul.mubr.msk.f32.gmra.mxu1 %vm4361_vm2, %v4344_v29  ;;  %v19682_v27 = vld [vmem:[#allocation39_spill] sm:$0xff]  ;;  %v9452_v29 = vmul.f32 -1.442695, %v15180_v35 }
 0x353   : > { %v3838_v44 = vpop.f32.mrf.mxu1  ;;  %v10714_v15 = vpop.eup %10713  ;;  %10741 = vpow2.f32 %v9446_v52  ;;  %v4053_v32 = vadd.f32 1.0, %v10712_v4  ;;  %4618 = vmatprep.mubr.f32.mxu0 %v19585_v28  ;;  %4875 = vmatprep.mubr.f32.mxu1 %v19585_v28  ;;  %v15212_v18 = vadd.f32 %v15131_v19, %v19682_v27  ;;  %v15225_v46 = vadd.f32 %v3834_v48, %v19682_v27 }
 0x354   : > { %v15182_v9 = vpop.eup %10715  ;;  %10743 = vpow2.f32 %v9445_v53  ;;  %v3727_v50 = vpop.f32.mrf.mxu0  ;;  %v4054_v10 = vadd.f32 1.0, %v10714_v15  ;;  %v15204_v53 = vadd.f32 %v15118_v23, %v19682_v27  ;;  %v9453_v15 = vmul.f32 -1.442695, %v15186_v38 }
 0x355   : > { %19680 = vst [vmem:[#allocation141_spill] sm:$0xff] %v15182_v9  ;;  %v15189_v13 = vpop.eup %10717  ;;  %10745 = vpow2.f32 %v9447_v26  ;;  %v3840_v4 = vpop.f32.mrf.mxu1  ;;  %v15218_v23 = vadd.f32 %v3721_v24, %v19682_v27 }
 0x356   : > { %19681 = vst [vmem:[#allocation138_spill] sm:$0xff] %v15189_v13  ;;  %v15200_v52 = vpop.eup %10719  ;;  %10747 = vrcp.f32 %v4045_v59  ;;  %9496 = vmatmul.mubr.msk.f32.gmra.mxu0 %vm4361_vm2, %v4345_v41  ;;  %v9455_v59 = vmul.f32 -1.442695, %v15193_v31  ;;  %v3731_v19 = vpop.f32.mrf.mxu0  ;;  %9528 = vmatmul.mubr.msk.f32.gmra.mxu1 %vm4361_vm2, %v4345_v41  ;;  %v9460_v22 = vmul.f32 -1.442695, %v15204_v53 }
 0x357   : > { %v15207_v21 = vpop.eup %10721  ;;  %10749 = vrcp.f32 %v4046_v6  ;;  %4624 = vmatprep.mubr.f32.mxu0 %v19585_v28  ;;  %v4346_v6 = vld [vmem:[%s18922_s9 + $0x88] sm:$0xff]  ;;  %v3844_v17 = vpop.f32.mrf.mxu1  ;;  %4881 = vmatprep.mubr.f32.mxu1 %v19585_v28  ;;  %v9462_v41 = vmul.f32 -1.442695, %v15212_v18 }
 0x358   : > { %19683 = vst [vmem:[#allocation173_spill] sm:$0xff] %v15207_v21  ;;  %v15214_v11 = vpop.eup %10723  ;;  %10751 = vrcp.f32 %v4053_v32  ;;  %v19684_v32 = vld [vmem:[#allocation25_spill] sm:$0xff]  ;;  %v9463_v21 = vmul.f32 -1.442695, %v15225_v46  ;;  %v3733_v61 = vpop.f32.mrf.mxu0 }
 0x359   : > { %v15221_v26 = vpop.eup %10725  ;;  %10753 = vrcp.f32 %v4054_v10  ;;  %v15236_v1 = vadd.f32 %v3725_v47, %v19684_v32  ;;  %v15243_v27 = vadd.f32 %v3838_v44, %v19684_v32  ;;  %v9461_v10 = vmul.f32 -1.442695, %v15218_v23  ;;  %v4347_v44 = vld [vmem:[%s18922_s9 + $0x90] sm:$0xff]  ;;  %v3846_v62 = vpop.f32.mrf.mxu1 }
 0x35a   : > { %v15232_v24 = vpop.eup %10727  ;;  %10755 = vpow2.f32 %v9452_v29  ;;  %v15247_v54 = vadd.f32 %v3727_v50, %v19684_v32  ;;  %9497 = vmatmul.mubr.msk.f32.gmra.mxu0 %vm4361_vm2, %v4346_v6  ;;  %v15254_v29 = vadd.f32 %v3840_v4, %v19684_v32  ;;  %9529 = vmatmul.mubr.msk.f32.gmra.mxu1 %vm4361_vm2, %v4346_v6  ;;  %v15270_v32 = vadd.f32 %v3844_v17, %v19685_v39  ;;  %v4348_v17 = vld [vmem:[%s18922_s9 + $0x98] sm:$0xff] }
 0x35b   : > { %v15239_v48 = vpop.eup %10729  ;;  %10757 = vpow2.f32 %v9453_v15  ;;  %4630 = vmatprep.mubr.f32.mxu0 %v19585_v28  ;;  %v9468_v15 = vmul.f32 -1.442695, %v15236_v1  ;;  %4887 = vmatprep.mubr.f32.mxu1 %v19585_v28  ;;  %v9470_v6 = vmul.f32 -1.442695, %v15243_v27  ;;  %v15274_v30 = vadd.f32 %v3733_v61, %v19685_v39 }
 0x35c   : > { %v10732_v16 = vpop.eup %10731  ;;  %10759 = vpow2.f32 %v9455_v59  ;;  %v15263_v59 = vadd.f32 %v3731_v19, %v19685_v39  ;;  %v9471_v42 = vmul.f32 -1.442695, %v15254_v29 }
 0x35d   : > { %v15250_v47 = vpop.eup %10733  ;;  %10761 = vpow2.f32 %v9460_v22  ;;  %v9469_v22 = vmul.f32 -1.442695, %v15247_v54  ;;  %v9477_v51 = vmul.f32 -1.442695, %v15274_v30 }
 0x35e   : > { %v10736_v50 = vpop.eup %10735  ;;  %10763 = vpow2.f32 %v9462_v41  ;;  %9498 = vmatmul.mubr.msk.f32.gmra.mxu0 %vm4361_vm2, %v4347_v44  ;;  %v15281_v41 = vadd.f32 %v3846_v62, %v19685_v39  ;;  %9530 = vmatmul.mubr.msk.f32.gmra.mxu1 %vm4361_vm2, %v4347_v44  ;;  %v9478_v39 = vmul.f32 -1.442695, %v15270_v32 }
 0x35f   : > { %v15266_v4 = vpop.eup %10737  ;;  %10765 = vpow2.f32 %v9461_v10  ;;  %4636 = vmatprep.mubr.f32.mxu0 %v19585_v28  ;;  %v15290_v10 = vadd.f32 %v15092_v33, %v19679_v3  ;;  %4893 = vmatprep.mubr.f32.mxu1 %v19585_v28  ;;  %v4349_v3 = vld [vmem:[%s18922_s9 + $0xa0] sm:$0xff] }
 0x360   : > { %v10740_v37 = vpop.eup %10739  ;;  %10767 = vpow2.f32 %v9463_v21  ;;  %v9476_v21 = vmul.f32 -1.442695, %v15263_v59  ;;  %v9479_v33 = vmul.f32 -1.442695, %v15281_v41 }
 0x361   : > { %v15277_v19 = vpop.eup %10741  ;;  %10769 = vpow2.f32 %v9468_v15  ;;  %v4069_v13 = vadd.f32 1.0, %v10740_v37 }
 0x362   : > { %v10744_v61 = vpop.eup %10743  ;;  %10771 = vpow2.f32 %v9470_v6  ;;  %9499 = vmatmul.mubr.msk.f32.gmra.mxu0 %vm4361_vm2, %v4348_v17  ;;  %9531 = vmatmul.mubr.msk.f32.gmra.mxu1 %vm4361_vm2, %v4348_v17  ;;  %v9454_v6 = vmul.f32 -1.442695, %v15290_v10 }
 0x363   : > { %v15294_v62 = vpop.eup %10745  ;;  %10773 = vpow2.f32 %v9469_v22  ;;  %4642 = vmatprep.mubr.f32.mxu0 %v19585_v28  ;;  %4899 = vmatprep.mubr.f32.mxu1 %v19585_v28  ;;  %v4070_v40 = vadd.f32 1.0, %v10744_v61  ;;  %v4351_v61 = vld [vmem:[%s18922_s9 + $0xb0] sm:$0xff] }
 0x364   : > { %v15297_v44 = vpop.eup %10747  ;;  %10775 = vpow2.f32 %v9471_v42  ;;  %v4061_v42 = vadd.f32 1.0, %v10732_v16 }
 0x365   : > { %19686 = vst [vmem:[#allocation132_spill] sm:$0xff] %v15297_v44  ;;  %v15301_v7 = vpop.eup %10749  ;;  %10777 = vpow2.f32 %v9476_v21  ;;  %v4350_v21 = vld [vmem:[%s18922_s9 + $0xa8] sm:$0xff] }
 0x366   : > { %19687 = vst [vmem:[#allocation152_spill] sm:$0xff] %v15301_v7  ;;  %v15309_v15 = vpop.eup %10751  ;;  %10779 = vpow2.f32 %v9478_v39  ;;  %v4062_v7 = vadd.f32 1.0, %v10736_v50  ;;  %9500 = vmatmul.mubr.msk.f32.gmra.mxu0 %vm4361_vm2, %v4349_v3  ;;  %9532 = vmatmul.mubr.msk.f32.gmra.mxu1 %vm4361_vm2, %v4349_v3 }
 0x367   : > { %19688 = vst [vmem:[#allocation117_spill] sm:$0xff] %v15309_v15  ;;  %v15313_v22 = vpop.eup %10753  ;;  %10781 = vpow2.f32 %v9477_v51  ;;  %4648 = vmatprep.mubr.f32.mxu0 %v19585_v28  ;;  %4905 = vmatprep.mubr.f32.mxu1 %v19585_v28 }
 0x368   : > { %19689 = vst [vmem:[#allocation142_spill] sm:$0xff] %v15313_v22  ;;  %v10756_v44 = vpop.eup %10755  ;;  %10783 = vpow2.f32 %v9479_v33 }
 0x369   : > { %v10758_v17 = vpop.eup %10757  ;;  %10785 = vpow2.f32 %v9454_v6  ;;  %v4077_v51 = vadd.f32 1.0, %v10756_v44 }
 0x36a   : > { %v10760_v15 = vpop.eup %10759  ;;  %10787 = vrcp.f32 %v4061_v42  ;;  %v4078_v37 = vadd.f32 1.0, %v10758_v17  ;;  %9501 = vmatmul.mubr.msk.f32.gmra.mxu0 %vm4361_vm2, %v4350_v21  ;;  %9533 = vmatmul.mubr.msk.f32.gmra.mxu1 %vm4361_vm2, %v4350_v21 }
 0x36b   : > { %v10762_v16 = vpop.eup %10761  ;;  %10789 = vrcp.f32 %v4062_v7  ;;  %4654 = vmatprep.mubr.f32.mxu0 %v19585_v28  ;;  %4911 = vmatprep.mubr.f32.mxu1 %v19585_v28  ;;  %v4080_v22 = vadd.f32 1.0, %v10760_v15 }
 0x36c   : > { %v10764_v50 = vpop.eup %10763  ;;  %10791 = vrcp.f32 %v4069_v13  ;;  %v4085_v33 = vadd.f32 1.0, %v10762_v16 }
 0x36d   : > { %v10766_v39 = vpop.eup %10765  ;;  %10793 = vrcp.f32 %v4070_v40  ;;  %v4352_v40 = vld [vmem:[%s18922_s9 + $0xb8] sm:$0xff] }
 0x36e   : > { %v10768_v3 = vpop.eup %10767  ;;  %v4086_v6 = vadd.f32 1.0, %v10766_v39  ;;  %10795 = vrcp.f32 %v4077_v51  ;;  %9502 = vmatmul.mubr.msk.f32.gmra.mxu0 %vm4361_vm2, %v4351_v61  ;;  %9534 = vmatmul.mubr.msk.f32.gmra.mxu1 %vm4361_vm2, %v4351_v61 }
 0x36f   : > { %v10770_v7 = vpop.eup %10769  ;;  %10797 = vrcp.f32 %v4078_v37  ;;  %4660 = vmatprep.mubr.f32.mxu0 %v19585_v28  ;;  %4917 = vmatprep.mubr.f32.mxu1 %v19585_v28 }
 0x370   : > { %v10772_v44 = vpop.eup %10771  ;;  %v4093_v42 = vadd.f32 1.0, %v10770_v7  ;;  %10799 = vrcp.f32 %v4085_v33 }
 0x371   : > { %v10774_v13 = vpop.eup %10773  ;;  %10801 = vrcp.f32 %v4086_v6  ;;  %v4353_v6 = vld [vmem:[%s18922_s9 + $0xc0] sm:$0xff] }
 0x372   : > { %v10776_v17 = vpop.eup %10775  ;;  %v4094_v21 = vadd.f32 1.0, %v10774_v13  ;;  %10803 = vrcp.f32 %v4093_v42  ;;  %9503 = vmatmul.mubr.msk.f32.gmra.mxu0 %vm4361_vm2, %v4352_v40  ;;  %9535 = vmatmul.mubr.msk.f32.gmra.mxu1 %vm4361_vm2, %v4352_v40  ;;  %v4095_v13 = vadd.f32 1.0, %v10772_v44 }
 0x373   : > { %v10778_v16 = vpop.eup %10777  ;;  %v4096_v51 = vadd.f32 1.0, %v10776_v17  ;;  %4666 = vmatprep.mubr.f32.mxu0 %v19585_v28  ;;  %4923 = vmatprep.mubr.f32.mxu1 %v19585_v28 }
 0x374   : > { %v10780_v37 = vpop.eup %10779  ;;  %10805 = vrcp.f32 %v4094_v21  ;;  %v4101_v39 = vadd.f32 1.0, %v10778_v16  ;;  %v4088_v21 = vadd.f32 1.0, %v10768_v3  ;;  %v4354_v3 = vld [vmem:[%s18922_s9 + $0xc8] sm:$0xff] }
 0x375   : > { %v10782_v33 = vpop.eup %10781  ;;  %10807 = vrcp.f32 %v4096_v51  ;;  %v4103_v61 = vadd.f32 1.0, %v10780_v37  ;;  %v4087_v37 = vadd.f32 1.0, %v10764_v50 }
 0x376   : > { %v10784_v7 = vpop.eup %10783  ;;  %10809 = vrcp.f32 %v4101_v39  ;;  %v4102_v42 = vadd.f32 1.0, %v10782_v33  ;;  %9504 = vmatmul.mubr.msk.f32.gmra.mxu0 %vm4361_vm2, %v4353_v6  ;;  %9536 = vmatmul.mubr.msk.f32.gmra.mxu1 %vm4361_vm2, %v4353_v6  ;;  %v4072_v33 = vadd.f32 1.0, %v15294_v62  ;;  %v4355_v62 = vld [vmem:[%s18922_s9 + $0xd0] sm:$0xff] }
 0x377   : > { %v10786_v17 = vpop.eup %10785  ;;  %10811 = vrcp.f32 %v4103_v61  ;;  %v4104_v16 = vadd.f32 1.0, %v10784_v7  ;;  %4672 = vmatprep.mubr.f32.mxu0 %v19585_v28  ;;  %4929 = vmatprep.mubr.f32.mxu1 %v19585_v28  ;;  %v4071_v61 = vadd.f32 1.0, %v15277_v19  ;;  %v4064_v7 = vadd.f32 1.0, %v15266_v4 }
 0x378   : > { %v15343_v51 = vpop.eup %10787  ;;  %10813 = vrcp.f32 %v4102_v42  ;;  %v4079_v39 = vadd.f32 1.0, %v10786_v17  ;;  %v4063_v19 = vadd.f32 1.0, %v15250_v47  ;;  %v4056_v17 = vadd.f32 1.0, %v15239_v48  ;;  %v19692_v47 = vld [vmem:[#allocation42_spill] sm:$0xff]  ;;  %v4356_v48 = vld [vmem:[%s18922_s9 + $0xd8] sm:$0xff] }
 0x379   : > { %v15346_v40 = vpop.eup %10789  ;;  %10815 = vrcp.f32 %v4104_v16  ;;  %v4055_v16 = vadd.f32 1.0, %v15232_v24 }
 0x37a   : > { %v15353_v44 = vpop.eup %10791  ;;  %10817 = vrcp.f32 %v4095_v13  ;;  %9505 = vmatmul.mubr.msk.f32.gmra.mxu0 %vm4361_vm2, %v4354_v3  ;;  %9537 = vmatmul.mubr.msk.f32.gmra.mxu1 %vm4361_vm2, %v4354_v3  ;;  %v15384_v3 = vadd.f32 %v19692_v47, %v19630_v20  ;;  %v1476_v47 = vadd.f32 1.0, %v15200_v52 }
 0x37b   : > { %v15356_v50 = vpop.eup %10793  ;;  %10819 = vrcp.f32 %v4088_v21  ;;  %4678 = vmatprep.mubr.f32.mxu0 %v19585_v28  ;;  %4935 = vmatprep.mubr.f32.mxu1 %v19585_v28 }
 0x37c   : > { %v15359_v15 = vpop.eup %10795  ;;  %10821 = vrcp.f32 %v4087_v37  ;;  %19693 = vst [vmem:[#allocation172_spill] sm:$0xff] %v15384_v3 }
 0x37d   : > { %v15363_v6 = vpop.eup %10797  ;;  %10823 = vrcp.f32 %v4080_v22  ;;  %v19690_v22 = vld [vmem:[#allocation40_spill] sm:$0xff] }
 0x37e   : > { %v15371_v13 = vpop.eup %10799  ;;  %10825 = vrcp.f32 %v4079_v39  ;;  %v15378_v21 = vadd.f32 %v19690_v22, %v19630_v20  ;;  %9506 = vmatmul.mubr.msk.f32.gmra.mxu0 %vm4361_vm2, %v4355_v62  ;;  %v4048_v39 = vadd.f32 1.0, %v15221_v26  ;;  %9538 = vmatmul.mubr.msk.f32.gmra.mxu1 %vm4361_vm2, %v4355_v62  ;;  %v4047_v22 = vadd.f32 1.0, %v15214_v11 }
 0x37f   : > { %v10802_v42 = vpop.eup %10801  ;;  %10827 = vrcp.f32 %v4072_v33  ;;  %4684 = vmatprep.mubr.f32.mxu0 %v19585_v28  ;;  %v19694_v33 = vld [vmem:[#allocation38_spill] sm:$0xff]  ;;  %4941 = vmatprep.mubr.f32.mxu1 %v19585_v28  ;;  %v9266_v11 = vmul.f32 -1.442695, %v15384_v3 }
 0x380   : > { %v10804_v4 = vpop.eup %10803  ;;  %19691 = vst [vmem:[#allocation109_spill] sm:$0xff] %v15378_v21  ;;  %10829 = vrcp.f32 %v4071_v61  ;;  %v15394_v61 = vadd.f32 %v19694_v33, %v19625_v56  ;;  %v9264_v2 = vmul.f32 -1.442695, %v15378_v21  ;;  %v1434_v21 = vadd.f32 1.0, %v14959_v43 }
 0x381   : > { %v10806_v37 = vpop.eup %10805  ;;  %10831 = vrcp.f32 %v4064_v7  ;;  %v19695_v7 = vld [vmem:[#allocation36_spill] sm:$0xff] }
 0x382   : > { %v10808_v24 = vpop.eup %10807  ;;  %10833 = vrcp.f32 %v4063_v19  ;;  %v15400_v62 = vadd.f32 %v19695_v7, %v19625_v56  ;;  %9507 = vmatmul.mubr.msk.f32.gmra.mxu0 %vm4361_vm2, %v4356_v48  ;;  %9539 = vmatmul.mubr.msk.f32.gmra.mxu1 %vm4361_vm2, %v4356_v48  ;;  %v15411_v19 = vld [vmem:[%s18922_s9 + $0xe0] sm:$0xff]  ;;  %v4286_v9 = vmul.f32 %v10806_v37, %v15247_v54 }
 0x383   : > { %v10810_v26 = vpop.eup %10809  ;;  %10835 = vrcp.f32 %v4056_v17  ;;  %4690 = vmatprep.mubr.f32.mxu0 %v19585_v28  ;;  %v9259_v17 = vmul.f32 -1.442695, %v15394_v61  ;;  %4947 = vmatprep.mubr.f32.mxu1 %v19585_v28  ;;  %v19700_v37 = vld [vmem:[#allocation142_spill] sm:$0xff] }
 0x384   : > { %v10812_v20 = vpop.eup %10811  ;;  %10837 = vrcp.f32 %v4055_v16  ;;  %v4293_v48 = vmul.f32 %v10810_v26, %v15263_v59  ;;  %v4285_v59 = vmul.f32 %v10804_v4, %v15236_v1  ;;  %v4277_v1 = vmul.f32 %v15371_v13, %v15204_v53 }
 0x385   : > { %v10814_v33 = vpop.eup %10813  ;;  %10839 = vrcp.f32 %v4048_v39  ;;  %v9258_v39 = vmul.f32 -1.442695, %v15400_v62  ;;  %v1465_v13 = vadd.f32 1.0, %v15140_v34 }
 0x386   : > { %v10816_v52 = vpop.eup %10815  ;;  %10841 = vrcp.f32 %v4047_v22  ;;  %v4294_v16 = vmul.f32 %v10814_v33, %v15274_v30  ;;  %v4295_v22 = vmul.f32 %v10812_v20, %v15270_v32  ;;  %9508 = vmatmul.mubr.msk.f32.gmra.mxu0 %vm4361_vm2, %v15411_v19  ;;  %v1436_v33 = vadd.f32 1.0, %v14966_v58  ;;  %9540 = vmatmul.mubr.msk.f32.gmra.mxu1 %vm4361_vm2, %v15411_v19  ;;  %v15510_v19 = vld [vmem:[%s18922_s9 + $0xf0] sm:$0xff] }
 0x387   : > { %v10818_v7 = vpop.eup %10817  ;;  %10843 = vrcp.f32 %v1476_v47  ;;  %v4296_v56 = vmul.f32 %v10816_v52, %v15281_v41  ;;  %v4288_v41 = vmul.f32 %v10808_v24, %v15254_v29  ;;  %v4278_v20 = vmul.f32 %v10802_v42, %v15218_v23  ;;  %v19701_v24 = vld [vmem:[#allocation115_spill] sm:$0xff]  ;;  %v19702_v47 = vld [vmem:[#allocation138_spill] sm:$0xff]  ;;  %v19705_v52 = vld [vmem:[#allocation136_spill] sm:$0xff]  ;;  %4696 = vmatprep.mubr.f32.mxu0 %v19585_v28  ;;  %4953 = vmatprep.mubr.f32.mxu1 %v19585_v28 }
 0x388   : > { %v10820_v3 = vpop.eup %10819  ;;  %10845 = vpow2.f32 %v9264_v2  ;;  %4988 = vmatprep.subr.mxu0 %v4294_v16  ;;  %v1449_v2 = vadd.f32 1.0, %v15103_v55  ;;  %v4287_v54 = vmul.f32 %v10818_v7, %v15243_v27  ;;  %v1450_v58 = vadd.f32 1.0, %v15112_v5 }
 0x389   : > { %v10822_v30 = vpop.eup %10821  ;;  %10847 = vpow2.f32 %v9266_v11  ;;  %5245 = vmatprep.subr.mxu1 %v4296_v56  ;;  %4989 = vmatpush1.msra.mxu0 %v4293_v48  ;;  %v4280_v56 = vmul.f32 %v10820_v3, %v15225_v46  ;;  %v4270_v55 = vmul.f32 %v15363_v6, %v15186_v38  ;;  %v4269_v5 = vmul.f32 %v15359_v15, %v15180_v35  ;;  %v19707_v48 = vld [vmem:[#allocation152_spill] sm:$0xff] }
 0x38a   : > { %v10824_v43 = vpop.eup %10823  ;;  %10849 = vpow2.f32 %v9259_v17  ;;  %5246 = vmatpush1.msra.mxu1 %v4295_v22  ;;  %4990 = vmatprep.subr.mxu0 %v4286_v9  ;;  %v4279_v23 = vmul.f32 %v10822_v30, %v15212_v18  ;;  %v1458_v27 = vadd.f32 1.0, %v15125_v25  ;;  %v4262_v38 = vmul.f32 %v15356_v50, %v15151_v12  ;;  %v19696_v12 = vld [vmem:[#allocation92_spill] sm:$0xff]  ;;  %v19708_v30 = vld [vmem:[#allocation106_spill] sm:$0xff] }
 0x38b   : > { %v10826_v32 = vpop.eup %10825  ;;  %10851 = vpow2.f32 %v9258_v39  ;;  %5247 = vmatprep.subr.mxu1 %v4288_v41  ;;  %4991 = vmatpush1.msra.mxu0 %v4285_v59  ;;  %v4272_v53 = vmul.f32 %v10824_v43, %v15193_v31  ;;  %v4261_v35 = vmul.f32 %v15353_v44, %v15138_v0  ;;  %v1466_v25 = vadd.f32 1.0, %v15158_v45  ;;  %v19706_v39 = vld [vmem:[#allocation155_spill] sm:$0xff]  ;;  %v19709_v43 = vld [vmem:[#allocation120_spill] sm:$0xff] }
 0x38c   : > { %v10828_v29 = vpop.eup %10827  ;;  %10853 = vrcp.f32 %v1434_v21  ;;  %5248 = vmatpush1.msra.mxu1 %v4287_v54  ;;  %4992 = vmatprep.subr.mxu0 %v4278_v20  ;;  %v4271_v18 = vmul.f32 %v10826_v32, %v15290_v10  ;;  %v15451_v50 = vadd.f32 %v19696_v12, %v19618_v57  ;;  %v4254_v10 = vmul.f32 %v15346_v40, %v15116_v14  ;;  %v19698_v14 = vld [vmem:[#allocation141_spill] sm:$0xff]  ;;  %v19699_v40 = vld [vmem:[#allocation104_spill] sm:$0xff]  ;;  %v19711_v54 = vld [vmem:[#allocation110_spill] sm:$0xff] }
 0x38d   : > { %v10830_v9 = vpop.eup %10829  ;;  %10855 = vrcp.f32 %v1436_v33  ;;  %5249 = vmatprep.subr.mxu1 %v4280_v56  ;;  %4993 = vmatpush1.msra.mxu0 %v4277_v1  ;;  %v4264_v31 = vmul.f32 %v10828_v29, %v15162_v49  ;;  %v1468_v0 = vadd.f32 1.0, %v15165_v36  ;;  %v19697_v49 = vld [vmem:[#allocation93_spill] sm:$0xff]  ;;  %v4253_v45 = vmul.f32 %v15343_v51, %v15099_v60  ;;  %v19703_v60 = vld [vmem:[#allocation170_spill] sm:$0xff]  ;;  %v19712_v1 = vld [vmem:[#allocation103_spill] sm:$0xff] }
 0x38e   : > { %v10832_v46 = vpop.eup %10831  ;;  %10857 = vrcp.f32 %v1449_v2  ;;  %5250 = vmatpush1.msra.mxu1 %v4279_v23  ;;  %4994 = vmatprep.subr.mxu0 %v4270_v55  ;;  %v4263_v42 = vmul.f32 %v10830_v9, %v15144_v63  ;;  %v15459_v44 = vadd.f32 %v19697_v49, %v19618_v57  ;;  %v1473_v63 = vadd.f32 1.0, %v19698_v14  ;;  %v19704_v51 = vld [vmem:[#allocation117_spill] sm:$0xff]  ;;  %v19710_v2 = vld [vmem:[#allocation132_spill] sm:$0xff]  ;;  %v19713_v29 = vld [vmem:[#allocation10_spill] sm:$0xff] }
 0x38f   : > { %v10834_v6 = vpop.eup %10833  ;;  %10859 = vrcp.f32 %v1450_v58  ;;  %5251 = vmatprep.subr.mxu1 %v4272_v53  ;;  %4995 = vmatpush1.msra.mxu0 %v4269_v5  ;;  %v4256_v4 = vmul.f32 %v10832_v46, %v15129_v8  ;;  %v4246_v3 = vmul.f32 %v19700_v37, %v19699_v40  ;;  %v1475_v11 = vadd.f32 1.0, %v19702_v47  ;;  %v19714_v55 = vld [vmem:[#allocation173_spill] sm:$0xff]  ;;  %v19715_v9 = vld [vmem:[#allocation14_spill] sm:$0xff] }
 0x390   : > { %v10836_v15 = vpop.eup %10835  ;;  %5252 = vmatpush1.msra.mxu1 %v4271_v18  ;;  %4996 = vmatprep.subr.mxu0 %v4262_v38  ;;  %10861 = vrcp.f32 %v1458_v27  ;;  %v4255_v36 = vmul.f32 %v10834_v6, %v19701_v24  ;;  %v4245_v8 = vmul.f32 %v19704_v51, %v19703_v60  ;;  %v9285_v7 = vmul.f32 -1.442695, %v15451_v50  ;;  %v19716_v46 = vld [vmem:[#allocation165_spill] sm:$0xff]  ;;  %v19721_v40 = vld [vmem:[#allocation154_spill] sm:$0xff] }
 0x391   : > { %v10838_v34 = vpop.eup %10837  ;;  %5253 = vmatprep.subr.mxu1 %v4264_v31  ;;  %4997 = vmatpush1.msra.mxu0 %v4261_v35  ;;  %10863 = vrcp.f32 %v1465_v13  ;;  %v4248_v17 = vmul.f32 %v10836_v15, %v19705_v52  ;;  %v4238_v22 = vmul.f32 %v19707_v48, %v19706_v39  ;;  %v9287_v41 = vmul.f32 -1.442695, %v15459_v44  ;;  %v19717_v38 = vld [vmem:[#allocation101_spill] sm:$0xff]  ;;  %v15489_v35 = vld [vmem:[%s18922_s9 + $0xe8] sm:$0xff]  ;;  %v19722_v24 = vld [vmem:[#allocation118_spill] sm:$0xff] }
 0x392   : > { %v10840_v21 = vpop.eup %10839  ;;  %5254 = vmatpush1.msra.mxu1 %v4263_v42  ;;  %4998 = vmatprep.subr.mxu0 %v4254_v10  ;;  %10865 = vrcp.f32 %v1466_v25  ;;  %v4247_v33 = vmul.f32 %v10838_v34, %v19708_v30  ;;  %v4237_v20 = vmul.f32 %v19710_v2, %v19709_v43  ;;  %v1467_v56 = vadd.f32 1.0, %v19712_v1  ;;  %v19726_v48 = vld [vmem:[#allocation128_spill] sm:$0xff]  ;;  %v19728_v43 = vld [vmem:[#allocation135_spill] sm:$0xff] }
 0x393   : > { %v10842_v26 = vpop.eup %10841  ;;  %5255 = vmatprep.subr.mxu1 %v4256_v4  ;;  %4999 = vmatpush1.msra.mxu0 %v4253_v45  ;;  %10867 = vrcp.f32 %v1468_v0  ;;  %v4240_v32 = vmul.f32 %v10840_v21, %v19711_v54  ;;  %v1666_v23 = vmul.f32 %v19714_v55, %v19713_v29  ;;  %v1460_v27 = vadd.f32 1.0, %v19716_v46  ;;  %v19718_v0 = vld [vmem:[#allocation139_spill] sm:$0xff]  ;;  %v19720_v21 = vld [vmem:[#allocation5_spill] sm:$0xff]  ;;  %v12066_v55 = vld [vmem:[%s18922_s9] sm:$0xff] }
 0x394   : > { %v10844_v16 = vpop.eup %10843  ;;  %5256 = vmatpush1.msra.mxu1 %v4255_v36  ;;  %5000 = vmatprep.subr.mxu0 %v4246_v3  ;;  %10869 = vrcp.f32 %v1473_v63  ;;  %v4239_v5 = vmul.f32 %v10842_v26, %v19715_v9  ;;  %v1442_v49 = vadd.f32 1.0, %v19718_v0  ;;  %v19719_v45 = vld [vmem:[#allocation143_spill] sm:$0xff]  ;;  %v1441_v14 = vadd.f32 1.0, %v19720_v21  ;;  %v15525_v26 = vld [vmem:[%s18922_s9 + $0xf8] sm:$0xff]  ;;  %v19732_v9 = vld [vmem:[#allocation4_spill] sm:$0xff] }
 0x395   : > { %v10846_v59 = vpop.eup %10845  ;;  %5257 = vmatprep.subr.mxu1 %v4248_v17  ;;  %5001 = vmatpush1.msra.mxu0 %v4245_v8  ;;  %10871 = vrcp.f32 %v1475_v11  ;;  %v1668_v18 = vmul.f32 %v10844_v16, %v19717_v38  ;;  %v1444_v4 = vadd.f32 1.0, %v19719_v45  ;;  %v1443_v37 = vadd.f32 1.0, %v19721_v40  ;;  %v19723_v11 = vld [vmem:[#allocation145_spill] sm:$0xff]  ;;  %v19725_v16 = vld [vmem:[#allocation130_spill] sm:$0xff] }
 0x396   : > { %v10848_v58 = vpop.eup %10847  ;;  %5258 = vmatpush1.msra.mxu1 %v4247_v33  ;;  %5002 = vmatprep.subr.mxu0 %v4238_v22  ;;  %v1457_v13 = vadd.f32 1.0, %v10846_v59  ;;  %10873 = vpow2.f32 %v9285_v7  ;;  %v1417_v36 = vadd.f32 1.0, %v19722_v24  ;;  %v1418_v60 = vadd.f32 1.0, %v19723_v11  ;;  %v19724_v8 = vld [vmem:[#allocation129_spill] sm:$0xff]  ;;  %v19727_v33 = vld [vmem:[#allocation168_spill] sm:$0xff]  ;;  %v19736_v0 = vld [vmem:[#allocation2_spill] sm:$0xff] }
 0x397   : > { %v10850_v53 = vpop.eup %10849  ;;  %5259 = vmatprep.subr.mxu1 %v4240_v32  ;;  %5003 = vmatpush1.msra.mxu0 %v4237_v20  ;;  %v1459_v15 = vadd.f32 1.0, %v10848_v58  ;;  %10875 = vpow2.f32 %v9287_v41  ;;  %v1426_v52 = vadd.f32 1.0, %v19724_v8  ;;  %v1428_v7 = vadd.f32 1.0, %v19725_v16  ;;  %v19729_v20 = vld [vmem:[#allocation112_spill] sm:$0xff]  ;;  %v19730_v58 = vld [vmem:[#allocation122_spill] sm:$0xff]  ;;  %v19738_v40 = vld [vmem:[#allocation109_spill] sm:$0xff] }
 0x398   : > { %v10852_v6 = vpop.eup %10851  ;;  %5260 = vmatpush1.msra.mxu1 %v4239_v5  ;;  %5598 = vmatprep.subr.mxu0 %v1666_v23  ;;  %v1452_v12 = vadd.f32 1.0, %v10850_v53  ;;  %10877 = vrcp.f32 %v1467_v56  ;;  %v1425_v22 = vadd.f32 1.0, %v19726_v48  ;;  %v1427_v59 = vadd.f32 1.0, %v19727_v33  ;;  %v19731_v56 = vld [vmem:[#allocation3_spill] sm:$0xff]  ;;  %v19733_v53 = vld [vmem:[#allocation124_spill] sm:$0xff]  ;;  %v19739_v24 = vld [vmem:[#allocation9_spill] sm:$0xff] }
 0x399   : > { %v15491_v31 = vpop.eup %10853  ;;  %5855 = vmatprep.subr.mxu1 %v1668_v18  ;;  %v1451_v42 = vadd.f32 1.0, %v10852_v6  ;;  %10879 = vrcp.f32 %v1460_v27  ;;  %9509 = vmatmul.mubr.msk.f32.gmra.mxu0 %vm4361_vm2, %v15489_v35  ;;  %v1420_v2 = vadd.f32 1.0, %v19728_v43  ;;  %v1419_v1 = vadd.f32 1.0, %v19730_v58  ;;  %v19734_v18 = vld [vmem:[#allocation163_spill] sm:$0xff]  ;;  %v19746_v43 = vld [vmem:[#allocation113_spill] sm:$0xff]  ;;  %v19748_v58 = vld [vmem:[#allocation140_spill] sm:$0xff] }
 0x39a   : > { %v15495_v25 = vpop.eup %10855  ;;  %10881 = vrcp.f32 %v1457_v13  ;;  %4702 = vmatprep.mubr.f32.mxu0 %v19585_v28  ;;  %9541 = vmatmul.mubr.msk.f32.gmra.mxu1 %vm4361_vm2, %v15489_v35  ;;  %v12067_v11 = vld [vmem:[%s18922_s9 + $0x8] sm:$0xff] }
 0x39b   : > { %v15499_v10 = vpop.eup %10857  ;;  %10883 = vrcp.f32 %v1459_v15  ;;  %4959 = vmatprep.mubr.f32.mxu1 %v19585_v28 }
 0x39c   : > { %v15503_v34 = vpop.eup %10859  ;;  %10885 = vrcp.f32 %v1452_v12  ;;  %v19735_v12 = vld [vmem:[#allocation6_spill] sm:$0xff] }
 0x39d   : > { %v10862_v63 = vpop.eup %10861  ;;  %10887 = vrcp.f32 %v1451_v42  ;;  %9510 = vmatmul.mubr.msk.f32.gmra.mxu0 %vm4361_vm2, %v15510_v19 }
 0x39e   : > { %v10864_v3 = vpop.eup %10863  ;;  %10889 = vrcp.f32 %v1442_v49  ;;  %4708 = vmatprep.mubr.f32.mxu0 %v19585_v28  ;;  %9542 = vmatmul.mubr.msk.f32.gmra.mxu1 %vm4361_vm2, %v15510_v19  ;;  %v1650_v42 = vmul.f32 %v10862_v63, %v19735_v12  ;;  %v1642_v63 = vmul.f32 %v15503_v34, %v19739_v24  ;;  %v19755_v12 = vld [vmem:[#allocation96_spill] sm:$0xff] }
 0x39f   : > { %v10866_v47 = vpop.eup %10865  ;;  %10891 = vrcp.f32 %v1444_v4  ;;  %4965 = vmatprep.mubr.f32.mxu1 %v19585_v28  ;;  %v1657_v5 = vmul.f32 %v10864_v3, %v19732_v9  ;;  %v19737_v4 = vld [vmem:[#allocation7_spill] sm:$0xff] }
 0x3a0   : > { %v10868_v51 = vpop.eup %10867  ;;  %10893 = vrcp.f32 %v1441_v14  ;;  %v1658_v29 = vmul.f32 %v10866_v47, %v19731_v56  ;;  %v19749_v56 = vld [vmem:[#allocation100_spill] sm:$0xff] }
 0x3a1   : > { %v10870_v17 = vpop.eup %10869  ;;  %10895 = vrcp.f32 %v1443_v37  ;;  %9511 = vmatmul.mubr.msk.f32.gmra.mxu0 %vm4361_vm2, %v15525_v26  ;;  %v1660_v6 = vmul.f32 %v10868_v51, %v19734_v18  ;;  %v19741_v51 = vld [vmem:[#allocation8_spill] sm:$0xff] }
 0x3a2   : > { %v10872_v39 = vpop.eup %10871  ;;  %10897 = vrcp.f32 %v1417_v36  ;;  %5036 = vmatprep.mubr.f32.mxu0 %v19585_v28  ;;  %9543 = vmatmul.mubr.msk.f32.gmra.mxu1 %vm4361_vm2, %v15525_v26  ;;  %v1665_v54 = vmul.f32 %v10870_v17, %v19729_v20  ;;  %v19740_v36 = vld [vmem:[#allocation172_spill] sm:$0xff]  ;;  %v1641_v8 = vmul.f32 %v15499_v10, %v19741_v51  ;;  %v19744_v10 = vld [vmem:[#allocation127_spill] sm:$0xff] }
 0x3a3   : > { %v10874_v30 = vpop.eup %10873  ;;  %10899 = vrcp.f32 %v1418_v60  ;;  %5293 = vmatprep.mubr.f32.mxu1 %v19585_v28  ;;  %v1667_v46 = vmul.f32 %v10872_v39, %v19733_v53  ;;  %v12068_v20 = vld [vmem:[%s18922_s9 + $0x10] sm:$0xff]  ;;  %v19752_v53 = vld [vmem:[#allocation13_spill] sm:$0xff]  ;;  %v12075_v51 = vld [vmem:[%s18922_s9 + $0x48] sm:$0xff] }
 0x3a4   : > { %v10876_v41 = vpop.eup %10875  ;;  %10901 = vrcp.f32 %v1426_v52  ;;  %v1478_v27 = vadd.f32 1.0, %v10874_v30 }
 0x3a5   : > { %v10878_v32 = vpop.eup %10877  ;;  %10903 = vrcp.f32 %v1428_v7  ;;  %9544 = vmatmul.mubr.msk.f32.vlgmr.msra.gmra.mxu0 %vm4361_vm2, %v12066_v55  ;;  %v1480_v13 = vadd.f32 1.0, %v10876_v41  ;;  %v19742_v7 = vld [vmem:[#allocation11_spill] sm:$0xff] }
 0x3a6   : > { %v10880_v23 = vpop.eup %10879  ;;  %10905 = vrcp.f32 %v1425_v22  ;;  %5599 = vmatpush1.msra.mxu0 %v1665_v54  ;;  %5042 = vmatprep.mubr.f32.mxu0 %v19585_v28  ;;  %v1659_v49 = vmul.f32 %v10878_v32, %v19736_v0  ;;  %v19743_v22 = vld [vmem:[#allocation174_spill] sm:$0xff]  ;;  %v19756_v0 = vld [vmem:[#allocation116_spill] sm:$0xff] }
 0x3a7   : > { %v10882_v38 = vpop.eup %10881  ;;  %10907 = vrcp.f32 %v1427_v59  ;;  %9576 = vmatmul.mubr.msk.f32.vlgmr.msra.gmra.mxu1 %vm4361_vm2, %v12066_v55  ;;  %5600 = vmatprep.subr.mxu0 %v1658_v29  ;;  %v1652_v21 = vmul.f32 %v10880_v23, %v19737_v4  ;;  %v19745_v59 = vld [vmem:[#allocation121_spill] sm:$0xff]  ;;  %v19747_v32 = vld [vmem:[#allocation102_spill] sm:$0xff]  ;;  %v1628_v29 = vmul.f32 %v15495_v25, %v19749_v56  ;;  %v19750_v55 = vld [vmem:[#allocation131_spill] sm:$0xff] }
 0x3a8   : > { %v10884_v15 = vpop.eup %10883  ;;  %10909 = vrcp.f32 %v1420_v2  ;;  %5856 = vmatpush1.msra.mxu1 %v1667_v46  ;;  %5601 = vmatpush1.msra.mxu0 %v1657_v5  ;;  %v1649_v37 = vmul.f32 %v10882_v38, %v19738_v40  ;;  %v1626_v41 = vmul.f32 %v15491_v31, %v19745_v59  ;;  %v19751_v23 = vld [vmem:[#allocation133_spill] sm:$0xff]  ;;  %v19753_v38 = vld [vmem:[#allocation94_spill] sm:$0xff]  ;;  %v19758_v40 = vld [vmem:[#allocation119_spill] sm:$0xff] }
 0x3a9   : > { %v10886_v45 = vpop.eup %10885  ;;  %10911 = vrcp.f32 %v1419_v1  ;;  %5857 = vmatprep.subr.mxu1 %v1660_v6  ;;  %5299 = vmatprep.mubr.f32.mxu1 %v19585_v28  ;;  %v1651_v47 = vmul.f32 %v10884_v15, %v19740_v36  ;;  %v1625_v1 = vmul.f32 %v19748_v58, %v19747_v32  ;;  %v1627_v9 = vmul.f32 %v19751_v23, %v19750_v55  ;;  %v19754_v6 = vld [vmem:[#allocation95_spill] sm:$0xff] }
 0x3aa   : > { %v10888_v14 = vpop.eup %10887  ;;  %10913 = vrcp.f32 %v1478_v27  ;;  %5858 = vmatpush1.msra.mxu1 %v1659_v49  ;;  %5602 = vmatprep.subr.mxu0 %v1650_v42  ;;  %v1644_v52 = vmul.f32 %v10886_v45, %v15394_v61  ;;  %v12069_v45 = vld [vmem:[%s18922_s9 + $0x18] sm:$0xff]  ;;  %v12079_v59 = vld [vmem:[%s18922_s9 + $0x68] sm:$0xff] }
 0x3ab   : > { %v10890_v3 = vpop.eup %10889  ;;  %10915 = vrcp.f32 %v1480_v13  ;;  %5859 = vmatprep.subr.mxu1 %v1652_v21  ;;  %9545 = vmatmul.mubr.msk.f32.gmra.mxu0 %vm4361_vm2, %v12067_v11  ;;  %v1643_v17 = vmul.f32 %v10888_v14, %v15400_v62  ;;  %v19757_v21 = vld [vmem:[#allocation98_spill] sm:$0xff] }
 0x3ac   : > { %v10892_v60 = vpop.eup %10891  ;;  %9577 = vmatmul.mubr.msk.f32.gmra.mxu1 %vm4361_vm2, %v12067_v11  ;;  %5603 = vmatpush1.msra.mxu0 %v1649_v37  ;;  %v1634_v39 = vmul.f32 %v10890_v3, %v19742_v7  ;;  %v19759_v3 = vld [vmem:[#allocation123_spill] sm:$0xff]  ;;  %v12073_v11 = vld [vmem:[%s18922_s9 + $0x38] sm:$0xff] }
 0x3ad   : > { %v10894_v34 = vpop.eup %10893  ;;  %5860 = vmatpush1.msra.mxu1 %v1651_v47  ;;  %5604 = vmatprep.subr.mxu0 %v1642_v63  ;;  %v1636_v30 = vmul.f32 %v10892_v60, %v19743_v22  ;;  %v12070_v47 = vld [vmem:[%s18922_s9 + $0x20] sm:$0xff] }
 0x3ae   : > { %v10896_v16 = vpop.eup %10895  ;;  %5861 = vmatprep.subr.mxu1 %v1644_v52  ;;  %5605 = vmatpush1.msra.mxu0 %v1641_v8  ;;  %v1633_v33 = vmul.f32 %v10894_v34, %v19744_v10  ;;  %v12074_v60 = vld [vmem:[%s18922_s9 + $0x40] sm:$0xff]  ;;  %v12076_v8 = vld [vmem:[%s18922_s9 + $0x50] sm:$0xff] }
 0x3af   : > { %v10898_v48 = vpop.eup %10897  ;;  %5862 = vmatpush1.msra.mxu1 %v1643_v17  ;;  %5048 = vmatprep.mubr.f32.mxu0 %v19585_v28  ;;  %v1635_v2 = vmul.f32 %v10896_v16, %v19746_v43  ;;  %v12077_v16 = vld [vmem:[%s18922_s9 + $0x58] sm:$0xff] }
 0x3b0   : > { %v10900_v61 = vpop.eup %10899  ;;  %5305 = vmatprep.mubr.f32.mxu1 %v19585_v28  ;;  %5606 = vmatprep.subr.mxu0 %v1634_v39  ;;  %v1609_v14 = vmul.f32 %v10898_v48, %v19757_v21 }
 0x3b1   : > { %v10902_v62 = vpop.eup %10901  ;;  %5863 = vmatprep.subr.mxu1 %v1636_v30  ;;  %9546 = vmatmul.mubr.msk.f32.gmra.mxu0 %vm4361_vm2, %v12068_v20  ;;  %v1610_v42 = vmul.f32 %v10900_v61, %v19755_v12  ;;  %v12078_v30 = vld [vmem:[%s18922_s9 + $0x60] sm:$0xff] }
 0x3b2   : > { %v10904_v54 = vpop.eup %10903  ;;  %9578 = vmatmul.mubr.msk.f32.gmra.mxu1 %vm4361_vm2, %v12068_v20  ;;  %5607 = vmatpush1.msra.mxu0 %v1633_v33  ;;  %v1618_v46 = vmul.f32 %v10902_v62, %v19752_v53 }
 0x3b3   : > { %v10906_v31 = vpop.eup %10905  ;;  %5864 = vmatpush1.msra.mxu1 %v1635_v2  ;;  %5608 = vmatprep.subr.mxu0 %v1626_v41  ;;  %v1620_v18 = vmul.f32 %v10904_v54, %v19753_v38  ;;  %v12080_v54 = vld [vmem:[%s18922_s9 + $0x70] sm:$0xff] }
 0x3b4   : > { %v10908_v5 = vpop.eup %10907  ;;  %5865 = vmatprep.subr.mxu1 %v1628_v29  ;;  %5609 = vmatpush1.msra.mxu0 %v1625_v1  ;;  %v1617_v13 = vmul.f32 %v10906_v31, %v19754_v6  ;;  %v12081_v29 = vld [vmem:[%s18922_s9 + $0x78] sm:$0xff] }
 0x3b5   : > { %v10910_v27 = vpop.eup %10909  ;;  %5866 = vmatpush1.msra.mxu1 %v1627_v9  ;;  %5054 = vmatprep.mubr.f32.mxu0 %v19585_v28  ;;  %v1619_v49 = vmul.f32 %v10908_v5, %v19756_v0  ;;  %v12082_v5 = vld [vmem:[%s18922_s9 + $0x80] sm:$0xff]  ;;  %v19788_v0 = vld [vmem:[#allocation60_spill] sm:$0xff] }
 0x3b6   : > { %v10912_v25 = vpop.eup %10911  ;;  %5311 = vmatprep.mubr.f32.mxu1 %v19585_v28  ;;  %5610 = vmatprep.subr.mxu0 %v1618_v46  ;;  %v1612_v37 = vmul.f32 %v10910_v27, %v19758_v40  ;;  %v19781_v46 = vld [vmem:[#allocation97_spill] sm:$0xff]  ;;  %v19782_v27 = vld [vmem:[#allocation56_spill] sm:$0xff] }
 0x3b7   : > { %v10914_v15 = vpop.eup %10913  ;;  %5867 = vmatprep.subr.mxu1 %v1620_v18  ;;  %9547 = vmatmul.mubr.msk.f32.gmra.mxu0 %vm4361_vm2, %v12069_v45  ;;  %v1611_v24 = vmul.f32 %v10912_v25, %v19759_v3  ;;  %v15747_v38 = vadd.f32 %v19782_v27, %v19781_v46  ;;  %v19784_v25 = vld [vmem:[#allocation58_spill] sm:$0xff]  ;;  %v19791_v40 = vld [vmem:[#allocation61_spill] sm:$0xff] }
 0x3b8   : > { %v10916_v4 = vpop.eup %10915  ;;  %9579 = vmatmul.mubr.msk.f32.gmra.mxu1 %vm4361_vm2, %v12069_v45  ;;  %5611 = vmatpush1.msra.mxu0 %v1617_v13  ;;  %v1670_v63 = vmul.f32 %v10914_v15, %v15451_v50  ;;  %v12071_v50 = vld [vmem:[%s18922_s9 + $0x28] sm:$0xff]  ;;  %v15755_v6 = vadd.f32 %v19784_v25, %v19781_v46  ;;  %v19801_v25 = vld [vmem:[#allocation68_spill] sm:$0xff] }
 0x3b9   : > { %5868 = vmatpush1.msra.mxu1 %v1619_v49  ;;  %5612 = vmatprep.subr.mxu0 %v1610_v42  ;;  %v1672_v36 = vmul.f32 %v10916_v4, %v15459_v44  ;;  %v12072_v44 = vld [vmem:[%s18922_s9 + $0x30] sm:$0xff]  ;;  %v19786_v15 = vld [vmem:[#allocation59_spill] sm:$0xff]  ;;  %v15768_v49 = vadd.f32 %v19788_v0, %v19781_v46  ;;  %v9228_v21 = vmul.f32 -1.442695, %v15747_v38 }
 0x3ba   : > { %5869 = vmatprep.subr.mxu1 %v1612_v37  ;;  %5613 = vmatpush1.msra.mxu0 %v1609_v14  ;;  %v15762_v12 = vadd.f32 %v19786_v15, %v19781_v46  ;;  %v12083_v45 = vld [vmem:[%s18922_s9 + $0x88] sm:$0xff]  ;;  %v19790_v14 = vld [vmem:[#allocation12_spill] sm:$0xff] }
 0x3bb   : > { %5870 = vmatpush1.msra.mxu1 %v1611_v24  ;;  %5060 = vmatprep.mubr.f32.mxu0 %v19585_v28  ;;  %v15779_v37 = vadd.f32 %v19791_v40, %v19790_v14  ;;  %v9230_v24 = vmul.f32 -1.442695, %v15755_v6  ;;  %10917 = vpow2.f32 %v9228_v21  ;;  %v19802_v15 = vld [vmem:[#allocation71_spill] sm:$0xff] }
 0x3bc   : > { %5317 = vmatprep.mubr.f32.mxu1 %v19585_v28  ;;  %6112 = vmatprep.subr.mxu0 %v1670_v63  ;;  %v19793_v63 = vld [vmem:[#allocation62_spill] sm:$0xff]  ;;  %v15823_v0 = vadd.f32 %v19802_v15, %v19801_v25 }
 0x3bd   : > { %6369 = vmatprep.subr.mxu1 %v1672_v36  ;;  %9548 = vmatmul.mubr.msk.f32.gmra.mxu0 %vm4361_vm2, %v12070_v47  ;;  %v15788_v36 = vadd.f32 %v19793_v63, %v19790_v14  ;;  %10919 = vpow2.f32 %v9230_v24  ;;  %v12085_v24 = vld [vmem:[%s18922_s9 + $0x98] sm:$0xff] }
 0x3be   : > { %9580 = vmatmul.mubr.msk.f32.gmra.mxu1 %vm4361_vm2, %v12070_v47  ;;  %5066 = vmatprep.mubr.f32.mxu0 %v19585_v28  ;;  %v9245_v15 = vmul.f32 -1.442695, %v15823_v0 }
 0x3bf   : > { %5323 = vmatprep.mubr.f32.mxu1 %v19585_v28 }
 0x3c1   : > { %9549 = vmatmul.mubr.msk.f32.gmra.mxu0 %vm4361_vm2, %v12071_v50 }
 0x3c2   : > { %9581 = vmatmul.mubr.msk.f32.gmra.mxu1 %vm4361_vm2, %v12071_v50  ;;  %5072 = vmatprep.mubr.f32.mxu0 %v19585_v28  ;;  %v9229_v50 = vmul.f32 -1.442695, %v15762_v12 }
 0x3c3   : > { %5329 = vmatprep.mubr.f32.mxu1 %v19585_v28 }
 0x3c4   : > { %10921 = vpow2.f32 %v9229_v50  ;;  %v19806_v50 = vld [vmem:[#allocation69_spill] sm:$0xff] }
 0x3c5   : > { %9550 = vmatmul.mubr.msk.f32.gmra.mxu0 %vm4361_vm2, %v12072_v44 }
 0x3c6   : > { %9582 = vmatmul.mubr.msk.f32.gmra.mxu1 %vm4361_vm2, %v12072_v44  ;;  %5078 = vmatprep.mubr.f32.mxu0 %v19585_v28  ;;  %v19795_v44 = vld [vmem:[#allocation65_spill] sm:$0xff] }
 0x3c7   : > { %5335 = vmatprep.mubr.f32.mxu1 %v19585_v28 }
 0x3c9   : > { %9551 = vmatmul.mubr.msk.f32.gmra.mxu0 %vm4361_vm2, %v12073_v11 }
 0x3ca   : > { %9583 = vmatmul.mubr.msk.f32.gmra.mxu1 %vm4361_vm2, %v12073_v11  ;;  %5084 = vmatprep.mubr.f32.mxu0 %v19585_v28  ;;  %v15796_v11 = vadd.f32 %v19795_v44, %v19790_v14  ;;  %v9244_v44 = vmul.f32 -1.442695, %v19806_v50 }
 0x3cb   : > { %5341 = vmatprep.mubr.f32.mxu1 %v19585_v28 }
 0x3cc   : > { %v9237_v27 = vmul.f32 -1.442695, %v15796_v11 }
 0x3cd   : > { %9552 = vmatmul.mubr.msk.f32.gmra.mxu0 %vm4361_vm2, %v12074_v60 }
 0x3ce   : > { %9584 = vmatmul.mubr.msk.f32.gmra.mxu1 %vm4361_vm2, %v12074_v60  ;;  %5090 = vmatprep.mubr.f32.mxu0 %v19585_v28 }
 0x3cf   : > { %5347 = vmatprep.mubr.f32.mxu1 %v19585_v28 }
 0x3d1   : > { %9553 = vmatmul.mubr.msk.f32.gmra.mxu0 %vm4361_vm2, %v12075_v51 }
 0x3d2   : > { %9585 = vmatmul.mubr.msk.f32.gmra.mxu1 %vm4361_vm2, %v12075_v51  ;;  %5096 = vmatprep.mubr.f32.mxu0 %v19585_v28  ;;  %v9231_v51 = vmul.f32 -1.442695, %v15768_v49 }
 0x3d3   : > { %5353 = vmatprep.mubr.f32.mxu1 %v19585_v28 }
 0x3d4   : > { %v15657_v52 = vpop.f32.mrf.mxu0  ;;  %10923 = vpow2.f32 %v9231_v51 }
 0x3d5   : > { %9554 = vmatmul.mubr.msk.f32.gmra.mxu0 %vm4361_vm2, %v12076_v8  ;;  %v15660_v34 = vpop.f32.mrf.mxu1 }
 0x3d6   : > { %9586 = vmatmul.mubr.msk.f32.gmra.mxu1 %vm4361_vm2, %v12076_v8  ;;  %5102 = vmatprep.mubr.f32.mxu0 %v19585_v28  ;;  %v15662_v17 = vpop.f32.mrf.mxu0  ;;  %v19797_v8 = vld [vmem:[#allocation66_spill] sm:$0xff] }
 0x3d7   : > { %5359 = vmatprep.mubr.f32.mxu1 %v19585_v28  ;;  %v15668_v7 = vpop.f32.mrf.mxu1 }
 0x3d8   : > { %19760 = vst [vmem:[#allocation162_spill] sm:$0xff] %v15668_v7  ;;  %v15672_v39 = vpop.f32.mrf.mxu0 }
 0x3d9   : > { %9555 = vmatmul.mubr.msk.f32.gmra.mxu0 %vm4361_vm2, %v12077_v16  ;;  %19761 = vst [vmem:[#allocation147_spill] sm:$0xff] %v15672_v39  ;;  %v15675_v48 = vpop.f32.mrf.mxu1 }
 0x3da   : > { %9587 = vmatmul.mubr.msk.f32.gmra.mxu1 %vm4361_vm2, %v12077_v16  ;;  %5108 = vmatprep.mubr.f32.mxu0 %v19585_v28  ;;  %19762 = vst [vmem:[#allocation171_spill] sm:$0xff] %v15675_v48  ;;  %v15677_v22 = vpop.f32.mrf.mxu0  ;;  %v15803_v16 = vadd.f32 %v19797_v8, %v19790_v14  ;;  %v19804_v14 = vld [vmem:[#allocation72_spill] sm:$0xff]  ;;  %v19808_v8 = vld [vmem:[#allocation70_spill] sm:$0xff] }
 0x3db   : > { %5365 = vmatprep.mubr.f32.mxu1 %v19585_v28  ;;  %19763 = vst [vmem:[#allocation134_spill] sm:$0xff] %v15677_v22  ;;  %v15683_v61 = vpop.f32.mrf.mxu1  ;;  %v15830_v40 = vadd.f32 %v19804_v14, %v19801_v25 }
 0x3dc   : > { %19764 = vst [vmem:[#allocation148_spill] sm:$0xff] %v15683_v61  ;;  %v15687_v10 = vpop.f32.mrf.mxu0  ;;  %v9239_v21 = vmul.f32 -1.442695, %v15803_v16 }
 0x3dd   : > { %9556 = vmatmul.mubr.msk.f32.gmra.mxu0 %vm4361_vm2, %v12078_v30  ;;  %19765 = vst [vmem:[#allocation126_spill] sm:$0xff] %v15687_v10  ;;  %v15690_v33 = vpop.f32.mrf.mxu1 }
 0x3de   : > { %9588 = vmatmul.mubr.msk.f32.gmra.mxu1 %vm4361_vm2, %v12078_v30  ;;  %5114 = vmatprep.mubr.f32.mxu0 %v19585_v28  ;;  %19766 = vst [vmem:[#allocation169_spill] sm:$0xff] %v15690_v33  ;;  %v15692_v62 = vpop.f32.mrf.mxu0  ;;  %v12084_v30 = vld [vmem:[%s18922_s9 + $0x90] sm:$0xff]  ;;  %v19848_v33 = vld [vmem:[#allocation79_spill] sm:$0xff] }
 0x3df   : > { %5371 = vmatprep.mubr.f32.mxu1 %v19585_v28  ;;  %19767 = vst [vmem:[#allocation137_spill] sm:$0xff] %v15692_v62  ;;  %v15698_v41 = vpop.f32.mrf.mxu1  ;;  %v9262_v10 = vmul.f32 -1.442695, %v19848_v33 }
 0x3e0   : > { %19768 = vst [vmem:[#allocation111_spill] sm:$0xff] %v15698_v41  ;;  %v15702_v43 = vpop.f32.mrf.mxu0 }
 0x3e1   : > { %9557 = vmatmul.mubr.msk.f32.gmra.mxu0 %vm4361_vm2, %v12079_v59  ;;  %19769 = vst [vmem:[#allocation144_spill] sm:$0xff] %v15702_v43  ;;  %v15705_v2 = vpop.f32.mrf.mxu1 }
 0x3e2   : > { %9589 = vmatmul.mubr.msk.f32.gmra.mxu1 %vm4361_vm2, %v12079_v59  ;;  %5120 = vmatprep.mubr.f32.mxu0 %v19585_v28  ;;  %19770 = vst [vmem:[#allocation105_spill] sm:$0xff] %v15705_v2  ;;  %v15707_v20 = vpop.f32.mrf.mxu0  ;;  %v19844_v2 = vld [vmem:[#allocation77_spill] sm:$0xff] }
 0x3e3   : > { %5377 = vmatprep.mubr.f32.mxu1 %v19585_v28  ;;  %19771 = vst [vmem:[#allocation156_spill] sm:$0xff] %v15707_v20  ;;  %v15713_v32 = vpop.f32.mrf.mxu1 }
 0x3e4   : > { %19772 = vst [vmem:[#allocation151_spill] sm:$0xff] %v15713_v32  ;;  %v15717_v58 = vpop.f32.mrf.mxu0 }
 0x3e5   : > { %9558 = vmatmul.mubr.msk.f32.gmra.mxu0 %vm4361_vm2, %v12080_v54  ;;  %19773 = vst [vmem:[#allocation167_spill] sm:$0xff] %v15717_v58  ;;  %v15720_v1 = vpop.f32.mrf.mxu1  ;;  %v19841_v58 = vld [vmem:[#allocation76_spill] sm:$0xff] }
 0x3e6   : > { %9590 = vmatmul.mubr.msk.f32.gmra.mxu1 %vm4361_vm2, %v12080_v54  ;;  %5126 = vmatprep.mubr.f32.mxu0 %v19585_v28  ;;  %19774 = vst [vmem:[#allocation160_spill] sm:$0xff] %v15720_v1  ;;  %v15722_v56 = vpop.f32.mrf.mxu0  ;;  %v9236_v54 = vmul.f32 -1.442695, %v15779_v37 }
 0x3e7   : > { %5383 = vmatprep.mubr.f32.mxu1 %v19585_v28  ;;  %19775 = vst [vmem:[#allocation108_spill] sm:$0xff] %v15722_v56  ;;  %v15728_v31 = vpop.f32.mrf.mxu1 }
 0x3e8   : > { %19776 = vst [vmem:[#allocation159_spill] sm:$0xff] %v15728_v31  ;;  %v15732_v55 = vpop.f32.mrf.mxu0  ;;  %10925 = vpow2.f32 %v9236_v54  ;;  %v9247_v54 = vmul.f32 -1.442695, %v15830_v40 }
 0x3e9   : > { %9559 = vmatmul.mubr.msk.f32.gmra.mxu0 %vm4361_vm2, %v12081_v29  ;;  %19777 = vst [vmem:[#allocation114_spill] sm:$0xff] %v15732_v55  ;;  %v15735_v23 = vpop.f32.mrf.mxu1 }
 0x3ea   : > { %9591 = vmatmul.mubr.msk.f32.gmra.mxu1 %vm4361_vm2, %v12081_v29  ;;  %5132 = vmatprep.mubr.f32.mxu0 %v19585_v28  ;;  %19778 = vst [vmem:[#allocation150_spill] sm:$0xff] %v15735_v23  ;;  %v15737_v9 = vpop.f32.mrf.mxu0 }
 0x3eb   : > { %5389 = vmatprep.mubr.f32.mxu1 %v19585_v28  ;;  %19779 = vst [vmem:[#allocation177_spill] sm:$0xff] %v15737_v9  ;;  %v15743_v53 = vpop.f32.mrf.mxu1 }
 0x3ec   : > { %19780 = vst [vmem:[#allocation158_spill] sm:$0xff] %v15743_v53  ;;  %v15751_v18 = vpop.f32.mrf.mxu0 }
 0x3ed   : > { %9560 = vmatmul.mubr.msk.f32.gmra.mxu0 %vm4361_vm2, %v12082_v5  ;;  %19783 = vst [vmem:[#allocation146_spill] sm:$0xff] %v15751_v18  ;;  %v15758_v13 = vpop.f32.mrf.mxu1 }
 0x3ee   : > { %9592 = vmatmul.mubr.msk.f32.gmra.mxu1 %vm4361_vm2, %v12082_v5  ;;  %5138 = vmatprep.mubr.f32.mxu0 %v19585_v28  ;;  %19785 = vst [vmem:[#allocation176_spill] sm:$0xff] %v15758_v13  ;;  %v15764_v42 = vpop.f32.mrf.mxu0  ;;  %v9238_v5 = vmul.f32 -1.442695, %v15788_v36 }
 0x3ef   : > { %5395 = vmatprep.mubr.f32.mxu1 %v19585_v28  ;;  %19787 = vst [vmem:[#allocation17_spill] sm:$0xff] %v15764_v42  ;;  %v15774_v4 = vpop.f32.mrf.mxu1 }
 0x3f0   : > { %19789 = vst [vmem:[#allocation149_spill] sm:$0xff] %v15774_v4  ;;  %v15783_v3 = vpop.f32.mrf.mxu0  ;;  %10927 = vpow2.f32 %v9238_v5  ;;  %v12086_v5 = vld [vmem:[%s18922_s9 + $0xa0] sm:$0xff] }
 0x3f1   : > { %9561 = vmatmul.mubr.msk.f32.gmra.mxu0 %vm4361_vm2, %v12083_v45  ;;  %19792 = vst [vmem:[#allocation175_spill] sm:$0xff] %v15783_v3  ;;  %v15791_v47 = vpop.f32.mrf.mxu1  ;;  %10929 = vpow2.f32 %v9237_v27  ;;  %v19814_v27 = vld [vmem:[#allocation74_spill] sm:$0xff] }
 0x3f2   : > { %9593 = vmatmul.mubr.msk.f32.gmra.mxu1 %vm4361_vm2, %v12083_v45  ;;  %5144 = vmatprep.mubr.f32.mxu0 %v19585_v28  ;;  %19794 = vst [vmem:[#allocation161_spill] sm:$0xff] %v15791_v47  ;;  %v15798_v60 = vpop.f32.mrf.mxu0  ;;  %10931 = vpow2.f32 %v9239_v21 }
 0x3f3   : > { %5401 = vmatprep.mubr.f32.mxu1 %v19585_v28  ;;  %19796 = vst [vmem:[#allocation107_spill] sm:$0xff] %v15798_v60  ;;  %v15809_v59 = vpop.f32.mrf.mxu1  ;;  %10933 = vpow2.f32 %v9244_v44  ;;  %v19820_v44 = vld [vmem:[#allocation78_spill] sm:$0xff] }
 0x3f4   : > { %19798 = vst [vmem:[#allocation153_spill] sm:$0xff] %v15809_v59  ;;  %v15814_v29 = vpop.f32.mrf.mxu0 }
 0x3f5   : > { %9562 = vmatmul.mubr.msk.f32.gmra.mxu0 %vm4361_vm2, %v12084_v30  ;;  %19799 = vst [vmem:[#allocation157_spill] sm:$0xff] %v15814_v29  ;;  %v15818_v46 = vpop.f32.mrf.mxu1  ;;  %v19818_v29 = vld [vmem:[#allocation88_spill] sm:$0xff] }
 0x3f6   : > { %9594 = vmatmul.mubr.msk.f32.gmra.mxu1 %vm4361_vm2, %v12084_v30  ;;  %5150 = vmatprep.mubr.f32.mxu0 %v19585_v28  ;;  %19800 = vst [vmem:[#allocation164_spill] sm:$0xff] %v15818_v46  ;;  %v15825_v45 = vpop.f32.mrf.mxu0  ;;  %v9246_v30 = vmul.f32 -1.442695, %v19808_v8  ;;  %v19817_v46 = vld [vmem:[#allocation57_spill] sm:$0xff] }
 0x3f7   : > { %5407 = vmatprep.mubr.f32.mxu1 %v19585_v28  ;;  %19803 = vst [vmem:[#allocation166_spill] sm:$0xff] %v15825_v45  ;;  %v15836_v63 = vpop.f32.mrf.mxu1  ;;  %v15869_v59 = vadd.f32 %v19818_v29, %v19817_v46 }
 0x3f8   : > { %19805 = vst [vmem:[#allocation125_spill] sm:$0xff] %v15836_v63  ;;  %v15841_v51 = vpop.f32.mrf.mxu0  ;;  %v19812_v63 = vld [vmem:[#allocation80_spill] sm:$0xff]  ;;  %10935 = vpow2.f32 %v9246_v30 }
 0x3f9   : > { %9563 = vmatmul.mubr.msk.f32.gmra.mxu0 %vm4361_vm2, %v12085_v24  ;;  %19807 = vst [vmem:[#allocation99_spill] sm:$0xff] %v15841_v51  ;;  %v15845_v25 = vpop.f32.mrf.mxu1  ;;  %10937 = vpow2.f32 %v9245_v15  ;;  %v9277_v42 = vmul.f32 -1.442695, %v15869_v59 }
 0x3fa   : > { %9595 = vmatmul.mubr.msk.f32.gmra.mxu1 %vm4361_vm2, %v12085_v24  ;;  %5156 = vmatprep.mubr.f32.mxu0 %v19585_v28  ;;  %19809 = vst [vmem:[#allocation24_spill] sm:$0xff] %v15845_v25  ;;  %v15848_v14 = vpop.f32.mrf.mxu0  ;;  %v19811_v24 = vld [vmem:[#allocation64_spill] sm:$0xff]  ;;  %v9252_v25 = vmul.f32 -1.442695, %v19814_v27  ;;  %10939 = vpow2.f32 %v9247_v54 }
 0x3fb   : > { %5413 = vmatprep.mubr.f32.mxu1 %v19585_v28  ;;  %19810 = vst [vmem:[#allocation26_spill] sm:$0xff] %v15848_v14  ;;  %v15853_v45 = vadd.f32 %v19812_v63, %v19811_v24  ;;  %v15859_v51 = vpop.f32.mrf.mxu1  ;;  %v19816_v63 = vld [vmem:[#allocation75_spill] sm:$0xff] }
 0x3fc   : > { %19813 = vst [vmem:[#allocation27_spill] sm:$0xff] %v15859_v51  ;;  %v9254_v14 = vmul.f32 -1.442695, %v19816_v63  ;;  %v9260_v51 = vmul.f32 -1.442695, %v19820_v44  ;;  %10941 = vpow2.f32 %v9252_v25 }
 0x3fd   : > { %9564 = vmatmul.mubr.msk.f32.gmra.mxu0 %vm4361_vm2, %v12086_v5  ;;  %v9261_v30 = vmul.f32 -1.442695, %v15853_v45 }
 0x3fe   : > { %9596 = vmatmul.mubr.msk.f32.gmra.mxu1 %vm4361_vm2, %v12086_v5  ;;  %5162 = vmatprep.mubr.f32.mxu0 %v19585_v28  ;;  %v15864_v21 = vpop.f32.mrf.mxu0  ;;  %v15872_v60 = vpop.f32.mrf.mxu1  ;;  %v19821_v5 = vld [vmem:[#allocation90_spill] sm:$0xff]  ;;  %10943 = vpow2.f32 %v9254_v14  ;;  %v19832_v14 = vld [vmem:[#allocation85_spill] sm:$0xff] }
 0x3ff   : > { %19815 = vst [vmem:[#allocation28_spill] sm:$0xff] %v15864_v21  ;;  %5419 = vmatprep.mubr.f32.mxu1 %v19585_v28  ;;  %19819 = vst [vmem:[#allocation29_spill] sm:$0xff] %v15872_v60  ;;  %v15877_v47 = vadd.f32 %v19821_v5, %v19618_v57  ;;  %v19823_v21 = vld [vmem:[#allocation91_spill] sm:$0xff]  ;;  %v19825_v5 = vld [vmem:[#allocation86_spill] sm:$0xff]  ;;  %10945 = vpow2.f32 %v9260_v51 }
 0x400   : > { %v15879_v3 = vpop.f32.mrf.mxu0  ;;  %v15884_v29 = vadd.f32 %v19823_v21, %v19618_v57  ;;  %v12087_v60 = vld [vmem:[%s18922_s9 + $0xa8] sm:$0xff]  ;;  %v15890_v15 = vpop.f32.mrf.mxu1  ;;  %v9276_v4 = vmul.f32 -1.442695, %v19825_v5  ;;  %10947 = vpow2.f32 %v9261_v30  ;;  %v12088_v51 = vld [vmem:[%s18922_s9 + $0xb0] sm:$0xff] }
 0x401   : > { %19822 = vst [vmem:[#allocation15_spill] sm:$0xff] %v15879_v3  ;;  %9565 = vmatmul.mubr.msk.f32.gmra.mxu0 %vm4361_vm2, %v12087_v60  ;;  %19824 = vst [vmem:[#allocation16_spill] sm:$0xff] %v15890_v15  ;;  %v19826_v3 = vld [vmem:[#allocation89_spill] sm:$0xff]  ;;  %v15901_v21 = vpop.eup %10917 }
 0x402   : > { %v15895_v54 = vadd.f32 %v19826_v3, %v19817_v46  ;;  %9597 = vmatmul.mubr.msk.f32.gmra.mxu1 %vm4361_vm2, %v12087_v60  ;;  %5168 = vmatprep.mubr.f32.mxu0 %v19585_v28  ;;  %v15899_v57 = vpop.f32.mrf.mxu0  ;;  %v15905_v25 = vpop.f32.mrf.mxu1  ;;  %v19829_v3 = vld [vmem:[#allocation67_spill] sm:$0xff]  ;;  %v19830_v46 = vld [vmem:[#allocation84_spill] sm:$0xff]  ;;  %v9284_v60 = vmul.f32 -1.442695, %v15877_v47  ;;  %10949 = vpow2.f32 %v9276_v4  ;;  %v19837_v4 = vld [vmem:[#allocation81_spill] sm:$0xff]  ;;  %v1421_v22 = vadd.f32 1.0, %v15901_v21 }
 0x403   : > { %19827 = vst [vmem:[#allocation18_spill] sm:$0xff] %v15899_v57  ;;  %5425 = vmatprep.mubr.f32.mxu1 %v19585_v28  ;;  %19828 = vst [vmem:[#allocation19_spill] sm:$0xff] %v15905_v25  ;;  %v15907_v15 = vpop.eup %10919  ;;  %v15911_v13 = vadd.f32 %v19830_v46, %v19829_v3  ;;  %v15920_v53 = vadd.f32 %v19832_v14, %v19829_v3  ;;  %v9286_v25 = vmul.f32 -1.442695, %v15884_v29  ;;  %v19835_v14 = vld [vmem:[#allocation87_spill] sm:$0xff]  ;;  %10951 = vpow2.f32 %v9277_v42  ;;  %v12089_v42 = vld [vmem:[%s18922_s9 + $0xb8] sm:$0xff] }
 0x404   : > { %v15914_v18 = vpop.f32.mrf.mxu0  ;;  %v15916_v57 = vpop.eup %10921  ;;  %v9278_v23 = vmul.f32 -1.442695, %v19835_v14  ;;  %v15946_v31 = vadd.f32 %v19837_v4, %v19811_v24  ;;  %10953 = vpow2.f32 %v9284_v60  ;;  %v19840_v4 = vld [vmem:[#allocation73_spill] sm:$0xff] }
 0x405   : > { %19831 = vst [vmem:[#allocation20_spill] sm:$0xff] %v15914_v18  ;;  %9566 = vmatmul.mubr.msk.f32.gmra.mxu0 %vm4361_vm2, %v12088_v51  ;;  %v15927_v46 = vpop.f32.mrf.mxu1  ;;  %v15929_v9 = vpop.eup %10923  ;;  %v9279_v18 = vmul.f32 -1.442695, %v15895_v54  ;;  %v9271_v1 = vmul.f32 -1.442695, %v15920_v53  ;;  %10955 = vpow2.f32 %v9286_v25  ;;  %v15964_v60 = vadd.f32 %v19841_v58, %v19840_v4 }
 0x406   : > { %19833 = vst [vmem:[#allocation21_spill] sm:$0xff] %v15927_v46  ;;  %9598 = vmatmul.mubr.msk.f32.gmra.mxu1 %vm4361_vm2, %v12088_v51  ;;  %5174 = vmatprep.mubr.f32.mxu0 %v19585_v28  ;;  %v15934_v30 = vpop.f32.mrf.mxu0  ;;  %v15936_v3 = vpop.eup %10925  ;;  %v9269_v51 = vmul.f32 -1.442695, %v15911_v13  ;;  %v15973_v43 = vadd.f32 %v19844_v2, %v19840_v4  ;;  %v12090_v2 = vld [vmem:[%s18922_s9 + $0xc0] sm:$0xff]  ;;  %v1422_v48 = vadd.f32 1.0, %v15916_v57 }
 0x407   : > { %19834 = vst [vmem:[#allocation22_spill] sm:$0xff] %v15934_v30  ;;  %5431 = vmatprep.mubr.f32.mxu1 %v19585_v28  ;;  %v15940_v55 = vpop.f32.mrf.mxu1  ;;  %v15942_v46 = vpop.eup %10927  ;;  %10957 = vpow2.f32 %v9279_v18  ;;  %v9263_v18 = vmul.f32 -1.442695, %v15946_v31 }
 0x408   : > { %19836 = vst [vmem:[#allocation23_spill] sm:$0xff] %v15940_v55  ;;  %v15949_v56 = vpop.f32.mrf.mxu0  ;;  %v15951_v30 = vpop.eup %10929  ;;  %10959 = vpow2.f32 %v9278_v23 }
 0x409   : > { %19838 = vst [vmem:[#allocation30_spill] sm:$0xff] %v15949_v56  ;;  %9567 = vmatmul.mubr.msk.f32.gmra.mxu0 %vm4361_vm2, %v12089_v42  ;;  %v15958_v55 = vpop.f32.mrf.mxu1  ;;  %v15960_v24 = vpop.eup %10931  ;;  %v19842_v56 = vld [vmem:[#allocation82_spill] sm:$0xff]  ;;  %10961 = vpow2.f32 %v9269_v51 }
 0x40a   : > { %19839 = vst [vmem:[#allocation63_spill] sm:$0xff] %v15958_v55  ;;  %v9268_v32 = vmul.f32 -1.442695, %v19842_v56  ;;  %9599 = vmatmul.mubr.msk.f32.gmra.mxu1 %vm4361_vm2, %v12089_v42  ;;  %5180 = vmatprep.mubr.f32.mxu0 %v19585_v28  ;;  %v15969_v25 = vpop.f32.mrf.mxu0  ;;  %v10934_v20 = vpop.eup %10933  ;;  %v19845_v55 = vld [vmem:[#allocation83_spill] sm:$0xff]  ;;  %10963 = vpow2.f32 %v9271_v1 }
 0x40b   : > { %19843 = vst [vmem:[#allocation53_spill] sm:$0xff] %v15969_v25  ;;  %v9270_v41 = vmul.f32 -1.442695, %v19845_v55  ;;  %5437 = vmatprep.mubr.f32.mxu1 %v19585_v28  ;;  %v15977_v58 = vpop.f32.mrf.mxu1  ;;  %v15979_v62 = vpop.eup %10935  ;;  %v1437_v39 = vadd.f32 1.0, %v10934_v20 }
 0x40c   : > { %19846 = vst [vmem:[#allocation32_spill] sm:$0xff] %v15977_v58  ;;  %v15982_v42 = vpop.f32.mrf.mxu0  ;;  %v10938_v25 = vpop.eup %10937  ;;  %v9253_v58 = vmul.f32 -1.442695, %v15964_v60  ;;  %10965 = vpow2.f32 %v9268_v32 }
 0x40d   : > { %19847 = vst [vmem:[#allocation34_spill] sm:$0xff] %v15982_v42  ;;  %9568 = vmatmul.mubr.msk.f32.gmra.mxu0 %vm4361_vm2, %v12090_v2  ;;  %v15989_v23 = vpop.f32.mrf.mxu1  ;;  %v15991_v4 = vpop.eup %10939  ;;  %v9255_v42 = vmul.f32 -1.442695, %v15973_v43  ;;  %10967 = vpow2.f32 %v9270_v41  ;;  %v1438_v57 = vadd.f32 1.0, %v10938_v25 }
 0x40e   : > { %19849 = vst [vmem:[#allocation35_spill] sm:$0xff] %v15989_v23  ;;  %9600 = vmatmul.mubr.msk.f32.gmra.mxu1 %vm4361_vm2, %v12090_v2  ;;  %5186 = vmatprep.mubr.f32.mxu0 %v19585_v28  ;;  %v15996_v51 = vpop.f32.mrf.mxu0  ;;  %v15998_v1 = vpop.eup %10941  ;;  %10969 = vpow2.f32 %v9263_v18 }
 0x40f   : > { %19850 = vst [vmem:[#allocation37_spill] sm:$0xff] %v15996_v51  ;;  %5443 = vmatprep.mubr.f32.mxu1 %v19585_v28  ;;  %v16002_v61 = vpop.f32.mrf.mxu1  ;;  %v16004_v23 = vpop.eup %10943  ;;  %10971 = vpow2.f32 %v9262_v10  ;;  %v12091_v51 = vld [vmem:[%s18922_s9 + $0xc8] sm:$0xff] }
 0x410   : > { %19851 = vst [vmem:[#allocation43_spill] sm:$0xff] %v16002_v61  ;;  %v16007_v32 = vpop.f32.mrf.mxu0  ;;  %v10946_v2 = vpop.eup %10945  ;;  %10973 = vpow2.f32 %v9253_v58 }
 0x411   : > { %19852 = vst [vmem:[#allocation44_spill] sm:$0xff] %v16007_v32  ;;  %9569 = vmatmul.mubr.msk.f32.gmra.mxu0 %vm4361_vm2, %v12091_v51  ;;  %v16014_v41 = vpop.f32.mrf.mxu1  ;;  %v10948_v61 = vpop.eup %10947  ;;  %10975 = vpow2.f32 %v9255_v42  ;;  %v1453_v7 = vadd.f32 1.0, %v10946_v2 }
 0x412   : > { %19853 = vst [vmem:[#allocation45_spill] sm:$0xff] %v16014_v41  ;;  %9601 = vmatmul.mubr.msk.f32.gmra.mxu1 %vm4361_vm2, %v12091_v51  ;;  %5192 = vmatprep.mubr.f32.mxu0 %v19585_v28  ;;  %v16018_v21 = vpop.f32.mrf.mxu0  ;;  %v10950_v18 = vpop.eup %10949  ;;  %10977 = vrcp.f32 %v1421_v22  ;;  %v1454_v58 = vadd.f32 1.0, %v10948_v61  ;;  %v12092_v51 = vld [vmem:[%s18922_s9 + $0xd0] sm:$0xff] }
 0x413   : > { %19854 = vst [vmem:[#allocation46_spill] sm:$0xff] %v16018_v21  ;;  %5449 = vmatprep.mubr.f32.mxu1 %v19585_v28  ;;  %v16021_v10 = vpop.f32.mrf.mxu1  ;;  %v10952_v32 = vpop.eup %10951  ;;  %10979 = vrcp.f32 %v1422_v48  ;;  %v1469_v21 = vadd.f32 1.0, %v10950_v18 }
 0x414   : > { %19855 = vst [vmem:[#allocation48_spill] sm:$0xff] %v16021_v10  ;;  %v16023_v41 = vpop.f32.mrf.mxu0  ;;  %v10954_v20 = vpop.eup %10953  ;;  %10981 = vrcp.f32 %v1437_v39  ;;  %v1470_v48 = vadd.f32 1.0, %v10952_v32 }
 0x415   : > { %19856 = vst [vmem:[#allocation50_spill] sm:$0xff] %v16023_v41  ;;  %9570 = vmatmul.mubr.msk.f32.gmra.mxu0 %vm4361_vm2, %v12092_v51  ;;  %v16029_v25 = vpop.f32.mrf.mxu1  ;;  %v10956_v42 = vpop.eup %10955  ;;  %10983 = vrcp.f32 %v1438_v57  ;;  %v1477_v10 = vadd.f32 1.0, %v10954_v20 }
 0x416   : > { %19857 = vst [vmem:[#allocation49_spill] sm:$0xff] %v16029_v25  ;;  %9602 = vmatmul.mubr.msk.f32.gmra.mxu1 %vm4361_vm2, %v12092_v51  ;;  %5198 = vmatprep.mubr.f32.mxu0 %v19585_v28  ;;  %v16033_v22 = vpop.f32.mrf.mxu0  ;;  %v10958_v2 = vpop.eup %10957  ;;  %10985 = vrcp.f32 %v1453_v7  ;;  %v1479_v18 = vadd.f32 1.0, %v10956_v42  ;;  %v12093_v51 = vld [vmem:[%s18922_s9 + $0xd8] sm:$0xff] }
 0x417   : > { %19858 = vst [vmem:[#allocation55_spill] sm:$0xff] %v16033_v22  ;;  %5455 = vmatprep.mubr.f32.mxu1 %v19585_v28  ;;  %v16036_v61 = vpop.f32.mrf.mxu1  ;;  %v10960_v41 = vpop.eup %10959  ;;  %10987 = vrcp.f32 %v1454_v58  ;;  %v1472_v22 = vadd.f32 1.0, %v10958_v2 }
 0x418   : > { %19859 = vst [vmem:[#allocation51_spill] sm:$0xff] %v16036_v61  ;;  %v16038_v25 = vpop.f32.mrf.mxu0  ;;  %v10962_v39 = vpop.eup %10961  ;;  %10989 = vrcp.f32 %v1469_v21  ;;  %v1471_v58 = vadd.f32 1.0, %v10960_v41 }
 0x419   : > { %19860 = vst [vmem:[#allocation52_spill] sm:$0xff] %v16038_v25  ;;  %9571 = vmatmul.mubr.msk.f32.gmra.mxu0 %vm4361_vm2, %v12093_v51  ;;  %v16044_v57 = vpop.f32.mrf.mxu1  ;;  %v10964_v32 = vpop.eup %10963  ;;  %10991 = vrcp.f32 %v1470_v48  ;;  %v1462_v61 = vadd.f32 1.0, %v10962_v39 }
 0x41a   : > { %19861 = vst [vmem:[#allocation54_spill] sm:$0xff] %v16044_v57  ;;  %9603 = vmatmul.mubr.msk.f32.gmra.mxu1 %vm4361_vm2, %v12093_v51  ;;  %5204 = vmatprep.mubr.f32.mxu0 %v19585_v28  ;;  %v16048_v7 = vpop.f32.mrf.mxu0  ;;  %v10966_v20 = vpop.eup %10965  ;;  %10993 = vrcp.f32 %v1477_v10  ;;  %v1464_v2 = vadd.f32 1.0, %v10964_v32  ;;  %v12094_v51 = vld [vmem:[%s18922_s9 + $0xe0] sm:$0xff] }
 0x41b   : > { %19862 = vst [vmem:[#allocation41_spill] sm:$0xff] %v16048_v7  ;;  %5461 = vmatprep.mubr.f32.mxu1 %v19585_v28  ;;  %v16051_v42 = vpop.f32.mrf.mxu1  ;;  %v10968_v25 = vpop.eup %10967  ;;  %10995 = vrcp.f32 %v1479_v18  ;;  %v1461_v7 = vadd.f32 1.0, %v10966_v20 }
 0x41c   : > { %19863 = vst [vmem:[#allocation47_spill] sm:$0xff] %v16051_v42  ;;  %v16053_v57 = vpop.f32.mrf.mxu0  ;;  %v10970_v21 = vpop.eup %10969  ;;  %10997 = vrcp.f32 %v1472_v22  ;;  %v1463_v32 = vadd.f32 1.0, %v10968_v25 }
 0x41d   : > { %19864 = vst [vmem:[#allocation33_spill] sm:$0xff] %v16053_v57  ;;  %9572 = vmatmul.mubr.msk.f32.gmra.mxu0 %vm4361_vm2, %v12094_v51  ;;  %v16059_v41 = vpop.f32.mrf.mxu1  ;;  %v10972_v48 = vpop.eup %10971  ;;  %10999 = vrcp.f32 %v1471_v58  ;;  %v1456_v42 = vadd.f32 1.0, %v10970_v21 }
 0x41e   : > { %19865 = vst [vmem:[#allocation39_spill] sm:$0xff] %v16059_v41  ;;  %9604 = vmatmul.mubr.msk.f32.gmra.mxu1 %vm4361_vm2, %v12094_v51  ;;  %5210 = vmatprep.mubr.f32.mxu0 %v19585_v28  ;;  %v16063_v10 = vpop.f32.mrf.mxu0  ;;  %v10974_v39 = vpop.eup %10973  ;;  %11001 = vrcp.f32 %v1462_v61  ;;  %v1455_v22 = vadd.f32 1.0, %v10972_v48 }
 0x41f   : > { %5467 = vmatprep.mubr.f32.mxu1 %v19585_v28  ;;  %v16066_v18 = vpop.f32.mrf.mxu1  ;;  %v10976_v57 = vpop.eup %10975  ;;  %11003 = vrcp.f32 %v1464_v2  ;;  %v1446_v58 = vadd.f32 1.0, %v10974_v39  ;;  %v1445_v39 = vadd.f32 1.0, %v15998_v1 }
 0x420   : > { %v16068_v41 = vpop.f32.mrf.mxu0  ;;  %v16070_v20 = vpop.eup %10977  ;;  %11005 = vrcp.f32 %v1461_v7  ;;  %v1448_v48 = vadd.f32 1.0, %v10976_v57 }
 0x421   : > { %19866 = vst [vmem:[#allocation25_spill] sm:$0xff] %v16068_v41  ;;  %9573 = vmatmul.mubr.msk.f32.gmra.mxu0 %vm4361_vm2, %v15489_v35  ;;  %v16074_v51 = vpop.f32.mrf.mxu1  ;;  %v16076_v25 = vpop.eup %10979  ;;  %11007 = vrcp.f32 %v1463_v32  ;;  %v1447_v41 = vadd.f32 1.0, %v16004_v23  ;;  %v1439_v23 = vadd.f32 1.0, %v15979_v62 }
 0x422   : > { %19867 = vst [vmem:[#allocation31_spill] sm:$0xff] %v16074_v51  ;;  %9605 = vmatmul.mubr.msk.f32.gmra.mxu1 %vm4361_vm2, %v15489_v35  ;;  %5216 = vmatprep.mubr.f32.mxu0 %v19585_v28  ;;  %v16081_v61 = vpop.f32.mrf.mxu0  ;;  %v16083_v21 = vpop.eup %10981  ;;  %11009 = vrcp.f32 %v1456_v42 }
 0x423   : > { %19868 = vst [vmem:[#allocation40_spill] sm:$0xff] %v16081_v61  ;;  %5473 = vmatprep.mubr.f32.mxu1 %v19585_v28  ;;  %v16086_v2 = vpop.f32.mrf.mxu1  ;;  %v16088_v51 = vpop.eup %10983  ;;  %11011 = vrcp.f32 %v1455_v22  ;;  %v1423_v61 = vadd.f32 1.0, %v15907_v15 }
 0x424   : > { %19869 = vst [vmem:[#allocation42_spill] sm:$0xff] %v16086_v2  ;;  %v16091_v7 = vpop.f32.mrf.mxu0  ;;  %v16093_v35 = vpop.eup %10985  ;;  %v1440_v2 = vadd.f32 1.0, %v15991_v4  ;;  %11013 = vrcp.f32 %v1446_v58 }
 0x425   : > { %19870 = vst [vmem:[#allocation38_spill] sm:$0xff] %v16091_v7  ;;  %9574 = vmatmul.mubr.msk.f32.gmra.mxu0 %vm4361_vm2, %v15510_v19  ;;  %v16098_v57 = vpop.f32.mrf.mxu1  ;;  %v16100_v32 = vpop.eup %10987  ;;  %11015 = vrcp.f32 %v1448_v48  ;;  %v1430_v7 = vadd.f32 1.0, %v15951_v30  ;;  %v1429_v48 = vadd.f32 1.0, %v15936_v3  ;;  %v16127_v30 = vld [vmem:[%s18921_s8] sm:$0xff] }
 0x426   : > { %19871 = vst [vmem:[#allocation36_spill] sm:$0xff] %v16098_v57  ;;  %9606 = vmatmul.mubr.msk.f32.gmra.mxu1 %vm4361_vm2, %v15510_v19  ;;  %5222 = vmatprep.mubr.f32.mxu0 %v19585_v28  ;;  %v16106_v1 = vpop.f32.mrf.mxu0  ;;  %v10990_v42 = vpop.eup %10989  ;;  %11017 = vrcp.f32 %v1445_v39  ;;  %v1432_v19 = vadd.f32 1.0, %v15960_v24  ;;  %v1431_v39 = vadd.f32 1.0, %v15942_v46 }
 0x427   : > { %19872 = vst [vmem:[#allocation92_spill] sm:$0xff] %v16106_v1  ;;  %5479 = vmatprep.mubr.f32.mxu1 %v19585_v28  ;;  %v16110_v22 = vpop.f32.mrf.mxu1  ;;  %v10992_v57 = vpop.eup %10991  ;;  %11019 = vrcp.f32 %v1447_v41 }
 0x428   : > { %19873 = vst [vmem:[#allocation93_spill] sm:$0xff] %v16110_v22  ;;  %v16113_v4 = vpop.f32.mrf.mxu0  ;;  %v10994_v58 = vpop.eup %10993  ;;  %11021 = vrcp.f32 %v1440_v2 }
 0x429   : > { %19874 = vst [vmem:[#allocation141_spill] sm:$0xff] %v16113_v4  ;;  %9575 = vmatmul.mubr.msk.f32.gmra.mxu0 %vm4361_vm2, %v15525_v26  ;;  %v16118_v1 = vpop.f32.mrf.mxu1  ;;  %v10996_v62 = vpop.eup %10995  ;;  %11023 = vrcp.f32 %v1439_v23 }
 0x42a   : > { %19875 = vst [vmem:[#allocation104_spill] sm:$0xff] %v16118_v1  ;;  %9607 = vmatmul.mubr.msk.f32.gmra.mxu1 %vm4361_vm2, %v15525_v26  ;;  %5646 = vmatprep.mubr.f32.mxu0 %v19585_v28  ;;  %v16129_v24 = vpop.f32.mrf.mxu0  ;;  %v10998_v41 = vpop.eup %10997  ;;  %v1424_v26 = vadd.f32 1.0, %v15929_v9  ;;  %11025 = vrcp.f32 %v1430_v7  ;;  %v1669_v1 = vmul.f32 %v10994_v58, %v15877_v47  ;;  %v1671_v46 = vmul.f32 %v10996_v62, %v15884_v29 }
 0x42b   : > { %19876 = vst [vmem:[#allocation142_spill] sm:$0xff] %v16129_v24  ;;  %5903 = vmatprep.mubr.f32.mxu1 %v19585_v28  ;;  %v16133_v3 = vpop.f32.mrf.mxu1  ;;  %v11000_v2 = vpop.eup %10999  ;;  %11027 = vrcp.f32 %v1432_v19  ;;  %v1662_v24 = vmul.f32 %v10992_v57, %v15869_v59  ;;  %v1661_v9 = vmul.f32 %v10990_v42, %v19825_v5  ;;  %v1664_v47 = vmul.f32 %v10998_v41, %v15895_v54  ;;  %v16159_v54 = vld [vmem:[%s18921_s8 + $0x8] sm:$0xff] }
 0x42c   : > { %19877 = vst [vmem:[#allocation115_spill] sm:$0xff] %v16133_v3  ;;  %v16137_v4 = vpop.f32.mrf.mxu0  ;;  %v11002_v22 = vpop.eup %11001  ;;  %11029 = vrcp.f32 %v1429_v48  ;;  %v1663_v29 = vmul.f32 %v11000_v2, %v19835_v14  ;;  %v1646_v48 = vmul.f32 %v16100_v32, %v15853_v45 }
 0x42d   : > { %9608 = vmatmul.mubr.msk.f32.vlgmr.msra.gmra.mxu0 %vm4361_vm2, %v16127_v30  ;;  %v16144_v23 = vpop.f32.mrf.mxu1  ;;  %v11004_v3 = vpop.eup %11003  ;;  %11031 = vrcp.f32 %v1431_v39  ;;  %v1654_v5 = vmul.f32 %v11002_v22, %v15911_v13 }
 0x42e   : > { %9640 = vmatmul.mubr.msk.f32.vlgmr.msra.gmra.mxu1 %vm4361_vm2, %v16127_v30  ;;  %6113 = vmatpush1.msra.mxu0 %v1669_v1  ;;  %v16150_v15 = vpop.f32.mrf.mxu0  ;;  %v11006_v59 = vpop.eup %11005  ;;  %11033 = vrcp.f32 %v1424_v26  ;;  %v1656_v14 = vmul.f32 %v11004_v3, %v15920_v53 }
 0x42f   : > { %6370 = vmatpush1.msra.mxu1 %v1671_v46  ;;  %6114 = vmatprep.subr.mxu0 %v1662_v24  ;;  %v16153_v7 = vpop.f32.mrf.mxu1  ;;  %v11008_v57 = vpop.eup %11007  ;;  %11035 = vrcp.f32 %v1423_v61  ;;  %v1653_v13 = vmul.f32 %v11006_v59, %v19842_v56  ;;  %v1645_v56 = vmul.f32 %v16093_v35, %v19820_v44  ;;  %v1630_v59 = vmul.f32 %v16088_v51, %v15823_v0 }
 0x430   : > { %6371 = vmatprep.subr.mxu1 %v1664_v47  ;;  %6115 = vmatpush1.msra.mxu0 %v1661_v9  ;;  %v16161_v1 = vpop.f32.mrf.mxu0  ;;  %v11010_v42 = vpop.eup %11009  ;;  %v1655_v61 = vmul.f32 %v11008_v57, %v19845_v55  ;;  %v1629_v57 = vmul.f32 %v16083_v21, %v19806_v50 }
 0x431   : > { %6372 = vmatpush1.msra.mxu1 %v1663_v29  ;;  %5652 = vmatprep.mubr.f32.mxu0 %v19585_v28  ;;  %v16165_v58 = vpop.f32.mrf.mxu1  ;;  %v11012_v19 = vpop.eup %11011  ;;  %v1648_v41 = vmul.f32 %v11010_v42, %v15946_v31  ;;  %v16192_v31 = vld [vmem:[%s18921_s8 + $0x10] sm:$0xff] }
 0x432   : > { %5909 = vmatprep.mubr.f32.mxu1 %v19585_v28  ;;  %6116 = vmatprep.subr.mxu0 %v1654_v5  ;;  %v16169_v22 = vpop.f32.mrf.mxu0  ;;  %v11014_v62 = vpop.eup %11013  ;;  %v1647_v55 = vmul.f32 %v11012_v19, %v19848_v33 }
 0x433   : > { %6373 = vmatprep.subr.mxu1 %v1656_v14  ;;  %9609 = vmatmul.mubr.msk.f32.gmra.mxu0 %vm4361_vm2, %v16159_v54  ;;  %v16176_v53 = vpop.f32.mrf.mxu1  ;;  %v11016_v24 = vpop.eup %11015  ;;  %v1638_v2 = vmul.f32 %v11014_v62, %v15964_v60 }
 0x434   : > { %9641 = vmatmul.mubr.msk.f32.gmra.mxu1 %vm4361_vm2, %v16159_v54  ;;  %6117 = vmatpush1.msra.mxu0 %v1653_v13  ;;  %v16183_v39 = vpop.f32.mrf.mxu0  ;;  %v11018_v45 = vpop.eup %11017  ;;  %v1640_v26 = vmul.f32 %v11016_v24, %v15973_v43 }
 0x435   : > { %6374 = vmatpush1.msra.mxu1 %v1655_v61  ;;  %6118 = vmatprep.subr.mxu0 %v1646_v48  ;;  %v16186_v32 = vpop.f32.mrf.mxu1  ;;  %v11020_v3 = vpop.eup %11019  ;;  %v1637_v60 = vmul.f32 %v11018_v45, %v19814_v27  ;;  %v1613_v48 = vmul.f32 %v16070_v20, %v15747_v38 }
 0x436   : > { %6375 = vmatprep.subr.mxu1 %v1648_v41  ;;  %6119 = vmatpush1.msra.mxu0 %v1645_v56  ;;  %v16194_v44 = vpop.f32.mrf.mxu0  ;;  %v11022_v35 = vpop.eup %11021  ;;  %v1639_v29 = vmul.f32 %v11020_v3, %v19816_v63  ;;  %v16293_v41 = vld [vmem:[%s18921_s8 + $0x38] sm:$0xff]  ;;  %v16308_v3 = vld [vmem:[%s18921_s8 + $0x40] sm:$0xff] }
 0x437   : > { %6376 = vmatpush1.msra.mxu1 %v1647_v55  ;;  %5658 = vmatprep.mubr.f32.mxu0 %v19585_v28  ;;  %v16198_v33 = vpop.f32.mrf.mxu1  ;;  %v11024_v46 = vpop.eup %11023  ;;  %v1632_v27 = vmul.f32 %v11022_v35, %v15830_v40  ;;  %v16223_v40 = vld [vmem:[%s18921_s8 + $0x18] sm:$0xff] }
 0x438   : > { %19878 = vst [vmem:[#allocation138_spill] sm:$0xff] %v16198_v33  ;;  %5915 = vmatprep.mubr.f32.mxu1 %v19585_v28  ;;  %6120 = vmatprep.subr.mxu0 %v1638_v2  ;;  %v16202_v9 = vpop.f32.mrf.mxu0  ;;  %v11026_v47 = vpop.eup %11025  ;;  %v1631_v0 = vmul.f32 %v11024_v46, %v19808_v8 }
 0x439   : > { %19879 = vst [vmem:[#allocation170_spill] sm:$0xff] %v16202_v9  ;;  %6377 = vmatprep.subr.mxu1 %v1640_v26  ;;  %9610 = vmatmul.mubr.msk.f32.gmra.mxu0 %vm4361_vm2, %v16192_v31  ;;  %v11028_v43 = vpop.eup %11027  ;;  %v16217_v63 = vpop.f32.mrf.mxu1  ;;  %v1622_v14 = vmul.f32 %v11026_v47, %v15796_v11  ;;  %v1614_v11 = vmul.f32 %v16076_v25, %v15762_v12  ;;  %v16247_v12 = vld [vmem:[%s18921_s8 + $0x20] sm:$0xff]  ;;  %v16278_v25 = vld [vmem:[%s18921_s8 + $0x30] sm:$0xff]  ;;  %v16323_v26 = vld [vmem:[%s18921_s8 + $0x48] sm:$0xff] }
 0x43a   : > { %9642 = vmatmul.mubr.msk.f32.gmra.mxu1 %vm4361_vm2, %v16192_v31  ;;  %6121 = vmatpush1.msra.mxu0 %v1637_v60  ;;  %v16214_v5 = vpop.f32.mrf.mxu0  ;;  %v11030_v42 = vpop.eup %11029  ;;  %19881 = vst [vmem:[#allocation136_spill] sm:$0xff] %v16217_v63  ;;  %v1624_v21 = vmul.f32 %v11028_v43, %v15803_v16  ;;  %v16338_v47 = vld [vmem:[%s18921_s8 + $0x50] sm:$0xff] }
 0x43b   : > { %19880 = vst [vmem:[#allocation117_spill] sm:$0xff] %v16214_v5  ;;  %6378 = vmatpush1.msra.mxu1 %v1639_v29  ;;  %6122 = vmatprep.subr.mxu0 %v1630_v59  ;;  %v11032_v51 = vpop.eup %11031  ;;  %v1621_v13 = vmul.f32 %v11030_v42, %v15779_v37  ;;  %v16236_v16 = vpop.f32.mrf.mxu1 }
 0x43c   : > { %6379 = vmatprep.subr.mxu1 %v1632_v27  ;;  %6123 = vmatpush1.msra.mxu0 %v1629_v57  ;;  %v11034_v50 = vpop.eup %11033  ;;  %v16227_v8 = vpop.f32.mrf.mxu0  ;;  %v1623_v62 = vmul.f32 %v11032_v51, %v15788_v36  ;;  %19883 = vst [vmem:[#allocation152_spill] sm:$0xff] %v16236_v16  ;;  %v16357_v27 = vld [vmem:[%s18921_s8 + $0x58] sm:$0xff] }
 0x43d   : > { %6380 = vmatpush1.msra.mxu1 %v1631_v0  ;;  %5664 = vmatprep.mubr.f32.mxu0 %v19585_v28  ;;  %19882 = vst [vmem:[#allocation155_spill] sm:$0xff] %v16227_v8  ;;  %v11036_v19 = vpop.eup %11035  ;;  %v1616_v61 = vmul.f32 %v11034_v50, %v15768_v49  ;;  %v16252_v38 = vpop.f32.mrf.mxu1  ;;  %v16376_v50 = vld [vmem:[%s18921_s8 + $0x60] sm:$0xff] }
 0x43e   : > { %5921 = vmatprep.mubr.f32.mxu1 %v19585_v28  ;;  %6124 = vmatprep.subr.mxu0 %v1622_v14  ;;  %v1615_v37 = vmul.f32 %v11036_v19, %v15755_v6  ;;  %v16249_v36 = vpop.f32.mrf.mxu0  ;;  %19885 = vst [vmem:[#allocation120_spill] sm:$0xff] %v16252_v38  ;;  %v16263_v6 = vld [vmem:[%s18921_s8 + $0x28] sm:$0xff]  ;;  %v20055_v38 = vld [vmem:[#allocation160_spill] sm:$0xff] }
 0x43f   : > { %6381 = vmatprep.subr.mxu1 %v1624_v21  ;;  %9611 = vmatmul.mubr.msk.f32.gmra.mxu0 %vm4361_vm2, %v16223_v40  ;;  %19884 = vst [vmem:[#allocation106_spill] sm:$0xff] %v16249_v36  ;;  %v16268_v20 = vpop.f32.mrf.mxu1 }
 0x440   : > { %9643 = vmatmul.mubr.msk.f32.gmra.mxu1 %vm4361_vm2, %v16223_v40  ;;  %6125 = vmatpush1.msra.mxu0 %v1621_v13  ;;  %v16265_v49 = vpop.f32.mrf.mxu0  ;;  %19887 = vst [vmem:[#allocation110_spill] sm:$0xff] %v16268_v20 }
 0x441   : > { %6382 = vmatpush1.msra.mxu1 %v1623_v62  ;;  %6126 = vmatprep.subr.mxu0 %v1614_v11  ;;  %19886 = vst [vmem:[#allocation132_spill] sm:$0xff] %v16265_v49  ;;  %v16283_v56 = vpop.f32.mrf.mxu1  ;;  %v16395_v62 = vld [vmem:[%s18921_s8 + $0x68] sm:$0xff] }
 0x442   : > { %6383 = vmatprep.subr.mxu1 %v1616_v61  ;;  %6127 = vmatpush1.msra.mxu0 %v1613_v48  ;;  %v16280_v24 = vpop.f32.mrf.mxu0  ;;  %19889 = vst [vmem:[#allocation10_spill] sm:$0xff] %v16283_v56 }
 0x443   : > { %6384 = vmatpush1.msra.mxu1 %v1615_v37  ;;  %5670 = vmatprep.mubr.f32.mxu0 %v19585_v28  ;;  %19888 = vst [vmem:[#allocation103_spill] sm:$0xff] %v16280_v24  ;;  %v16298_v55 = vpop.f32.mrf.mxu1 }
 0x444   : > { %5927 = vmatprep.mubr.f32.mxu1 %v19585_v28  ;;  %9612 = vmatmul.mubr.msk.f32.gmra.mxu0 %vm4361_vm2, %v16247_v12  ;;  %v16295_v45 = vpop.f32.mrf.mxu0  ;;  %19891 = vst [vmem:[#allocation14_spill] sm:$0xff] %v16298_v55 }
 0x445   : > { %9644 = vmatmul.mubr.msk.f32.gmra.mxu1 %vm4361_vm2, %v16247_v12  ;;  %5676 = vmatprep.mubr.f32.mxu0 %v19585_v28  ;;  %19890 = vst [vmem:[#allocation173_spill] sm:$0xff] %v16295_v45  ;;  %v16313_v35 = vpop.f32.mrf.mxu1 }
 0x446   : > { %5933 = vmatprep.mubr.f32.mxu1 %v19585_v28  ;;  %v16310_v2 = vpop.f32.mrf.mxu0  ;;  %19893 = vst [vmem:[#allocation101_spill] sm:$0xff] %v16313_v35 }
 0x447   : > { %19892 = vst [vmem:[#allocation165_spill] sm:$0xff] %v16310_v2  ;;  %v16328_v60 = vpop.f32.mrf.mxu1 }
 0x448   : > { %9613 = vmatmul.mubr.msk.f32.gmra.mxu0 %vm4361_vm2, %v16263_v6  ;;  %v16325_v46 = vpop.f32.mrf.mxu0  ;;  %19895 = vst [vmem:[#allocation143_spill] sm:$0xff] %v16328_v60 }
 0x449   : > { %9645 = vmatmul.mubr.msk.f32.gmra.mxu1 %vm4361_vm2, %v16263_v6  ;;  %5682 = vmatprep.mubr.f32.mxu0 %v19585_v28  ;;  %19894 = vst [vmem:[#allocation139_spill] sm:$0xff] %v16325_v46  ;;  %v16340_v59 = vpop.f32.mrf.mxu1 }
 0x44a   : > { %5939 = vmatprep.mubr.f32.mxu1 %v19585_v28  ;;  %19896 = vst [vmem:[#allocation5_spill] sm:$0xff] %v16340_v59 }
 0x44c   : > { %9614 = vmatmul.mubr.msk.f32.gmra.mxu0 %vm4361_vm2, %v16278_v25 }
 0x44d   : > { %9646 = vmatmul.mubr.msk.f32.gmra.mxu1 %vm4361_vm2, %v16278_v25  ;;  %5688 = vmatprep.mubr.f32.mxu0 %v19585_v28 }
 0x44e   : > { %5945 = vmatprep.mubr.f32.mxu1 %v19585_v28 }
 0x450   : > { %9615 = vmatmul.mubr.msk.f32.gmra.mxu0 %vm4361_vm2, %v16293_v41 }
 0x451   : > { %9647 = vmatmul.mubr.msk.f32.gmra.mxu1 %vm4361_vm2, %v16293_v41  ;;  %5694 = vmatprep.mubr.f32.mxu0 %v19585_v28 }
 0x452   : > { %5951 = vmatprep.mubr.f32.mxu1 %v19585_v28 }
 0x454   : > { %9616 = vmatmul.mubr.msk.f32.gmra.mxu0 %vm4361_vm2, %v16308_v3 }
 0x455   : > { %9648 = vmatmul.mubr.msk.f32.gmra.mxu1 %vm4361_vm2, %v16308_v3  ;;  %5700 = vmatprep.mubr.f32.mxu0 %v19585_v28 }
 0x456   : > { %5957 = vmatprep.mubr.f32.mxu1 %v19585_v28 }
 0x458   : > { %9617 = vmatmul.mubr.msk.f32.gmra.mxu0 %vm4361_vm2, %v16323_v26 }
 0x459   : > { %9649 = vmatmul.mubr.msk.f32.gmra.mxu1 %vm4361_vm2, %v16323_v26  ;;  %5706 = vmatprep.mubr.f32.mxu0 %v19585_v28  ;;  %v16342_v29 = vpop.f32.mrf.mxu0 }
 0x45a   : > { %19897 = vst [vmem:[#allocation154_spill] sm:$0xff] %v16342_v29  ;;  %5963 = vmatprep.mubr.f32.mxu1 %v19585_v28  ;;  %v16345_v43 = vpop.f32.mrf.mxu1 }
 0x45b   : > { %19898 = vst [vmem:[#allocation118_spill] sm:$0xff] %v16345_v43  ;;  %v16347_v57 = vpop.f32.mrf.mxu0 }
 0x45c   : > { %19899 = vst [vmem:[#allocation145_spill] sm:$0xff] %v16347_v57  ;;  %9618 = vmatmul.mubr.msk.f32.gmra.mxu0 %vm4361_vm2, %v16338_v47  ;;  %v16359_v42 = vpop.f32.mrf.mxu1 }
 0x45d   : > { %9650 = vmatmul.mubr.msk.f32.gmra.mxu1 %vm4361_vm2, %v16338_v47  ;;  %5712 = vmatprep.mubr.f32.mxu0 %v19585_v28  ;;  %19900 = vst [vmem:[#allocation129_spill] sm:$0xff] %v16359_v42  ;;  %v16361_v0 = vpop.f32.mrf.mxu0 }
 0x45e   : > { %19901 = vst [vmem:[#allocation130_spill] sm:$0xff] %v16361_v0  ;;  %5969 = vmatprep.mubr.f32.mxu1 %v19585_v28  ;;  %v16364_v51 = vpop.f32.mrf.mxu1 }
 0x45f   : > { %19902 = vst [vmem:[#allocation128_spill] sm:$0xff] %v16364_v51  ;;  %v16366_v14 = vpop.f32.mrf.mxu0 }
 0x460   : > { %19903 = vst [vmem:[#allocation168_spill] sm:$0xff] %v16366_v14  ;;  %9619 = vmatmul.mubr.msk.f32.gmra.mxu0 %vm4361_vm2, %v16357_v27  ;;  %v16378_v21 = vpop.f32.mrf.mxu1 }
 0x461   : > { %9651 = vmatmul.mubr.msk.f32.gmra.mxu1 %vm4361_vm2, %v16357_v27  ;;  %5718 = vmatprep.mubr.f32.mxu0 %v19585_v28  ;;  %19904 = vst [vmem:[#allocation135_spill] sm:$0xff] %v16378_v21  ;;  %v16380_v19 = vpop.f32.mrf.mxu0 }
 0x462   : > { %19905 = vst [vmem:[#allocation112_spill] sm:$0xff] %v16380_v19  ;;  %5975 = vmatprep.mubr.f32.mxu1 %v19585_v28  ;;  %v16383_v13 = vpop.f32.mrf.mxu1 }
 0x463   : > { %19906 = vst [vmem:[#allocation122_spill] sm:$0xff] %v16383_v13  ;;  %v16385_v11 = vpop.f32.mrf.mxu0  ;;  %v16431_v13 = vld [vmem:[%s18921_s8 + $0x78] sm:$0xff] }
 0x464   : > { %19907 = vst [vmem:[#allocation3_spill] sm:$0xff] %v16385_v11  ;;  %9620 = vmatmul.mubr.msk.f32.gmra.mxu0 %vm4361_vm2, %v16376_v50  ;;  %v16397_v48 = vpop.f32.mrf.mxu1 }
 0x465   : > { %9652 = vmatmul.mubr.msk.f32.gmra.mxu1 %vm4361_vm2, %v16376_v50  ;;  %5724 = vmatprep.mubr.f32.mxu0 %v19585_v28  ;;  %19908 = vst [vmem:[#allocation4_spill] sm:$0xff] %v16397_v48  ;;  %v16399_v61 = vpop.f32.mrf.mxu0  ;;  %v16414_v48 = vld [vmem:[%s18921_s8 + $0x70] sm:$0xff] }
 0x466   : > { %19909 = vst [vmem:[#allocation124_spill] sm:$0xff] %v16399_v61  ;;  %5981 = vmatprep.mubr.f32.mxu1 %v19585_v28 }
 0x467   : > { %v16402_v37 = vpop.f32.mrf.mxu1  ;;  %v16404_v11 = vpop.f32.mrf.mxu0 }
 0x468   : > { %19910 = vst [vmem:[#allocation163_spill] sm:$0xff] %v16402_v37  ;;  %19911 = vst [vmem:[#allocation6_spill] sm:$0xff] %v16404_v11  ;;  %9621 = vmatmul.mubr.msk.f32.gmra.mxu0 %vm4361_vm2, %v16395_v62 }
 0x469   : > { %9653 = vmatmul.mubr.msk.f32.gmra.mxu1 %vm4361_vm2, %v16395_v62  ;;  %5730 = vmatprep.mubr.f32.mxu0 %v19585_v28  ;;  %v16416_v61 = vpop.f32.mrf.mxu1 }
 0x46a   : > { %19912 = vst [vmem:[#allocation2_spill] sm:$0xff] %v16416_v61  ;;  %5987 = vmatprep.mubr.f32.mxu1 %v19585_v28 }
 0x46b   : > { %v16419_v37 = vpop.f32.mrf.mxu0 }
 0x46c   : > { %19913 = vst [vmem:[#allocation7_spill] sm:$0xff] %v16419_v37  ;;  %9622 = vmatmul.mubr.msk.f32.gmra.mxu0 %vm4361_vm2, %v16414_v48  ;;  %v16423_v11 = vpop.f32.mrf.mxu1 }
 0x46d   : > { %19914 = vst [vmem:[#allocation109_spill] sm:$0xff] %v16423_v11  ;;  %9654 = vmatmul.mubr.msk.f32.gmra.mxu1 %vm4361_vm2, %v16414_v48  ;;  %5736 = vmatprep.mubr.f32.mxu0 %v19585_v28  ;;  %v16433_v61 = vpop.f32.mrf.mxu0  ;;  %v16446_v11 = vld [vmem:[%s18921_s8 + $0x80] sm:$0xff] }
 0x46e   : > { %19915 = vst [vmem:[#allocation9_spill] sm:$0xff] %v16433_v61  ;;  %5993 = vmatprep.mubr.f32.mxu1 %v19585_v28  ;;  %v16436_v37 = vpop.f32.mrf.mxu1 }
 0x46f   : > { %19916 = vst [vmem:[#allocation172_spill] sm:$0xff] %v16436_v37 }
 0x470   : > { %9623 = vmatmul.mubr.msk.f32.gmra.mxu0 %vm4361_vm2, %v16431_v13 }
 0x471   : > { %9655 = vmatmul.mubr.msk.f32.gmra.mxu1 %vm4361_vm2, %v16431_v13  ;;  %5742 = vmatprep.mubr.f32.mxu0 %v19585_v28  ;;  %v16448_v19 = vpop.f32.mrf.mxu0 }
 0x472   : > { %19917 = vst [vmem:[#allocation8_spill] sm:$0xff] %v16448_v19  ;;  %5999 = vmatprep.mubr.f32.mxu1 %v19585_v28  ;;  %v16451_v61 = vpop.f32.mrf.mxu1  ;;  %v16465_v19 = vld [vmem:[%s18921_s8 + $0x88] sm:$0xff] }
 0x473   : > { %19918 = vst [vmem:[#allocation11_spill] sm:$0xff] %v16451_v61  ;;  %v16453_v37 = vpop.f32.mrf.mxu0 }
 0x474   : > { %19919 = vst [vmem:[#allocation174_spill] sm:$0xff] %v16453_v37  ;;  %9624 = vmatmul.mubr.msk.f32.gmra.mxu0 %vm4361_vm2, %v16446_v11  ;;  %v16457_v21 = vpop.f32.mrf.mxu1 }
 0x475   : > { %19920 = vst [vmem:[#allocation127_spill] sm:$0xff] %v16457_v21  ;;  %9656 = vmatmul.mubr.msk.f32.gmra.mxu1 %vm4361_vm2, %v16446_v11  ;;  %5748 = vmatprep.mubr.f32.mxu0 %v19585_v28  ;;  %v16480_v21 = vld [vmem:[%s18921_s8 + $0x90] sm:$0xff] }
 0x476   : > { %6005 = vmatprep.mubr.f32.mxu1 %v19585_v28 }
 0x477   : > { %v16468_v61 = vpop.f32.mrf.mxu0 }
 0x478   : > { %19921 = vst [vmem:[#allocation121_spill] sm:$0xff] %v16468_v61  ;;  %9625 = vmatmul.mubr.msk.f32.gmra.mxu0 %vm4361_vm2, %v16465_v19  ;;  %v16472_v37 = vpop.f32.mrf.mxu1 }
 0x479   : > { %19922 = vst [vmem:[#allocation113_spill] sm:$0xff] %v16472_v37  ;;  %9657 = vmatmul.mubr.msk.f32.gmra.mxu1 %vm4361_vm2, %v16465_v19  ;;  %5754 = vmatprep.mubr.f32.mxu0 %v19585_v28  ;;  %v16482_v14 = vpop.f32.mrf.mxu0  ;;  %v16495_v37 = vld [vmem:[%s18921_s8 + $0x98] sm:$0xff] }
 0x47a   : > { %19923 = vst [vmem:[#allocation102_spill] sm:$0xff] %v16482_v14  ;;  %6011 = vmatprep.mubr.f32.mxu1 %v19585_v28  ;;  %v16485_v61 = vpop.f32.mrf.mxu1 }
 0x47b   : > { %19924 = vst [vmem:[#allocation140_spill] sm:$0xff] %v16485_v61 }
 0x47c   : > { %9626 = vmatmul.mubr.msk.f32.gmra.mxu0 %vm4361_vm2, %v16480_v21 }
 0x47d   : > { %9658 = vmatmul.mubr.msk.f32.gmra.mxu1 %vm4361_vm2, %v16480_v21  ;;  %5760 = vmatprep.mubr.f32.mxu0 %v19585_v28  ;;  %v16497_v51 = vpop.f32.mrf.mxu0 }
 0x47e   : > { %19925 = vst [vmem:[#allocation100_spill] sm:$0xff] %v16497_v51  ;;  %6017 = vmatprep.mubr.f32.mxu1 %v19585_v28  ;;  %v16500_v14 = vpop.f32.mrf.mxu1  ;;  %v16514_v51 = vld [vmem:[%s18921_s8 + $0xa0] sm:$0xff] }
 0x47f   : > { %19926 = vst [vmem:[#allocation131_spill] sm:$0xff] %v16500_v14  ;;  %v16502_v61 = vpop.f32.mrf.mxu0 }
 0x480   : > { %19927 = vst [vmem:[#allocation133_spill] sm:$0xff] %v16502_v61  ;;  %9627 = vmatmul.mubr.msk.f32.gmra.mxu0 %vm4361_vm2, %v16495_v37  ;;  %v16506_v0 = vpop.f32.mrf.mxu1 }
 0x481   : > { %19928 = vst [vmem:[#allocation13_spill] sm:$0xff] %v16506_v0  ;;  %9659 = vmatmul.mubr.msk.f32.gmra.mxu1 %vm4361_vm2, %v16495_v37  ;;  %5766 = vmatprep.mubr.f32.mxu0 %v19585_v28  ;;  %v16516_v42 = vpop.f32.mrf.mxu0 }
 0x482   : > { %19929 = vst [vmem:[#allocation94_spill] sm:$0xff] %v16516_v42  ;;  %6023 = vmatprep.mubr.f32.mxu1 %v19585_v28  ;;  %v16519_v61 = vpop.f32.mrf.mxu1  ;;  %v16533_v42 = vld [vmem:[%s18921_s8 + $0xa8] sm:$0xff] }
 0x483   : > { %19930 = vst [vmem:[#allocation95_spill] sm:$0xff] %v16519_v61  ;;  %v16521_v14 = vpop.f32.mrf.mxu0 }
 0x484   : > { %19931 = vst [vmem:[#allocation96_spill] sm:$0xff] %v16521_v14  ;;  %9628 = vmatmul.mubr.msk.f32.gmra.mxu0 %vm4361_vm2, %v16514_v51  ;;  %v16525_v0 = vpop.f32.mrf.mxu1 }
 0x485   : > { %19932 = vst [vmem:[#allocation116_spill] sm:$0xff] %v16525_v0  ;;  %9660 = vmatmul.mubr.msk.f32.gmra.mxu1 %vm4361_vm2, %v16514_v51  ;;  %5772 = vmatprep.mubr.f32.mxu0 %v19585_v28  ;;  %v16535_v57 = vpop.f32.mrf.mxu0 }
 0x486   : > { %19933 = vst [vmem:[#allocation98_spill] sm:$0xff] %v16535_v57  ;;  %6029 = vmatprep.mubr.f32.mxu1 %v19585_v28  ;;  %v16538_v14 = vpop.f32.mrf.mxu1  ;;  %v16552_v57 = vld [vmem:[%s18921_s8 + $0xb0] sm:$0xff] }
 0x487   : > { %19934 = vst [vmem:[#allocation119_spill] sm:$0xff] %v16538_v14  ;;  %v16540_v61 = vpop.f32.mrf.mxu0 }
 0x488   : > { %19935 = vst [vmem:[#allocation123_spill] sm:$0xff] %v16540_v61  ;;  %9629 = vmatmul.mubr.msk.f32.gmra.mxu0 %vm4361_vm2, %v16533_v42  ;;  %v16544_v0 = vpop.f32.mrf.mxu1 }
 0x489   : > { %19936 = vst [vmem:[#allocation97_spill] sm:$0xff] %v16544_v0  ;;  %9661 = vmatmul.mubr.msk.f32.gmra.mxu1 %vm4361_vm2, %v16533_v42  ;;  %5778 = vmatprep.mubr.f32.mxu0 %v19585_v28  ;;  %v16554_v43 = vpop.f32.mrf.mxu0 }
 0x48a   : > { %19937 = vst [vmem:[#allocation56_spill] sm:$0xff] %v16554_v43  ;;  %6035 = vmatprep.mubr.f32.mxu1 %v19585_v28  ;;  %v16557_v61 = vpop.f32.mrf.mxu1  ;;  %v16571_v43 = vld [vmem:[%s18921_s8 + $0xb8] sm:$0xff] }
 0x48b   : > { %19938 = vst [vmem:[#allocation58_spill] sm:$0xff] %v16557_v61  ;;  %v16559_v14 = vpop.f32.mrf.mxu0 }
 0x48c   : > { %19939 = vst [vmem:[#allocation59_spill] sm:$0xff] %v16559_v14  ;;  %9630 = vmatmul.mubr.msk.f32.gmra.mxu0 %vm4361_vm2, %v16552_v57  ;;  %v16563_v0 = vpop.f32.mrf.mxu1 }
 0x48d   : > { %19940 = vst [vmem:[#allocation60_spill] sm:$0xff] %v16563_v0  ;;  %9662 = vmatmul.mubr.msk.f32.gmra.mxu1 %vm4361_vm2, %v16552_v57  ;;  %5784 = vmatprep.mubr.f32.mxu0 %v19585_v28  ;;  %v16573_v29 = vpop.f32.mrf.mxu0 }
 0x48e   : > { %19941 = vst [vmem:[#allocation12_spill] sm:$0xff] %v16573_v29  ;;  %6041 = vmatprep.mubr.f32.mxu1 %v19585_v28  ;;  %v16576_v14 = vpop.f32.mrf.mxu1  ;;  %v16590_v29 = vld [vmem:[%s18921_s8 + $0xc0] sm:$0xff] }
 0x48f   : > { %19942 = vst [vmem:[#allocation61_spill] sm:$0xff] %v16576_v14  ;;  %v16578_v61 = vpop.f32.mrf.mxu0 }
 0x490   : > { %19943 = vst [vmem:[#allocation62_spill] sm:$0xff] %v16578_v61  ;;  %9631 = vmatmul.mubr.msk.f32.gmra.mxu0 %vm4361_vm2, %v16571_v43  ;;  %v16582_v0 = vpop.f32.mrf.mxu1 }
 0x491   : > { %19944 = vst [vmem:[#allocation65_spill] sm:$0xff] %v16582_v0  ;;  %9663 = vmatmul.mubr.msk.f32.gmra.mxu1 %vm4361_vm2, %v16571_v43  ;;  %5790 = vmatprep.mubr.f32.mxu0 %v19585_v28  ;;  %v16592_v59 = vpop.f32.mrf.mxu0 }
 0x492   : > { %19945 = vst [vmem:[#allocation66_spill] sm:$0xff] %v16592_v59  ;;  %6047 = vmatprep.mubr.f32.mxu1 %v19585_v28  ;;  %v16595_v61 = vpop.f32.mrf.mxu1  ;;  %v16609_v59 = vld [vmem:[%s18921_s8 + $0xc8] sm:$0xff] }
 0x493   : > { %19946 = vst [vmem:[#allocation68_spill] sm:$0xff] %v16595_v61  ;;  %v16597_v14 = vpop.f32.mrf.mxu0 }
 0x494   : > { %19947 = vst [vmem:[#allocation71_spill] sm:$0xff] %v16597_v14  ;;  %9632 = vmatmul.mubr.msk.f32.gmra.mxu0 %vm4361_vm2, %v16590_v29  ;;  %v16601_v0 = vpop.f32.mrf.mxu1 }
 0x495   : > { %19948 = vst [vmem:[#allocation72_spill] sm:$0xff] %v16601_v0  ;;  %9664 = vmatmul.mubr.msk.f32.gmra.mxu1 %vm4361_vm2, %v16590_v29  ;;  %5796 = vmatprep.mubr.f32.mxu0 %v19585_v28  ;;  %v16611_v46 = vpop.f32.mrf.mxu0 }
 0x496   : > { %19949 = vst [vmem:[#allocation69_spill] sm:$0xff] %v16611_v46  ;;  %6053 = vmatprep.mubr.f32.mxu1 %v19585_v28  ;;  %v16614_v14 = vpop.f32.mrf.mxu1  ;;  %v16628_v46 = vld [vmem:[%s18921_s8 + $0xd0] sm:$0xff] }
 0x497   : > { %19950 = vst [vmem:[#allocation70_spill] sm:$0xff] %v16614_v14  ;;  %v16616_v61 = vpop.f32.mrf.mxu0 }
 0x498   : > { %19951 = vst [vmem:[#allocation64_spill] sm:$0xff] %v16616_v61  ;;  %9633 = vmatmul.mubr.msk.f32.gmra.mxu0 %vm4361_vm2, %v16609_v59  ;;  %v16620_v0 = vpop.f32.mrf.mxu1 }
 0x499   : > { %19952 = vst [vmem:[#allocation80_spill] sm:$0xff] %v16620_v0  ;;  %9665 = vmatmul.mubr.msk.f32.gmra.mxu1 %vm4361_vm2, %v16609_v59  ;;  %5802 = vmatprep.mubr.f32.mxu0 %v19585_v28  ;;  %v16630_v60 = vpop.f32.mrf.mxu0 }
 0x49a   : > { %19953 = vst [vmem:[#allocation74_spill] sm:$0xff] %v16630_v60  ;;  %6059 = vmatprep.mubr.f32.mxu1 %v19585_v28  ;;  %v16633_v61 = vpop.f32.mrf.mxu1  ;;  %v16647_v60 = vld [vmem:[%s18921_s8 + $0xd8] sm:$0xff] }
 0x49b   : > { %19954 = vst [vmem:[#allocation75_spill] sm:$0xff] %v16633_v61  ;;  %v16635_v14 = vpop.f32.mrf.mxu0 }
 0x49c   : > { %19955 = vst [vmem:[#allocation57_spill] sm:$0xff] %v16635_v14  ;;  %9634 = vmatmul.mubr.msk.f32.gmra.mxu0 %vm4361_vm2, %v16628_v46  ;;  %v16639_v0 = vpop.f32.mrf.mxu1 }
 0x49d   : > { %19956 = vst [vmem:[#allocation88_spill] sm:$0xff] %v16639_v0  ;;  %9666 = vmatmul.mubr.msk.f32.gmra.mxu1 %vm4361_vm2, %v16628_v46  ;;  %5808 = vmatprep.mubr.f32.mxu0 %v19585_v28  ;;  %v16649_v2 = vpop.f32.mrf.mxu0 }
 0x49e   : > { %19957 = vst [vmem:[#allocation78_spill] sm:$0xff] %v16649_v2  ;;  %6065 = vmatprep.mubr.f32.mxu1 %v19585_v28  ;;  %v16652_v14 = vpop.f32.mrf.mxu1  ;;  %v16666_v2 = vld [vmem:[%s18921_s8 + $0xe0] sm:$0xff] }
 0x49f   : > { %19958 = vst [vmem:[#allocation90_spill] sm:$0xff] %v16652_v14  ;;  %v16654_v61 = vpop.f32.mrf.mxu0 }
 0x4a0   : > { %19959 = vst [vmem:[#allocation91_spill] sm:$0xff] %v16654_v61  ;;  %9635 = vmatmul.mubr.msk.f32.gmra.mxu0 %vm4361_vm2, %v16647_v60  ;;  %v16658_v0 = vpop.f32.mrf.mxu1 }
 0x4a1   : > { %19960 = vst [vmem:[#allocation86_spill] sm:$0xff] %v16658_v0  ;;  %9667 = vmatmul.mubr.msk.f32.gmra.mxu1 %vm4361_vm2, %v16647_v60  ;;  %5814 = vmatprep.mubr.f32.mxu0 %v19585_v28  ;;  %v16668_v35 = vpop.f32.mrf.mxu0 }
 0x4a2   : > { %19961 = vst [vmem:[#allocation89_spill] sm:$0xff] %v16668_v35  ;;  %6071 = vmatprep.mubr.f32.mxu1 %v19585_v28  ;;  %v16671_v61 = vpop.f32.mrf.mxu1  ;;  %v16685_v35 = vld [vmem:[%s18921_s8 + $0xe8] sm:$0xff] }
 0x4a3   : > { %19962 = vst [vmem:[#allocation67_spill] sm:$0xff] %v16671_v61  ;;  %v16673_v14 = vpop.f32.mrf.mxu0 }
 0x4a4   : > { %19963 = vst [vmem:[#allocation84_spill] sm:$0xff] %v16673_v14  ;;  %9636 = vmatmul.mubr.msk.f32.gmra.mxu0 %vm4361_vm2, %v16666_v2  ;;  %v16677_v0 = vpop.f32.mrf.mxu1 }
 0x4a5   : > { %19964 = vst [vmem:[#allocation85_spill] sm:$0xff] %v16677_v0  ;;  %9668 = vmatmul.mubr.msk.f32.gmra.mxu1 %vm4361_vm2, %v16666_v2  ;;  %5820 = vmatprep.mubr.f32.mxu0 %v19585_v28  ;;  %v16687_v45 = vpop.f32.mrf.mxu0 }
 0x4a6   : > { %19965 = vst [vmem:[#allocation87_spill] sm:$0xff] %v16687_v45  ;;  %6077 = vmatprep.mubr.f32.mxu1 %v19585_v28  ;;  %v16690_v14 = vpop.f32.mrf.mxu1  ;;  %v16704_v45 = vld [vmem:[%s18921_s8 + $0xf0] sm:$0xff] }
 0x4a7   : > { %19966 = vst [vmem:[#allocation81_spill] sm:$0xff] %v16690_v14  ;;  %v16692_v61 = vpop.f32.mrf.mxu0 }
 0x4a8   : > { %19967 = vst [vmem:[#allocation73_spill] sm:$0xff] %v16692_v61  ;;  %9637 = vmatmul.mubr.msk.f32.gmra.mxu0 %vm4361_vm2, %v16685_v35  ;;  %v16696_v0 = vpop.f32.mrf.mxu1 }
 0x4a9   : > { %19968 = vst [vmem:[#allocation76_spill] sm:$0xff] %v16696_v0  ;;  %9669 = vmatmul.mubr.msk.f32.gmra.mxu1 %vm4361_vm2, %v16685_v35  ;;  %5826 = vmatprep.mubr.f32.mxu0 %v19585_v28  ;;  %v16706_v55 = vpop.f32.mrf.mxu0 }
 0x4aa   : > { %19969 = vst [vmem:[#allocation82_spill] sm:$0xff] %v16706_v55  ;;  %6083 = vmatprep.mubr.f32.mxu1 %v19585_v28  ;;  %v16709_v61 = vpop.f32.mrf.mxu1  ;;  %v4328_v55 = vld [vmem:[%s18921_s8 + $0xf8] sm:$0xff] }
 0x4ab   : > { %19970 = vst [vmem:[#allocation77_spill] sm:$0xff] %v16709_v61  ;;  %v16711_v14 = vpop.f32.mrf.mxu0 }
 0x4ac   : > { %19971 = vst [vmem:[#allocation83_spill] sm:$0xff] %v16711_v14  ;;  %9638 = vmatmul.mubr.msk.f32.gmra.mxu0 %vm4361_vm2, %v16704_v45  ;;  %v16715_v0 = vpop.f32.mrf.mxu1 }
 0x4ad   : > { %19972 = vst [vmem:[#allocation79_spill] sm:$0xff] %v16715_v0  ;;  %9670 = vmatmul.mubr.msk.f32.gmra.mxu1 %vm4361_vm2, %v16704_v45  ;;  %5832 = vmatprep.mubr.f32.mxu0 %v19585_v28  ;;  %v16723_v24 = vpop.f32.mrf.mxu0 }
 0x4ae   : > { %19973 = vst [vmem:[#allocation178_spill] sm:$0xff] %v16723_v24  ;;  %6089 = vmatprep.mubr.f32.mxu1 %v19585_v28  ;;  %v16726_v61 = vpop.f32.mrf.mxu1 }
 0x4af   : > { %19974 = vst [vmem:[#allocation179_spill] sm:$0xff] %v16726_v61  ;;  %v16728_v14 = vpop.f32.mrf.mxu0  ;;  %v20052_v61 = vld [vmem:[#allocation156_spill] sm:$0xff] }
 0x4b0   : > { %19975 = vst [vmem:[#allocation180_spill] sm:$0xff] %v16728_v14  ;;  %9639 = vmatmul.mubr.msk.f32.gmra.mxu0 %vm4361_vm2, %v4328_v55  ;;  %v16731_v0 = vpop.f32.mrf.mxu1 }
 0x4b1   : > { %19976 = vst [vmem:[#allocation181_spill] sm:$0xff] %v16731_v0  ;;  %9671 = vmatmul.mubr.msk.f32.gmra.mxu1 %vm4361_vm2, %v4328_v55  ;;  %6160 = vmatprep.mubr.f32.mxu0 %v19585_v28  ;;  %v16735_v56 = vpop.f32.mrf.mxu0 }
 0x4b2   : > { %19977 = vst [vmem:[#allocation182_spill] sm:$0xff] %v16735_v56  ;;  %6417 = vmatprep.mubr.f32.mxu1 %v19585_v28  ;;  %v16738_v49 = vpop.f32.mrf.mxu1 }
 0x4b3   : > { %19978 = vst [vmem:[#allocation183_spill] sm:$0xff] %v16738_v49  ;;  %v16740_v24 = vpop.f32.mrf.mxu0 }
 0x4b4   : > { %19979 = vst [vmem:[#allocation184_spill] sm:$0xff] %v16740_v24  ;;  %9672 = vmatmul.mubr.msk.f32.vlgmr.msra.gmra.mxu0 %vm4361_vm2, %v16127_v30  ;;  %v16744_v14 = vpop.f32.mrf.mxu1 }
 0x4b5   : > { %19980 = vst [vmem:[#allocation185_spill] sm:$0xff] %v16744_v14  ;;  %9704 = vmatmul.mubr.msk.f32.vlgmr.msra.gmra.mxu1 %vm4361_vm2, %v16127_v30  ;;  %6166 = vmatprep.mubr.f32.mxu0 %v19585_v28  ;;  %v16749_v55 = vpop.f32.mrf.mxu0 }
 0x4b6   : > { %19981 = vst [vmem:[#allocation186_spill] sm:$0xff] %v16749_v55  ;;  %6423 = vmatprep.mubr.f32.mxu1 %v19585_v28  ;;  %v16752_v56 = vpop.f32.mrf.mxu1 }
 0x4b7   : > { %19982 = vst [vmem:[#allocation187_spill] sm:$0xff] %v16752_v56  ;;  %v16754_v0 = vpop.f32.mrf.mxu0  ;;  %v20051_v56 = vld [vmem:[#allocation105_spill] sm:$0xff] }
 0x4b8   : > { %19983 = vst [vmem:[#allocation188_spill] sm:$0xff] %v16754_v0  ;;  %9673 = vmatmul.mubr.msk.f32.gmra.mxu0 %vm4361_vm2, %v16159_v54  ;;  %v16758_v24 = vpop.f32.mrf.mxu1 }
 0x4b9   : > { %19984 = vst [vmem:[#allocation189_spill] sm:$0xff] %v16758_v24  ;;  %9705 = vmatmul.mubr.msk.f32.gmra.mxu1 %vm4361_vm2, %v16159_v54  ;;  %6172 = vmatprep.mubr.f32.mxu0 %v19585_v28  ;;  %v16763_v30 = vpop.f32.mrf.mxu0 }
 0x4ba   : > { %19985 = vst [vmem:[#allocation190_spill] sm:$0xff] %v16763_v30  ;;  %6429 = vmatprep.mubr.f32.mxu1 %v19585_v28  ;;  %v16766_v55 = vpop.f32.mrf.mxu1 }
 0x4bb   : > { %19986 = vst [vmem:[#allocation191_spill] sm:$0xff] %v16766_v55  ;;  %v16768_v14 = vpop.f32.mrf.mxu0 }
 0x4bc   : > { %19987 = vst [vmem:[#allocation192_spill] sm:$0xff] %v16768_v14  ;;  %9674 = vmatmul.mubr.msk.f32.gmra.mxu0 %vm4361_vm2, %v16192_v31  ;;  %v16772_v0 = vpop.f32.mrf.mxu1 }
 0x4bd   : > { %19988 = vst [vmem:[#allocation193_spill] sm:$0xff] %v16772_v0  ;;  %9706 = vmatmul.mubr.msk.f32.gmra.mxu1 %vm4361_vm2, %v16192_v31  ;;  %6178 = vmatprep.mubr.f32.mxu0 %v19585_v28  ;;  %v16777_v54 = vpop.f32.mrf.mxu0 }
 0x4be   : > { %19989 = vst [vmem:[#allocation194_spill] sm:$0xff] %v16777_v54  ;;  %6435 = vmatprep.mubr.f32.mxu1 %v19585_v28  ;;  %v16780_v30 = vpop.f32.mrf.mxu1 }
 0x4bf   : > { %19990 = vst [vmem:[#allocation195_spill] sm:$0xff] %v16780_v30  ;;  %v16782_v24 = vpop.f32.mrf.mxu0 }
 0x4c0   : > { %19991 = vst [vmem:[#allocation196_spill] sm:$0xff] %v16782_v24  ;;  %9675 = vmatmul.mubr.msk.f32.gmra.mxu0 %vm4361_vm2, %v16223_v40  ;;  %v16786_v14 = vpop.f32.mrf.mxu1 }
 0x4c1   : > { %19992 = vst [vmem:[#allocation197_spill] sm:$0xff] %v16786_v14  ;;  %9707 = vmatmul.mubr.msk.f32.gmra.mxu1 %vm4361_vm2, %v16223_v40  ;;  %6184 = vmatprep.mubr.f32.mxu0 %v19585_v28  ;;  %v16791_v31 = vpop.f32.mrf.mxu0 }
 0x4c2   : > { %19993 = vst [vmem:[#allocation198_spill] sm:$0xff] %v16791_v31  ;;  %6441 = vmatprep.mubr.f32.mxu1 %v19585_v28  ;;  %v16794_v54 = vpop.f32.mrf.mxu1 }
 0x4c3   : > { %19994 = vst [vmem:[#allocation199_spill] sm:$0xff] %v16794_v54  ;;  %v16796_v0 = vpop.f32.mrf.mxu0 }
 0x4c4   : > { %19995 = vst [vmem:[#allocation200_spill] sm:$0xff] %v16796_v0  ;;  %9676 = vmatmul.mubr.msk.f32.gmra.mxu0 %vm4361_vm2, %v16247_v12  ;;  %v16800_v24 = vpop.f32.mrf.mxu1 }
 0x4c5   : > { %19996 = vst [vmem:[#allocation201_spill] sm:$0xff] %v16800_v24  ;;  %9708 = vmatmul.mubr.msk.f32.gmra.mxu1 %vm4361_vm2, %v16247_v12  ;;  %6190 = vmatprep.mubr.f32.mxu0 %v19585_v28  ;;  %v16805_v40 = vpop.f32.mrf.mxu0 }
 0x4c6   : > { %19997 = vst [vmem:[#allocation202_spill] sm:$0xff] %v16805_v40  ;;  %6447 = vmatprep.mubr.f32.mxu1 %v19585_v28  ;;  %v16808_v31 = vpop.f32.mrf.mxu1 }
 0x4c7   : > { %19998 = vst [vmem:[#allocation203_spill] sm:$0xff] %v16808_v31  ;;  %v16810_v14 = vpop.f32.mrf.mxu0 }
 0x4c8   : > { %19999 = vst [vmem:[#allocation204_spill] sm:$0xff] %v16810_v14  ;;  %9677 = vmatmul.mubr.msk.f32.gmra.mxu0 %vm4361_vm2, %v16263_v6  ;;  %v16814_v0 = vpop.f32.mrf.mxu1 }
 0x4c9   : > { %20000 = vst [vmem:[#allocation205_spill] sm:$0xff] %v16814_v0  ;;  %9709 = vmatmul.mubr.msk.f32.gmra.mxu1 %vm4361_vm2, %v16263_v6  ;;  %6196 = vmatprep.mubr.f32.mxu0 %v19585_v28  ;;  %v16819_v12 = vpop.f32.mrf.mxu0 }
 0x4ca   : > { %20001 = vst [vmem:[#allocation206_spill] sm:$0xff] %v16819_v12  ;;  %6453 = vmatprep.mubr.f32.mxu1 %v19585_v28  ;;  %v16822_v40 = vpop.f32.mrf.mxu1 }
 0x4cb   : > { %20002 = vst [vmem:[#allocation207_spill] sm:$0xff] %v16822_v40  ;;  %v16824_v24 = vpop.f32.mrf.mxu0 }
 0x4cc   : > { %20003 = vst [vmem:[#allocation208_spill] sm:$0xff] %v16824_v24  ;;  %9678 = vmatmul.mubr.msk.f32.gmra.mxu0 %vm4361_vm2, %v16278_v25  ;;  %v16828_v14 = vpop.f32.mrf.mxu1 }
 0x4cd   : > { %20004 = vst [vmem:[#allocation209_spill] sm:$0xff] %v16828_v14  ;;  %9710 = vmatmul.mubr.msk.f32.gmra.mxu1 %vm4361_vm2, %v16278_v25  ;;  %6202 = vmatprep.mubr.f32.mxu0 %v19585_v28  ;;  %v16833_v6 = vpop.f32.mrf.mxu0 }
 0x4ce   : > { %20005 = vst [vmem:[#allocation210_spill] sm:$0xff] %v16833_v6  ;;  %6459 = vmatprep.mubr.f32.mxu1 %v19585_v28  ;;  %v16836_v12 = vpop.f32.mrf.mxu1 }
 0x4cf   : > { %20006 = vst [vmem:[#allocation211_spill] sm:$0xff] %v16836_v12  ;;  %v16838_v0 = vpop.f32.mrf.mxu0 }
 0x4d0   : > { %20007 = vst [vmem:[#allocation212_spill] sm:$0xff] %v16838_v0  ;;  %9679 = vmatmul.mubr.msk.f32.gmra.mxu0 %vm4361_vm2, %v16293_v41  ;;  %v16842_v24 = vpop.f32.mrf.mxu1 }
 0x4d1   : > { %20008 = vst [vmem:[#allocation213_spill] sm:$0xff] %v16842_v24  ;;  %9711 = vmatmul.mubr.msk.f32.gmra.mxu1 %vm4361_vm2, %v16293_v41  ;;  %6208 = vmatprep.mubr.f32.mxu0 %v19585_v28  ;;  %v16847_v25 = vpop.f32.mrf.mxu0 }
 0x4d2   : > { %20009 = vst [vmem:[#allocation214_spill] sm:$0xff] %v16847_v25  ;;  %6465 = vmatprep.mubr.f32.mxu1 %v19585_v28  ;;  %v16850_v6 = vpop.f32.mrf.mxu1 }
 0x4d3   : > { %20010 = vst [vmem:[#allocation215_spill] sm:$0xff] %v16850_v6  ;;  %v16852_v14 = vpop.f32.mrf.mxu0 }
 0x4d4   : > { %20011 = vst [vmem:[#allocation216_spill] sm:$0xff] %v16852_v14  ;;  %9680 = vmatmul.mubr.msk.f32.gmra.mxu0 %vm4361_vm2, %v16308_v3  ;;  %v16856_v0 = vpop.f32.mrf.mxu1 }
 0x4d5   : > { %20012 = vst [vmem:[#allocation217_spill] sm:$0xff] %v16856_v0  ;;  %9712 = vmatmul.mubr.msk.f32.gmra.mxu1 %vm4361_vm2, %v16308_v3  ;;  %6214 = vmatprep.mubr.f32.mxu0 %v19585_v28  ;;  %v16861_v41 = vpop.f32.mrf.mxu0 }
 0x4d6   : > { %20013 = vst [vmem:[#allocation218_spill] sm:$0xff] %v16861_v41  ;;  %6471 = vmatprep.mubr.f32.mxu1 %v19585_v28  ;;  %v16864_v25 = vpop.f32.mrf.mxu1 }
 0x4d7   : > { %20014 = vst [vmem:[#allocation219_spill] sm:$0xff] %v16864_v25  ;;  %v16866_v24 = vpop.f32.mrf.mxu0 }
 0x4d8   : > { %20015 = vst [vmem:[#allocation220_spill] sm:$0xff] %v16866_v24  ;;  %9681 = vmatmul.mubr.msk.f32.gmra.mxu0 %vm4361_vm2, %v16323_v26  ;;  %v16870_v14 = vpop.f32.mrf.mxu1 }
 0x4d9   : > { %20016 = vst [vmem:[#allocation221_spill] sm:$0xff] %v16870_v14  ;;  %9713 = vmatmul.mubr.msk.f32.gmra.mxu1 %vm4361_vm2, %v16323_v26  ;;  %6220 = vmatprep.mubr.f32.mxu0 %v19585_v28  ;;  %v16875_v3 = vpop.f32.mrf.mxu0 }
 0x4da   : > { %20017 = vst [vmem:[#allocation222_spill] sm:$0xff] %v16875_v3  ;;  %6477 = vmatprep.mubr.f32.mxu1 %v19585_v28  ;;  %v16878_v41 = vpop.f32.mrf.mxu1 }
 0x4db   : > { %20018 = vst [vmem:[#allocation223_spill] sm:$0xff] %v16878_v41  ;;  %v16880_v0 = vpop.f32.mrf.mxu0  ;;  %v16976_v41 = vpop.permute.xlu1 %6649 }
 0x4dc   : > { %20019 = vst [vmem:[#allocation224_spill] sm:$0xff] %v16880_v0  ;;  %9682 = vmatmul.mubr.msk.f32.gmra.mxu0 %vm4361_vm2, %v16338_v47  ;;  %v16884_v24 = vpop.f32.mrf.mxu1 }
 0x4dd   : > { %20020 = vst [vmem:[#allocation225_spill] sm:$0xff] %v16884_v24  ;;  %9714 = vmatmul.mubr.msk.f32.gmra.mxu1 %vm4361_vm2, %v16338_v47  ;;  %6226 = vmatprep.mubr.f32.mxu0 %v19585_v28  ;;  %v16889_v26 = vpop.f32.mrf.mxu0 }
 0x4de   : > { %20021 = vst [vmem:[#allocation226_spill] sm:$0xff] %v16889_v26  ;;  %6483 = vmatprep.mubr.f32.mxu1 %v19585_v28  ;;  %v16892_v3 = vpop.f32.mrf.mxu1 }
 0x4df   : > { %20022 = vst [vmem:[#allocation227_spill] sm:$0xff] %v16892_v3  ;;  %v16894_v14 = vpop.f32.mrf.mxu0 }
 0x4e0   : > { %20023 = vst [vmem:[#allocation228_spill] sm:$0xff] %v16894_v14  ;;  %9683 = vmatmul.mubr.msk.f32.gmra.mxu0 %vm4361_vm2, %v16357_v27  ;;  %v16898_v0 = vpop.f32.mrf.mxu1 }
 0x4e1   : > { %20024 = vst [vmem:[#allocation229_spill] sm:$0xff] %v16898_v0  ;;  %9715 = vmatmul.mubr.msk.f32.gmra.mxu1 %vm4361_vm2, %v16357_v27  ;;  %6232 = vmatprep.mubr.f32.mxu0 %v19585_v28  ;;  %v16903_v47 = vpop.f32.mrf.mxu0 }
 0x4e2   : > { %20025 = vst [vmem:[#allocation230_spill] sm:$0xff] %v16903_v47  ;;  %6489 = vmatprep.mubr.f32.mxu1 %v19585_v28  ;;  %v16906_v26 = vpop.f32.mrf.mxu1 }
 0x4e3   : > { %20026 = vst [vmem:[#allocation231_spill] sm:$0xff] %v16906_v26  ;;  %v16908_v24 = vpop.f32.mrf.mxu0 }
 0x4e4   : > { %20027 = vst [vmem:[#allocation232_spill] sm:$0xff] %v16908_v24  ;;  %9684 = vmatmul.mubr.msk.f32.gmra.mxu0 %vm4361_vm2, %v16376_v50  ;;  %v16912_v14 = vpop.f32.mrf.mxu1 }
 0x4e5   : > { %20028 = vst [vmem:[#allocation233_spill] sm:$0xff] %v16912_v14  ;;  %9716 = vmatmul.mubr.msk.f32.gmra.mxu1 %vm4361_vm2, %v16376_v50  ;;  %6238 = vmatprep.mubr.f32.mxu0 %v19585_v28  ;;  %v16917_v27 = vpop.f32.mrf.mxu0 }
 0x4e6   : > { %20029 = vst [vmem:[#allocation234_spill] sm:$0xff] %v16917_v27  ;;  %6495 = vmatprep.mubr.f32.mxu1 %v19585_v28  ;;  %v16920_v47 = vpop.f32.mrf.mxu1 }
 0x4e7   : > { %20030 = vst [vmem:[#allocation235_spill] sm:$0xff] %v16920_v47  ;;  %v16922_v0 = vpop.f32.mrf.mxu0  ;;  %v16947_v47 = vpop.permute.xlu0 %6644 }
 0x4e8   : > { %20031 = vst [vmem:[#allocation236_spill] sm:$0xff] %v16922_v0  ;;  %9685 = vmatmul.mubr.msk.f32.gmra.mxu0 %vm4361_vm2, %v16395_v62  ;;  %v16926_v24 = vpop.f32.mrf.mxu1  ;;  %20037 = vst [vmem:[#allocation242_spill] sm:$0xff] %v16947_v47 }
 0x4e9   : > { %20032 = vst [vmem:[#allocation237_spill] sm:$0xff] %v16926_v24  ;;  %9717 = vmatmul.mubr.msk.f32.gmra.mxu1 %vm4361_vm2, %v16395_v62  ;;  %6244 = vmatprep.mubr.f32.mxu0 %v19585_v28  ;;  %v16931_v50 = vpop.f32.mrf.mxu0 }
 0x4ea   : > { %20033 = vst [vmem:[#allocation238_spill] sm:$0xff] %v16931_v50  ;;  %6501 = vmatprep.mubr.f32.mxu1 %v19585_v28  ;;  %v16934_v27 = vpop.f32.mrf.mxu1 }
 0x4eb   : > { %20034 = vst [vmem:[#allocation239_spill] sm:$0xff] %v16934_v27  ;;  %v16936_v14 = vpop.f32.mrf.mxu0 }
 0x4ec   : > { %20035 = vst [vmem:[#allocation240_spill] sm:$0xff] %v16936_v14  ;;  %9686 = vmatmul.mubr.msk.f32.gmra.mxu0 %vm4361_vm2, %v16414_v48  ;;  %v16940_v0 = vpop.f32.mrf.mxu1 }
 0x4ed   : > { %20036 = vst [vmem:[#allocation241_spill] sm:$0xff] %v16940_v0  ;;  %9718 = vmatmul.mubr.msk.f32.gmra.mxu1 %vm4361_vm2, %v16414_v48  ;;  %6250 = vmatprep.mubr.f32.mxu0 %v19585_v28  ;;  %v5648_v62 = vpop.f32.mrf.mxu0 }
 0x4ee   : > { %6507 = vmatprep.mubr.f32.mxu1 %v19585_v28  ;;  %v5649_v50 = vadd.f32 %v5648_v62, %v15657_v52  ;;  %v5905_v24 = vpop.f32.mrf.mxu1  ;;  %v20038_v62 = vld [vmem:[#allocation162_spill] sm:$0xff] }
 0x4ef   : > { %v5906_v14 = vadd.f32 %v5905_v24, %v15660_v34  ;;  %v5650_v27 = vpop.f32.mrf.mxu0  ;;  %20040 = vst [vmem:[#allocation162_spill] sm:$0xff] %v16976_v41 }
 0x4f0   : > { %9687 = vmatmul.mubr.msk.f32.gmra.mxu0 %vm4361_vm2, %v16431_v13  ;;  %v16953_v0 = vadd.f32 %v16947_v47, %v5649_v50  ;;  %v5651_v48 = vadd.f32 %v5650_v27, %v15662_v17  ;;  %v5907_v26 = vpop.f32.mrf.mxu1 }
 0x4f1   : > { %9719 = vmatmul.mubr.msk.f32.gmra.mxu1 %vm4361_vm2, %v16431_v13  ;;  %6256 = vmatprep.mubr.f32.mxu0 %v19585_v28  ;;  %v16960_v52 = vadd.f32 %v16947_v47, %v5906_v14  ;;  %v5908_v34 = vadd.f32 %v5907_v26, %v20038_v62  ;;  %v20039_v26 = vld [vmem:[#allocation147_spill] sm:$0xff] }
 0x4f2   : > { %6513 = vmatprep.mubr.f32.mxu1 %v19585_v28  ;;  %v9736_v24 = vmul.f32 -1.442695, %v16953_v0  ;;  %v16966_v50 = vadd.f32 %v16947_v47, %v5651_v48 }
 0x4f3   : > { %v9738_v17 = vmul.f32 -1.442695, %v16960_v52  ;;  %v16970_v27 = vadd.f32 %v16947_v47, %v5908_v34  ;;  %v5654_v13 = vpop.f32.mrf.mxu0  ;;  %v20041_v34 = vld [vmem:[#allocation171_spill] sm:$0xff] }
 0x4f4   : > { %11037 = vpow2.f32 %v9736_v24  ;;  %9688 = vmatmul.mubr.msk.f32.gmra.mxu0 %vm4361_vm2, %v16446_v11  ;;  %v9737_v14 = vmul.f32 -1.442695, %v16966_v50  ;;  %v5655_v62 = vadd.f32 %v5654_v13, %v20039_v26  ;;  %v5911_v3 = vpop.f32.mrf.mxu1  ;;  %v20042_v13 = vld [vmem:[#allocation134_spill] sm:$0xff] }
 0x4f5   : > { %11039 = vpow2.f32 %v9738_v17  ;;  %9720 = vmatmul.mubr.msk.f32.gmra.mxu1 %vm4361_vm2, %v16446_v11  ;;  %v9739_v48 = vmul.f32 -1.442695, %v16970_v27  ;;  %6262 = vmatprep.mubr.f32.mxu0 %v19585_v28  ;;  %v5912_v24 = vadd.f32 %v5911_v3, %v20041_v34  ;;  %v5656_v25 = vpop.f32.mrf.mxu0  ;;  %v20043_v11 = vld [vmem:[#allocation148_spill] sm:$0xff] }
 0x4f6   : > { %11041 = vpow2.f32 %v9737_v14  ;;  %6519 = vmatprep.mubr.f32.mxu1 %v19585_v28  ;;  %v16985_v6 = vadd.f32 %v16976_v41, %v5655_v62  ;;  %v5657_v26 = vadd.f32 %v5656_v25, %v20042_v13  ;;  %v5913_v12 = vpop.f32.mrf.mxu1  ;;  %v17008_v13 = vpop.permute.xlu0 %6654 }
 0x4f7   : > { %11043 = vpow2.f32 %v9739_v48  ;;  %v16989_v17 = vadd.f32 %v16976_v41, %v5912_v24  ;;  %v5914_v40 = vadd.f32 %v5913_v12, %v20043_v11  ;;  %v20044_v48 = vld [vmem:[#allocation126_spill] sm:$0xff]  ;;  %20045 = vst [vmem:[#allocation147_spill] sm:$0xff] %v17008_v13 }
 0x4f8   : > { %v9744_v31 = vmul.f32 -1.442695, %v16985_v6  ;;  %9689 = vmatmul.mubr.msk.f32.gmra.mxu0 %vm4361_vm2, %v16465_v19  ;;  %v16996_v3 = vadd.f32 %v16976_v41, %v5657_v26 }
 0x4f9   : > { %v9746_v14 = vmul.f32 -1.442695, %v16989_v17  ;;  %9721 = vmatmul.mubr.msk.f32.gmra.mxu1 %vm4361_vm2, %v16465_v19  ;;  %v17002_v25 = vadd.f32 %v16976_v41, %v5914_v40  ;;  %6268 = vmatprep.mubr.f32.mxu0 %v19585_v28  ;;  %v5660_v62 = vpop.f32.mrf.mxu0  ;;  %v20046_v19 = vld [vmem:[#allocation169_spill] sm:$0xff] }
 0x4fa   : > { %11045 = vpow2.f32 %v9744_v31  ;;  %v9745_v12 = vmul.f32 -1.442695, %v16996_v3  ;;  %6525 = vmatprep.mubr.f32.mxu1 %v19585_v28  ;;  %v5661_v34 = vadd.f32 %v5660_v62, %v20044_v48  ;;  %v5917_v24 = vpop.f32.mrf.mxu1  ;;  %v20047_v31 = vld [vmem:[#allocation137_spill] sm:$0xff] }
 0x4fb   : > { %11047 = vpow2.f32 %v9746_v14  ;;  %v9747_v26 = vmul.f32 -1.442695, %v17002_v25  ;;  %v5918_v11 = vadd.f32 %v5917_v24, %v20046_v19  ;;  %v5662_v40 = vpop.f32.mrf.mxu0  ;;  %v20048_v14 = vld [vmem:[#allocation111_spill] sm:$0xff] }
 0x4fc   : > { %11049 = vpow2.f32 %v9745_v12  ;;  %v17013_v54 = vadd.f32 %v17008_v13, %v5661_v34  ;;  %9690 = vmatmul.mubr.msk.f32.gmra.mxu0 %vm4361_vm2, %v16480_v21  ;;  %v5663_v30 = vadd.f32 %v5662_v40, %v20047_v31  ;;  %v5919_v55 = vpop.f32.mrf.mxu1 }
 0x4fd   : > { %11051 = vpow2.f32 %v9747_v26  ;;  %v17019_v62 = vadd.f32 %v17008_v13, %v5918_v11  ;;  %9722 = vmatmul.mubr.msk.f32.gmra.mxu1 %vm4361_vm2, %v16480_v21  ;;  %v5920_v48 = vadd.f32 %v5919_v55, %v20048_v14  ;;  %6274 = vmatprep.mubr.f32.mxu0 %v19585_v28  ;;  %v20049_v11 = vld [vmem:[#allocation144_spill] sm:$0xff] }
 0x4fe   : > { %v9752_v12 = vmul.f32 -1.442695, %v17013_v54  ;;  %v17027_v34 = vadd.f32 %v17008_v13, %v5663_v30  ;;  %6531 = vmatprep.mubr.f32.mxu1 %v19585_v28  ;;  %v17038_v30 = vpop.permute.xlu1 %6659 }
 0x4ff   : > { %v9754_v24 = vmul.f32 -1.442695, %v17019_v62  ;;  %v17032_v26 = vadd.f32 %v17008_v13, %v5920_v48  ;;  %v5666_v19 = vpop.f32.mrf.mxu0  ;;  %20050 = vst [vmem:[#allocation171_spill] sm:$0xff] %v17038_v30 }
 0x500   : > { %11053 = vpow2.f32 %v9752_v12  ;;  %v9753_v21 = vmul.f32 -1.442695, %v17027_v34  ;;  %v5667_v55 = vadd.f32 %v5666_v19, %v20049_v11  ;;  %v5923_v40 = vpop.f32.mrf.mxu1  ;;  %9691 = vmatmul.mubr.msk.f32.gmra.mxu0 %vm4361_vm2, %v16495_v37 }
 0x501   : > { %v11038_v31 = vpop.eup %11037  ;;  %11055 = vpow2.f32 %v9754_v24  ;;  %v9755_v14 = vmul.f32 -1.442695, %v17032_v26  ;;  %v5924_v49 = vadd.f32 %v5923_v40, %v20051_v56  ;;  %9723 = vmatmul.mubr.msk.f32.gmra.mxu1 %vm4361_vm2, %v16495_v37  ;;  %v5668_v48 = vpop.f32.mrf.mxu0  ;;  %6280 = vmatprep.mubr.f32.mxu0 %v19585_v28  ;;  %v20053_v37 = vld [vmem:[#allocation151_spill] sm:$0xff] }
 0x502   : > { %v11040_v12 = vpop.eup %11039  ;;  %v7826_v19 = vadd.f32 1.0, %v11038_v31  ;;  %11057 = vpow2.f32 %v9753_v21  ;;  %v17046_v11 = vadd.f32 %v17038_v30, %v5667_v55  ;;  %v5669_v13 = vadd.f32 %v5668_v48, %v20052_v61  ;;  %v5925_v41 = vpop.f32.mrf.mxu1  ;;  %6537 = vmatprep.mubr.f32.mxu1 %v19585_v28 }
 0x503   : > { %v11042_v24 = vpop.eup %11041  ;;  %v7828_v47 = vadd.f32 1.0, %v11040_v12  ;;  %11059 = vpow2.f32 %v9755_v14  ;;  %v17051_v56 = vadd.f32 %v17038_v30, %v5924_v49  ;;  %v5926_v40 = vadd.f32 %v5925_v41, %v20053_v37  ;;  %v20054_v37 = vld [vmem:[#allocation167_spill] sm:$0xff] }
 0x504   : > { %v11044_v20 = vpop.eup %11043  ;;  %11061 = vrcp.f32 %v7826_v19  ;;  %v7827_v31 = vadd.f32 1.0, %v11042_v24  ;;  %v9760_v21 = vmul.f32 -1.442695, %v17046_v11  ;;  %v5672_v55 = vpop.f32.mrf.mxu0  ;;  %9692 = vmatmul.mubr.msk.f32.gmra.mxu0 %vm4361_vm2, %v16514_v51  ;;  %v17062_v49 = vadd.f32 %v17038_v30, %v5669_v13 }
 0x505   : > { %11063 = vrcp.f32 %v7828_v47  ;;  %v7829_v61 = vadd.f32 1.0, %v11044_v20  ;;  %v9762_v48 = vmul.f32 -1.442695, %v17051_v56  ;;  %v5929_v12 = vpop.f32.mrf.mxu1  ;;  %9724 = vmatmul.mubr.msk.f32.gmra.mxu1 %vm4361_vm2, %v16514_v51  ;;  %6286 = vmatprep.mubr.f32.mxu0 %v19585_v28  ;;  %v17066_v47 = vadd.f32 %v17038_v30, %v5926_v40 }
 0x506   : > { %11065 = vrcp.f32 %v7827_v31  ;;  %v5674_v41 = vpop.f32.mrf.mxu0  ;;  %6543 = vmatprep.mubr.f32.mxu1 %v19585_v28  ;;  %v5673_v51 = vadd.f32 %v5672_v55, %v20054_v37  ;;  %v5930_v8 = vadd.f32 %v5929_v12, %v20055_v38  ;;  %v9761_v55 = vmul.f32 -1.442695, %v17062_v49  ;;  %v17078_v37 = vpop.permute.xlu0 %6664  ;;  %v20058_v12 = vld [vmem:[#allocation159_spill] sm:$0xff] }
 0x507   : > { %v11046_v14 = vpop.eup %11045  ;;  %11067 = vrcp.f32 %v7829_v61  ;;  %v5931_v20 = vpop.f32.mrf.mxu1  ;;  %v20056_v61 = vld [vmem:[#allocation108_spill] sm:$0xff]  ;;  %20057 = vst [vmem:[#allocation134_spill] sm:$0xff] %v17078_v37  ;;  %v9763_v38 = vmul.f32 -1.442695, %v17066_v47 }
 0x508   : > { %v11048_v19 = vpop.eup %11047  ;;  %v7834_v24 = vadd.f32 1.0, %v11046_v14  ;;  %11069 = vpow2.f32 %v9760_v21  ;;  %v5678_v36 = vpop.f32.mrf.mxu0  ;;  %9693 = vmatmul.mubr.msk.f32.gmra.mxu0 %vm4361_vm2, %v16533_v42  ;;  %v5675_v14 = vadd.f32 %v5674_v41, %v20056_v61  ;;  %v17083_v30 = vadd.f32 %v17078_v37, %v5673_v51 }
 0x509   : > { %v11050_v13 = vpop.eup %11049  ;;  %v7836_v31 = vadd.f32 1.0, %v11048_v19  ;;  %11071 = vpow2.f32 %v9762_v48  ;;  %v5935_v16 = vpop.f32.mrf.mxu1  ;;  %9725 = vmatmul.mubr.msk.f32.gmra.mxu1 %vm4361_vm2, %v16533_v42  ;;  %6292 = vmatprep.mubr.f32.mxu0 %v19585_v28  ;;  %v5932_v19 = vadd.f32 %v5931_v20, %v20058_v12 }
 0x50a   : > { %v11052_v40 = vpop.eup %11051  ;;  %11073 = vrcp.f32 %v7834_v24  ;;  %v7835_v21 = vadd.f32 1.0, %v11050_v13  ;;  %6549 = vmatprep.mubr.f32.mxu1 %v19585_v28  ;;  %v5680_v42 = vpop.f32.mrf.mxu0  ;;  %v17088_v13 = vadd.f32 %v17078_v37, %v5930_v8  ;;  %v17094_v51 = vadd.f32 %v17078_v37, %v5675_v14 }
 0x50b   : > { %11075 = vrcp.f32 %v7836_v31  ;;  %v7837_v48 = vadd.f32 1.0, %v11052_v40  ;;  %v5937_v24 = vpop.f32.mrf.mxu1  ;;  %v20059_v40 = vld [vmem:[#allocation114_spill] sm:$0xff]  ;;  %v17099_v8 = vadd.f32 %v17078_v37, %v5932_v19  ;;  %v9768_v14 = vmul.f32 -1.442695, %v17083_v30 }
 0x50c   : > { %11077 = vrcp.f32 %v7835_v21  ;;  %9694 = vmatmul.mubr.msk.f32.gmra.mxu0 %vm4361_vm2, %v16552_v57  ;;  %v5679_v21 = vadd.f32 %v5678_v36, %v20059_v40  ;;  %v5684_v5 = vpop.f32.mrf.mxu0  ;;  %v9770_v19 = vmul.f32 -1.442695, %v17088_v13 }
 0x50d   : > { %v11054_v41 = vpop.eup %11053  ;;  %11079 = vrcp.f32 %v7837_v48  ;;  %9726 = vmatmul.mubr.msk.f32.gmra.mxu1 %vm4361_vm2, %v16552_v57  ;;  %6298 = vmatprep.mubr.f32.mxu0 %v19585_v28  ;;  %v20060_v57 = vld [vmem:[#allocation150_spill] sm:$0xff]  ;;  %v5941_v36 = vpop.f32.mrf.mxu1 }
 0x50e   : > { %v11056_v20 = vpop.eup %11055  ;;  %v7842_v31 = vadd.f32 1.0, %v11054_v41  ;;  %11081 = vpow2.f32 %v9761_v55  ;;  %6555 = vmatprep.mubr.f32.mxu1 %v19585_v28  ;;  %v5936_v12 = vadd.f32 %v5935_v16, %v20060_v57  ;;  %v20061_v41 = vld [vmem:[#allocation177_spill] sm:$0xff]  ;;  %v17113_v16 = vpop.permute.xlu1 %6669  ;;  %v9769_v57 = vmul.f32 -1.442695, %v17094_v51 }
 0x50f   : > { %v11058_v61 = vpop.eup %11057  ;;  %v7844_v48 = vadd.f32 1.0, %v11056_v20  ;;  %11083 = vpow2.f32 %v9763_v38  ;;  %v5681_v9 = vadd.f32 %v5680_v42, %v20061_v41  ;;  %v20062_v20 = vld [vmem:[#allocation158_spill] sm:$0xff]  ;;  %v17123_v41 = vadd.f32 %v17113_v16, %v5679_v21  ;;  %v5943_v33 = vpop.f32.mrf.mxu1 }
 0x510   : > { %v11060_v63 = vpop.eup %11059  ;;  %11085 = vrcp.f32 %v7842_v31  ;;  %v7843_v55 = vadd.f32 1.0, %v11058_v61  ;;  %9695 = vmatmul.mubr.msk.f32.gmra.mxu0 %vm4361_vm2, %v16571_v43  ;;  %v5938_v31 = vadd.f32 %v5937_v24, %v20062_v20  ;;  %v5686_v20 = vpop.f32.mrf.mxu0 }
 0x511   : > { %v11062_v40 = vpop.eup %11061  ;;  %11087 = vrcp.f32 %v7844_v48  ;;  %v7845_v38 = vadd.f32 1.0, %v11060_v63  ;;  %9727 = vmatmul.mubr.msk.f32.gmra.mxu1 %vm4361_vm2, %v16571_v43  ;;  %6304 = vmatprep.mubr.f32.mxu0 %v19585_v28  ;;  %v9771_v43 = vmul.f32 -1.442695, %v17099_v8  ;;  %v17129_v48 = vadd.f32 %v17113_v16, %v5936_v12 }
 0x512   : > { %v11064_v42 = vpop.eup %11063  ;;  %v8594_v61 = vmul.f32 %v11062_v40, %v16953_v0  ;;  %11089 = vrcp.f32 %v7843_v55  ;;  %6561 = vmatprep.mubr.f32.mxu1 %v19585_v28  ;;  %v17134_v21 = vadd.f32 %v17113_v16, %v5681_v9  ;;  %v20063_v40 = vld [vmem:[#allocation146_spill] sm:$0xff] }
 0x513   : > { %v11066_v63 = vpop.eup %11065  ;;  %v8596_v24 = vmul.f32 %v11064_v42, %v16960_v52  ;;  %11091 = vrcp.f32 %v7845_v38  ;;  %v5685_v37 = vadd.f32 %v5684_v5, %v20063_v40  ;;  %v17142_v38 = vadd.f32 %v17113_v16, %v5938_v31  ;;  %v20066_v31 = vld [vmem:[#allocation149_spill] sm:$0xff] }
 0x514   : > { %v11068_v0 = vpop.eup %11067  ;;  %8850 = vst [vmem:[%s17111_s23] sm:$0xff] %v8594_v61  ;;  %v8595_v55 = vmul.f32 %v11066_v63, %v16966_v50  ;;  %11093 = vpow2.f32 %v9768_v14  ;;  %9696 = vmatmul.mubr.msk.f32.gmra.mxu0 %vm4361_vm2, %v16590_v29  ;;  %v20064_v50 = vld [vmem:[#allocation176_spill] sm:$0xff]  ;;  %v9776_v42 = vmul.f32 -1.442695, %v17123_v41  ;;  %v20065_v61 = vld [vmem:[#allocation17_spill] sm:$0xff] }
 0x515   : > { %v11070_v52 = vpop.eup %11069  ;;  %8852 = vst [vmem:[%s17111_s23 + $0x10] sm:$0xff] %v8596_v24  ;;  %v8597_v12 = vmul.f32 %v11068_v0, %v16970_v27  ;;  %11095 = vpow2.f32 %v9770_v19  ;;  %v5942_v14 = vadd.f32 %v5941_v36, %v20064_v50  ;;  %9728 = vmatmul.mubr.msk.f32.gmra.mxu1 %vm4361_vm2, %v16590_v29  ;;  %6310 = vmatprep.mubr.f32.mxu0 %v19585_v28  ;;  %v17152_v19 = vpop.permute.xlu0 %6674  ;;  %v9778_v29 = vmul.f32 -1.442695, %v17129_v48 }
 0x516   : > { %v11072_v9 = vpop.eup %11071  ;;  %8851 = vst [vmem:[%s17111_s23 + $0x8] sm:$0xff] %v8595_v55  ;;  %v7850_v5 = vadd.f32 1.0, %v11070_v52  ;;  %11097 = vpow2.f32 %v9769_v57  ;;  %v5687_v63 = vadd.f32 %v5686_v20, %v20065_v61  ;;  %6567 = vmatprep.mubr.f32.mxu1 %v19585_v28  ;;  %v5944_v24 = vadd.f32 %v5943_v33, %v20066_v31  ;;  %v5690_v0 = vpop.f32.mrf.mxu0 }
 0x517   : > { %v11074_v27 = vpop.eup %11073  ;;  %8853 = vst [vmem:[%s17111_s23 + $0x18] sm:$0xff] %v8597_v12  ;;  %v7852_v36 = vadd.f32 1.0, %v11072_v9  ;;  %11099 = vpow2.f32 %v9771_v43  ;;  %v9777_v20 = vmul.f32 -1.442695, %v17134_v21  ;;  %v17160_v40 = vadd.f32 %v17152_v19, %v5685_v37  ;;  %v5947_v52 = vpop.f32.mrf.mxu1 }
 0x518   : > { %v11076_v55 = vpop.eup %11075  ;;  %v8602_v57 = vmul.f32 %v11074_v27, %v16985_v6  ;;  %11101 = vrcp.f32 %v7850_v5  ;;  %9697 = vmatmul.mubr.msk.f32.gmra.mxu0 %vm4361_vm2, %v16609_v59  ;;  %v9779_v33 = vmul.f32 -1.442695, %v17142_v38  ;;  %v17167_v50 = vadd.f32 %v17152_v19, %v5942_v14  ;;  %v5692_v5 = vpop.f32.mrf.mxu0 }
 0x519   : > { %v11078_v43 = vpop.eup %11077  ;;  %v8604_v12 = vmul.f32 %v11076_v55, %v16989_v17  ;;  %11103 = vrcp.f32 %v7852_v36  ;;  %9729 = vmatmul.mubr.msk.f32.gmra.mxu1 %vm4361_vm2, %v16609_v59  ;;  %6316 = vmatprep.mubr.f32.mxu0 %v19585_v28  ;;  %v17175_v9 = vadd.f32 %v17152_v19, %v5687_v63  ;;  %v17181_v59 = vadd.f32 %v17152_v19, %v5944_v24  ;;  %v5949_v36 = vpop.f32.mrf.mxu1  ;;  %v20068_v24 = vld [vmem:[#allocation161_spill] sm:$0xff] }
 0x51a   : > { %v11080_v6 = vpop.eup %11079  ;;  %8858 = vst [vmem:[%s17111_s23 + $0x40] sm:$0xff] %v8602_v57  ;;  %v8603_v37 = vmul.f32 %v11078_v43, %v16996_v3  ;;  %11105 = vpow2.f32 %v9776_v42  ;;  %6573 = vmatprep.mubr.f32.mxu1 %v19585_v28  ;;  %v9784_v3 = vmul.f32 -1.442695, %v17160_v40  ;;  %v20067_v42 = vld [vmem:[#allocation175_spill] sm:$0xff]  ;;  %v5948_v55 = vadd.f32 %v5947_v52, %v20068_v24 }
 0x51b   : > { %v11082_v17 = vpop.eup %11081  ;;  %8860 = vst [vmem:[%s17111_s23 + $0x50] sm:$0xff] %v8604_v12  ;;  %v8605_v14 = vmul.f32 %v11080_v6, %v17002_v25  ;;  %11107 = vpow2.f32 %v9778_v29  ;;  %v5691_v63 = vadd.f32 %v5690_v0, %v20067_v42  ;;  %v9786_v29 = vmul.f32 -1.442695, %v17167_v50  ;;  %v17197_v12 = vpop.permute.xlu1 %6679 }
 0x51c   : > { %v11084_v61 = vpop.eup %11083  ;;  %8859 = vst [vmem:[%s17111_s23 + $0x48] sm:$0xff] %v8603_v37  ;;  %v7851_v27 = vadd.f32 1.0, %v11082_v17  ;;  %11109 = vpow2.f32 %v9777_v20  ;;  %9698 = vmatmul.mubr.msk.f32.gmra.mxu0 %vm4361_vm2, %v16628_v46  ;;  %v9785_v20 = vmul.f32 -1.442695, %v17175_v9  ;;  %v9787_v52 = vmul.f32 -1.442695, %v17181_v59  ;;  %v5953_v17 = vpop.f32.mrf.mxu1 }
 0x51d   : > { %v11086_v31 = vpop.eup %11085  ;;  %8861 = vst [vmem:[%s17111_s23 + $0x58] sm:$0xff] %v8605_v14  ;;  %v7853_v25 = vadd.f32 1.0, %v11084_v61  ;;  %11111 = vpow2.f32 %v9779_v33  ;;  %9730 = vmatmul.mubr.msk.f32.gmra.mxu1 %vm4361_vm2, %v16628_v46  ;;  %6322 = vmatprep.mubr.f32.mxu0 %v19585_v28  ;;  %v5696_v46 = vpop.f32.mrf.mxu0  ;;  %v17204_v37 = vadd.f32 %v17197_v12, %v5691_v63  ;;  %v17211_v61 = vadd.f32 %v17197_v12, %v5948_v55 }
 0x51e   : > { %v11088_v57 = vpop.eup %11087  ;;  %v8610_v0 = vmul.f32 %v11086_v31, %v17013_v54  ;;  %11113 = vrcp.f32 %v7851_v27  ;;  %6579 = vmatprep.mubr.f32.mxu1 %v19585_v28  ;;  %v20070_v31 = vld [vmem:[#allocation153_spill] sm:$0xff] }
 0x51f   : > { %v11090_v43 = vpop.eup %11089  ;;  %v8612_v33 = vmul.f32 %v11088_v57, %v17019_v62  ;;  %11115 = vrcp.f32 %v7853_v25  ;;  %v5950_v25 = vadd.f32 %v5949_v36, %v20070_v31  ;;  %v9792_v55 = vmul.f32 -1.442695, %v17204_v37  ;;  %v5955_v57 = vpop.f32.mrf.mxu1 }
 0x520   : > { %v11092_v6 = vpop.eup %11091  ;;  %8866 = vst [vmem:[%s17111_s23 + $0x80] sm:$0xff] %v8610_v0  ;;  %v8611_v54 = vmul.f32 %v11090_v43, %v17027_v34  ;;  %11117 = vpow2.f32 %v9784_v3  ;;  %9699 = vmatmul.mubr.msk.f32.gmra.mxu0 %vm4361_vm2, %v16647_v60  ;;  %v20069_v3 = vld [vmem:[#allocation107_spill] sm:$0xff] }
 0x521   : > { %v11094_v14 = vpop.eup %11093  ;;  %8868 = vst [vmem:[%s17111_s23 + $0x90] sm:$0xff] %v8612_v33  ;;  %v8613_v62 = vmul.f32 %v11092_v6, %v17032_v26  ;;  %11119 = vpow2.f32 %v9786_v29  ;;  %9731 = vmatmul.mubr.msk.f32.gmra.mxu1 %vm4361_vm2, %v16647_v60  ;;  %6328 = vmatprep.mubr.f32.mxu0 %v19585_v28  ;;  %v5693_v42 = vadd.f32 %v5692_v5, %v20069_v3  ;;  %v5698_v29 = vpop.f32.mrf.mxu0 }
 0x522   : > { %v11096_v34 = vpop.eup %11095  ;;  %8867 = vst [vmem:[%s17111_s23 + $0x88] sm:$0xff] %v8611_v54  ;;  %v7858_v27 = vadd.f32 1.0, %v11094_v14  ;;  %11121 = vpow2.f32 %v9785_v20  ;;  %6585 = vmatprep.mubr.f32.mxu1 %v19585_v28  ;;  %v9794_v20 = vmul.f32 -1.442695, %v17211_v61  ;;  %v17235_v54 = vadd.f32 %v17197_v12, %v5950_v25  ;;  %v20073_v25 = vld [vmem:[#allocation166_spill] sm:$0xff] }
 0x523   : > { %v11098_v63 = vpop.eup %11097  ;;  %8869 = vst [vmem:[%s17111_s23 + $0x98] sm:$0xff] %v8613_v62  ;;  %v7860_v26 = vadd.f32 1.0, %v11096_v34  ;;  %11123 = vpow2.f32 %v9787_v52  ;;  %v17230_v33 = vadd.f32 %v17197_v12, %v5693_v42 }
 0x524   : > { %v11100_v24 = vpop.eup %11099  ;;  %11125 = vrcp.f32 %v7858_v27  ;;  %v7859_v60 = vadd.f32 1.0, %v11098_v63  ;;  %9700 = vmatmul.mubr.msk.f32.gmra.mxu0 %vm4361_vm2, %v16666_v2  ;;  %v5959_v27 = vpop.f32.mrf.mxu1 }
 0x525   : > { %v11102_v0 = vpop.eup %11101  ;;  %11127 = vrcp.f32 %v7860_v26  ;;  %v7861_v5 = vadd.f32 1.0, %v11100_v24  ;;  %9732 = vmatmul.mubr.msk.f32.gmra.mxu1 %vm4361_vm2, %v16666_v2  ;;  %6334 = vmatprep.mubr.f32.mxu0 %v19585_v28  ;;  %v5702_v2 = vpop.f32.mrf.mxu0  ;;  %v5699_v24 = vadd.f32 %v5698_v29, %v20073_v25 }
 0x526   : > { %v11104_v36 = vpop.eup %11103  ;;  %v8618_v43 = vmul.f32 %v11102_v0, %v17046_v11  ;;  %11129 = vrcp.f32 %v7859_v60  ;;  %6591 = vmatprep.mubr.f32.mxu1 %v19585_v28  ;;  %v20071_v11 = vld [vmem:[#allocation157_spill] sm:$0xff]  ;;  %v5961_v29 = vpop.f32.mrf.mxu1 }
 0x527   : > { %v11106_v52 = vpop.eup %11105  ;;  %v8620_v6 = vmul.f32 %v11104_v36, %v17051_v56  ;;  %11131 = vrcp.f32 %v7861_v5  ;;  %v5697_v34 = vadd.f32 %v5696_v46, %v20071_v11  ;;  %v20072_v56 = vld [vmem:[#allocation164_spill] sm:$0xff]  ;;  %v9793_v46 = vmul.f32 -1.442695, %v17230_v33  ;;  %v20074_v5 = vld [vmem:[#allocation125_spill] sm:$0xff] }
 0x528   : > { %v11108_v14 = vpop.eup %11107  ;;  %8874 = vst [vmem:[%s17111_s23 + $0xc0] sm:$0xff] %v8618_v43  ;;  %v7866_v62 = vadd.f32 1.0, %v11106_v52  ;;  %11133 = vpow2.f32 %v9792_v55  ;;  %9701 = vmatmul.mubr.msk.f32.gmra.mxu0 %vm4361_vm2, %v16685_v35  ;;  %v5954_v63 = vadd.f32 %v5953_v17, %v20072_v56  ;;  %v17249_v55 = vpop.permute.xlu0 %6684  ;;  %v9795_v17 = vmul.f32 -1.442695, %v17235_v54 }
 0x529   : > { %v11110_v3 = vpop.eup %11109  ;;  %8876 = vst [vmem:[%s17111_s23 + $0xd0] sm:$0xff] %v8620_v6  ;;  %v7868_v42 = vadd.f32 1.0, %v11108_v14  ;;  %11135 = vpow2.f32 %v9794_v20  ;;  %9733 = vmatmul.mubr.msk.f32.gmra.mxu1 %vm4361_vm2, %v16685_v35  ;;  %6340 = vmatprep.mubr.f32.mxu0 %v19585_v28  ;;  %v5956_v35 = vadd.f32 %v5955_v57, %v20074_v5  ;;  %v5704_v20 = vpop.f32.mrf.mxu0  ;;  %v17255_v52 = vadd.f32 %v17249_v55, %v5697_v34  ;;  %v20075_v34 = vld [vmem:[#allocation99_spill] sm:$0xff] }
 0x52a   : > { %v11112_v26 = vpop.eup %11111  ;;  %11137 = vrcp.f32 %v7866_v62  ;;  %v7867_v31 = vadd.f32 1.0, %v11110_v3  ;;  %6597 = vmatprep.mubr.f32.mxu1 %v19585_v28  ;;  %v17261_v62 = vadd.f32 %v17249_v55, %v5954_v63  ;;  %v17268_v11 = vadd.f32 %v17249_v55, %v5699_v24  ;;  %v20077_v24 = vld [vmem:[#allocation26_spill] sm:$0xff] }
 0x52b   : > { %v11114_v60 = vpop.eup %11113  ;;  %11139 = vrcp.f32 %v7868_v42  ;;  %v7869_v0 = vadd.f32 1.0, %v11112_v26  ;;  %v5703_v3 = vadd.f32 %v5702_v2, %v20075_v34  ;;  %v17274_v56 = vadd.f32 %v17249_v55, %v5956_v35  ;;  %v5708_v26 = vpop.f32.mrf.mxu0  ;;  %v20078_v35 = vld [vmem:[#allocation27_spill] sm:$0xff] }
 0x52c   : > { %v11116_v36 = vpop.eup %11115  ;;  %v8619_v43 = vmul.f32 %v11114_v60, %v17062_v49  ;;  %11141 = vrcp.f32 %v7867_v31  ;;  %9702 = vmatmul.mubr.msk.f32.gmra.mxu0 %vm4361_vm2, %v16704_v45  ;;  %v9800_v25 = vmul.f32 -1.442695, %v17255_v52  ;;  %v5705_v60 = vadd.f32 %v5704_v20, %v20077_v24  ;;  %v5965_v2 = vpop.f32.mrf.mxu1 }
 0x52d   : > { %v11118_v6 = vpop.eup %11117  ;;  %v8621_v14 = vmul.f32 %v11116_v36, %v17066_v47  ;;  %11143 = vrcp.f32 %v7869_v0  ;;  %9734 = vmatmul.mubr.msk.f32.gmra.mxu1 %vm4361_vm2, %v16704_v45  ;;  %6346 = vmatprep.mubr.f32.mxu0 %v19585_v28  ;;  %v20076_v45 = vld [vmem:[#allocation24_spill] sm:$0xff]  ;;  %v9802_v5 = vmul.f32 -1.442695, %v17261_v62  ;;  %v5962_v36 = vadd.f32 %v5961_v29, %v20078_v35 }
 0x52e   : > { %v11120_v49 = vpop.eup %11119  ;;  %8875 = vst [vmem:[%s17111_s23 + $0xc8] sm:$0xff] %v8619_v43  ;;  %v7874_v57 = vadd.f32 1.0, %v11118_v6  ;;  %11145 = vpow2.f32 %v9793_v46  ;;  %6603 = vmatprep.mubr.f32.mxu1 %v19585_v28  ;;  %v5960_v63 = vadd.f32 %v5959_v27, %v20076_v45  ;;  %v12095_v28 = vld [vmem:[%s18921_s8 + $0xf8] sm:$0xff]  ;;  %v9801_v6 = vmul.f32 -1.442695, %v17268_v11 }
 0x52f   : > { %v11122_v47 = vpop.eup %11121  ;;  %8877 = vst [vmem:[%s17111_s23 + $0xd8] sm:$0xff] %v8621_v14  ;;  %v7876_v42 = vadd.f32 1.0, %v11120_v49  ;;  %11147 = vpow2.f32 %v9795_v17  ;;  %v17283_v17 = vpop.permute.xlu1 %6689  ;;  %v9803_v34 = vmul.f32 -1.442695, %v17274_v56 }
 0x530   : > { %v11124_v31 = vpop.eup %11123  ;;  %11149 = vrcp.f32 %v7874_v57  ;;  %v7875_v46 = vadd.f32 1.0, %v11122_v47  ;;  %9703 = vmatmul.mubr.msk.f32.gmra.mxu0 %vm4361_vm2, %v12095_v28  ;;  %v17291_v14 = vadd.f32 %v17283_v17, %v5703_v3  ;;  %v17296_v29 = vadd.f32 %v17283_v17, %v5960_v63  ;;  %v5710_v47 = vpop.f32.mrf.mxu0  ;;  %v20079_v3 = vld [vmem:[#allocation28_spill] sm:$0xff] }
 0x531   : > { %v11126_v0 = vpop.eup %11125  ;;  %11151 = vrcp.f32 %v7876_v42  ;;  %v7877_v27 = vadd.f32 1.0, %v11124_v31  ;;  %9735 = vmatmul.mubr.msk.f32.gmra.mxu1 %vm4361_vm2, %v12095_v28  ;;  %v17301_v45 = vadd.f32 %v17283_v17, %v5705_v60  ;;  %v5709_v31 = vadd.f32 %v5708_v26, %v20079_v3  ;;  %v20080_v28 = vld [vmem:[#allocation29_spill] sm:$0xff]  ;;  %v20081_v60 = vld [vmem:[#allocation15_spill] sm:$0xff] }
 0x532   : > { %v11128_v20 = vpop.eup %11127  ;;  %v8626_v43 = vmul.f32 %v11126_v0, %v17083_v30  ;;  %11153 = vrcp.f32 %v7875_v46  ;;  %v17307_v63 = vadd.f32 %v17283_v17, %v5962_v36  ;;  %v5966_v0 = vadd.f32 %v5965_v2, %v20080_v28  ;;  %v5714_v2 = vpop.f32.mrf.mxu0 }
 0x533   : > { %v11130_v49 = vpop.eup %11129  ;;  %v8628_v57 = vmul.f32 %v11128_v20, %v17088_v13  ;;  %11155 = vrcp.f32 %v7877_v27  ;;  %v5967_v13 = vpop.f32.mrf.mxu1  ;;  %v5711_v26 = vadd.f32 %v5710_v47, %v20081_v60 }
 0x534   : > { %v11132_v42 = vpop.eup %11131  ;;  %8882 = vst [vmem:[%s17111_s23 + $0x100] sm:$0xff] %v8626_v43  ;;  %v8627_v30 = vmul.f32 %v11130_v49, %v17094_v51  ;;  %11157 = vpow2.f32 %v9800_v25  ;;  %v9808_v25 = vmul.f32 -1.442695, %v17291_v14  ;;  %v17313_v20 = vpop.permute.xlu0 %6694  ;;  %v9811_v3 = vmul.f32 -1.442695, %v17307_v63 }
 0x535   : > { %v11134_v46 = vpop.eup %11133  ;;  %8884 = vst [vmem:[%s17111_s23 + $0x110] sm:$0xff] %v8628_v57  ;;  %v8629_v24 = vmul.f32 %v11132_v42, %v17099_v8  ;;  %11159 = vpow2.f32 %v9802_v5  ;;  %v9810_v8 = vmul.f32 -1.442695, %v17296_v29  ;;  %v20082_v5 = vld [vmem:[#allocation16_spill] sm:$0xff]  ;;  %v17321_v47 = vadd.f32 %v17313_v20, %v5709_v31  ;;  %v5971_v42 = vpop.f32.mrf.mxu1 }
 0x536   : > { %v11136_v27 = vpop.eup %11135  ;;  %8883 = vst [vmem:[%s17111_s23 + $0x108] sm:$0xff] %v8627_v30  ;;  %v7882_v51 = vadd.f32 1.0, %v11134_v46  ;;  %11161 = vpow2.f32 %v9801_v6  ;;  %v5968_v36 = vadd.f32 %v5967_v13, %v20082_v5  ;;  %v9809_v6 = vmul.f32 -1.442695, %v17301_v45 }
 0x537   : > { %v11138_v35 = vpop.eup %11137  ;;  %8885 = vst [vmem:[%s17111_s23 + $0x118] sm:$0xff] %v8629_v24  ;;  %v7884_v43 = vadd.f32 1.0, %v11136_v27  ;;  %11163 = vpow2.f32 %v9803_v34  ;;  %v17326_v13 = vadd.f32 %v17313_v20, %v5966_v0  ;;  %v17331_v31 = vadd.f32 %v17313_v20, %v5711_v26  ;;  %v5716_v27 = vpop.f32.mrf.mxu0 }
 0x538   : > { %v11140_v49 = vpop.eup %11139  ;;  %v8634_v57 = vmul.f32 %v11138_v35, %v17123_v41  ;;  %11165 = vrcp.f32 %v7882_v51  ;;  %v17336_v28 = vadd.f32 %v17313_v20, %v5968_v36  ;;  %v5973_v35 = vpop.f32.mrf.mxu1 }
 0x539   : > { %v11142_v30 = vpop.eup %11141  ;;  %v8636_v34 = vmul.f32 %v11140_v49, %v17129_v48  ;;  %11167 = vrcp.f32 %v7884_v43 }
 0x53a   : > { %v11144_v46 = vpop.eup %11143  ;;  %8890 = vst [vmem:[%s17111_s23 + $0x140] sm:$0xff] %v8634_v57  ;;  %v8635_v41 = vmul.f32 %v11142_v30, %v17134_v21  ;;  %11169 = vpow2.f32 %v9808_v25  ;;  %v9816_v21 = vmul.f32 -1.442695, %v17321_v47  ;;  %v20083_v25 = vld [vmem:[#allocation18_spill] sm:$0xff]  ;;  %v9817_v57 = vmul.f32 -1.442695, %v17331_v31  ;;  %v17346_v30 = vpop.permute.xlu1 %6699 }
 0x53b   : > { %v11146_v24 = vpop.eup %11145  ;;  %8892 = vst [vmem:[%s17111_s23 + $0x150] sm:$0xff] %v8636_v34  ;;  %v8637_v48 = vmul.f32 %v11144_v46, %v17142_v38  ;;  %11171 = vpow2.f32 %v9810_v8  ;;  %v5715_v60 = vadd.f32 %v5714_v2, %v20083_v25  ;;  %v9818_v38 = vmul.f32 -1.442695, %v17326_v13  ;;  %v20084_v8 = vld [vmem:[#allocation19_spill] sm:$0xff]  ;;  %v20085_v25 = vld [vmem:[#allocation20_spill] sm:$0xff] }
 0x53c   : > { %v11148_v0 = vpop.eup %11147  ;;  %8891 = vst [vmem:[%s17111_s23 + $0x148] sm:$0xff] %v8635_v41  ;;  %v7883_v51 = vadd.f32 1.0, %v11146_v24  ;;  %11173 = vpow2.f32 %v9809_v6  ;;  %v5972_v5 = vadd.f32 %v5971_v42, %v20084_v8  ;;  %v9819_v34 = vmul.f32 -1.442695, %v17336_v28  ;;  %v5977_v41 = vpop.f32.mrf.mxu1 }
 0x53d   : > { %v11150_v26 = vpop.eup %11149  ;;  %8893 = vst [vmem:[%s17111_s23 + $0x158] sm:$0xff] %v8637_v48  ;;  %v7885_v43 = vadd.f32 1.0, %v11148_v0  ;;  %11175 = vpow2.f32 %v9811_v3  ;;  %v5720_v3 = vpop.f32.mrf.mxu0 }
 0x53e   : > { %v11152_v36 = vpop.eup %11151  ;;  %v8642_v49 = vmul.f32 %v11150_v26, %v17160_v40  ;;  %11177 = vrcp.f32 %v7883_v51  ;;  %v17353_v40 = vadd.f32 %v17346_v30, %v5715_v60  ;;  %v5717_v26 = vadd.f32 %v5716_v27, %v20085_v25  ;;  %v20086_v60 = vld [vmem:[#allocation21_spill] sm:$0xff] }
 0x53f   : > { %v11154_v6 = vpop.eup %11153  ;;  %v8644_v2 = vmul.f32 %v11152_v36, %v17167_v50  ;;  %11179 = vrcp.f32 %v7885_v43  ;;  %v17358_v50 = vadd.f32 %v17346_v30, %v5972_v5  ;;  %v5974_v43 = vadd.f32 %v5973_v35, %v20086_v60  ;;  %v5722_v8 = vpop.f32.mrf.mxu0 }
 0x540   : > { %v11156_v46 = vpop.eup %11155  ;;  %8898 = vst [vmem:[%s17111_s23 + $0x180] sm:$0xff] %v8642_v49  ;;  %v8643_v42 = vmul.f32 %v11154_v6, %v17175_v9  ;;  %11181 = vpow2.f32 %v9816_v21  ;;  %v5979_v5 = vpop.f32.mrf.mxu1  ;;  %v17368_v35 = vadd.f32 %v17346_v30, %v5717_v26  ;;  %v20088_v26 = vld [vmem:[#allocation23_spill] sm:$0xff] }
 0x541   : > { %v11158_v24 = vpop.eup %11157  ;;  %8900 = vst [vmem:[%s17111_s23 + $0x190] sm:$0xff] %v8644_v2  ;;  %v8645_v48 = vmul.f32 %v11156_v46, %v17181_v59  ;;  %11183 = vpow2.f32 %v9818_v38  ;;  %v9824_v38 = vmul.f32 -1.442695, %v17353_v40  ;;  %v5978_v60 = vadd.f32 %v5977_v41, %v20088_v26 }
 0x542   : > { %v11160_v0 = vpop.eup %11159  ;;  %8899 = vst [vmem:[%s17111_s23 + $0x188] sm:$0xff] %v8643_v42  ;;  %v7890_v51 = vadd.f32 1.0, %v11158_v24  ;;  %11185 = vpow2.f32 %v9817_v57  ;;  %v9826_v57 = vmul.f32 -1.442695, %v17358_v50  ;;  %v17372_v42 = vadd.f32 %v17346_v30, %v5974_v43  ;;  %v5726_v24 = vpop.f32.mrf.mxu0 }
 0x543   : > { %v11162_v9 = vpop.eup %11161  ;;  %8901 = vst [vmem:[%s17111_s23 + $0x198] sm:$0xff] %v8645_v48  ;;  %v7892_v21 = vadd.f32 1.0, %v11160_v0  ;;  %11187 = vpow2.f32 %v9819_v34  ;;  %v9825_v43 = vmul.f32 -1.442695, %v17368_v35 }
 0x544   : > { %v11164_v36 = vpop.eup %11163  ;;  %11189 = vrcp.f32 %v7890_v51  ;;  %v7891_v59 = vadd.f32 1.0, %v11162_v9  ;;  %v20087_v51 = vld [vmem:[#allocation22_spill] sm:$0xff]  ;;  %v5983_v9 = vpop.f32.mrf.mxu1 }
 0x545   : > { %v11166_v49 = vpop.eup %11165  ;;  %11191 = vrcp.f32 %v7892_v21  ;;  %v7893_v6 = vadd.f32 1.0, %v11164_v36  ;;  %v5721_v25 = vadd.f32 %v5720_v3, %v20087_v51 }
 0x546   : > { %v11168_v27 = vpop.eup %11167  ;;  %v8650_v2 = vmul.f32 %v11166_v49, %v17204_v37  ;;  %11193 = vrcp.f32 %v7891_v59  ;;  %v20089_v59 = vld [vmem:[#allocation30_spill] sm:$0xff] }
 0x547   : > { %v11170_v34 = vpop.eup %11169  ;;  %v8652_v46 = vmul.f32 %v11168_v27, %v17211_v61  ;;  %11195 = vrcp.f32 %v7893_v6  ;;  %v5723_v49 = vadd.f32 %v5722_v8, %v20089_v59  ;;  %v17380_v27 = vpop.permute.xlu0 %6704 }
 0x548   : > { %v11172_v48 = vpop.eup %11171  ;;  %8906 = vst [vmem:[%s17111_s23 + $0x1c0] sm:$0xff] %v8650_v2  ;;  %v7898_v0 = vadd.f32 1.0, %v11170_v34  ;;  %11197 = vpow2.f32 %v9824_v38  ;;  %20090 = vst [vmem:[#allocation148_spill] sm:$0xff] %v17380_v27  ;;  %v9827_v38 = vmul.f32 -1.442695, %v17372_v42  ;;  %v20091_v2 = vld [vmem:[#allocation63_spill] sm:$0xff]  ;;  %v5985_v8 = vpop.f32.mrf.mxu1 }
 0x549   : > { %v11174_v37 = vpop.eup %11173  ;;  %8908 = vst [vmem:[%s17111_s23 + $0x1d0] sm:$0xff] %v8652_v46  ;;  %v7900_v21 = vadd.f32 1.0, %v11172_v48  ;;  %11199 = vpow2.f32 %v9826_v57  ;;  %v5980_v34 = vadd.f32 %v5979_v5, %v20091_v2  ;;  %v5728_v57 = vpop.f32.mrf.mxu0  ;;  %v17386_v48 = vadd.f32 %v17380_v27, %v5721_v25 }
 0x54a   : > { %v11176_v36 = vpop.eup %11175  ;;  %11201 = vrcp.f32 %v7898_v0  ;;  %v7899_v61 = vadd.f32 1.0, %v11174_v37  ;;  %v17390_v37 = vadd.f32 %v17380_v27, %v5978_v60  ;;  %v17394_v26 = vadd.f32 %v17380_v27, %v5723_v49 }
 0x54b   : > { %v11178_v6 = vpop.eup %11177  ;;  %11203 = vrcp.f32 %v7900_v21  ;;  %v7901_v3 = vadd.f32 1.0, %v11176_v36  ;;  %v17399_v59 = vadd.f32 %v17380_v27, %v5980_v34  ;;  %v5732_v60 = vpop.f32.mrf.mxu0 }
 0x54c   : > { %v11180_v46 = vpop.eup %11179  ;;  %v8651_v41 = vmul.f32 %v11178_v6, %v17230_v33  ;;  %11205 = vrcp.f32 %v7899_v61  ;;  %v20092_v33 = vld [vmem:[#allocation53_spill] sm:$0xff]  ;;  %v9834_v34 = vmul.f32 -1.442695, %v17390_v37 }
 0x54d   : > { %v11182_v0 = vpop.eup %11181  ;;  %v8653_v51 = vmul.f32 %v11180_v46, %v17235_v54  ;;  %11207 = vrcp.f32 %v7901_v3  ;;  %v5727_v36 = vadd.f32 %v5726_v24, %v20092_v33  ;;  %v20093_v54 = vld [vmem:[#allocation32_spill] sm:$0xff]  ;;  %v20094_v46 = vld [vmem:[#allocation34_spill] sm:$0xff]  ;;  %v17404_v24 = vpop.permute.xlu1 %6709 }
 0x54e   : > { %v11184_v21 = vpop.eup %11183  ;;  %8907 = vst [vmem:[%s17111_s23 + $0x1c8] sm:$0xff] %v8651_v41  ;;  %v7906_v5 = vadd.f32 1.0, %v11182_v0  ;;  %11209 = vpow2.f32 %v9825_v43  ;;  %v5984_v6 = vadd.f32 %v5983_v9, %v20093_v54  ;;  %v9832_v43 = vmul.f32 -1.442695, %v17386_v48  ;;  %v5989_v41 = vpop.f32.mrf.mxu1  ;;  %20095 = vst [vmem:[#allocation126_spill] sm:$0xff] %v17404_v24 }
 0x54f   : > { %v11186_v61 = vpop.eup %11185  ;;  %8909 = vst [vmem:[%s17111_s23 + $0x1d8] sm:$0xff] %v8653_v51  ;;  %v7908_v25 = vadd.f32 1.0, %v11184_v21  ;;  %11211 = vpow2.f32 %v9827_v38  ;;  %v5729_v49 = vadd.f32 %v5728_v57, %v20094_v46  ;;  %v20096_v51 = vld [vmem:[#allocation35_spill] sm:$0xff]  ;;  %v17411_v57 = vadd.f32 %v17404_v24, %v5727_v36  ;;  %v20097_v36 = vld [vmem:[#allocation37_spill] sm:$0xff] }
 0x550   : > { %v11188_v3 = vpop.eup %11187  ;;  %11213 = vrcp.f32 %v7906_v5  ;;  %v7907_v2 = vadd.f32 1.0, %v11186_v61  ;;  %v5986_v21 = vadd.f32 %v5985_v8, %v20096_v51  ;;  %v9833_v5 = vmul.f32 -1.442695, %v17394_v26  ;;  %v5734_v8 = vpop.f32.mrf.mxu0 }
 0x551   : > { %v11190_v0 = vpop.eup %11189  ;;  %11215 = vrcp.f32 %v7908_v25  ;;  %v7909_v38 = vadd.f32 1.0, %v11188_v3  ;;  %v9835_v25 = vmul.f32 -1.442695, %v17399_v59  ;;  %v17416_v3 = vadd.f32 %v17404_v24, %v5984_v6 }
 0x552   : > { %v11192_v9 = vpop.eup %11191  ;;  %v8658_v33 = vmul.f32 %v11190_v0, %v17255_v52  ;;  %11217 = vrcp.f32 %v7907_v2  ;;  %v17421_v2 = vadd.f32 %v17404_v24, %v5729_v49  ;;  %v5733_v0 = vadd.f32 %v5732_v60, %v20097_v36  ;;  %v20099_v49 = vld [vmem:[#allocation44_spill] sm:$0xff]  ;;  %v17433_v36 = vpop.permute.xlu0 %6714 }
 0x553   : > { %v11194_v61 = vpop.eup %11193  ;;  %v8660_v54 = vmul.f32 %v11192_v9, %v17261_v62  ;;  %11219 = vrcp.f32 %v7909_v38  ;;  %v5991_v62 = vpop.f32.mrf.mxu1  ;;  %v17427_v6 = vadd.f32 %v17404_v24, %v5986_v21  ;;  %v20098_v9 = vld [vmem:[#allocation43_spill] sm:$0xff]  ;;  %v5735_v60 = vadd.f32 %v5734_v8, %v20099_v49  ;;  %20100 = vst [vmem:[#allocation169_spill] sm:$0xff] %v17433_v36 }
 0x554   : > { %v11196_v46 = vpop.eup %11195  ;;  %8914 = vst [vmem:[%s17111_s23 + $0x200] sm:$0xff] %v8658_v33  ;;  %v8659_v52 = vmul.f32 %v11194_v61, %v17268_v11  ;;  %11221 = vpow2.f32 %v9832_v43  ;;  %v5990_v33 = vadd.f32 %v5989_v41, %v20098_v9  ;;  %v9840_v43 = vmul.f32 -1.442695, %v17411_v57  ;;  %v5738_v41 = vpop.f32.mrf.mxu0 }
 0x555   : > { %v11198_v38 = vpop.eup %11197  ;;  %8916 = vst [vmem:[%s17111_s23 + $0x210] sm:$0xff] %v8660_v54  ;;  %v8661_v51 = vmul.f32 %v11196_v46, %v17274_v56  ;;  %11223 = vpow2.f32 %v9834_v34  ;;  %v9842_v56 = vmul.f32 -1.442695, %v17416_v3  ;;  %v20101_v34 = vld [vmem:[#allocation45_spill] sm:$0xff]  ;;  %v17441_v8 = vadd.f32 %v17433_v36, %v5733_v0 }
 0x556   : > { %v11200_v27 = vpop.eup %11199  ;;  %8915 = vst [vmem:[%s17111_s23 + $0x208] sm:$0xff] %v8659_v52  ;;  %v7914_v11 = vadd.f32 1.0, %v11198_v38  ;;  %11225 = vpow2.f32 %v9833_v5  ;;  %v5992_v21 = vadd.f32 %v5991_v62, %v20101_v34  ;;  %v9841_v5 = vmul.f32 -1.442695, %v17421_v2  ;;  %v5995_v38 = vpop.f32.mrf.mxu1 }
 0x557   : > { %v11202_v61 = vpop.eup %11201  ;;  %8917 = vst [vmem:[%s17111_s23 + $0x218] sm:$0xff] %v8661_v51  ;;  %v7916_v54 = vadd.f32 1.0, %v11200_v27  ;;  %11227 = vpow2.f32 %v9835_v25  ;;  %v9843_v25 = vmul.f32 -1.442695, %v17427_v6  ;;  %v17446_v62 = vadd.f32 %v17433_v36, %v5990_v33 }
 0x558   : > { %v11204_v46 = vpop.eup %11203  ;;  %v8666_v52 = vmul.f32 %v11202_v61, %v17291_v14  ;;  %11229 = vrcp.f32 %v7914_v11  ;;  %v17451_v0 = vadd.f32 %v17433_v36, %v5735_v60  ;;  %v17456_v49 = vadd.f32 %v17433_v36, %v5992_v21  ;;  %v5740_v61 = vpop.f32.mrf.mxu0 }
 0x559   : > { %v11206_v51 = vpop.eup %11205  ;;  %v8668_v27 = vmul.f32 %v11204_v46, %v17296_v29  ;;  %11231 = vrcp.f32 %v7916_v54  ;;  %v5997_v46 = vpop.f32.mrf.mxu1 }
 0x55a   : > { %v11208_v9 = vpop.eup %11207  ;;  %8922 = vst [vmem:[%s17111_s23 + $0x240] sm:$0xff] %v8666_v52  ;;  %v8667_v14 = vmul.f32 %v11206_v51, %v17301_v45  ;;  %11233 = vpow2.f32 %v9840_v43  ;;  %v9848_v45 = vmul.f32 -1.442695, %v17441_v8  ;;  %v20102_v43 = vld [vmem:[#allocation46_spill] sm:$0xff] }
 0x55b   : > { %v11210_v11 = vpop.eup %11209  ;;  %8924 = vst [vmem:[%s17111_s23 + $0x250] sm:$0xff] %v8668_v27  ;;  %v8669_v29 = vmul.f32 %v11208_v9, %v17307_v63  ;;  %11235 = vpow2.f32 %v9842_v56  ;;  %v5739_v34 = vadd.f32 %v5738_v41, %v20102_v43  ;;  %v9850_v63 = vmul.f32 -1.442695, %v17446_v62  ;;  %v20103_v56 = vld [vmem:[#allocation48_spill] sm:$0xff] }
 0x55c   : > { %v11212_v33 = vpop.eup %11211  ;;  %8923 = vst [vmem:[%s17111_s23 + $0x248] sm:$0xff] %v8667_v14  ;;  %v7915_v54 = vadd.f32 1.0, %v11210_v11  ;;  %11237 = vpow2.f32 %v9841_v5  ;;  %v5996_v21 = vadd.f32 %v5995_v38, %v20103_v56  ;;  %v9849_v5 = vmul.f32 -1.442695, %v17451_v0  ;;  %v17466_v14 = vpop.permute.xlu1 %6719  ;;  %v20105_v56 = vld [vmem:[#allocation50_spill] sm:$0xff] }
 0x55d   : > { %v11214_v60 = vpop.eup %11213  ;;  %8925 = vst [vmem:[%s17111_s23 + $0x258] sm:$0xff] %v8669_v29  ;;  %v7917_v52 = vadd.f32 1.0, %v11212_v33  ;;  %11239 = vpow2.f32 %v9843_v25  ;;  %20104 = vst [vmem:[#allocation137_spill] sm:$0xff] %v17466_v14  ;;  %v9851_v25 = vmul.f32 -1.442695, %v17456_v49  ;;  %v5744_v11 = vpop.f32.mrf.mxu0 }
 0x55e   : > { %v11216_v51 = vpop.eup %11215  ;;  %v8674_v27 = vmul.f32 %v11214_v60, %v17321_v47  ;;  %11241 = vrcp.f32 %v7915_v54  ;;  %v17473_v47 = vadd.f32 %v17466_v14, %v5739_v34  ;;  %v6001_v33 = vpop.f32.mrf.mxu1  ;;  %v20106_v34 = vld [vmem:[#allocation49_spill] sm:$0xff] }
 0x55f   : > { %v11218_v9 = vpop.eup %11217  ;;  %v8676_v41 = vmul.f32 %v11216_v51, %v17326_v13  ;;  %11243 = vrcp.f32 %v7917_v52  ;;  %v17478_v13 = vadd.f32 %v17466_v14, %v5996_v21  ;;  %v5741_v51 = vadd.f32 %v5740_v61, %v20105_v56 }
 0x560   : > { %v11220_v29 = vpop.eup %11219  ;;  %8930 = vst [vmem:[%s17111_s23 + $0x280] sm:$0xff] %v8674_v27  ;;  %v8675_v38 = vmul.f32 %v11218_v9, %v17331_v31  ;;  %11245 = vpow2.f32 %v9848_v45  ;;  %v5998_v27 = vadd.f32 %v5997_v46, %v20106_v34  ;;  %v5746_v9 = vpop.f32.mrf.mxu0 }
 0x561   : > { %v11222_v54 = vpop.eup %11221  ;;  %8932 = vst [vmem:[%s17111_s23 + $0x290] sm:$0xff] %v8676_v41  ;;  %v8677_v43 = vmul.f32 %v11220_v29, %v17336_v28  ;;  %11247 = vpow2.f32 %v9850_v63  ;;  %v9856_v63 = vmul.f32 -1.442695, %v17473_v47  ;;  %v6003_v21 = vpop.f32.mrf.mxu1  ;;  %v17488_v46 = vadd.f32 %v17466_v14, %v5741_v51  ;;  %v20108_v51 = vld [vmem:[#allocation51_spill] sm:$0xff] }
 0x562   : > { %v11224_v60 = vpop.eup %11223  ;;  %8931 = vst [vmem:[%s17111_s23 + $0x288] sm:$0xff] %v8675_v38  ;;  %v7922_v52 = vadd.f32 1.0, %v11222_v54  ;;  %11249 = vpow2.f32 %v9849_v5  ;;  %v9858_v5 = vmul.f32 -1.442695, %v17478_v13 }
 0x563   : > { %v11226_v31 = vpop.eup %11225  ;;  %8933 = vst [vmem:[%s17111_s23 + $0x298] sm:$0xff] %v8677_v43  ;;  %v7924_v45 = vadd.f32 1.0, %v11224_v60  ;;  %11251 = vpow2.f32 %v9851_v25  ;;  %v17492_v60 = vadd.f32 %v17466_v14, %v5998_v27  ;;  %v9857_v27 = vmul.f32 -1.442695, %v17488_v46 }
 0x564   : > { %v11228_v41 = vpop.eup %11227  ;;  %11253 = vrcp.f32 %v7922_v52  ;;  %v7923_v28 = vadd.f32 1.0, %v11226_v31  ;;  %v5750_v52 = vpop.f32.mrf.mxu0 }
 0x565   : > { %v11230_v29 = vpop.eup %11229  ;;  %11255 = vrcp.f32 %v7924_v45  ;;  %v7925_v38 = vadd.f32 1.0, %v11228_v41  ;;  %v20107_v45 = vld [vmem:[#allocation55_spill] sm:$0xff]  ;;  %v6007_v41 = vpop.f32.mrf.mxu1 }
 0x566   : > { %v11232_v61 = vpop.eup %11231  ;;  %v8682_v54 = vmul.f32 %v11230_v29, %v17353_v40  ;;  %11257 = vrcp.f32 %v7923_v28  ;;  %v5745_v34 = vadd.f32 %v5744_v11, %v20107_v45  ;;  %v6002_v29 = vadd.f32 %v6001_v33, %v20108_v51 }
 0x567   : > { %v11234_v25 = vpop.eup %11233  ;;  %v8684_v43 = vmul.f32 %v11232_v61, %v17358_v50  ;;  %11259 = vrcp.f32 %v7925_v38  ;;  %v20109_v38 = vld [vmem:[#allocation52_spill] sm:$0xff] }
 0x568   : > { %v11236_v56 = vpop.eup %11235  ;;  %8938 = vst [vmem:[%s17111_s23 + $0x2c0] sm:$0xff] %v8682_v54  ;;  %v7930_v31 = vadd.f32 1.0, %v11234_v25  ;;  %11261 = vpow2.f32 %v9856_v63  ;;  %v5747_v61 = vadd.f32 %v5746_v9, %v20109_v38  ;;  %v17500_v54 = vpop.permute.xlu0 %6724  ;;  %v9859_v63 = vmul.f32 -1.442695, %v17492_v60  ;;  %v20110_v25 = vld [vmem:[#allocation54_spill] sm:$0xff] }
 0x569   : > { %v11238_v40 = vpop.eup %11237  ;;  %8940 = vst [vmem:[%s17111_s23 + $0x2d0] sm:$0xff] %v8684_v43  ;;  %v7932_v28 = vadd.f32 1.0, %v11236_v56  ;;  %11263 = vpow2.f32 %v9858_v5  ;;  %v6004_v43 = vadd.f32 %v6003_v21, %v20110_v25  ;;  %v5752_v5 = vpop.f32.mrf.mxu0 }
 0x56a   : > { %v11240_v36 = vpop.eup %11239  ;;  %11265 = vrcp.f32 %v7930_v31  ;;  %v7931_v50 = vadd.f32 1.0, %v11238_v40  ;;  %v17506_v31 = vadd.f32 %v17500_v54, %v5745_v34  ;;  %v6009_v9 = vpop.f32.mrf.mxu1  ;;  %v17514_v51 = vadd.f32 %v17500_v54, %v5747_v61 }
 0x56b   : > { %v11242_v14 = vpop.eup %11241  ;;  %11267 = vrcp.f32 %v7932_v28  ;;  %v7933_v11 = vadd.f32 1.0, %v11240_v36  ;;  %v17510_v36 = vadd.f32 %v17500_v54, %v6002_v29  ;;  %v17519_v38 = vadd.f32 %v17500_v54, %v6004_v43  ;;  %v5756_v29 = vpop.f32.mrf.mxu0 }
 0x56c   : > { %v11244_v56 = vpop.eup %11243  ;;  %v8683_v33 = vmul.f32 %v11242_v14, %v17368_v35  ;;  %11269 = vrcp.f32 %v7931_v50  ;;  %v20111_v35 = vld [vmem:[#allocation41_spill] sm:$0xff] }
 0x56d   : > { %v11246_v45 = vpop.eup %11245  ;;  %v8685_v40 = vmul.f32 %v11244_v56, %v17372_v42  ;;  %11271 = vrcp.f32 %v7933_v11  ;;  %v5751_v14 = vadd.f32 %v5750_v52, %v20111_v35  ;;  %v20112_v42 = vld [vmem:[#allocation47_spill] sm:$0xff]  ;;  %v17524_v52 = vpop.permute.xlu1 %6729  ;;  %v9866_v43 = vmul.f32 -1.442695, %v17510_v36 }
 0x56e   : > { %v11248_v28 = vpop.eup %11247  ;;  %8939 = vst [vmem:[%s17111_s23 + $0x2c8] sm:$0xff] %v8683_v33  ;;  %v7938_v21 = vadd.f32 1.0, %v11246_v45  ;;  %11273 = vpow2.f32 %v9857_v27  ;;  %v6008_v11 = vadd.f32 %v6007_v41, %v20112_v42  ;;  %v9864_v27 = vmul.f32 -1.442695, %v17506_v31  ;;  %v20113_v33 = vld [vmem:[#allocation33_spill] sm:$0xff]  ;;  %v6013_v45 = vpop.f32.mrf.mxu1 }
 0x56f   : > { %v11250_v50 = vpop.eup %11249  ;;  %8941 = vst [vmem:[%s17111_s23 + $0x2d8] sm:$0xff] %v8685_v40  ;;  %v7940_v34 = vadd.f32 1.0, %v11248_v28  ;;  %11275 = vpow2.f32 %v9859_v63  ;;  %v5753_v61 = vadd.f32 %v5752_v5, %v20113_v33  ;;  %v20114_v40 = vld [vmem:[#allocation39_spill] sm:$0xff]  ;;  %v17531_v5 = vadd.f32 %v17524_v52, %v5751_v14 }
 0x570   : > { %v11252_v25 = vpop.eup %11251  ;;  %11277 = vrcp.f32 %v7938_v21  ;;  %v7939_v56 = vadd.f32 1.0, %v11250_v50  ;;  %v6010_v28 = vadd.f32 %v6009_v9, %v20114_v40  ;;  %v9865_v21 = vmul.f32 -1.442695, %v17514_v51  ;;  %v5758_v9 = vpop.f32.mrf.mxu0 }
 0x571   : > { %v11254_v24 = vpop.eup %11253  ;;  %11279 = vrcp.f32 %v7940_v34  ;;  %v7941_v63 = vadd.f32 1.0, %v11252_v25  ;;  %v9867_v34 = vmul.f32 -1.442695, %v17519_v38  ;;  %v17536_v25 = vadd.f32 %v17524_v52, %v6008_v11 }
 0x572   : > { %v11256_v41 = vpop.eup %11255  ;;  %v8690_v35 = vmul.f32 %v11254_v24, %v17386_v48  ;;  %11281 = vrcp.f32 %v7939_v56  ;;  %v17541_v24 = vadd.f32 %v17524_v52, %v5753_v61  ;;  %v5757_v14 = vadd.f32 %v5756_v29, %v16063_v10  ;;  %v20115_v61 = vld [vmem:[#allocation25_spill] sm:$0xff] }
 0x573   : > { %v11258_v50 = vpop.eup %11257  ;;  %v8692_v42 = vmul.f32 %v11256_v41, %v17390_v37  ;;  %11283 = vrcp.f32 %v7941_v63  ;;  %v6015_v37 = vpop.f32.mrf.mxu1  ;;  %v17547_v11 = vadd.f32 %v17524_v52, %v6010_v28  ;;  %v6014_v40 = vadd.f32 %v6013_v45, %v16066_v18 }
 0x574   : > { %v11260_v33 = vpop.eup %11259  ;;  %8946 = vst [vmem:[%s17111_s23 + $0x300] sm:$0xff] %v8690_v35  ;;  %v8691_v48 = vmul.f32 %v11258_v50, %v17394_v26  ;;  %11285 = vpow2.f32 %v9864_v27  ;;  %v9872_v27 = vmul.f32 -1.442695, %v17531_v5  ;;  %v5759_v10 = vadd.f32 %v5758_v9, %v20115_v61  ;;  %v17553_v35 = vpop.permute.xlu0 %6734 }
 0x575   : > { %v11262_v56 = vpop.eup %11261  ;;  %8948 = vst [vmem:[%s17111_s23 + $0x310] sm:$0xff] %v8692_v42  ;;  %v8693_v63 = vmul.f32 %v11260_v33, %v17399_v59  ;;  %11287 = vpow2.f32 %v9866_v43  ;;  %v9874_v59 = vmul.f32 -1.442695, %v17536_v25  ;;  %v20116_v43 = vld [vmem:[#allocation31_spill] sm:$0xff]  ;;  %v5762_v18 = vpop.f32.mrf.mxu0  ;;  %v17561_v9 = vadd.f32 %v17553_v35, %v5757_v14 }
 0x576   : > { %v11264_v41 = vpop.eup %11263  ;;  %8947 = vst [vmem:[%s17111_s23 + $0x308] sm:$0xff] %v8691_v48  ;;  %v7946_v26 = vadd.f32 1.0, %v11262_v56  ;;  %11289 = vpow2.f32 %v9865_v21  ;;  %v6016_v28 = vadd.f32 %v6015_v37, %v20116_v43  ;;  %v9873_v21 = vmul.f32 -1.442695, %v17541_v24  ;;  %v6019_v33 = vpop.f32.mrf.mxu1 }
 0x577   : > { %v11266_v29 = vpop.eup %11265  ;;  %8949 = vst [vmem:[%s17111_s23 + $0x318] sm:$0xff] %v8693_v63  ;;  %v7948_v50 = vadd.f32 1.0, %v11264_v41  ;;  %11291 = vpow2.f32 %v9867_v34  ;;  %v9875_v56 = vmul.f32 -1.442695, %v17547_v11  ;;  %v17566_v37 = vadd.f32 %v17553_v35, %v6014_v40  ;;  %v5764_v61 = vpop.f32.mrf.mxu0 }
 0x578   : > { %v11268_v45 = vpop.eup %11267  ;;  %v8698_v42 = vmul.f32 %v11266_v29, %v17411_v57  ;;  %11293 = vrcp.f32 %v7946_v26  ;;  %v17571_v14 = vadd.f32 %v17553_v35, %v5759_v10  ;;  %v17576_v26 = vadd.f32 %v17553_v35, %v6016_v28  ;;  %v6021_v43 = vpop.f32.mrf.mxu1 }
 0x579   : > { %v11270_v48 = vpop.eup %11269  ;;  %v8700_v34 = vmul.f32 %v11268_v45, %v17416_v3  ;;  %11295 = vrcp.f32 %v7948_v50 }
 0x57a   : > { %v11272_v63 = vpop.eup %11271  ;;  %8954 = vst [vmem:[%s17111_s23 + $0x340] sm:$0xff] %v8698_v42  ;;  %v8699_v57 = vmul.f32 %v11270_v48, %v17421_v2  ;;  %11297 = vpow2.f32 %v9872_v27  ;;  %v9880_v2 = vmul.f32 -1.442695, %v17561_v9  ;;  %v20117_v27 = vld [vmem:[#allocation40_spill] sm:$0xff] }
 0x57b   : > { %v11274_v41 = vpop.eup %11273  ;;  %8956 = vst [vmem:[%s17111_s23 + $0x350] sm:$0xff] %v8700_v34  ;;  %v8701_v3 = vmul.f32 %v11272_v63, %v17427_v6  ;;  %11299 = vpow2.f32 %v9874_v59  ;;  %v5763_v50 = vadd.f32 %v5762_v18, %v20117_v27  ;;  %v9882_v6 = vmul.f32 -1.442695, %v17566_v37  ;;  %v20118_v59 = vld [vmem:[#allocation42_spill] sm:$0xff]  ;;  %v17586_v63 = vpop.permute.xlu1 %6739 }
 0x57c   : > { %v11276_v40 = vpop.eup %11275  ;;  %8955 = vst [vmem:[%s17111_s23 + $0x348] sm:$0xff] %v8699_v57  ;;  %v7947_v29 = vadd.f32 1.0, %v11274_v41  ;;  %11301 = vpow2.f32 %v9873_v21  ;;  %v6020_v28 = vadd.f32 %v6019_v33, %v20118_v59  ;;  %v9881_v21 = vmul.f32 -1.442695, %v17571_v14  ;;  %20119 = vst [vmem:[#allocation111_spill] sm:$0xff] %v17586_v63  ;;  %v5768_v57 = vpop.f32.mrf.mxu0 }
 0x57d   : > { %v11278_v10 = vpop.eup %11277  ;;  %8957 = vst [vmem:[%s17111_s23 + $0x358] sm:$0xff] %v8701_v3  ;;  %v7949_v45 = vadd.f32 1.0, %v11276_v40  ;;  %11303 = vpow2.f32 %v9875_v56  ;;  %v9883_v56 = vmul.f32 -1.442695, %v17576_v26  ;;  %v6025_v3 = vpop.f32.mrf.mxu1 }
 0x57e   : > { %v11280_v42 = vpop.eup %11279  ;;  %v8706_v48 = vmul.f32 %v11278_v10, %v17441_v8  ;;  %11305 = vrcp.f32 %v7947_v29  ;;  %v17593_v8 = vadd.f32 %v17586_v63, %v5763_v50  ;;  %v20121_v50 = vld [vmem:[#allocation36_spill] sm:$0xff] }
 0x57f   : > { %v11282_v34 = vpop.eup %11281  ;;  %v8708_v18 = vmul.f32 %v11280_v42, %v17446_v62  ;;  %11307 = vrcp.f32 %v7949_v45  ;;  %v17598_v62 = vadd.f32 %v17586_v63, %v6020_v28  ;;  %v20120_v45 = vld [vmem:[#allocation38_spill] sm:$0xff]  ;;  %v6022_v42 = vadd.f32 %v6021_v43, %v20121_v50  ;;  %v6027_v28 = vpop.f32.mrf.mxu1 }
 0x580   : > { %v11284_v41 = vpop.eup %11283  ;;  %8962 = vst [vmem:[%s17111_s23 + $0x380] sm:$0xff] %v8706_v48  ;;  %v8707_v33 = vmul.f32 %v11282_v34, %v17451_v0  ;;  %11309 = vpow2.f32 %v9880_v2  ;;  %v5765_v59 = vadd.f32 %v5764_v61, %v20120_v45  ;;  %v5770_v48 = vpop.f32.mrf.mxu0 }
 0x581   : > { %v11286_v40 = vpop.eup %11285  ;;  %8964 = vst [vmem:[%s17111_s23 + $0x390] sm:$0xff] %v8708_v18  ;;  %v8709_v29 = vmul.f32 %v11284_v41, %v17456_v49  ;;  %11311 = vpow2.f32 %v9882_v6  ;;  %v9888_v6 = vmul.f32 -1.442695, %v17593_v8  ;;  %v6031_v50 = vpop.f32.mrf.mxu1 }
 0x582   : > { %v11288_v27 = vpop.eup %11287  ;;  %8963 = vst [vmem:[%s17111_s23 + $0x388] sm:$0xff] %v8707_v33  ;;  %v7954_v10 = vadd.f32 1.0, %v11286_v40  ;;  %11313 = vpow2.f32 %v9881_v21  ;;  %v9890_v21 = vmul.f32 -1.442695, %v17598_v62  ;;  %v17608_v43 = vadd.f32 %v17586_v63, %v5765_v59  ;;  %v20123_v59 = vld [vmem:[#allocation93_spill] sm:$0xff] }
 0x583   : > { %v11290_v0 = vpop.eup %11289  ;;  %8965 = vst [vmem:[%s17111_s23 + $0x398] sm:$0xff] %v8709_v29  ;;  %v7956_v2 = vadd.f32 1.0, %v11288_v27  ;;  %11315 = vpow2.f32 %v9883_v56  ;;  %v17612_v29 = vadd.f32 %v17586_v63, %v6022_v42  ;;  %v5774_v27 = vpop.f32.mrf.mxu0 }
 0x584   : > { %v11292_v34 = vpop.eup %11291  ;;  %11317 = vrcp.f32 %v7954_v10  ;;  %v7955_v49 = vadd.f32 1.0, %v11290_v0  ;;  %v20122_v0 = vld [vmem:[#allocation92_spill] sm:$0xff]  ;;  %v9889_v42 = vmul.f32 -1.442695, %v17608_v43 }
 0x585   : > { %v11294_v18 = vpop.eup %11293  ;;  %11319 = vrcp.f32 %v7956_v2  ;;  %v7957_v41 = vadd.f32 1.0, %v11292_v34  ;;  %v5769_v2 = vadd.f32 %v5768_v57, %v20122_v0 }
 0x586   : > { %v11296_v61 = vpop.eup %11295  ;;  %v8714_v33 = vmul.f32 %v11294_v18, %v17473_v47  ;;  %11321 = vrcp.f32 %v7955_v49  ;;  %v6026_v49 = vadd.f32 %v6025_v3, %v20123_v59 }
 0x587   : > { %v11298_v56 = vpop.eup %11297  ;;  %v8716_v40 = vmul.f32 %v11296_v61, %v17478_v13  ;;  %11323 = vrcp.f32 %v7957_v41  ;;  %v20124_v41 = vld [vmem:[#allocation141_spill] sm:$0xff] }
 0x588   : > { %v11300_v10 = vpop.eup %11299  ;;  %8970 = vst [vmem:[%s17111_s23 + $0x3c0] sm:$0xff] %v8714_v33  ;;  %v7962_v45 = vadd.f32 1.0, %v11298_v56  ;;  %11325 = vpow2.f32 %v9888_v6  ;;  %v5771_v61 = vadd.f32 %v5770_v48, %v20124_v41  ;;  %v17620_v33 = vpop.permute.xlu0 %6744  ;;  %v9891_v6 = vmul.f32 -1.442695, %v17612_v29  ;;  %v20125_v56 = vld [vmem:[#allocation104_spill] sm:$0xff] }
 0x589   : > { %v11302_v47 = vpop.eup %11301  ;;  %8972 = vst [vmem:[%s17111_s23 + $0x3d0] sm:$0xff] %v8716_v40  ;;  %v7964_v34 = vadd.f32 1.0, %v11300_v10  ;;  %11327 = vpow2.f32 %v9890_v21  ;;  %v6028_v40 = vadd.f32 %v6027_v28, %v20125_v56  ;;  %v5776_v21 = vpop.f32.mrf.mxu0 }
 0x58a   : > { %v11304_v18 = vpop.eup %11303  ;;  %11329 = vrcp.f32 %v7962_v45  ;;  %v7963_v13 = vadd.f32 1.0, %v11302_v47  ;;  %v17626_v45 = vadd.f32 %v17620_v33, %v5769_v2  ;;  %v6033_v48 = vpop.f32.mrf.mxu1 }
 0x58b   : > { %v11306_v63 = vpop.eup %11305  ;;  %11331 = vrcp.f32 %v7964_v34  ;;  %v7965_v57 = vadd.f32 1.0, %v11304_v18  ;;  %v17630_v34 = vadd.f32 %v17620_v33, %v6026_v49  ;;  %v17634_v18 = vadd.f32 %v17620_v33, %v5771_v61  ;;  %v5780_v49 = vpop.f32.mrf.mxu0 }
 0x58c   : > { %v11308_v10 = vpop.eup %11307  ;;  %v8715_v3 = vmul.f32 %v11306_v63, %v17488_v46  ;;  %11333 = vrcp.f32 %v7963_v13  ;;  %v20126_v46 = vld [vmem:[#allocation142_spill] sm:$0xff]  ;;  %v17639_v41 = vadd.f32 %v17620_v33, %v6028_v40  ;;  %v5777_v61 = vadd.f32 %v5776_v21, %v16137_v4 }
 0x58d   : > { %v11310_v0 = vpop.eup %11309  ;;  %v8717_v47 = vmul.f32 %v11308_v10, %v17492_v60  ;;  %11335 = vrcp.f32 %v7965_v57  ;;  %v5775_v63 = vadd.f32 %v5774_v27, %v20126_v46  ;;  %v20127_v60 = vld [vmem:[#allocation115_spill] sm:$0xff]  ;;  %v17644_v27 = vpop.permute.xlu1 %6749  ;;  %v9898_v40 = vmul.f32 -1.442695, %v17630_v34 }
 0x58e   : > { %v11312_v59 = vpop.eup %11311  ;;  %8971 = vst [vmem:[%s17111_s23 + $0x3c8] sm:$0xff] %v8715_v3  ;;  %v7970_v28 = vadd.f32 1.0, %v11310_v0  ;;  %11337 = vpow2.f32 %v9889_v42  ;;  %v6032_v57 = vadd.f32 %v6031_v50, %v20127_v60  ;;  %v9896_v42 = vmul.f32 -1.442695, %v17626_v45  ;;  %v6037_v3 = vpop.f32.mrf.mxu1 }
 0x58f   : > { %v11314_v13 = vpop.eup %11313  ;;  %8973 = vst [vmem:[%s17111_s23 + $0x3d8] sm:$0xff] %v8717_v47  ;;  %v7972_v2 = vadd.f32 1.0, %v11312_v59  ;;  %11339 = vpow2.f32 %v9891_v6  ;;  %v6034_v47 = vadd.f32 %v6033_v48, %v16144_v23  ;;  %v17651_v4 = vadd.f32 %v17644_v27, %v5775_v63  ;;  %v5782_v23 = vpop.f32.mrf.mxu0 }
 0x590   : > { %v11316_v56 = vpop.eup %11315  ;;  %11341 = vrcp.f32 %v7970_v28  ;;  %v7971_v10 = vadd.f32 1.0, %v11314_v13  ;;  %v9897_v28 = vmul.f32 -1.442695, %v17634_v18  ;;  %v9899_v13 = vmul.f32 -1.442695, %v17639_v41 }
 0x591   : > { %v11318_v0 = vpop.eup %11317  ;;  %11343 = vrcp.f32 %v7972_v2  ;;  %v7973_v6 = vadd.f32 1.0, %v11316_v56  ;;  %v17656_v2 = vadd.f32 %v17644_v27, %v6032_v57  ;;  %v17661_v60 = vadd.f32 %v17644_v27, %v5777_v61  ;;  %v17673_v61 = vpop.permute.xlu0 %6754 }
 0x592   : > { %v11320_v50 = vpop.eup %11319  ;;  %v8722_v59 = vmul.f32 %v11318_v0, %v17506_v31  ;;  %11345 = vrcp.f32 %v7971_v10  ;;  %v5781_v63 = vadd.f32 %v5780_v49, %v16150_v15  ;;  %v17667_v57 = vadd.f32 %v17644_v27, %v6034_v47 }
 0x593   : > { %v11322_v21 = vpop.eup %11321  ;;  %v8724_v46 = vmul.f32 %v11320_v50, %v17510_v36  ;;  %11347 = vrcp.f32 %v7973_v6  ;;  %v6039_v36 = vpop.f32.mrf.mxu1  ;;  %v6038_v0 = vadd.f32 %v6037_v3, %v16153_v7  ;;  %v5783_v15 = vadd.f32 %v5782_v23, %v16161_v1 }
 0x594   : > { %v11324_v48 = vpop.eup %11323  ;;  %8978 = vst [vmem:[%s17111_s23 + $0x400] sm:$0xff] %v8722_v59  ;;  %v8723_v31 = vmul.f32 %v11322_v21, %v17514_v51  ;;  %11349 = vpow2.f32 %v9896_v42  ;;  %v9904_v42 = vmul.f32 -1.442695, %v17651_v4  ;;  %v5786_v7 = vpop.f32.mrf.mxu0  ;;  %v9905_v59 = vmul.f32 -1.442695, %v17661_v60 }
 0x595   : > { %v11326_v56 = vpop.eup %11325  ;;  %8980 = vst [vmem:[%s17111_s23 + $0x410] sm:$0xff] %v8724_v46  ;;  %v8725_v10 = vmul.f32 %v11324_v48, %v17519_v38  ;;  %11351 = vpow2.f32 %v9898_v40  ;;  %v9906_v38 = vmul.f32 -1.442695, %v17656_v2  ;;  %v6040_v40 = vadd.f32 %v6039_v36, %v16165_v58 }
 0x596   : > { %v11328_v6 = vpop.eup %11327  ;;  %8979 = vst [vmem:[%s17111_s23 + $0x408] sm:$0xff] %v8723_v31  ;;  %v7978_v51 = vadd.f32 1.0, %v11326_v56  ;;  %11353 = vpow2.f32 %v9897_v28  ;;  %v17681_v1 = vadd.f32 %v17673_v61, %v5781_v63  ;;  %v6043_v28 = vpop.f32.mrf.mxu1  ;;  %v17686_v58 = vadd.f32 %v17673_v61, %v6038_v0 }
 0x597   : > { %v11330_v49 = vpop.eup %11329  ;;  %8981 = vst [vmem:[%s17111_s23 + $0x418] sm:$0xff] %v8725_v10  ;;  %v7980_v50 = vadd.f32 1.0, %v11328_v6  ;;  %11355 = vpow2.f32 %v9899_v13  ;;  %v9907_v13 = vmul.f32 -1.442695, %v17667_v57  ;;  %v17691_v48 = vadd.f32 %v17673_v61, %v5783_v15  ;;  %v5788_v36 = vpop.f32.mrf.mxu0 }
 0x598   : > { %v11332_v3 = vpop.eup %11331  ;;  %v8730_v47 = vmul.f32 %v11330_v49, %v17531_v5  ;;  %11357 = vrcp.f32 %v7978_v51  ;;  %v17696_v63 = vadd.f32 %v17673_v61, %v6040_v40  ;;  %v5787_v0 = vadd.f32 %v5786_v7, %v16169_v22  ;;  %v6045_v6 = vpop.f32.mrf.mxu1 }
 0x599   : > { %v11334_v21 = vpop.eup %11333  ;;  %v8732_v46 = vmul.f32 %v11332_v3, %v17536_v25  ;;  %11359 = vrcp.f32 %v7980_v50  ;;  %v6044_v15 = vadd.f32 %v6043_v28, %v16176_v53  ;;  %v17706_v3 = vpop.permute.xlu1 %6759 }
 0x59a   : > { %v11336_v23 = vpop.eup %11335  ;;  %8986 = vst [vmem:[%s17111_s23 + $0x440] sm:$0xff] %v8730_v47  ;;  %v8731_v5 = vmul.f32 %v11334_v21, %v17541_v24  ;;  %11361 = vpow2.f32 %v9904_v42  ;;  %v9912_v24 = vmul.f32 -1.442695, %v17681_v1  ;;  %v9915_v7 = vmul.f32 -1.442695, %v17696_v63  ;;  %v5792_v47 = vpop.f32.mrf.mxu0 }
 0x59b   : > { %v11338_v31 = vpop.eup %11337  ;;  %8988 = vst [vmem:[%s17111_s23 + $0x450] sm:$0xff] %v8732_v46  ;;  %v8733_v25 = vmul.f32 %v11336_v23, %v17547_v11  ;;  %11363 = vpow2.f32 %v9906_v38  ;;  %v9914_v11 = vmul.f32 -1.442695, %v17686_v58  ;;  %v9913_v38 = vmul.f32 -1.442695, %v17691_v48  ;;  %v6049_v28 = vpop.f32.mrf.mxu1 }
 0x59c   : > { %v11340_v56 = vpop.eup %11339  ;;  %8987 = vst [vmem:[%s17111_s23 + $0x448] sm:$0xff] %v8731_v5  ;;  %v7979_v10 = vadd.f32 1.0, %v11338_v31  ;;  %11365 = vpow2.f32 %v9905_v59  ;;  %v5789_v5 = vadd.f32 %v5788_v36, %v16183_v39 }
 0x59d   : > { %v11342_v51 = vpop.eup %11341  ;;  %8989 = vst [vmem:[%s17111_s23 + $0x458] sm:$0xff] %v8733_v25  ;;  %v7981_v42 = vadd.f32 1.0, %v11340_v56  ;;  %11367 = vpow2.f32 %v9907_v13  ;;  %v6046_v25 = vadd.f32 %v6045_v6, %v16186_v32  ;;  %v5794_v56 = vpop.f32.mrf.mxu0 }
 0x59e   : > { %v11344_v49 = vpop.eup %11343  ;;  %v8738_v50 = vmul.f32 %v11342_v51, %v17561_v9  ;;  %11369 = vrcp.f32 %v7979_v10  ;;  %v17713_v9 = vadd.f32 %v17706_v3, %v5787_v0  ;;  %v6051_v0 = vpop.f32.mrf.mxu1  ;;  %v17728_v32 = vadd.f32 %v17706_v3, %v5789_v5 }
 0x59f   : > { %v11346_v40 = vpop.eup %11345  ;;  %v8740_v22 = vmul.f32 %v11344_v49, %v17566_v37  ;;  %11371 = vrcp.f32 %v7981_v42  ;;  %v17718_v37 = vadd.f32 %v17706_v3, %v6044_v15  ;;  %v17732_v49 = vadd.f32 %v17706_v3, %v6046_v25  ;;  %v20130_v25 = vld [vmem:[#allocation136_spill] sm:$0xff] }
 0x5a0   : > { %v11348_v59 = vpop.eup %11347  ;;  %8994 = vst [vmem:[%s17111_s23 + $0x480] sm:$0xff] %v8738_v50  ;;  %v8739_v53 = vmul.f32 %v11346_v40, %v17571_v14  ;;  %11373 = vpow2.f32 %v9912_v24  ;;  %v9920_v24 = vmul.f32 -1.442695, %v17713_v9  ;;  %v5798_v50 = vpop.f32.mrf.mxu0 }
 0x5a1   : > { %v11350_v21 = vpop.eup %11349  ;;  %8996 = vst [vmem:[%s17111_s23 + $0x490] sm:$0xff] %v8740_v22  ;;  %v8741_v46 = vmul.f32 %v11348_v59, %v17576_v26  ;;  %11375 = vpow2.f32 %v9914_v11  ;;  %v9922_v11 = vmul.f32 -1.442695, %v17718_v37  ;;  %v5793_v22 = vadd.f32 %v5792_v47, %v16194_v44 }
 0x5a2   : > { %v11352_v13 = vpop.eup %11351  ;;  %8995 = vst [vmem:[%s17111_s23 + $0x488] sm:$0xff] %v8739_v53  ;;  %v7986_v23 = vadd.f32 1.0, %v11350_v21  ;;  %11377 = vpow2.f32 %v9913_v38  ;;  %v20128_v53 = vld [vmem:[#allocation138_spill] sm:$0xff]  ;;  %v9923_v47 = vmul.f32 -1.442695, %v17732_v49 }
 0x5a3   : > { %v11354_v14 = vpop.eup %11353  ;;  %8997 = vst [vmem:[%s17111_s23 + $0x498] sm:$0xff] %v8741_v46  ;;  %v7988_v31 = vadd.f32 1.0, %v11352_v13  ;;  %11379 = vpow2.f32 %v9915_v7  ;;  %v6055_v7 = vpop.f32.mrf.mxu1  ;;  %v6050_v21 = vadd.f32 %v6049_v28, %v20128_v53  ;;  %v9921_v13 = vmul.f32 -1.442695, %v17728_v32 }
 0x5a4   : > { %v11356_v10 = vpop.eup %11355  ;;  %11381 = vrcp.f32 %v7986_v23  ;;  %v7987_v26 = vadd.f32 1.0, %v11354_v14  ;;  %v20129_v23 = vld [vmem:[#allocation170_spill] sm:$0xff] }
 0x5a5   : > { %v11358_v51 = vpop.eup %11357  ;;  %11383 = vrcp.f32 %v7988_v31  ;;  %v7989_v42 = vadd.f32 1.0, %v11356_v10  ;;  %v5795_v5 = vadd.f32 %v5794_v56, %v20129_v23  ;;  %v17740_v31 = vpop.permute.xlu0 %6764  ;;  %v6052_v10 = vadd.f32 %v6051_v0, %v20130_v25 }
 0x5a6   : > { %v11360_v39 = vpop.eup %11359  ;;  %v8746_v36 = vmul.f32 %v11358_v51, %v17593_v8  ;;  %11385 = vrcp.f32 %v7987_v26  ;;  %v5800_v26 = vpop.f32.mrf.mxu0  ;;  %v17746_v51 = vadd.f32 %v17740_v31, %v5793_v22 }
 0x5a7   : > { %v11362_v6 = vpop.eup %11361  ;;  %v8748_v15 = vmul.f32 %v11360_v39, %v17598_v62  ;;  %11387 = vrcp.f32 %v7989_v42  ;;  %v6057_v56 = vpop.f32.mrf.mxu1  ;;  %v17750_v39 = vadd.f32 %v17740_v31, %v6050_v21  ;;  %v17759_v22 = vadd.f32 %v17740_v31, %v6052_v10 }
 0x5a8   : > { %v11364_v38 = vpop.eup %11363  ;;  %9002 = vst [vmem:[%s17111_s23 + $0x4c0] sm:$0xff] %v8746_v36  ;;  %v7994_v40 = vadd.f32 1.0, %v11362_v6  ;;  %11389 = vpow2.f32 %v9920_v24  ;;  %v17754_v6 = vadd.f32 %v17740_v31, %v5795_v5 }
 0x5a9   : > { %v11366_v8 = vpop.eup %11365  ;;  %9004 = vst [vmem:[%s17111_s23 + $0x4d0] sm:$0xff] %v8748_v15  ;;  %v7996_v59 = vadd.f32 1.0, %v11364_v38  ;;  %11391 = vpow2.f32 %v9922_v11  ;;  %v6061_v23 = vpop.f32.mrf.mxu1 }
 0x5aa   : > { %v11368_v46 = vpop.eup %11367  ;;  %11393 = vrcp.f32 %v7994_v40  ;;  %v7995_v62 = vadd.f32 1.0, %v11366_v8 }
 0x5ab   : > { %v11370_v14 = vpop.eup %11369  ;;  %11395 = vrcp.f32 %v7996_v59  ;;  %v7997_v44 = vadd.f32 1.0, %v11368_v46  ;;  %v5804_v59 = vpop.f32.mrf.mxu0  ;;  %v9928_v46 = vmul.f32 -1.442695, %v17746_v51 }
 0x5ac   : > { %v11372_v24 = vpop.eup %11371  ;;  %v8747_v28 = vmul.f32 %v11370_v14, %v17608_v43  ;;  %11397 = vrcp.f32 %v7995_v62  ;;  %v20131_v43 = vld [vmem:[#allocation117_spill] sm:$0xff]  ;;  %v20133_v62 = vld [vmem:[#allocation155_spill] sm:$0xff] }
 0x5ad   : > { %v11374_v42 = vpop.eup %11373  ;;  %v8749_v11 = vmul.f32 %v11372_v24, %v17612_v29  ;;  %11399 = vrcp.f32 %v7997_v44  ;;  %v5799_v15 = vadd.f32 %v5798_v50, %v20131_v43  ;;  %v20132_v29 = vld [vmem:[#allocation152_spill] sm:$0xff]  ;;  %v17764_v50 = vpop.permute.xlu1 %6769  ;;  %v9930_v44 = vmul.f32 -1.442695, %v17750_v39 }
 0x5ae   : > { %v11376_v36 = vpop.eup %11375  ;;  %9003 = vst [vmem:[%s17111_s23 + $0x4c8] sm:$0xff] %v8747_v28  ;;  %v8002_v0 = vadd.f32 1.0, %v11374_v42  ;;  %11401 = vpow2.f32 %v9921_v13  ;;  %v6056_v8 = vadd.f32 %v6055_v7, %v20132_v29  ;;  %v5801_v13 = vadd.f32 %v5800_v26, %v20133_v62 }
 0x5af   : > { %v11378_v38 = vpop.eup %11377  ;;  %9005 = vst [vmem:[%s17111_s23 + $0x4d8] sm:$0xff] %v8749_v11  ;;  %v8004_v40 = vadd.f32 1.0, %v11376_v36  ;;  %11403 = vpow2.f32 %v9923_v47  ;;  %v20134_v47 = vld [vmem:[#allocation120_spill] sm:$0xff]  ;;  %v9929_v24 = vmul.f32 -1.442695, %v17754_v6  ;;  %v17771_v26 = vadd.f32 %v17764_v50, %v5799_v15  ;;  %v20135_v15 = vld [vmem:[#allocation106_spill] sm:$0xff] }
 0x5b0   : > { %v11380_v53 = vpop.eup %11379  ;;  %11405 = vrcp.f32 %v8002_v0  ;;  %v8003_v21 = vadd.f32 1.0, %v11378_v38  ;;  %v6058_v25 = vadd.f32 %v6057_v56, %v20134_v47  ;;  %v9931_v11 = vmul.f32 -1.442695, %v17759_v22  ;;  %v5806_v56 = vpop.f32.mrf.mxu0 }
 0x5b1   : > { %v11382_v5 = vpop.eup %11381  ;;  %11407 = vrcp.f32 %v8004_v40  ;;  %v8005_v14 = vadd.f32 1.0, %v11380_v53  ;;  %v17776_v36 = vadd.f32 %v17764_v50, %v6056_v8  ;;  %v17781_v43 = vadd.f32 %v17764_v50, %v5801_v13  ;;  %v20136_v53 = vld [vmem:[#allocation110_spill] sm:$0xff]  ;;  %v20137_v13 = vld [vmem:[#allocation132_spill] sm:$0xff] }
 0x5b2   : > { %v11384_v7 = vpop.eup %11383  ;;  %v8754_v10 = vmul.f32 %v11382_v5, %v17626_v45  ;;  %11409 = vrcp.f32 %v8003_v21  ;;  %v5805_v38 = vadd.f32 %v5804_v59, %v20135_v15  ;;  %v17787_v8 = vadd.f32 %v17764_v50, %v6058_v25 }
 0x5b3   : > { %v11386_v28 = vpop.eup %11385  ;;  %v8756_v42 = vmul.f32 %v11384_v7, %v17630_v34  ;;  %11411 = vrcp.f32 %v8005_v14  ;;  %v6063_v34 = vpop.f32.mrf.mxu1  ;;  %v6062_v21 = vadd.f32 %v6061_v23, %v20136_v53  ;;  %v5807_v59 = vadd.f32 %v5806_v56, %v20137_v13 }
 0x5b4   : > { %v11388_v0 = vpop.eup %11387  ;;  %9010 = vst [vmem:[%s17111_s23 + $0x500] sm:$0xff] %v8754_v10  ;;  %v8755_v45 = vmul.f32 %v11386_v28, %v17634_v18  ;;  %11413 = vpow2.f32 %v9928_v46  ;;  %v9936_v46 = vmul.f32 -1.442695, %v17771_v26  ;;  %v17793_v14 = vpop.permute.xlu0 %6774 }
 0x5b5   : > { %v11390_v40 = vpop.eup %11389  ;;  %9012 = vst [vmem:[%s17111_s23 + $0x510] sm:$0xff] %v8756_v42  ;;  %v8757_v29 = vmul.f32 %v11388_v0, %v17639_v41  ;;  %11415 = vpow2.f32 %v9930_v44  ;;  %v9938_v41 = vmul.f32 -1.442695, %v17776_v36  ;;  %v20138_v44 = vld [vmem:[#allocation10_spill] sm:$0xff]  ;;  %v5810_v23 = vpop.f32.mrf.mxu0  ;;  %v17801_v28 = vadd.f32 %v17793_v14, %v5805_v38 }
 0x5b6   : > { %v11392_v62 = vpop.eup %11391  ;;  %9011 = vst [vmem:[%s17111_s23 + $0x508] sm:$0xff] %v8755_v45  ;;  %v8010_v18 = vadd.f32 1.0, %v11390_v40  ;;  %11417 = vpow2.f32 %v9929_v24  ;;  %v6064_v25 = vadd.f32 %v6063_v34, %v20138_v44  ;;  %v9937_v24 = vmul.f32 -1.442695, %v17781_v43  ;;  %v6067_v42 = vpop.f32.mrf.mxu1 }
 0x5b7   : > { %v11394_v5 = vpop.eup %11393  ;;  %9013 = vst [vmem:[%s17111_s23 + $0x518] sm:$0xff] %v8757_v29  ;;  %v8012_v47 = vadd.f32 1.0, %v11392_v62  ;;  %11419 = vpow2.f32 %v9931_v11  ;;  %v9939_v0 = vmul.f32 -1.442695, %v17787_v8  ;;  %v17806_v45 = vadd.f32 %v17793_v14, %v6062_v21  ;;  %v5812_v29 = vpop.f32.mrf.mxu0  ;;  %v20139_v62 = vld [vmem:[#allocation103_spill] sm:$0xff] }
 0x5b8   : > { %v11396_v7 = vpop.eup %11395  ;;  %v8762_v10 = vmul.f32 %v11394_v5, %v17651_v4  ;;  %11421 = vrcp.f32 %v8010_v18  ;;  %v17811_v38 = vadd.f32 %v17793_v14, %v5807_v59  ;;  %v17816_v40 = vadd.f32 %v17793_v14, %v6064_v25  ;;  %v20140_v5 = vld [vmem:[#allocation14_spill] sm:$0xff] }
 0x5b9   : > { %v11398_v56 = vpop.eup %11397  ;;  %v8764_v11 = vmul.f32 %v11396_v7, %v17656_v2  ;;  %11423 = vrcp.f32 %v8012_v47  ;;  %v5811_v18 = vadd.f32 %v5810_v23, %v20139_v62  ;;  %v6068_v47 = vadd.f32 %v6067_v42, %v20140_v5  ;;  %v20142_v62 = vld [vmem:[#allocation101_spill] sm:$0xff] }
 0x5ba   : > { %v11400_v15 = vpop.eup %11399  ;;  %9018 = vst [vmem:[%s17111_s23 + $0x540] sm:$0xff] %v8762_v10  ;;  %v8763_v4 = vmul.f32 %v11398_v56, %v17661_v60  ;;  %11425 = vpow2.f32 %v9936_v46  ;;  %v9944_v60 = vmul.f32 -1.442695, %v17801_v28  ;;  %v6069_v46 = vpop.f32.mrf.mxu1  ;;  %v9945_v25 = vmul.f32 -1.442695, %v17811_v38 }
 0x5bb   : > { %v11402_v34 = vpop.eup %11401  ;;  %9020 = vst [vmem:[%s17111_s23 + $0x550] sm:$0xff] %v8764_v11  ;;  %v8765_v2 = vmul.f32 %v11400_v15, %v17667_v57  ;;  %11427 = vpow2.f32 %v9938_v41  ;;  %v9946_v57 = vmul.f32 -1.442695, %v17806_v45  ;;  %v17826_v10 = vpop.permute.xlu1 %6779 }
 0x5bc   : > { %v11404_v53 = vpop.eup %11403  ;;  %9019 = vst [vmem:[%s17111_s23 + $0x548] sm:$0xff] %v8763_v4  ;;  %v8011_v21 = vadd.f32 1.0, %v11402_v34  ;;  %11429 = vpow2.f32 %v9937_v24  ;;  %v9947_v24 = vmul.f32 -1.442695, %v17816_v40  ;;  %v5816_v56 = vpop.f32.mrf.mxu0 }
 0x5bd   : > { %v11406_v13 = vpop.eup %11405  ;;  %9021 = vst [vmem:[%s17111_s23 + $0x558] sm:$0xff] %v8765_v2  ;;  %v8013_v59 = vadd.f32 1.0, %v11404_v53  ;;  %11431 = vpow2.f32 %v9939_v0  ;;  %v6073_v0 = vpop.f32.mrf.mxu1  ;;  %v20141_v53 = vld [vmem:[#allocation173_spill] sm:$0xff] }
 0x5be   : > { %v11408_v41 = vpop.eup %11407  ;;  %v8770_v44 = vmul.f32 %v11406_v13, %v17681_v1  ;;  %11433 = vrcp.f32 %v8011_v21  ;;  %v17833_v1 = vadd.f32 %v17826_v10, %v5811_v18  ;;  %v5813_v21 = vadd.f32 %v5812_v29, %v20141_v53  ;;  %v5818_v13 = vpop.f32.mrf.mxu0 }
 0x5bf   : > { %v11410_v7 = vpop.eup %11409  ;;  %v8772_v23 = vmul.f32 %v11408_v41, %v17686_v58  ;;  %11435 = vrcp.f32 %v8013_v59  ;;  %v17838_v58 = vadd.f32 %v17826_v10, %v6068_v47  ;;  %v6070_v18 = vadd.f32 %v6069_v46, %v20142_v62  ;;  %v6075_v5 = vpop.f32.mrf.mxu1 }
 0x5c0   : > { %v11412_v11 = vpop.eup %11411  ;;  %9026 = vst [vmem:[%s17111_s23 + $0x580] sm:$0xff] %v8770_v44  ;;  %v8771_v42 = vmul.f32 %v11410_v7, %v17691_v48  ;;  %11437 = vpow2.f32 %v9944_v60  ;;  %v17848_v46 = vadd.f32 %v17826_v10, %v5813_v21  ;;  %v20144_v21 = vld [vmem:[#allocation143_spill] sm:$0xff] }
 0x5c1   : > { %v11414_v15 = vpop.eup %11413  ;;  %9028 = vst [vmem:[%s17111_s23 + $0x590] sm:$0xff] %v8772_v23  ;;  %v8773_v4 = vmul.f32 %v11412_v11, %v17696_v63  ;;  %11439 = vpow2.f32 %v9946_v57  ;;  %v9952_v57 = vmul.f32 -1.442695, %v17833_v1  ;;  %v9954_v44 = vmul.f32 -1.442695, %v17838_v58  ;;  %v5822_v11 = vpop.f32.mrf.mxu0 }
 0x5c2   : > { %v11416_v34 = vpop.eup %11415  ;;  %9027 = vst [vmem:[%s17111_s23 + $0x588] sm:$0xff] %v8771_v42  ;;  %v8018_v2 = vadd.f32 1.0, %v11414_v15  ;;  %11441 = vpow2.f32 %v9945_v25  ;;  %v9953_v62 = vmul.f32 -1.442695, %v17848_v46 }
 0x5c3   : > { %v11418_v48 = vpop.eup %11417  ;;  %9029 = vst [vmem:[%s17111_s23 + $0x598] sm:$0xff] %v8773_v4  ;;  %v8020_v60 = vadd.f32 1.0, %v11416_v34  ;;  %11443 = vpow2.f32 %v9947_v24  ;;  %v17852_v24 = vadd.f32 %v17826_v10, %v6070_v18  ;;  %v20143_v4 = vld [vmem:[#allocation165_spill] sm:$0xff]  ;;  %v20145_v18 = vld [vmem:[#allocation139_spill] sm:$0xff] }
 0x5c4   : > { %v11420_v59 = vpop.eup %11419  ;;  %11445 = vrcp.f32 %v8018_v2  ;;  %v8019_v63 = vadd.f32 1.0, %v11418_v48  ;;  %v5817_v34 = vadd.f32 %v5816_v56, %v20143_v4  ;;  %v6079_v2 = vpop.f32.mrf.mxu1  ;;  %v6074_v48 = vadd.f32 %v6073_v0, %v20144_v21 }
 0x5c5   : > { %v11422_v47 = vpop.eup %11421  ;;  %11447 = vrcp.f32 %v8020_v60  ;;  %v8021_v41 = vadd.f32 1.0, %v11420_v59  ;;  %v5819_v59 = vadd.f32 %v5818_v13, %v20145_v18 }
 0x5c6   : > { %v11424_v29 = vpop.eup %11423  ;;  %v8778_v25 = vmul.f32 %v11422_v47, %v17713_v9  ;;  %11449 = vrcp.f32 %v8019_v63  ;;  %v17860_v47 = vpop.permute.xlu0 %6784 }
 0x5c7   : > { %v11426_v7 = vpop.eup %11425  ;;  %v8780_v23 = vmul.f32 %v11424_v29, %v17718_v37  ;;  %11451 = vrcp.f32 %v8021_v41  ;;  %v20146_v41 = vld [vmem:[#allocation5_spill] sm:$0xff]  ;;  %v6081_v13 = vpop.f32.mrf.mxu1 }
 0x5c8   : > { %v11428_v42 = vpop.eup %11427  ;;  %9034 = vst [vmem:[%s17111_s23 + $0x5c0] sm:$0xff] %v8778_v25  ;;  %v8026_v15 = vadd.f32 1.0, %v11426_v7  ;;  %11453 = vpow2.f32 %v9952_v57  ;;  %v9955_v57 = vmul.f32 -1.442695, %v17852_v24  ;;  %v6076_v29 = vadd.f32 %v6075_v5, %v20146_v41 }
 0x5c9   : > { %v11430_v9 = vpop.eup %11429  ;;  %9036 = vst [vmem:[%s17111_s23 + $0x5d0] sm:$0xff] %v8780_v23  ;;  %v8028_v53 = vadd.f32 1.0, %v11428_v42  ;;  %11455 = vpow2.f32 %v9954_v44  ;;  %v5824_v44 = vpop.f32.mrf.mxu0  ;;  %v17866_v7 = vadd.f32 %v17860_v47, %v5817_v34 }
 0x5ca   : > { %v11432_v60 = vpop.eup %11431  ;;  %11457 = vrcp.f32 %v8026_v15  ;;  %v8027_v37 = vadd.f32 1.0, %v11430_v9  ;;  %v17870_v15 = vadd.f32 %v17860_v47, %v6074_v48  ;;  %v17874_v9 = vadd.f32 %v17860_v47, %v5819_v59  ;;  %v6085_v41 = vpop.f32.mrf.mxu1 }
 0x5cb   : > { %v11434_v63 = vpop.eup %11433  ;;  %11459 = vrcp.f32 %v8028_v53  ;;  %v8029_v56 = vadd.f32 1.0, %v11432_v60  ;;  %v17879_v60 = vadd.f32 %v17860_v47, %v6076_v29  ;;  %v5828_v48 = vpop.f32.mrf.mxu0 }
 0x5cc   : > { %v11436_v25 = vpop.eup %11435  ;;  %v8779_v0 = vmul.f32 %v11434_v63, %v17728_v32  ;;  %11461 = vrcp.f32 %v8027_v37  ;;  %v20147_v32 = vld [vmem:[#allocation154_spill] sm:$0xff]  ;;  %v9962_v29 = vmul.f32 -1.442695, %v17870_v15 }
 0x5cd   : > { %v11438_v23 = vpop.eup %11437  ;;  %v8781_v42 = vmul.f32 %v11436_v25, %v17732_v49  ;;  %11463 = vrcp.f32 %v8029_v56  ;;  %v5823_v53 = vadd.f32 %v5822_v11, %v20147_v32  ;;  %v20148_v49 = vld [vmem:[#allocation118_spill] sm:$0xff]  ;;  %v20149_v56 = vld [vmem:[#allocation145_spill] sm:$0xff]  ;;  %v17884_v11 = vpop.permute.xlu1 %6789 }
 0x5ce   : > { %v11440_v4 = vpop.eup %11439  ;;  %9035 = vst [vmem:[%s17111_s23 + $0x5c8] sm:$0xff] %v8779_v0  ;;  %v8034_v5 = vadd.f32 1.0, %v11438_v23  ;;  %11465 = vpow2.f32 %v9953_v62  ;;  %v6080_v37 = vadd.f32 %v6079_v2, %v20148_v49  ;;  %v9960_v62 = vmul.f32 -1.442695, %v17866_v7  ;;  %v20150_v0 = vld [vmem:[#allocation129_spill] sm:$0xff] }
 0x5cf   : > { %v11442_v21 = vpop.eup %11441  ;;  %9037 = vst [vmem:[%s17111_s23 + $0x5d8] sm:$0xff] %v8781_v42  ;;  %v8036_v34 = vadd.f32 1.0, %v11440_v4  ;;  %11467 = vpow2.f32 %v9955_v57  ;;  %v5825_v59 = vadd.f32 %v5824_v44, %v20149_v56  ;;  %v6082_v23 = vadd.f32 %v6081_v13, %v20150_v0  ;;  %v5830_v13 = vpop.f32.mrf.mxu0 }
 0x5d0   : > { %v11444_v18 = vpop.eup %11443  ;;  %11469 = vrcp.f32 %v8034_v5  ;;  %v8035_v63 = vadd.f32 1.0, %v11442_v21  ;;  %v9961_v4 = vmul.f32 -1.442695, %v17874_v9  ;;  %v17891_v44 = vadd.f32 %v17884_v11, %v5823_v53  ;;  %v20151_v53 = vld [vmem:[#allocation130_spill] sm:$0xff] }
 0x5d1   : > { %v11446_v25 = vpop.eup %11445  ;;  %11471 = vrcp.f32 %v8036_v34  ;;  %v8037_v57 = vadd.f32 1.0, %v11444_v18  ;;  %v9963_v21 = vmul.f32 -1.442695, %v17879_v60  ;;  %v17896_v34 = vadd.f32 %v17884_v11, %v6080_v37 }
 0x5d2   : > { %v11448_v2 = vpop.eup %11447  ;;  %v8786_v42 = vmul.f32 %v11446_v25, %v17746_v51  ;;  %11473 = vrcp.f32 %v8035_v63  ;;  %v17901_v18 = vadd.f32 %v17884_v11, %v5825_v59  ;;  %v5829_v63 = vadd.f32 %v5828_v48, %v20151_v53  ;;  %v20153_v59 = vld [vmem:[#allocation168_spill] sm:$0xff] }
 0x5d3   : > { %v11450_v5 = vpop.eup %11449  ;;  %v8788_v32 = vmul.f32 %v11448_v2, %v17750_v39  ;;  %11475 = vrcp.f32 %v8037_v57  ;;  %v6087_v39 = vpop.f32.mrf.mxu1  ;;  %v17907_v37 = vadd.f32 %v17884_v11, %v6082_v23  ;;  %v20152_v57 = vld [vmem:[#allocation128_spill] sm:$0xff]  ;;  %v5831_v48 = vadd.f32 %v5830_v13, %v20153_v59 }
 0x5d4   : > { %v11452_v49 = vpop.eup %11451  ;;  %9042 = vst [vmem:[%s17111_s23 + $0x600] sm:$0xff] %v8786_v42  ;;  %v8787_v51 = vmul.f32 %v11450_v5, %v17754_v6  ;;  %11477 = vpow2.f32 %v9960_v62  ;;  %v6086_v0 = vadd.f32 %v6085_v41, %v20152_v57  ;;  %v9968_v62 = vmul.f32 -1.442695, %v17891_v44  ;;  %v17913_v5 = vpop.permute.xlu0 %6794 }
 0x5d5   : > { %v11454_v56 = vpop.eup %11453  ;;  %9044 = vst [vmem:[%s17111_s23 + $0x610] sm:$0xff] %v8788_v32  ;;  %v8789_v25 = vmul.f32 %v11452_v49, %v17759_v22  ;;  %11479 = vpow2.f32 %v9962_v29  ;;  %20154 = vst [vmem:[#allocation144_spill] sm:$0xff] %v17913_v5  ;;  %v9970_v22 = vmul.f32 -1.442695, %v17896_v34  ;;  %v20155_v29 = vld [vmem:[#allocation135_spill] sm:$0xff]  ;;  %v5834_v41 = vpop.f32.mrf.mxu0  ;;  %v17921_v13 = vadd.f32 %v17913_v5, %v5829_v63 }
 0x5d6   : > { %v11456_v2 = vpop.eup %11455  ;;  %9043 = vst [vmem:[%s17111_s23 + $0x608] sm:$0xff] %v8787_v51  ;;  %v8042_v6 = vadd.f32 1.0, %v11454_v56  ;;  %11481 = vpow2.f32 %v9961_v4  ;;  %v6088_v23 = vadd.f32 %v6087_v39, %v20155_v29  ;;  %v9969_v4 = vmul.f32 -1.442695, %v17901_v18  ;;  %v6091_v53 = vpop.f32.mrf.mxu1 }
 0x5d7   : > { %v11458_v42 = vpop.eup %11457  ;;  %9045 = vst [vmem:[%s17111_s23 + $0x618] sm:$0xff] %v8789_v25  ;;  %v8044_v32 = vadd.f32 1.0, %v11456_v2  ;;  %11483 = vpow2.f32 %v9963_v21  ;;  %v9971_v25 = vmul.f32 -1.442695, %v17907_v37  ;;  %v17926_v39 = vadd.f32 %v17913_v5, %v6086_v0  ;;  %v5836_v59 = vpop.f32.mrf.mxu0 }
 0x5d8   : > { %v11460_v49 = vpop.eup %11459  ;;  %v8794_v51 = vmul.f32 %v11458_v42, %v17771_v26  ;;  %11485 = vrcp.f32 %v8042_v6  ;;  %v17931_v63 = vadd.f32 %v17913_v5, %v5831_v48  ;;  %v17936_v6 = vadd.f32 %v17913_v5, %v6088_v23  ;;  %v6093_v29 = vpop.f32.mrf.mxu1 }
 0x5d9   : > { %v11462_v56 = vpop.eup %11461  ;;  %v8796_v21 = vmul.f32 %v11460_v49, %v17776_v36  ;;  %11487 = vrcp.f32 %v8044_v32 }
 0x5da   : > { %v11464_v57 = vpop.eup %11463  ;;  %9050 = vst [vmem:[%s17111_s23 + $0x640] sm:$0xff] %v8794_v51  ;;  %v8795_v26 = vmul.f32 %v11462_v56, %v17781_v43  ;;  %11489 = vpow2.f32 %v9968_v62  ;;  %v9976_v43 = vmul.f32 -1.442695, %v17921_v13  ;;  %v20156_v62 = vld [vmem:[#allocation112_spill] sm:$0xff] }
 0x5db   : > { %v11466_v2 = vpop.eup %11465  ;;  %9052 = vst [vmem:[%s17111_s23 + $0x650] sm:$0xff] %v8796_v21  ;;  %v8797_v36 = vmul.f32 %v11464_v57, %v17787_v8  ;;  %11491 = vpow2.f32 %v9970_v22  ;;  %v5835_v32 = vadd.f32 %v5834_v41, %v20156_v62  ;;  %v9978_v8 = vmul.f32 -1.442695, %v17926_v39  ;;  %v20157_v22 = vld [vmem:[#allocation122_spill] sm:$0xff]  ;;  %v17946_v57 = vpop.permute.xlu1 %6799 }
 0x5dc   : > { %v11468_v0 = vpop.eup %11467  ;;  %9051 = vst [vmem:[%s17111_s23 + $0x648] sm:$0xff] %v8795_v26  ;;  %v8043_v42 = vadd.f32 1.0, %v11466_v2  ;;  %11493 = vpow2.f32 %v9969_v4  ;;  %v6092_v23 = vadd.f32 %v6091_v53, %v20157_v22  ;;  %v9977_v4 = vmul.f32 -1.442695, %v17931_v63  ;;  %20158 = vst [vmem:[#allocation105_spill] sm:$0xff] %v17946_v57  ;;  %v6162_v26 = vpop.f32.mrf.mxu0 }
 0x5dd   : > { %v11470_v48 = vpop.eup %11469  ;;  %9053 = vst [vmem:[%s17111_s23 + $0x658] sm:$0xff] %v8797_v36  ;;  %v8045_v49 = vadd.f32 1.0, %v11468_v0  ;;  %11495 = vpow2.f32 %v9971_v25  ;;  %v9979_v25 = vmul.f32 -1.442695, %v17936_v6  ;;  %v6419_v36 = vpop.f32.mrf.mxu1 }
 0x5de   : > { %v11472_v51 = vpop.eup %11471  ;;  %v8802_v56 = vmul.f32 %v11470_v48, %v17801_v28  ;;  %11497 = vrcp.f32 %v8043_v42  ;;  %v17953_v28 = vadd.f32 %v17946_v57, %v5835_v32  ;;  %v20160_v32 = vld [vmem:[#allocation4_spill] sm:$0xff] }
 0x5df   : > { %v11474_v21 = vpop.eup %11473  ;;  %v8804_v41 = vmul.f32 %v11472_v51, %v17806_v45  ;;  %11499 = vrcp.f32 %v8045_v49  ;;  %v17958_v45 = vadd.f32 %v17946_v57, %v6092_v23  ;;  %v20159_v49 = vld [vmem:[#allocation3_spill] sm:$0xff]  ;;  %v6094_v51 = vadd.f32 %v6093_v29, %v20160_v32  ;;  %v6421_v23 = vpop.f32.mrf.mxu1 }
 0x5e0   : > { %v11476_v2 = vpop.eup %11475  ;;  %9058 = vst [vmem:[%s17111_s23 + $0x680] sm:$0xff] %v8802_v56  ;;  %v8803_v53 = vmul.f32 %v11474_v21, %v17811_v38  ;;  %11501 = vpow2.f32 %v9976_v43  ;;  %v5837_v22 = vadd.f32 %v5836_v59, %v20159_v49  ;;  %v6164_v56 = vpop.f32.mrf.mxu0 }
 0x5e1   : > { %v11478_v0 = vpop.eup %11477  ;;  %9060 = vst [vmem:[%s17111_s23 + $0x690] sm:$0xff] %v8804_v41  ;;  %v8805_v42 = vmul.f32 %v11476_v2, %v17816_v40  ;;  %11503 = vpow2.f32 %v9978_v8  ;;  %v9984_v8 = vmul.f32 -1.442695, %v17953_v28  ;;  %v6425_v32 = vpop.f32.mrf.mxu1 }
 0x5e2   : > { %v11480_v62 = vpop.eup %11479  ;;  %9059 = vst [vmem:[%s17111_s23 + $0x688] sm:$0xff] %v8803_v53  ;;  %v8050_v48 = vadd.f32 1.0, %v11478_v0  ;;  %11505 = vpow2.f32 %v9977_v4  ;;  %v9986_v4 = vmul.f32 -1.442695, %v17958_v45  ;;  %v17968_v29 = vadd.f32 %v17946_v57, %v5837_v22  ;;  %v20162_v22 = vld [vmem:[#allocation163_spill] sm:$0xff] }
 0x5e3   : > { %v11482_v38 = vpop.eup %11481  ;;  %9061 = vst [vmem:[%s17111_s23 + $0x698] sm:$0xff] %v8805_v42  ;;  %v8052_v43 = vadd.f32 1.0, %v11480_v62  ;;  %11507 = vpow2.f32 %v9979_v25  ;;  %v17972_v42 = vadd.f32 %v17946_v57, %v6094_v51  ;;  %v6168_v62 = vpop.f32.mrf.mxu0 }
 0x5e4   : > { %v11484_v21 = vpop.eup %11483  ;;  %11509 = vrcp.f32 %v8050_v48  ;;  %v8051_v40 = vadd.f32 1.0, %v11482_v38  ;;  %v20161_v38 = vld [vmem:[#allocation124_spill] sm:$0xff]  ;;  %v9985_v51 = vmul.f32 -1.442695, %v17968_v29 }
 0x5e5   : > { %v11486_v41 = vpop.eup %11485  ;;  %11511 = vrcp.f32 %v8052_v43  ;;  %v8053_v2 = vadd.f32 1.0, %v11484_v21  ;;  %v6163_v43 = vadd.f32 %v6162_v26, %v20161_v38  ;;  %v9987_v26 = vmul.f32 -1.442695, %v17972_v42  ;;  %v6427_v38 = vpop.f32.mrf.mxu1 }
 0x5e6   : > { %v11488_v59 = vpop.eup %11487  ;;  %v8810_v53 = vmul.f32 %v11486_v41, %v17833_v1  ;;  %11513 = vrcp.f32 %v8051_v40  ;;  %v6420_v40 = vadd.f32 %v6419_v36, %v20162_v22 }
 0x5e7   : > { %v11490_v25 = vpop.eup %11489  ;;  %v8812_v0 = vmul.f32 %v11488_v59, %v17838_v58  ;;  %11515 = vrcp.f32 %v8053_v2  ;;  %v20163_v2 = vld [vmem:[#allocation6_spill] sm:$0xff] }
 0x5e8   : > { %v11492_v48 = vpop.eup %11491  ;;  %9066 = vst [vmem:[%s17111_s23 + $0x6c0] sm:$0xff] %v8810_v53  ;;  %v8058_v49 = vadd.f32 1.0, %v11490_v25  ;;  %11517 = vpow2.f32 %v9984_v8  ;;  %v6165_v59 = vadd.f32 %v6164_v56, %v20163_v2  ;;  %v20164_v53 = vld [vmem:[#allocation2_spill] sm:$0xff] }
 0x5e9   : > { %v11494_v1 = vpop.eup %11493  ;;  %9068 = vst [vmem:[%s17111_s23 + $0x6d0] sm:$0xff] %v8812_v0  ;;  %v8060_v21 = vadd.f32 1.0, %v11492_v48  ;;  %11519 = vpow2.f32 %v9986_v4  ;;  %v6422_v25 = vadd.f32 %v6421_v23, %v20164_v53  ;;  %v6170_v0 = vpop.f32.mrf.mxu0  ;;  %v20165_v4 = vld [vmem:[#allocation242_spill] sm:$0xff] }
 0x5ea   : > { %v11496_v41 = vpop.eup %11495  ;;  %11521 = vrcp.f32 %v8058_v49  ;;  %v8059_v58 = vadd.f32 1.0, %v11494_v1  ;;  %v17984_v49 = vadd.f32 %v20165_v4, %v6163_v43 }
 0x5eb   : > { %v11498_v57 = vpop.eup %11497  ;;  %11523 = vrcp.f32 %v8060_v21  ;;  %v8061_v8 = vadd.f32 1.0, %v11496_v41  ;;  %v17988_v21 = vadd.f32 %v20165_v4, %v6420_v40  ;;  %v17992_v41 = vadd.f32 %v20165_v4, %v6165_v59  ;;  %v6174_v40 = vpop.f32.mrf.mxu0 }
 0x5ec   : > { %v11500_v48 = vpop.eup %11499  ;;  %v8811_v36 = vmul.f32 %v11498_v57, %v17848_v46  ;;  %11525 = vrcp.f32 %v8059_v58  ;;  %v20166_v46 = vld [vmem:[#allocation7_spill] sm:$0xff]  ;;  %v17997_v2 = vadd.f32 %v20165_v4, %v6422_v25 }
 0x5ed   : > { %v11502_v1 = vpop.eup %11501  ;;  %v8813_v56 = vmul.f32 %v11500_v48, %v17852_v24  ;;  %11527 = vrcp.f32 %v8061_v8  ;;  %v6169_v57 = vadd.f32 %v6168_v62, %v20166_v46  ;;  %v20167_v24 = vld [vmem:[#allocation109_spill] sm:$0xff] }
 0x5ee   : > { %v11504_v22 = vpop.eup %11503  ;;  %9067 = vst [vmem:[%s17111_s23 + $0x6c8] sm:$0xff] %v8811_v36  ;;  %v8066_v23 = vadd.f32 1.0, %v11502_v1  ;;  %11529 = vpow2.f32 %v9985_v51  ;;  %v6426_v8 = vadd.f32 %v6425_v32, %v20167_v24  ;;  %v9740_v51 = vmul.f32 -1.442695, %v17984_v49  ;;  %v20168_v36 = vld [vmem:[#allocation9_spill] sm:$0xff]  ;;  %v6431_v1 = vpop.f32.mrf.mxu1 }
 0x5ef   : > { %v11506_v58 = vpop.eup %11505  ;;  %9069 = vst [vmem:[%s17111_s23 + $0x6d8] sm:$0xff] %v8813_v56  ;;  %v8068_v43 = vadd.f32 1.0, %v11504_v22  ;;  %11531 = vpow2.f32 %v9987_v26  ;;  %v6171_v59 = vadd.f32 %v6170_v0, %v20168_v36  ;;  %v9742_v26 = vmul.f32 -1.442695, %v17988_v21  ;;  %v20169_v56 = vld [vmem:[#allocation172_spill] sm:$0xff] }
 0x5f0   : > { %v11508_v53 = vpop.eup %11507  ;;  %11533 = vrcp.f32 %v8066_v23  ;;  %v8067_v48 = vadd.f32 1.0, %v11506_v58  ;;  %v6428_v25 = vadd.f32 %v6427_v38, %v20169_v56  ;;  %v9741_v22 = vmul.f32 -1.442695, %v17992_v41  ;;  %v20170_v23 = vld [vmem:[#allocation162_spill] sm:$0xff]  ;;  %v6176_v38 = vpop.f32.mrf.mxu0  ;;  %v20172_v56 = vld [vmem:[#allocation11_spill] sm:$0xff] }
 0x5f1   : > { %v11510_v5 = vpop.eup %11509  ;;  %11535 = vrcp.f32 %v8068_v43  ;;  %v8069_v62 = vadd.f32 1.0, %v11508_v53  ;;  %v18007_v46 = vadd.f32 %v20170_v23, %v6169_v57  ;;  %v9743_v43 = vmul.f32 -1.442695, %v17997_v2  ;;  %v20171_v57 = vld [vmem:[#allocation8_spill] sm:$0xff] }
 0x5f2   : > { %v11512_v4 = vpop.eup %11511  ;;  %v8818_v32 = vmul.f32 %v11510_v5, %v17866_v7  ;;  %11537 = vrcp.f32 %v8067_v48  ;;  %v18012_v24 = vadd.f32 %v20170_v23, %v6426_v8  ;;  %v18017_v5 = vadd.f32 %v20170_v23, %v6171_v59  ;;  %v20173_v59 = vld [vmem:[#allocation174_spill] sm:$0xff] }
 0x5f3   : > { %v11514_v0 = vpop.eup %11513  ;;  %v8820_v58 = vmul.f32 %v11512_v4, %v17870_v15  ;;  %11539 = vrcp.f32 %v8069_v62  ;;  %v6175_v48 = vadd.f32 %v6174_v40, %v20171_v57  ;;  %v6433_v15 = vpop.f32.mrf.mxu1  ;;  %v18023_v8 = vadd.f32 %v20170_v23, %v6428_v25 }
 0x5f4   : > { %v11516_v53 = vpop.eup %11515  ;;  %9074 = vst [vmem:[%s17111_s23 + $0x700] sm:$0xff] %v8818_v32  ;;  %v8819_v7 = vmul.f32 %v11514_v0, %v17874_v9  ;;  %11541 = vpow2.f32 %v9740_v51  ;;  %v6432_v4 = vadd.f32 %v6431_v1, %v20172_v56  ;;  %v9748_v51 = vmul.f32 -1.442695, %v18007_v46  ;;  %v6180_v23 = vpop.f32.mrf.mxu0 }
 0x5f5   : > { %v11518_v36 = vpop.eup %11517  ;;  %9076 = vst [vmem:[%s17111_s23 + $0x710] sm:$0xff] %v8820_v58  ;;  %v8821_v62 = vmul.f32 %v11516_v53, %v17879_v60  ;;  %11543 = vpow2.f32 %v9742_v26  ;;  %v6177_v0 = vadd.f32 %v6176_v38, %v20173_v59  ;;  %v9750_v60 = vmul.f32 -1.442695, %v18012_v24  ;;  %v20174_v26 = vld [vmem:[#allocation127_spill] sm:$0xff]  ;;  %v6437_v38 = vpop.f32.mrf.mxu1 }
 0x5f6   : > { %v11520_v32 = vpop.eup %11519  ;;  %9075 = vst [vmem:[%s17111_s23 + $0x708] sm:$0xff] %v8819_v7  ;;  %v8074_v9 = vadd.f32 1.0, %v11518_v36  ;;  %11545 = vpow2.f32 %v9741_v22  ;;  %v6434_v25 = vadd.f32 %v6433_v15, %v20174_v26  ;;  %v9749_v22 = vmul.f32 -1.442695, %v18017_v5  ;;  %v20175_v53 = vld [vmem:[#allocation147_spill] sm:$0xff]  ;;  %v6182_v59 = vpop.f32.mrf.mxu0 }
 0x5f7   : > { %v11522_v40 = vpop.eup %11521  ;;  %9077 = vst [vmem:[%s17111_s23 + $0x718] sm:$0xff] %v8821_v62  ;;  %v8076_v57 = vadd.f32 1.0, %v11520_v32  ;;  %11547 = vpow2.f32 %v9743_v43  ;;  %v18035_v7 = vadd.f32 %v20175_v53, %v6175_v48  ;;  %v9751_v62 = vmul.f32 -1.442695, %v18023_v8  ;;  %v6439_v26 = vpop.f32.mrf.mxu1 }
 0x5f8   : > { %v11524_v58 = vpop.eup %11523  ;;  %v8826_v1 = vmul.f32 %v11522_v40, %v17891_v44  ;;  %11549 = vrcp.f32 %v8074_v9  ;;  %v18040_v15 = vadd.f32 %v20175_v53, %v6432_v4  ;;  %v18045_v48 = vadd.f32 %v20175_v53, %v6177_v0 }
 0x5f9   : > { %v11526_v36 = vpop.eup %11525  ;;  %v8828_v43 = vmul.f32 %v11524_v58, %v17896_v34  ;;  %11551 = vrcp.f32 %v8076_v57  ;;  %v18050_v9 = vadd.f32 %v20175_v53, %v6434_v25 }
 0x5fa   : > { %v11528_v56 = vpop.eup %11527  ;;  %9082 = vst [vmem:[%s17111_s23 + $0x740] sm:$0xff] %v8826_v1  ;;  %v8827_v44 = vmul.f32 %v11526_v36, %v17901_v18  ;;  %11553 = vpow2.f32 %v9748_v51  ;;  %v9756_v18 = vmul.f32 -1.442695, %v18035_v7  ;;  %v20176_v51 = vld [vmem:[#allocation121_spill] sm:$0xff] }
 0x5fb   : > { %v11530_v32 = vpop.eup %11529  ;;  %9084 = vst [vmem:[%s17111_s23 + $0x750] sm:$0xff] %v8828_v43  ;;  %v8829_v34 = vmul.f32 %v11528_v56, %v17907_v37  ;;  %11555 = vpow2.f32 %v9750_v60  ;;  %v6181_v57 = vadd.f32 %v6180_v23, %v20176_v51  ;;  %v9758_v37 = vmul.f32 -1.442695, %v18040_v15  ;;  %v20177_v60 = vld [vmem:[#allocation113_spill] sm:$0xff]  ;;  %v6186_v56 = vpop.f32.mrf.mxu0 }
 0x5fc   : > { %v11532_v4 = vpop.eup %11531  ;;  %9083 = vst [vmem:[%s17111_s23 + $0x748] sm:$0xff] %v8827_v44  ;;  %v8075_v40 = vadd.f32 1.0, %v11530_v32  ;;  %11557 = vpow2.f32 %v9749_v22  ;;  %v6438_v25 = vadd.f32 %v6437_v38, %v20177_v60  ;;  %v9757_v22 = vmul.f32 -1.442695, %v18045_v48  ;;  %v20178_v44 = vld [vmem:[#allocation171_spill] sm:$0xff] }
 0x5fd   : > { %v11534_v0 = vpop.eup %11533  ;;  %9085 = vst [vmem:[%s17111_s23 + $0x758] sm:$0xff] %v8829_v34  ;;  %v8077_v58 = vadd.f32 1.0, %v11532_v4  ;;  %11559 = vpow2.f32 %v9751_v62  ;;  %v9759_v43 = vmul.f32 -1.442695, %v18050_v9  ;;  %v18065_v32 = vadd.f32 %v20178_v44, %v6181_v57  ;;  %v20180_v57 = vld [vmem:[#allocation140_spill] sm:$0xff] }
 0x5fe   : > { %v11536_v1 = vpop.eup %11535  ;;  %v8834_v53 = vmul.f32 %v11534_v0, %v17921_v13  ;;  %11561 = vrcp.f32 %v8075_v40  ;;  %v6443_v13 = vpop.f32.mrf.mxu1  ;;  %v20179_v0 = vld [vmem:[#allocation102_spill] sm:$0xff]  ;;  %v6440_v60 = vadd.f32 %v6439_v26, %v20180_v57 }
 0x5ff   : > { %v11538_v36 = vpop.eup %11537  ;;  %v8836_v23 = vmul.f32 %v11536_v1, %v17926_v39  ;;  %11563 = vrcp.f32 %v8077_v58  ;;  %v18070_v39 = vadd.f32 %v20178_v44, %v6438_v25  ;;  %v6183_v58 = vadd.f32 %v6182_v59, %v20179_v0  ;;  %v6188_v1 = vpop.f32.mrf.mxu0  ;;  %v20181_v0 = vld [vmem:[#allocation100_spill] sm:$0xff] }
 0x600   : > { %v11540_v62 = vpop.eup %11539  ;;  %9090 = vst [vmem:[%s17111_s23 + $0x780] sm:$0xff] %v8834_v53  ;;  %v8835_v38 = vmul.f32 %v11538_v36, %v17931_v63  ;;  %11565 = vpow2.f32 %v9756_v18  ;;  %v6445_v25 = vpop.f32.mrf.mxu1 }
 0x601   : > { %v11542_v34 = vpop.eup %11541  ;;  %9092 = vst [vmem:[%s17111_s23 + $0x790] sm:$0xff] %v8836_v23  ;;  %v8837_v4 = vmul.f32 %v11540_v62, %v17936_v6  ;;  %11567 = vpow2.f32 %v9758_v37  ;;  %v9764_v37 = vmul.f32 -1.442695, %v18065_v32  ;;  %v18080_v26 = vadd.f32 %v20178_v44, %v6183_v58  ;;  %v20182_v58 = vld [vmem:[#allocation131_spill] sm:$0xff] }
 0x602   : > { %v11544_v40 = vpop.eup %11543  ;;  %9091 = vst [vmem:[%s17111_s23 + $0x788] sm:$0xff] %v8835_v38  ;;  %v7830_v51 = vadd.f32 1.0, %v11542_v34  ;;  %11569 = vpow2.f32 %v9757_v22  ;;  %v9766_v22 = vmul.f32 -1.442695, %v18070_v39  ;;  %v18084_v34 = vadd.f32 %v20178_v44, %v6440_v60  ;;  %v20183_v60 = vld [vmem:[#allocation133_spill] sm:$0xff] }
 0x603   : > { %v11546_v63 = vpop.eup %11545  ;;  %9093 = vst [vmem:[%s17111_s23 + $0x798] sm:$0xff] %v8837_v4  ;;  %v7832_v18 = vadd.f32 1.0, %v11544_v40  ;;  %11571 = vpow2.f32 %v9759_v43  ;;  %v6192_v4 = vpop.f32.mrf.mxu0  ;;  %v9765_v44 = vmul.f32 -1.442695, %v18080_v26 }
 0x604   : > { %v11548_v53 = vpop.eup %11547  ;;  %11573 = vrcp.f32 %v7830_v51  ;;  %v7831_v6 = vadd.f32 1.0, %v11546_v63  ;;  %v6187_v63 = vadd.f32 %v6186_v56, %v20181_v0  ;;  %v9767_v56 = vmul.f32 -1.442695, %v18084_v34 }
 0x605   : > { %v11550_v36 = vpop.eup %11549  ;;  %11575 = vrcp.f32 %v7832_v18  ;;  %v7833_v23 = vadd.f32 1.0, %v11548_v53  ;;  %v6449_v18 = vpop.f32.mrf.mxu1  ;;  %v6444_v53 = vadd.f32 %v6443_v13, %v20182_v58 }
 0x606   : > { %v11552_v59 = vpop.eup %11551  ;;  %v8842_v62 = vmul.f32 %v11550_v36, %v17953_v28  ;;  %11577 = vrcp.f32 %v7831_v6  ;;  %v6189_v36 = vadd.f32 %v6188_v1, %v20183_v60 }
 0x607   : > { %v11554_v43 = vpop.eup %11553  ;;  %v8844_v38 = vmul.f32 %v11552_v59, %v17958_v45  ;;  %11579 = vrcp.f32 %v7833_v23  ;;  %v20184_v59 = vld [vmem:[#allocation13_spill] sm:$0xff] }
 0x608   : > { %v11556_v40 = vpop.eup %11555  ;;  %9098 = vst [vmem:[%s17111_s23 + $0x7c0] sm:$0xff] %v8842_v62  ;;  %v7838_v51 = vadd.f32 1.0, %v11554_v43  ;;  %11581 = vpow2.f32 %v9764_v37  ;;  %v6446_v62 = vadd.f32 %v6445_v25, %v20184_v59  ;;  %v6194_v43 = vpop.f32.mrf.mxu0 }
 0x609   : > { %v11558_v28 = vpop.eup %11557  ;;  %9100 = vst [vmem:[%s17111_s23 + $0x7d0] sm:$0xff] %v8844_v38  ;;  %v7840_v57 = vadd.f32 1.0, %v11556_v40  ;;  %11583 = vpow2.f32 %v9766_v22  ;;  %v20185_v22 = vld [vmem:[#allocation134_spill] sm:$0xff] }
 0x60a   : > { %v11560_v6 = vpop.eup %11559  ;;  %11585 = vrcp.f32 %v7838_v51  ;;  %v7839_v45 = vadd.f32 1.0, %v11558_v28  ;;  %v18096_v40 = vadd.f32 %v20185_v22, %v6187_v63  ;;  %v6451_v51 = vpop.f32.mrf.mxu1  ;;  %v18100_v28 = vadd.f32 %v20185_v22, %v6444_v53 }
 0x60b   : > { %v11562_v23 = vpop.eup %11561  ;;  %11587 = vrcp.f32 %v7840_v57  ;;  %v7841_v37 = vadd.f32 1.0, %v11560_v6  ;;  %v18104_v58 = vadd.f32 %v20185_v22, %v6189_v36  ;;  %v18109_v60 = vadd.f32 %v20185_v22, %v6446_v62  ;;  %v6198_v53 = vpop.f32.mrf.mxu0 }
 0x60c   : > { %v11564_v38 = vpop.eup %11563  ;;  %v8843_v13 = vmul.f32 %v11562_v23, %v17968_v29  ;;  %11589 = vrcp.f32 %v7839_v45  ;;  %v20186_v29 = vld [vmem:[#allocation94_spill] sm:$0xff] }
 0x60d   : > { %v11566_v0 = vpop.eup %11565  ;;  %v8845_v1 = vmul.f32 %v11564_v38, %v17972_v42  ;;  %11591 = vrcp.f32 %v7841_v37  ;;  %v6193_v6 = vadd.f32 %v6192_v4, %v20186_v29  ;;  %v20187_v42 = vld [vmem:[#allocation95_spill] sm:$0xff]  ;;  %v20188_v38 = vld [vmem:[#allocation96_spill] sm:$0xff] }
 0x60e   : > { %v11568_v57 = vpop.eup %11567  ;;  %9099 = vst [vmem:[%s17111_s23 + $0x7c8] sm:$0xff] %v8843_v13  ;;  %v7846_v25 = vadd.f32 1.0, %v11566_v0  ;;  %11593 = vpow2.f32 %v9765_v44  ;;  %v6450_v23 = vadd.f32 %v6449_v18, %v20187_v42  ;;  %v9772_v44 = vmul.f32 -1.442695, %v18096_v40  ;;  %v6455_v13 = vpop.f32.mrf.mxu1 }
 0x60f   : > { %v11570_v45 = vpop.eup %11569  ;;  %9101 = vst [vmem:[%s17111_s23 + $0x7d8] sm:$0xff] %v8845_v1  ;;  %v7848_v63 = vadd.f32 1.0, %v11568_v57  ;;  %11595 = vpow2.f32 %v9767_v56  ;;  %v6195_v36 = vadd.f32 %v6194_v43, %v20188_v38  ;;  %v9774_v56 = vmul.f32 -1.442695, %v18100_v28  ;;  %v20189_v1 = vld [vmem:[#allocation116_spill] sm:$0xff] }
 0x610   : > { %v11572_v37 = vpop.eup %11571  ;;  %11597 = vrcp.f32 %v7846_v25  ;;  %v7847_v59 = vadd.f32 1.0, %v11570_v45  ;;  %v6452_v62 = vadd.f32 %v6451_v51, %v20189_v1  ;;  %v9773_v57 = vmul.f32 -1.442695, %v18104_v58  ;;  %v6200_v51 = vpop.f32.mrf.mxu0 }
 0x611   : > { %v11574_v0 = vpop.eup %11573  ;;  %11599 = vrcp.f32 %v7848_v63  ;;  %v7849_v4 = vadd.f32 1.0, %v11572_v37  ;;  %v18119_v25 = vadd.f32 %v17113_v16, %v6193_v6  ;;  %v9775_v45 = vmul.f32 -1.442695, %v18109_v60  ;;  %v20190_v6 = vld [vmem:[#allocation98_spill] sm:$0xff] }
 0x612   : > { %v11576_v22 = vpop.eup %11575  ;;  %v8598_v18 = vmul.f32 %v11574_v0, %v17984_v49  ;;  %11601 = vrcp.f32 %v7847_v59  ;;  %v18124_v63 = vadd.f32 %v17113_v16, %v6450_v23  ;;  %v18129_v37 = vadd.f32 %v17113_v16, %v6195_v36  ;;  %v20192_v36 = vld [vmem:[#allocation123_spill] sm:$0xff] }
 0x613   : > { %v11578_v43 = vpop.eup %11577  ;;  %v8600_v29 = vmul.f32 %v11576_v22, %v17988_v21  ;;  %11603 = vrcp.f32 %v7849_v4  ;;  %v6199_v59 = vadd.f32 %v6198_v53, %v20190_v6  ;;  %v6457_v21 = vpop.f32.mrf.mxu1  ;;  %v18135_v23 = vadd.f32 %v17113_v16, %v6452_v62  ;;  %v20191_v4 = vld [vmem:[#allocation119_spill] sm:$0xff] }
 0x614   : > { %v11580_v42 = vpop.eup %11579  ;;  %8854 = vst [vmem:[%s17111_s23 + $0x20] sm:$0xff] %v8598_v18  ;;  %v8599_v49 = vmul.f32 %v11578_v43, %v17992_v41  ;;  %11605 = vpow2.f32 %v9772_v44  ;;  %v6456_v1 = vadd.f32 %v6455_v13, %v20191_v4  ;;  %v9780_v44 = vmul.f32 -1.442695, %v18119_v25  ;;  %v6204_v62 = vpop.f32.mrf.mxu0 }
 0x615   : > { %v11582_v38 = vpop.eup %11581  ;;  %8856 = vst [vmem:[%s17111_s23 + $0x30] sm:$0xff] %v8600_v29  ;;  %v8601_v0 = vmul.f32 %v11580_v42, %v17997_v2  ;;  %11607 = vpow2.f32 %v9774_v56  ;;  %v6201_v18 = vadd.f32 %v6200_v51, %v20192_v36  ;;  %v9782_v2 = vmul.f32 -1.442695, %v18124_v63  ;;  %v20193_v56 = vld [vmem:[#allocation97_spill] sm:$0xff]  ;;  %v6461_v51 = vpop.f32.mrf.mxu1 }
 0x616   : > { %v11584_v22 = vpop.eup %11583  ;;  %8855 = vst [vmem:[%s17111_s23 + $0x28] sm:$0xff] %v8599_v49  ;;  %v7854_v41 = vadd.f32 1.0, %v11582_v38  ;;  %11609 = vpow2.f32 %v9773_v57  ;;  %v6458_v16 = vadd.f32 %v6457_v21, %v20193_v56  ;;  %v9781_v57 = vmul.f32 -1.442695, %v18129_v37 }
 0x617   : > { %v11586_v53 = vpop.eup %11585  ;;  %8857 = vst [vmem:[%s17111_s23 + $0x38] sm:$0xff] %v8601_v0  ;;  %v7856_v43 = vadd.f32 1.0, %v11584_v22  ;;  %11611 = vpow2.f32 %v9775_v45  ;;  %v18147_v42 = vadd.f32 %v17152_v19, %v6199_v59  ;;  %v9783_v6 = vmul.f32 -1.442695, %v18135_v23  ;;  %v6206_v22 = vpop.f32.mrf.mxu0 }
 0x618   : > { %v11588_v29 = vpop.eup %11587  ;;  %v8606_v13 = vmul.f32 %v11586_v53, %v18007_v46  ;;  %11613 = vrcp.f32 %v7854_v41  ;;  %v18152_v21 = vadd.f32 %v17152_v19, %v6456_v1  ;;  %v18157_v59 = vadd.f32 %v17152_v19, %v6201_v18  ;;  %v6463_v53 = vpop.f32.mrf.mxu1 }
 0x619   : > { %v11590_v49 = vpop.eup %11589  ;;  %v8608_v45 = vmul.f32 %v11588_v29, %v18012_v24  ;;  %11615 = vrcp.f32 %v7856_v43  ;;  %v18162_v4 = vadd.f32 %v17152_v19, %v6458_v16 }
 0x61a   : > { %v11592_v38 = vpop.eup %11591  ;;  %8862 = vst [vmem:[%s17111_s23 + $0x60] sm:$0xff] %v8606_v13  ;;  %v8607_v46 = vmul.f32 %v11590_v49, %v18017_v5  ;;  %11617 = vpow2.f32 %v9780_v44  ;;  %v9788_v5 = vmul.f32 -1.442695, %v18147_v42  ;;  %v20194_v44 = vld [vmem:[#allocation56_spill] sm:$0xff]  ;;  %v9789_v29 = vmul.f32 -1.442695, %v18157_v59  ;;  %v6210_v49 = vpop.f32.mrf.mxu0 }
 0x61b   : > { %v11594_v0 = vpop.eup %11593  ;;  %8864 = vst [vmem:[%s17111_s23 + $0x70] sm:$0xff] %v8608_v45  ;;  %v8609_v24 = vmul.f32 %v11592_v38, %v18023_v8  ;;  %11619 = vpow2.f32 %v9782_v2  ;;  %v6205_v36 = vadd.f32 %v6204_v62, %v20194_v44  ;;  %v9790_v8 = vmul.f32 -1.442695, %v18152_v21  ;;  %v20195_v2 = vld [vmem:[#allocation58_spill] sm:$0xff]  ;;  %v20197_v44 = vld [vmem:[#allocation60_spill] sm:$0xff] }
 0x61c   : > { %v11596_v1 = vpop.eup %11595  ;;  %8863 = vst [vmem:[%s17111_s23 + $0x68] sm:$0xff] %v8607_v46  ;;  %v7855_v41 = vadd.f32 1.0, %v11594_v0  ;;  %11621 = vpow2.f32 %v9781_v57  ;;  %v6462_v19 = vadd.f32 %v6461_v51, %v20195_v2  ;;  %v9791_v57 = vmul.f32 -1.442695, %v18162_v4 }
 0x61d   : > { %v11598_v18 = vpop.eup %11597  ;;  %8865 = vst [vmem:[%s17111_s23 + $0x78] sm:$0xff] %v8609_v24  ;;  %v7857_v43 = vadd.f32 1.0, %v11596_v1  ;;  %11623 = vpow2.f32 %v9783_v6  ;;  %v18177_v6 = vadd.f32 %v17197_v12, %v6205_v36  ;;  %v20196_v1 = vld [vmem:[#allocation59_spill] sm:$0xff]  ;;  %v6464_v36 = vadd.f32 %v6463_v53, %v20197_v44  ;;  %v20200_v44 = vld [vmem:[#allocation62_spill] sm:$0xff] }
 0x61e   : > { %v11600_v56 = vpop.eup %11599  ;;  %v8614_v16 = vmul.f32 %v11598_v18, %v18035_v7  ;;  %11625 = vrcp.f32 %v7855_v41  ;;  %v6467_v7 = vpop.f32.mrf.mxu1  ;;  %v6207_v41 = vadd.f32 %v6206_v22, %v20196_v1 }
 0x61f   : > { %v11602_v13 = vpop.eup %11601  ;;  %v8616_v62 = vmul.f32 %v11600_v56, %v18040_v15  ;;  %11627 = vrcp.f32 %v7857_v43  ;;  %v18182_v15 = vadd.f32 %v17197_v12, %v6462_v19  ;;  %v6212_v18 = vpop.f32.mrf.mxu0 }
 0x620   : > { %v11604_v45 = vpop.eup %11603  ;;  %8870 = vst [vmem:[%s17111_s23 + $0xa0] sm:$0xff] %v8614_v16  ;;  %v8615_v51 = vmul.f32 %v11602_v13, %v18045_v48  ;;  %11629 = vpow2.f32 %v9788_v5  ;;  %v6469_v2 = vpop.f32.mrf.mxu1  ;;  %v18192_v53 = vadd.f32 %v17197_v12, %v6207_v41  ;;  %v20199_v41 = vld [vmem:[#allocation61_spill] sm:$0xff] }
 0x621   : > { %v11606_v38 = vpop.eup %11605  ;;  %8872 = vst [vmem:[%s17111_s23 + $0xb0] sm:$0xff] %v8616_v62  ;;  %v8617_v46 = vmul.f32 %v11604_v45, %v18050_v9  ;;  %11631 = vpow2.f32 %v9790_v8  ;;  %v9796_v8 = vmul.f32 -1.442695, %v18177_v6  ;;  %v9798_v16 = vmul.f32 -1.442695, %v18182_v15  ;;  %v6216_v45 = vpop.f32.mrf.mxu0 }
 0x622   : > { %v11608_v0 = vpop.eup %11607  ;;  %8871 = vst [vmem:[%s17111_s23 + $0xa8] sm:$0xff] %v8615_v51  ;;  %v7862_v24 = vadd.f32 1.0, %v11606_v38  ;;  %11633 = vpow2.f32 %v9789_v29 }
 0x623   : > { %v11610_v48 = vpop.eup %11609  ;;  %8873 = vst [vmem:[%s17111_s23 + $0xb8] sm:$0xff] %v8617_v46  ;;  %v7864_v5 = vadd.f32 1.0, %v11608_v0  ;;  %11635 = vpow2.f32 %v9791_v57  ;;  %v18196_v57 = vadd.f32 %v17197_v12, %v6464_v36  ;;  %v20198_v46 = vld [vmem:[#allocation12_spill] sm:$0xff]  ;;  %v9797_v12 = vmul.f32 -1.442695, %v18192_v53 }
 0x624   : > { %v11612_v43 = vpop.eup %11611  ;;  %11637 = vrcp.f32 %v7862_v24  ;;  %v7863_v9 = vadd.f32 1.0, %v11610_v48  ;;  %v6211_v0 = vadd.f32 %v6210_v49, %v20198_v46  ;;  %v6473_v24 = vpop.f32.mrf.mxu1  ;;  %v6468_v48 = vadd.f32 %v6467_v7, %v20199_v41 }
 0x625   : > { %v11614_v19 = vpop.eup %11613  ;;  %11639 = vrcp.f32 %v7864_v5  ;;  %v7865_v56 = vadd.f32 1.0, %v11612_v43  ;;  %v6213_v36 = vadd.f32 %v6212_v18, %v20200_v44  ;;  %v9799_v49 = vmul.f32 -1.442695, %v18196_v57  ;;  %v20204_v44 = vld [vmem:[#allocation71_spill] sm:$0xff] }
 0x626   : > { %v11616_v22 = vpop.eup %11615  ;;  %v8622_v29 = vmul.f32 %v11614_v19, %v18065_v32  ;;  %11641 = vrcp.f32 %v7863_v9 }
 0x627   : > { %v11618_v13 = vpop.eup %11617  ;;  %v8624_v62 = vmul.f32 %v11616_v22, %v18070_v39  ;;  %11643 = vrcp.f32 %v7865_v56  ;;  %v6218_v56 = vpop.f32.mrf.mxu0 }
 0x628   : > { %v11620_v51 = vpop.eup %11619  ;;  %8878 = vst [vmem:[%s17111_s23 + $0xe0] sm:$0xff] %v8622_v29  ;;  %v7870_v38 = vadd.f32 1.0, %v11618_v13  ;;  %11645 = vpow2.f32 %v9796_v8  ;;  %v20201_v8 = vld [vmem:[#allocation65_spill] sm:$0xff]  ;;  %v6475_v29 = vpop.f32.mrf.mxu1 }
 0x629   : > { %v11622_v32 = vpop.eup %11621  ;;  %8880 = vst [vmem:[%s17111_s23 + $0xf0] sm:$0xff] %v8624_v62  ;;  %v7872_v1 = vadd.f32 1.0, %v11620_v51  ;;  %11647 = vpow2.f32 %v9798_v16  ;;  %v6470_v19 = vadd.f32 %v6469_v2, %v20201_v8  ;;  %v18208_v16 = vadd.f32 %v17249_v55, %v6211_v0  ;;  %v20205_v8 = vld [vmem:[#allocation72_spill] sm:$0xff] }
 0x62a   : > { %v11624_v5 = vpop.eup %11623  ;;  %11649 = vrcp.f32 %v7870_v38  ;;  %v7871_v39 = vadd.f32 1.0, %v11622_v32  ;;  %v18212_v62 = vadd.f32 %v17249_v55, %v6468_v48  ;;  %v18216_v38 = vadd.f32 %v17249_v55, %v6213_v36  ;;  %v6222_v48 = vpop.f32.mrf.mxu0 }
 0x62b   : > { %v11626_v43 = vpop.eup %11625  ;;  %11651 = vrcp.f32 %v7872_v1  ;;  %v7873_v9 = vadd.f32 1.0, %v11624_v5  ;;  %v18221_v1 = vadd.f32 %v17249_v55, %v6470_v19  ;;  %v6219_v36 = vadd.f32 %v6218_v56, %v20204_v44 }
 0x62c   : > { %v11628_v22 = vpop.eup %11627  ;;  %v8623_v7 = vmul.f32 %v11626_v43, %v18080_v26  ;;  %11653 = vrcp.f32 %v7871_v39  ;;  %v20202_v26 = vld [vmem:[#allocation66_spill] sm:$0xff]  ;;  %v6479_v43 = vpop.f32.mrf.mxu1  ;;  %v6476_v55 = vadd.f32 %v6475_v29, %v20205_v8 }
 0x62d   : > { %v11630_v13 = vpop.eup %11629  ;;  %v8625_v18 = vmul.f32 %v11628_v22, %v18084_v34  ;;  %11655 = vrcp.f32 %v7873_v9  ;;  %v6217_v46 = vadd.f32 %v6216_v45, %v20202_v26  ;;  %v20203_v34 = vld [vmem:[#allocation68_spill] sm:$0xff]  ;;  %v9805_v22 = vmul.f32 -1.442695, %v18216_v38  ;;  %v6224_v29 = vpop.f32.mrf.mxu0 }
 0x62e   : > { %v11632_v51 = vpop.eup %11631  ;;  %8879 = vst [vmem:[%s17111_s23 + $0xe8] sm:$0xff] %v8623_v7  ;;  %v7878_v2 = vadd.f32 1.0, %v11630_v13  ;;  %11657 = vpow2.f32 %v9797_v12  ;;  %v6474_v41 = vadd.f32 %v6473_v24, %v20203_v34  ;;  %v9804_v12 = vmul.f32 -1.442695, %v18208_v16 }
 0x62f   : > { %v11634_v32 = vpop.eup %11633  ;;  %8881 = vst [vmem:[%s17111_s23 + $0xf8] sm:$0xff] %v8625_v18  ;;  %v7880_v0 = vadd.f32 1.0, %v11632_v51  ;;  %11659 = vpow2.f32 %v9799_v49  ;;  %v9806_v49 = vmul.f32 -1.442695, %v18212_v62  ;;  %v18231_v7 = vadd.f32 %v17283_v17, %v6217_v46  ;;  %v20206_v46 = vld [vmem:[#allocation69_spill] sm:$0xff]  ;;  %v6228_v8 = vpop.f32.mrf.mxu0 }
 0x630   : > { %v11636_v5 = vpop.eup %11635  ;;  %11661 = vrcp.f32 %v7878_v2  ;;  %v7879_v39 = vadd.f32 1.0, %v11634_v32  ;;  %v9807_v18 = vmul.f32 -1.442695, %v18221_v1  ;;  %v18236_v51 = vadd.f32 %v17283_v17, %v6474_v41 }
 0x631   : > { %v11638_v9 = vpop.eup %11637  ;;  %11663 = vrcp.f32 %v7880_v0  ;;  %v7881_v45 = vadd.f32 1.0, %v11636_v5  ;;  %v18241_v26 = vadd.f32 %v17283_v17, %v6219_v36  ;;  %v6223_v32 = vadd.f32 %v6222_v48, %v20206_v46  ;;  %v20207_v5 = vld [vmem:[#allocation70_spill] sm:$0xff]  ;;  %v20208_v36 = vld [vmem:[#allocation64_spill] sm:$0xff] }
 0x632   : > { %v11640_v19 = vpop.eup %11639  ;;  %v8630_v24 = vmul.f32 %v11638_v9, %v18096_v40  ;;  %11665 = vrcp.f32 %v7879_v39  ;;  %v18247_v41 = vadd.f32 %v17283_v17, %v6476_v55  ;;  %v6480_v39 = vadd.f32 %v6479_v43, %v20207_v5  ;;  %v20210_v5 = vld [vmem:[#allocation74_spill] sm:$0xff] }
 0x633   : > { %v11642_v56 = vpop.eup %11641  ;;  %v8632_v13 = vmul.f32 %v11640_v19, %v18100_v28  ;;  %11667 = vrcp.f32 %v7881_v45  ;;  %v6481_v28 = vpop.f32.mrf.mxu1  ;;  %v6225_v9 = vadd.f32 %v6224_v29, %v20208_v36  ;;  %v9813_v19 = vmul.f32 -1.442695, %v18241_v26  ;;  %v20211_v36 = vld [vmem:[#allocation75_spill] sm:$0xff] }
 0x634   : > { %v11644_v2 = vpop.eup %11643  ;;  %8886 = vst [vmem:[%s17111_s23 + $0x120] sm:$0xff] %v8630_v24  ;;  %v8631_v40 = vmul.f32 %v11642_v56, %v18104_v58  ;;  %11669 = vpow2.f32 %v9804_v12  ;;  %v9812_v12 = vmul.f32 -1.442695, %v18231_v7  ;;  %v18259_v24 = vadd.f32 %v17313_v20, %v6223_v32 }
 0x635   : > { %v11646_v0 = vpop.eup %11645  ;;  %8888 = vst [vmem:[%s17111_s23 + $0x130] sm:$0xff] %v8632_v13  ;;  %v8633_v34 = vmul.f32 %v11644_v2, %v18109_v60  ;;  %11671 = vpow2.f32 %v9806_v49  ;;  %v9814_v60 = vmul.f32 -1.442695, %v18236_v51  ;;  %v20209_v49 = vld [vmem:[#allocation80_spill] sm:$0xff]  ;;  %v18264_v29 = vadd.f32 %v17313_v20, %v6480_v39 }
 0x636   : > { %v11648_v44 = vpop.eup %11647  ;;  %8887 = vst [vmem:[%s17111_s23 + $0x128] sm:$0xff] %v8631_v40  ;;  %v7886_v58 = vadd.f32 1.0, %v11646_v0  ;;  %11673 = vpow2.f32 %v9805_v22  ;;  %v6482_v17 = vadd.f32 %v6481_v28, %v20209_v49  ;;  %v6485_v22 = vpop.f32.mrf.mxu1  ;;  %v18269_v40 = vadd.f32 %v17313_v20, %v6225_v9 }
 0x637   : > { %v11650_v48 = vpop.eup %11649  ;;  %8889 = vst [vmem:[%s17111_s23 + $0x138] sm:$0xff] %v8633_v34  ;;  %v7888_v45 = vadd.f32 1.0, %v11648_v44  ;;  %11675 = vpow2.f32 %v9807_v18  ;;  %v9815_v18 = vmul.f32 -1.442695, %v18247_v41  ;;  %v6230_v28 = vpop.f32.mrf.mxu0  ;;  %v6229_v39 = vadd.f32 %v6228_v8, %v20210_v5 }
 0x638   : > { %v11652_v55 = vpop.eup %11651  ;;  %v8638_v43 = vmul.f32 %v11650_v48, %v18119_v25  ;;  %11677 = vrcp.f32 %v7886_v58  ;;  %v18274_v32 = vadd.f32 %v17313_v20, %v6482_v17  ;;  %v6487_v44 = vpop.f32.mrf.mxu1  ;;  %v6486_v20 = vadd.f32 %v6485_v22, %v20211_v36 }
 0x639   : > { %v11654_v56 = vpop.eup %11653  ;;  %v8640_v13 = vmul.f32 %v11652_v55, %v18124_v63  ;;  %11679 = vrcp.f32 %v7888_v45  ;;  %v9821_v45 = vmul.f32 -1.442695, %v18269_v40  ;;  %v6234_v8 = vpop.f32.mrf.mxu0 }
 0x63a   : > { %v11656_v2 = vpop.eup %11655  ;;  %8894 = vst [vmem:[%s17111_s23 + $0x160] sm:$0xff] %v8638_v43  ;;  %v8639_v25 = vmul.f32 %v11654_v56, %v18129_v37  ;;  %11681 = vpow2.f32 %v9812_v12  ;;  %v9820_v37 = vmul.f32 -1.442695, %v18259_v24  ;;  %v9823_v17 = vmul.f32 -1.442695, %v18274_v32 }
 0x63b   : > { %v11658_v46 = vpop.eup %11657  ;;  %8896 = vst [vmem:[%s17111_s23 + $0x170] sm:$0xff] %v8640_v13  ;;  %v8641_v63 = vmul.f32 %v11656_v2, %v18135_v23  ;;  %11683 = vpow2.f32 %v9814_v60  ;;  %v9822_v23 = vmul.f32 -1.442695, %v18264_v29  ;;  %v20212_v2 = vld [vmem:[#allocation57_spill] sm:$0xff] }
 0x63c   : > { %v11660_v0 = vpop.eup %11659  ;;  %8895 = vst [vmem:[%s17111_s23 + $0x168] sm:$0xff] %v8639_v25  ;;  %v7887_v34 = vadd.f32 1.0, %v11658_v46  ;;  %11685 = vpow2.f32 %v9813_v19  ;;  %v18289_v19 = vadd.f32 %v17346_v30, %v6229_v39  ;;  %v6231_v25 = vadd.f32 %v6230_v28, %v20212_v2  ;;  %v20216_v2 = vld [vmem:[#allocation91_spill] sm:$0xff] }
 0x63d   : > { %v11662_v58 = vpop.eup %11661  ;;  %8897 = vst [vmem:[%s17111_s23 + $0x178] sm:$0xff] %v8641_v63  ;;  %v7889_v12 = vadd.f32 1.0, %v11660_v0  ;;  %11687 = vpow2.f32 %v9815_v18  ;;  %v20213_v63 = vld [vmem:[#allocation88_spill] sm:$0xff] }
 0x63e   : > { %v11664_v9 = vpop.eup %11663  ;;  %v8646_v48 = vmul.f32 %v11662_v58, %v18147_v42  ;;  %11689 = vrcp.f32 %v7887_v34  ;;  %v6491_v42 = vpop.f32.mrf.mxu1  ;;  %v6488_v0 = vadd.f32 %v6487_v44, %v20213_v63  ;;  %v9828_v5 = vmul.f32 -1.442695, %v18289_v19  ;;  %v20217_v63 = vld [vmem:[#allocation86_spill] sm:$0xff] }
 0x63f   : > { %v11666_v60 = vpop.eup %11665  ;;  %v8648_v49 = vmul.f32 %v11664_v9, %v18152_v21  ;;  %11691 = vrcp.f32 %v7889_v12  ;;  %v18294_v21 = vadd.f32 %v17346_v30, %v6486_v20  ;;  %v6236_v34 = vpop.f32.mrf.mxu0  ;;  %v18304_v44 = vadd.f32 %v17346_v30, %v6231_v25 }
 0x640   : > { %v11668_v55 = vpop.eup %11667  ;;  %8902 = vst [vmem:[%s17111_s23 + $0x1a0] sm:$0xff] %v8646_v48  ;;  %v8647_v43 = vmul.f32 %v11666_v60, %v18157_v59  ;;  %11693 = vpow2.f32 %v9820_v37  ;;  %v6493_v39 = vpop.f32.mrf.mxu1  ;;  %v18308_v48 = vadd.f32 %v17346_v30, %v6488_v0  ;;  %v6237_v25 = vadd.f32 %v6236_v34, %v20216_v2 }
 0x641   : > { %v11670_v22 = vpop.eup %11669  ;;  %8904 = vst [vmem:[%s17111_s23 + $0x1b0] sm:$0xff] %v8648_v49  ;;  %v8649_v56 = vmul.f32 %v11668_v55, %v18162_v4  ;;  %11695 = vpow2.f32 %v9822_v23  ;;  %v9830_v23 = vmul.f32 -1.442695, %v18294_v21  ;;  %v9829_v30 = vmul.f32 -1.442695, %v18304_v44 }
 0x642   : > { %v11672_v13 = vpop.eup %11671  ;;  %8903 = vst [vmem:[%s17111_s23 + $0x1a8] sm:$0xff] %v8647_v43  ;;  %v7894_v18 = vadd.f32 1.0, %v11670_v22  ;;  %11697 = vpow2.f32 %v9821_v45  ;;  %v6240_v45 = vpop.f32.mrf.mxu0  ;;  %v6494_v0 = vadd.f32 %v6493_v39, %v20217_v63 }
 0x643   : > { %v11674_v59 = vpop.eup %11673  ;;  %8905 = vst [vmem:[%s17111_s23 + $0x1b8] sm:$0xff] %v8649_v56  ;;  %v7896_v46 = vadd.f32 1.0, %v11672_v13  ;;  %11699 = vpow2.f32 %v9823_v17  ;;  %v20214_v17 = vld [vmem:[#allocation78_spill] sm:$0xff]  ;;  %v6497_v43 = vpop.f32.mrf.mxu1 }
 0x644   : > { %v11676_v37 = vpop.eup %11675  ;;  %11701 = vrcp.f32 %v7894_v18  ;;  %v7895_v4 = vadd.f32 1.0, %v11674_v59  ;;  %v6235_v55 = vadd.f32 %v6234_v8, %v20214_v17  ;;  %v20215_v56 = vld [vmem:[#allocation90_spill] sm:$0xff]  ;;  %v9831_v8 = vmul.f32 -1.442695, %v18308_v48 }
 0x645   : > { %v11678_v58 = vpop.eup %11677  ;;  %11703 = vrcp.f32 %v7896_v46  ;;  %v7897_v12 = vadd.f32 1.0, %v11676_v37  ;;  %v6492_v13 = vadd.f32 %v6491_v42, %v20215_v56  ;;  %v6242_v37 = vpop.f32.mrf.mxu0 }
 0x646   : > { %v11680_v28 = vpop.eup %11679  ;;  %v8654_v36 = vmul.f32 %v11678_v58, %v18177_v6  ;;  %11705 = vrcp.f32 %v7895_v4 }
 0x647   : > { %v11682_v20 = vpop.eup %11681  ;;  %v8656_v9 = vmul.f32 %v11680_v28, %v18182_v15  ;;  %11707 = vrcp.f32 %v7897_v12  ;;  %v6499_v12 = vpop.f32.mrf.mxu1 }
 0x648   : > { %v11684_v60 = vpop.eup %11683  ;;  %8910 = vst [vmem:[%s17111_s23 + $0x1e0] sm:$0xff] %v8654_v36  ;;  %v7902_v49 = vadd.f32 1.0, %v11682_v20  ;;  %11709 = vpow2.f32 %v9828_v5  ;;  %v20218_v5 = vld [vmem:[#allocation148_spill] sm:$0xff] }
 0x649   : > { %v11686_v6 = vpop.eup %11685  ;;  %8912 = vst [vmem:[%s17111_s23 + $0x1f0] sm:$0xff] %v8656_v9  ;;  %v7904_v22 = vadd.f32 1.0, %v11684_v60  ;;  %11711 = vpow2.f32 %v9830_v23  ;;  %v18320_v58 = vadd.f32 %v20218_v5, %v6235_v55  ;;  %v18324_v28 = vadd.f32 %v20218_v5, %v6492_v13 }
 0x64a   : > { %v11688_v18 = vpop.eup %11687  ;;  %11713 = vrcp.f32 %v7902_v49  ;;  %v7903_v15 = vadd.f32 1.0, %v11686_v6  ;;  %v18328_v20 = vadd.f32 %v20218_v5, %v6237_v25  ;;  %v18333_v17 = vadd.f32 %v20218_v5, %v6494_v0  ;;  %v6246_v6 = vpop.f32.mrf.mxu0  ;;  %v20223_v0 = vld [vmem:[#allocation126_spill] sm:$0xff] }
 0x64b   : > { %v11690_v59 = vpop.eup %11689  ;;  %11715 = vrcp.f32 %v7904_v22  ;;  %v7905_v46 = vadd.f32 1.0, %v11688_v18  ;;  %v9836_v13 = vmul.f32 -1.442695, %v18320_v58  ;;  %v20221_v18 = vld [vmem:[#allocation84_spill] sm:$0xff]  ;;  %v9838_v25 = vmul.f32 -1.442695, %v18324_v28 }
 0x64c   : > { %v11692_v4 = vpop.eup %11691  ;;  %v8655_v42 = vmul.f32 %v11690_v59, %v18192_v53  ;;  %11717 = vrcp.f32 %v7903_v15  ;;  %v20219_v53 = vld [vmem:[#allocation89_spill] sm:$0xff]  ;;  %v6243_v15 = vadd.f32 %v6242_v37, %v20221_v18  ;;  %v9837_v63 = vmul.f32 -1.442695, %v18328_v20 }
 0x64d   : > { %v11694_v23 = vpop.eup %11693  ;;  %v8657_v34 = vmul.f32 %v11692_v4, %v18196_v57  ;;  %11719 = vrcp.f32 %v7905_v46  ;;  %v6241_v9 = vadd.f32 %v6240_v45, %v20219_v53  ;;  %v20220_v57 = vld [vmem:[#allocation67_spill] sm:$0xff]  ;;  %v20222_v59 = vld [vmem:[#allocation85_spill] sm:$0xff]  ;;  %v9839_v5 = vmul.f32 -1.442695, %v18333_v17 }
 0x64e   : > { %v11696_v36 = vpop.eup %11695  ;;  %8911 = vst [vmem:[%s17111_s23 + $0x1e8] sm:$0xff] %v8655_v42  ;;  %v7910_v39 = vadd.f32 1.0, %v11694_v23  ;;  %11721 = vpow2.f32 %v9829_v30  ;;  %v6498_v55 = vadd.f32 %v6497_v43, %v20220_v57  ;;  %v6503_v30 = vpop.f32.mrf.mxu1  ;;  %v6500_v46 = vadd.f32 %v6499_v12, %v20222_v59  ;;  %v20225_v57 = vld [vmem:[#allocation81_spill] sm:$0xff] }
 0x64f   : > { %v11698_v60 = vpop.eup %11697  ;;  %8913 = vst [vmem:[%s17111_s23 + $0x1f8] sm:$0xff] %v8657_v34  ;;  %v7912_v49 = vadd.f32 1.0, %v11696_v36  ;;  %11723 = vpow2.f32 %v9831_v8  ;;  %v18343_v4 = vadd.f32 %v20223_v0, %v6241_v9  ;;  %v6248_v12 = vpop.f32.mrf.mxu0  ;;  %v18353_v36 = vadd.f32 %v20223_v0, %v6243_v15 }
 0x650   : > { %v11700_v22 = vpop.eup %11699  ;;  %11725 = vrcp.f32 %v7910_v39  ;;  %v7911_v56 = vadd.f32 1.0, %v11698_v60  ;;  %v18348_v23 = vadd.f32 %v20223_v0, %v6498_v55  ;;  %v20224_v39 = vld [vmem:[#allocation87_spill] sm:$0xff]  ;;  %v6504_v55 = vadd.f32 %v6503_v30, %v20225_v57 }
 0x651   : > { %v11702_v2 = vpop.eup %11701  ;;  %11727 = vrcp.f32 %v7912_v49  ;;  %v7913_v45 = vadd.f32 1.0, %v11700_v22  ;;  %v6247_v53 = vadd.f32 %v6246_v6, %v20224_v39  ;;  %v18359_v49 = vadd.f32 %v20223_v0, %v6500_v46 }
 0x652   : > { %v11704_v8 = vpop.eup %11703  ;;  %v8662_v43 = vmul.f32 %v11702_v2, %v18208_v16  ;;  %11729 = vrcp.f32 %v7911_v56  ;;  %v9844_v56 = vmul.f32 -1.442695, %v18343_v4  ;;  %v20227_v2 = vld [vmem:[#allocation76_spill] sm:$0xff]  ;;  %v9845_v46 = vmul.f32 -1.442695, %v18353_v36 }
 0x653   : > { %v11706_v37 = vpop.eup %11705  ;;  %v8664_v42 = vmul.f32 %v11704_v8, %v18212_v62  ;;  %11731 = vrcp.f32 %v7913_v45  ;;  %v6505_v62 = vpop.f32.mrf.mxu1  ;;  %v20228_v8 = vld [vmem:[#allocation169_spill] sm:$0xff] }
 0x654   : > { %v11708_v34 = vpop.eup %11707  ;;  %8918 = vst [vmem:[%s17111_s23 + $0x220] sm:$0xff] %v8662_v43  ;;  %v8663_v16 = vmul.f32 %v11706_v37, %v18216_v38  ;;  %11733 = vpow2.f32 %v9836_v13  ;;  %v20226_v13 = vld [vmem:[#allocation73_spill] sm:$0xff]  ;;  %v6506_v45 = vadd.f32 %v6505_v62, %v20227_v2  ;;  %v18371_v43 = vadd.f32 %v20228_v8, %v6247_v53 }
 0x655   : > { %v11710_v9 = vpop.eup %11709  ;;  %8920 = vst [vmem:[%s17111_s23 + $0x230] sm:$0xff] %v8664_v42  ;;  %v8665_v60 = vmul.f32 %v11708_v34, %v18221_v1  ;;  %11735 = vpow2.f32 %v9838_v25  ;;  %v6249_v18 = vadd.f32 %v6248_v12, %v20226_v13  ;;  %v9846_v1 = vmul.f32 -1.442695, %v18348_v23  ;;  %v6252_v25 = vpop.f32.mrf.mxu0 }
 0x656   : > { %v11712_v22 = vpop.eup %11711  ;;  %8919 = vst [vmem:[%s17111_s23 + $0x228] sm:$0xff] %v8663_v16  ;;  %v7918_v38 = vadd.f32 1.0, %v11710_v9  ;;  %11737 = vpow2.f32 %v9837_v63  ;;  %v6509_v63 = vpop.f32.mrf.mxu1  ;;  %v9847_v42 = vmul.f32 -1.442695, %v18359_v49  ;;  %v18386_v39 = vadd.f32 %v20228_v8, %v6506_v45 }
 0x657   : > { %v11714_v6 = vpop.eup %11713  ;;  %8921 = vst [vmem:[%s17111_s23 + $0x238] sm:$0xff] %v8665_v60  ;;  %v7920_v15 = vadd.f32 1.0, %v11712_v22  ;;  %11739 = vpow2.f32 %v9839_v5  ;;  %v18376_v5 = vadd.f32 %v20228_v8, %v6504_v55  ;;  %v18381_v34 = vadd.f32 %v20228_v8, %v6249_v18  ;;  %v6254_v53 = vpop.f32.mrf.mxu0  ;;  %v20229_v60 = vld [vmem:[#allocation82_spill] sm:$0xff] }
 0x658   : > { %v11716_v59 = vpop.eup %11715  ;;  %v8670_v30 = vmul.f32 %v11714_v6, %v18231_v7  ;;  %11741 = vrcp.f32 %v7918_v38  ;;  %v6253_v57 = vadd.f32 %v6252_v25, %v20229_v60  ;;  %v6511_v55 = vpop.f32.mrf.mxu1  ;;  %v9855_v45 = vmul.f32 -1.442695, %v18386_v39 }
 0x659   : > { %v11718_v0 = vpop.eup %11717  ;;  %v8672_v37 = vmul.f32 %v11716_v59, %v18236_v51  ;;  %11743 = vrcp.f32 %v7920_v15  ;;  %v9853_v15 = vmul.f32 -1.442695, %v18381_v34  ;;  %v6258_v25 = vpop.f32.mrf.mxu0 }
 0x65a   : > { %v11720_v12 = vpop.eup %11719  ;;  %8926 = vst [vmem:[%s17111_s23 + $0x260] sm:$0xff] %v8670_v30  ;;  %v8671_v7 = vmul.f32 %v11718_v0, %v18241_v26  ;;  %11745 = vpow2.f32 %v9844_v56  ;;  %v9852_v26 = vmul.f32 -1.442695, %v18371_v43  ;;  %v20230_v56 = vld [vmem:[#allocation77_spill] sm:$0xff] }
 0x65b   : > { %v11722_v16 = vpop.eup %11721  ;;  %8928 = vst [vmem:[%s17111_s23 + $0x270] sm:$0xff] %v8672_v37  ;;  %v8673_v51 = vmul.f32 %v11720_v12, %v18247_v41  ;;  %11747 = vpow2.f32 %v9846_v1  ;;  %v9854_v41 = vmul.f32 -1.442695, %v18376_v5  ;;  %v6510_v13 = vadd.f32 %v6509_v63, %v20230_v56  ;;  %v20232_v12 = vld [vmem:[#allocation83_spill] sm:$0xff] }
 0x65c   : > { %v11724_v62 = vpop.eup %11723  ;;  %8927 = vst [vmem:[%s17111_s23 + $0x268] sm:$0xff] %v8671_v7  ;;  %v7919_v9 = vadd.f32 1.0, %v11722_v16  ;;  %11749 = vpow2.f32 %v9845_v46  ;;  %v20231_v46 = vld [vmem:[#allocation137_spill] sm:$0xff]  ;;  %v6255_v7 = vadd.f32 %v6254_v53, %v20232_v12  ;;  %v20236_v12 = vld [vmem:[#allocation180_spill] sm:$0xff] }
 0x65d   : > { %v11726_v22 = vpop.eup %11725  ;;  %8929 = vst [vmem:[%s17111_s23 + $0x278] sm:$0xff] %v8673_v51  ;;  %v7921_v38 = vadd.f32 1.0, %v11724_v62  ;;  %11751 = vpow2.f32 %v9847_v42  ;;  %v18401_v8 = vadd.f32 %v20231_v46, %v6253_v57  ;;  %v20233_v51 = vld [vmem:[#allocation79_spill] sm:$0xff] }
 0x65e   : > { %v11728_v18 = vpop.eup %11727  ;;  %v8678_v6 = vmul.f32 %v11726_v22, %v18259_v24  ;;  %11753 = vrcp.f32 %v7919_v9  ;;  %v6515_v24 = vpop.f32.mrf.mxu1  ;;  %v6512_v62 = vadd.f32 %v6511_v55, %v20233_v51  ;;  %v18416_v55 = vadd.f32 %v20231_v46, %v6255_v7  ;;  %v20237_v51 = vld [vmem:[#allocation181_spill] sm:$0xff] }
 0x65f   : > { %v11730_v1 = vpop.eup %11729  ;;  %v8680_v2 = vmul.f32 %v11728_v18, %v18264_v29  ;;  %11755 = vrcp.f32 %v7921_v38  ;;  %v18406_v29 = vadd.f32 %v20231_v46, %v6510_v13  ;;  %v6260_v9 = vpop.f32.mrf.mxu0  ;;  %v9860_v60 = vmul.f32 -1.442695, %v18401_v8 }
 0x660   : > { %v11732_v59 = vpop.eup %11731  ;;  %8934 = vst [vmem:[%s17111_s23 + $0x2a0] sm:$0xff] %v8678_v6  ;;  %v8679_v30 = vmul.f32 %v11730_v1, %v18269_v40  ;;  %11757 = vpow2.f32 %v9852_v26  ;;  %v6517_v57 = vpop.f32.mrf.mxu1  ;;  %v18420_v6 = vadd.f32 %v20231_v46, %v6512_v62  ;;  %v9861_v46 = vmul.f32 -1.442695, %v18416_v55 }
 0x661   : > { %v11734_v63 = vpop.eup %11733  ;;  %8936 = vst [vmem:[%s17111_s23 + $0x2b0] sm:$0xff] %v8680_v2  ;;  %v8681_v0 = vmul.f32 %v11732_v59, %v18274_v32  ;;  %11759 = vpow2.f32 %v9854_v41  ;;  %v9862_v41 = vmul.f32 -1.442695, %v18406_v29  ;;  %v6261_v7 = vadd.f32 %v6260_v9, %v20236_v12 }
 0x662   : > { %v11736_v37 = vpop.eup %11735  ;;  %8935 = vst [vmem:[%s17111_s23 + $0x2a8] sm:$0xff] %v8679_v30  ;;  %v7926_v42 = vadd.f32 1.0, %v11734_v63  ;;  %11761 = vpow2.f32 %v9853_v15  ;;  %v6264_v15 = vpop.f32.mrf.mxu0  ;;  %v6518_v62 = vadd.f32 %v6517_v57, %v20237_v51 }
 0x663   : > { %v11738_v40 = vpop.eup %11737  ;;  %8937 = vst [vmem:[%s17111_s23 + $0x2b8] sm:$0xff] %v8681_v0  ;;  %v7928_v16 = vadd.f32 1.0, %v11736_v37  ;;  %11763 = vpow2.f32 %v9855_v45  ;;  %v20234_v45 = vld [vmem:[#allocation178_spill] sm:$0xff]  ;;  %v6521_v30 = vpop.f32.mrf.mxu1  ;;  %v20235_v0 = vld [vmem:[#allocation179_spill] sm:$0xff] }
 0x664   : > { %v11740_v26 = vpop.eup %11739  ;;  %11765 = vrcp.f32 %v7926_v42  ;;  %v7927_v32 = vadd.f32 1.0, %v11738_v40  ;;  %v6259_v59 = vadd.f32 %v6258_v25, %v20234_v45  ;;  %v6516_v37 = vadd.f32 %v6515_v24, %v20235_v0 }
 0x665   : > { %v11742_v22 = vpop.eup %11741  ;;  %11767 = vrcp.f32 %v7928_v16  ;;  %v7929_v38 = vadd.f32 1.0, %v11740_v26  ;;  %v9863_v25 = vmul.f32 -1.442695, %v18420_v6  ;;  %v6266_v26 = vpop.f32.mrf.mxu0 }
 0x666   : > { %v11744_v53 = vpop.eup %11743  ;;  %v8686_v56 = vmul.f32 %v11742_v22, %v18289_v19  ;;  %11769 = vrcp.f32 %v7927_v32  ;;  %v6523_v22 = vpop.f32.mrf.mxu1 }
 0x667   : > { %v11746_v13 = vpop.eup %11745  ;;  %v8688_v18 = vmul.f32 %v11744_v53, %v18294_v21  ;;  %11771 = vrcp.f32 %v7929_v38 }
 0x668   : > { %v11748_v1 = vpop.eup %11747  ;;  %8942 = vst [vmem:[%s17111_s23 + $0x2e0] sm:$0xff] %v8686_v56  ;;  %v7934_v2 = vadd.f32 1.0, %v11746_v13  ;;  %11773 = vpow2.f32 %v9860_v60  ;;  %v18432_v60 = vadd.f32 %v17500_v54, %v6259_v59  ;;  %v18440_v56 = vadd.f32 %v17500_v54, %v6261_v7  ;;  %v6270_v59 = vpop.f32.mrf.mxu0  ;;  %v20241_v7 = vld [vmem:[#allocation185_spill] sm:$0xff] }
 0x669   : > { %v11750_v19 = vpop.eup %11749  ;;  %8944 = vst [vmem:[%s17111_s23 + $0x2f0] sm:$0xff] %v8688_v18  ;;  %v7936_v63 = vadd.f32 1.0, %v11748_v1  ;;  %11775 = vpow2.f32 %v9862_v41  ;;  %v18436_v41 = vadd.f32 %v17500_v54, %v6516_v37  ;;  %v20240_v37 = vld [vmem:[#allocation184_spill] sm:$0xff] }
 0x66a   : > { %v11752_v42 = vpop.eup %11751  ;;  %11777 = vrcp.f32 %v7934_v2  ;;  %v7935_v21 = vadd.f32 1.0, %v11750_v19  ;;  %v18445_v2 = vadd.f32 %v17500_v54, %v6518_v62  ;;  %v9868_v0 = vmul.f32 -1.442695, %v18432_v60 }
 0x66b   : > { %v11754_v40 = vpop.eup %11753  ;;  %11779 = vrcp.f32 %v7936_v63  ;;  %v7937_v16 = vadd.f32 1.0, %v11752_v42  ;;  %v6267_v42 = vadd.f32 %v6266_v26, %v20240_v37  ;;  %v9870_v12 = vmul.f32 -1.442695, %v18436_v41  ;;  %v20245_v37 = vld [vmem:[#allocation189_spill] sm:$0xff] }
 0x66c   : > { %v11756_v32 = vpop.eup %11755  ;;  %v8687_v24 = vmul.f32 %v11754_v40, %v18304_v44  ;;  %11781 = vrcp.f32 %v7935_v21  ;;  %v20238_v44 = vld [vmem:[#allocation182_spill] sm:$0xff]  ;;  %v6527_v21 = vpop.f32.mrf.mxu1  ;;  %v6524_v54 = vadd.f32 %v6523_v22, %v20241_v7  ;;  %v9871_v26 = vmul.f32 -1.442695, %v18445_v2 }
 0x66d   : > { %v11758_v38 = vpop.eup %11757  ;;  %v8689_v9 = vmul.f32 %v11756_v32, %v18308_v48  ;;  %11783 = vrcp.f32 %v7937_v16  ;;  %v6265_v13 = vadd.f32 %v6264_v15, %v20238_v44  ;;  %v20239_v48 = vld [vmem:[#allocation183_spill] sm:$0xff]  ;;  %v9869_v16 = vmul.f32 -1.442695, %v18440_v56 }
 0x66e   : > { %v11760_v53 = vpop.eup %11759  ;;  %8943 = vst [vmem:[%s17111_s23 + $0x2e8] sm:$0xff] %v8687_v24  ;;  %v7942_v57 = vadd.f32 1.0, %v11758_v38  ;;  %11785 = vpow2.f32 %v9861_v46  ;;  %v6522_v45 = vadd.f32 %v6521_v30, %v20239_v48  ;;  %v6272_v24 = vpop.f32.mrf.mxu0  ;;  %v18465_v38 = vadd.f32 %v17524_v52, %v6267_v42 }
 0x66f   : > { %v11762_v18 = vpop.eup %11761  ;;  %8945 = vst [vmem:[%s17111_s23 + $0x2f8] sm:$0xff] %v8689_v9  ;;  %v7944_v1 = vadd.f32 1.0, %v11760_v53  ;;  %11787 = vpow2.f32 %v9863_v25  ;;  %v18455_v25 = vadd.f32 %v17524_v52, %v6265_v13  ;;  %v20242_v9 = vld [vmem:[#allocation186_spill] sm:$0xff]  ;;  %v18471_v13 = vadd.f32 %v17524_v52, %v6524_v54 }
 0x670   : > { %v11764_v19 = vpop.eup %11763  ;;  %11789 = vrcp.f32 %v7942_v57  ;;  %v7943_v63 = vadd.f32 1.0, %v11762_v18  ;;  %v18460_v32 = vadd.f32 %v17524_v52, %v6522_v45  ;;  %v6271_v53 = vadd.f32 %v6270_v59, %v20242_v9  ;;  %v20243_v18 = vld [vmem:[#allocation187_spill] sm:$0xff]  ;;  %v6276_v42 = vpop.f32.mrf.mxu0 }
 0x671   : > { %v11766_v46 = vpop.eup %11765  ;;  %11791 = vrcp.f32 %v7944_v1  ;;  %v7945_v15 = vadd.f32 1.0, %v11764_v19  ;;  %v6528_v1 = vadd.f32 %v6527_v21, %v20243_v18  ;;  %v9876_v45 = vmul.f32 -1.442695, %v18455_v25  ;;  %v20244_v19 = vld [vmem:[#allocation188_spill] sm:$0xff] }
 0x672   : > { %v11768_v40 = vpop.eup %11767  ;;  %v8694_v30 = vmul.f32 %v11766_v46, %v18320_v58  ;;  %11793 = vrcp.f32 %v7943_v63  ;;  %v6273_v63 = vadd.f32 %v6272_v24, %v20244_v19 }
 0x673   : > { %v11770_v51 = vpop.eup %11769  ;;  %v8696_v62 = vmul.f32 %v11768_v40, %v18324_v28  ;;  %11795 = vrcp.f32 %v7945_v15  ;;  %v6529_v28 = vpop.f32.mrf.mxu1  ;;  %v9877_v15 = vmul.f32 -1.442695, %v18465_v38 }
 0x674   : > { %v11772_v22 = vpop.eup %11771  ;;  %8950 = vst [vmem:[%s17111_s23 + $0x320] sm:$0xff] %v8694_v30  ;;  %v8695_v58 = vmul.f32 %v11770_v51, %v18328_v20  ;;  %11797 = vpow2.f32 %v9868_v0  ;;  %v6530_v52 = vadd.f32 %v6529_v28, %v20245_v37  ;;  %v9879_v30 = vmul.f32 -1.442695, %v18471_v13 }
 0x675   : > { %v11774_v57 = vpop.eup %11773  ;;  %8952 = vst [vmem:[%s17111_s23 + $0x330] sm:$0xff] %v8696_v62  ;;  %v8697_v44 = vmul.f32 %v11772_v22, %v18333_v17  ;;  %11799 = vpow2.f32 %v9870_v12  ;;  %v9878_v17 = vmul.f32 -1.442695, %v18460_v32  ;;  %v18483_v12 = vadd.f32 %v17553_v35, %v6271_v53  ;;  %v6533_v7 = vpop.f32.mrf.mxu1  ;;  %v20246_v53 = vld [vmem:[#allocation190_spill] sm:$0xff] }
 0x676   : > { %v11776_v48 = vpop.eup %11775  ;;  %8951 = vst [vmem:[%s17111_s23 + $0x328] sm:$0xff] %v8695_v58  ;;  %v7950_v20 = vadd.f32 1.0, %v11774_v57  ;;  %11801 = vpow2.f32 %v9869_v16  ;;  %v18488_v16 = vadd.f32 %v17553_v35, %v6528_v1  ;;  %v18493_v62 = vadd.f32 %v17553_v35, %v6273_v63  ;;  %v6278_v22 = vpop.f32.mrf.mxu0  ;;  %v20247_v1 = vld [vmem:[#allocation191_spill] sm:$0xff] }
 0x677   : > { %v11778_v59 = vpop.eup %11777  ;;  %8953 = vst [vmem:[%s17111_s23 + $0x338] sm:$0xff] %v8697_v44  ;;  %v7952_v0 = vadd.f32 1.0, %v11776_v48  ;;  %11803 = vpow2.f32 %v9871_v26  ;;  %v18498_v24 = vadd.f32 %v17553_v35, %v6530_v52  ;;  %v6277_v28 = vadd.f32 %v6276_v42, %v20246_v53  ;;  %v6535_v57 = vpop.f32.mrf.mxu1  ;;  %v20248_v52 = vld [vmem:[#allocation111_spill] sm:$0xff] }
 0x678   : > { %v11780_v46 = vpop.eup %11779  ;;  %v8702_v21 = vmul.f32 %v11778_v59, %v18343_v4  ;;  %11805 = vrcp.f32 %v7950_v20  ;;  %v6534_v35 = vadd.f32 %v6533_v7, %v20247_v1 }
 0x679   : > { %v11782_v54 = vpop.eup %11781  ;;  %v8704_v40 = vmul.f32 %v11780_v46, %v18348_v23  ;;  %11807 = vrcp.f32 %v7952_v0  ;;  %v9887_v59 = vmul.f32 -1.442695, %v18498_v24  ;;  %v6282_v0 = vpop.f32.mrf.mxu0  ;;  %v18513_v42 = vadd.f32 %v20248_v52, %v6277_v28 }
 0x67a   : > { %v11784_v51 = vpop.eup %11783  ;;  %8958 = vst [vmem:[%s17111_s23 + $0x360] sm:$0xff] %v8702_v21  ;;  %v8703_v4 = vmul.f32 %v11782_v54, %v18353_v36  ;;  %11809 = vpow2.f32 %v9876_v45  ;;  %v9884_v36 = vmul.f32 -1.442695, %v18483_v12  ;;  %v9885_v45 = vmul.f32 -1.442695, %v18493_v62  ;;  %v20249_v54 = vld [vmem:[#allocation192_spill] sm:$0xff] }
 0x67b   : > { %v11786_v26 = vpop.eup %11785  ;;  %8960 = vst [vmem:[%s17111_s23 + $0x370] sm:$0xff] %v8704_v40  ;;  %v8705_v23 = vmul.f32 %v11784_v51, %v18359_v49  ;;  %11811 = vpow2.f32 %v9878_v17  ;;  %v9886_v49 = vmul.f32 -1.442695, %v18488_v16  ;;  %v6279_v40 = vadd.f32 %v6278_v22, %v20249_v54  ;;  %v20250_v51 = vld [vmem:[#allocation193_spill] sm:$0xff] }
 0x67c   : > { %v11788_v58 = vpop.eup %11787  ;;  %8959 = vst [vmem:[%s17111_s23 + $0x368] sm:$0xff] %v8703_v4  ;;  %v7951_v9 = vadd.f32 1.0, %v11786_v26  ;;  %11813 = vpow2.f32 %v9877_v15  ;;  %v6536_v4 = vadd.f32 %v6535_v57, %v20250_v51  ;;  %v6284_v26 = vpop.f32.mrf.mxu0 }
 0x67d   : > { %v11790_v44 = vpop.eup %11789  ;;  %8961 = vst [vmem:[%s17111_s23 + $0x378] sm:$0xff] %v8705_v23  ;;  %v7953_v18 = vadd.f32 1.0, %v11788_v58  ;;  %11815 = vpow2.f32 %v9879_v30  ;;  %v9892_v58 = vmul.f32 -1.442695, %v18513_v42  ;;  %v18528_v57 = vadd.f32 %v20248_v52, %v6279_v40  ;;  %v20254_v40 = vld [vmem:[#allocation197_spill] sm:$0xff] }
 0x67e   : > { %v11792_v48 = vpop.eup %11791  ;;  %v8710_v20 = vmul.f32 %v11790_v44, %v18371_v43  ;;  %11817 = vrcp.f32 %v7951_v9  ;;  %v6539_v43 = vpop.f32.mrf.mxu1  ;;  %v18532_v1 = vadd.f32 %v20248_v52, %v6536_v4 }
 0x67f   : > { %v11794_v19 = vpop.eup %11793  ;;  %v8712_v63 = vmul.f32 %v11792_v48, %v18376_v5  ;;  %11819 = vrcp.f32 %v7953_v18  ;;  %v18518_v5 = vadd.f32 %v20248_v52, %v6534_v35  ;;  %v6288_v35 = vpop.f32.mrf.mxu0  ;;  %v9893_v52 = vmul.f32 -1.442695, %v18528_v57 }
 0x680   : > { %v11796_v17 = vpop.eup %11795  ;;  %8966 = vst [vmem:[%s17111_s23 + $0x3a0] sm:$0xff] %v8710_v20  ;;  %v8711_v37 = vmul.f32 %v11794_v19, %v18381_v34  ;;  %11821 = vpow2.f32 %v9884_v36  ;;  %v6541_v9 = vpop.f32.mrf.mxu1 }
 0x681   : > { %v11798_v46 = vpop.eup %11797  ;;  %8968 = vst [vmem:[%s17111_s23 + $0x3b0] sm:$0xff] %v8712_v63  ;;  %v8713_v21 = vmul.f32 %v11796_v17, %v18386_v39  ;;  %11823 = vpow2.f32 %v9886_v49  ;;  %v9894_v28 = vmul.f32 -1.442695, %v18518_v5  ;;  %v20252_v17 = vld [vmem:[#allocation195_spill] sm:$0xff] }
 0x682   : > { %v11800_v15 = vpop.eup %11799  ;;  %8967 = vst [vmem:[%s17111_s23 + $0x3a8] sm:$0xff] %v8711_v37  ;;  %v7958_v7 = vadd.f32 1.0, %v11798_v46  ;;  %11825 = vpow2.f32 %v9885_v45  ;;  %v20251_v45 = vld [vmem:[#allocation194_spill] sm:$0xff]  ;;  %v6545_v63 = vpop.f32.mrf.mxu1  ;;  %v6540_v37 = vadd.f32 %v6539_v43, %v20252_v17 }
 0x683   : > { %v11802_v34 = vpop.eup %11801  ;;  %8969 = vst [vmem:[%s17111_s23 + $0x3b8] sm:$0xff] %v8713_v21  ;;  %v7960_v30 = vadd.f32 1.0, %v11800_v15  ;;  %11827 = vpow2.f32 %v9887_v59  ;;  %v6283_v19 = vadd.f32 %v6282_v0, %v20251_v45  ;;  %v20253_v21 = vld [vmem:[#allocation196_spill] sm:$0xff]  ;;  %v9895_v0 = vmul.f32 -1.442695, %v18532_v1 }
 0x684   : > { %v11804_v23 = vpop.eup %11803  ;;  %11829 = vrcp.f32 %v7958_v7  ;;  %v7959_v39 = vadd.f32 1.0, %v11802_v34  ;;  %v6285_v15 = vadd.f32 %v6284_v26, %v20253_v21  ;;  %v6542_v34 = vadd.f32 %v6541_v9, %v20254_v40 }
 0x685   : > { %v11806_v36 = vpop.eup %11805  ;;  %11831 = vrcp.f32 %v7960_v30  ;;  %v7961_v53 = vadd.f32 1.0, %v11804_v23  ;;  %v6290_v30 = vpop.f32.mrf.mxu0  ;;  %v18544_v4 = vadd.f32 %v17620_v33, %v6283_v19 }
 0x686   : > { %v11808_v22 = vpop.eup %11807  ;;  %v8718_v44 = vmul.f32 %v11806_v36, %v18401_v8  ;;  %11833 = vrcp.f32 %v7959_v39  ;;  %v6547_v23 = vpop.f32.mrf.mxu1 }
 0x687   : > { %v11810_v18 = vpop.eup %11809  ;;  %v8720_v49 = vmul.f32 %v11808_v22, %v18406_v29  ;;  %11835 = vrcp.f32 %v7961_v53  ;;  %v18552_v53 = vadd.f32 %v17620_v33, %v6285_v15  ;;  %v9900_v19 = vmul.f32 -1.442695, %v18544_v4 }
 0x688   : > { %v11812_v48 = vpop.eup %11811  ;;  %8974 = vst [vmem:[%s17111_s23 + $0x3e0] sm:$0xff] %v8718_v44  ;;  %v7966_v20 = vadd.f32 1.0, %v11810_v18  ;;  %11837 = vpow2.f32 %v9892_v58  ;;  %v18548_v58 = vadd.f32 %v17620_v33, %v6540_v37  ;;  %v18557_v18 = vadd.f32 %v17620_v33, %v6542_v34  ;;  %v6551_v17 = vpop.f32.mrf.mxu1 }
 0x689   : > { %v11814_v8 = vpop.eup %11813  ;;  %8976 = vst [vmem:[%s17111_s23 + $0x3f0] sm:$0xff] %v8720_v49  ;;  %v7968_v59 = vadd.f32 1.0, %v11812_v48  ;;  %11839 = vpow2.f32 %v9894_v28  ;;  %v6294_v48 = vpop.f32.mrf.mxu0  ;;  %v9901_v21 = vmul.f32 -1.442695, %v18552_v53 }
 0x68a   : > { %v11816_v46 = vpop.eup %11815  ;;  %11841 = vrcp.f32 %v7966_v20  ;;  %v7967_v29 = vadd.f32 1.0, %v11814_v8  ;;  %v20257_v8 = vld [vmem:[#allocation200_spill] sm:$0xff] }
 0x68b   : > { %v11818_v7 = vpop.eup %11817  ;;  %11843 = vrcp.f32 %v7968_v59  ;;  %v7969_v54 = vadd.f32 1.0, %v11816_v46  ;;  %v6291_v59 = vadd.f32 %v6290_v30, %v20257_v8  ;;  %v9902_v46 = vmul.f32 -1.442695, %v18548_v58  ;;  %v6296_v34 = vpop.f32.mrf.mxu0 }
 0x68c   : > { %v11820_v51 = vpop.eup %11819  ;;  %v8719_v43 = vmul.f32 %v11818_v7, %v18416_v55  ;;  %11845 = vrcp.f32 %v7967_v29  ;;  %v20255_v55 = vld [vmem:[#allocation198_spill] sm:$0xff]  ;;  %v20258_v29 = vld [vmem:[#allocation201_spill] sm:$0xff] }
 0x68d   : > { %v11822_v39 = vpop.eup %11821  ;;  %v8721_v26 = vmul.f32 %v11820_v51, %v18420_v6  ;;  %11847 = vrcp.f32 %v7969_v54  ;;  %v6289_v28 = vadd.f32 %v6288_v35, %v20255_v55  ;;  %v20256_v6 = vld [vmem:[#allocation199_spill] sm:$0xff]  ;;  %v6548_v33 = vadd.f32 %v6547_v23, %v20258_v29 }
 0x68e   : > { %v11824_v36 = vpop.eup %11823  ;;  %8975 = vst [vmem:[%s17111_s23 + $0x3e8] sm:$0xff] %v8719_v43  ;;  %v7974_v9 = vadd.f32 1.0, %v11822_v39  ;;  %11849 = vpow2.f32 %v9893_v52  ;;  %v6546_v49 = vadd.f32 %v6545_v63, %v20256_v6  ;;  %v18577_v51 = vadd.f32 %v17644_v27, %v6291_v59  ;;  %v20259_v43 = vld [vmem:[#allocation202_spill] sm:$0xff] }
 0x68f   : > { %v11826_v22 = vpop.eup %11825  ;;  %8977 = vst [vmem:[%s17111_s23 + $0x3f8] sm:$0xff] %v8721_v26  ;;  %v7976_v44 = vadd.f32 1.0, %v11824_v36  ;;  %11851 = vpow2.f32 %v9895_v0  ;;  %v18567_v15 = vadd.f32 %v17644_v27, %v6289_v28  ;;  %v9903_v0 = vmul.f32 -1.442695, %v18557_v18 }
 0x690   : > { %v11828_v20 = vpop.eup %11827  ;;  %11853 = vrcp.f32 %v7974_v9  ;;  %v7975_v45 = vadd.f32 1.0, %v11826_v22  ;;  %v18572_v40 = vadd.f32 %v17644_v27, %v6546_v49  ;;  %v6295_v23 = vadd.f32 %v6294_v48, %v20259_v43  ;;  %v20260_v9 = vld [vmem:[#allocation203_spill] sm:$0xff] }
 0x691   : > { %v11830_v37 = vpop.eup %11829  ;;  %11855 = vrcp.f32 %v7976_v44  ;;  %v7977_v35 = vadd.f32 1.0, %v11828_v20  ;;  %v18583_v36 = vadd.f32 %v17644_v27, %v6548_v33  ;;  %v6552_v55 = vadd.f32 %v6551_v17, %v20260_v9  ;;  %v20261_v44 = vld [vmem:[#allocation204_spill] sm:$0xff]  ;;  %v20262_v20 = vld [vmem:[#allocation205_spill] sm:$0xff] }
 0x692   : > { %v11832_v52 = vpop.eup %11831  ;;  %v8726_v63 = vmul.f32 %v11830_v37, %v18432_v60  ;;  %11857 = vrcp.f32 %v7975_v45  ;;  %v9908_v22 = vmul.f32 -1.442695, %v18567_v15  ;;  %v6297_v6 = vadd.f32 %v6296_v34, %v20261_v44  ;;  %v6300_v45 = vpop.f32.mrf.mxu0 }
 0x693   : > { %v11834_v7 = vpop.eup %11833  ;;  %v8728_v54 = vmul.f32 %v11832_v52, %v18436_v41  ;;  %11859 = vrcp.f32 %v7977_v35  ;;  %v6553_v41 = vpop.f32.mrf.mxu1  ;;  %v9909_v59 = vmul.f32 -1.442695, %v18577_v51  ;;  %v18595_v17 = vadd.f32 %v17673_v61, %v6295_v23 }
 0x694   : > { %v11836_v30 = vpop.eup %11835  ;;  %8982 = vst [vmem:[%s17111_s23 + $0x420] sm:$0xff] %v8726_v63  ;;  %v8727_v60 = vmul.f32 %v11834_v7, %v18440_v56  ;;  %11861 = vpow2.f32 %v9900_v19  ;;  %v6554_v27 = vadd.f32 %v6553_v41, %v20262_v20  ;;  %v9911_v29 = vmul.f32 -1.442695, %v18583_v36 }
 0x695   : > { %v11838_v39 = vpop.eup %11837  ;;  %8984 = vst [vmem:[%s17111_s23 + $0x430] sm:$0xff] %v8728_v54  ;;  %v8729_v26 = vmul.f32 %v11836_v30, %v18445_v2  ;;  %11863 = vpow2.f32 %v9902_v46  ;;  %v9910_v2 = vmul.f32 -1.442695, %v18572_v40  ;;  %v6557_v37 = vpop.f32.mrf.mxu1  ;;  %v18600_v33 = vadd.f32 %v17673_v61, %v6552_v55  ;;  %v20263_v30 = vld [vmem:[#allocation206_spill] sm:$0xff] }
 0x696   : > { %v11840_v28 = vpop.eup %11839  ;;  %8983 = vst [vmem:[%s17111_s23 + $0x428] sm:$0xff] %v8727_v60  ;;  %v7982_v56 = vadd.f32 1.0, %v11838_v39  ;;  %11865 = vpow2.f32 %v9901_v21  ;;  %v18605_v63 = vadd.f32 %v17673_v61, %v6297_v6  ;;  %v18610_v7 = vadd.f32 %v17673_v61, %v6554_v27  ;;  %v6302_v54 = vpop.f32.mrf.mxu0  ;;  %v20264_v39 = vld [vmem:[#allocation207_spill] sm:$0xff] }
 0x697   : > { %v11842_v49 = vpop.eup %11841  ;;  %8985 = vst [vmem:[%s17111_s23 + $0x438] sm:$0xff] %v8729_v26  ;;  %v7984_v48 = vadd.f32 1.0, %v11840_v28  ;;  %11867 = vpow2.f32 %v9903_v0  ;;  %v6301_v60 = vadd.f32 %v6300_v45, %v20263_v30  ;;  %v6559_v43 = vpop.f32.mrf.mxu1  ;;  %v6558_v61 = vadd.f32 %v6557_v37, %v20264_v39  ;;  %v20266_v37 = vld [vmem:[#allocation209_spill] sm:$0xff]  ;;  %v20267_v39 = vld [vmem:[#allocation210_spill] sm:$0xff] }
 0x698   : > { %v11844_v19 = vpop.eup %11843  ;;  %v8734_v8 = vmul.f32 %v11842_v49, %v18455_v25  ;;  %11869 = vrcp.f32 %v7982_v56  ;;  %v9917_v55 = vmul.f32 -1.442695, %v18605_v63  ;;  %v6306_v44 = vpop.f32.mrf.mxu0 }
 0x699   : > { %v11846_v35 = vpop.eup %11845  ;;  %v8736_v46 = vmul.f32 %v11844_v19, %v18460_v32  ;;  %11871 = vrcp.f32 %v7984_v48  ;;  %v18625_v48 = vadd.f32 %v17706_v3, %v6301_v60  ;;  %v20265_v19 = vld [vmem:[#allocation208_spill] sm:$0xff] }
 0x69a   : > { %v11848_v52 = vpop.eup %11847  ;;  %8990 = vst [vmem:[%s17111_s23 + $0x460] sm:$0xff] %v8734_v8  ;;  %v8735_v25 = vmul.f32 %v11846_v35, %v18465_v38  ;;  %11873 = vpow2.f32 %v9908_v22  ;;  %v9916_v38 = vmul.f32 -1.442695, %v18595_v17  ;;  %v9919_v22 = vmul.f32 -1.442695, %v18610_v7 }
 0x69b   : > { %v11850_v21 = vpop.eup %11849  ;;  %8992 = vst [vmem:[%s17111_s23 + $0x470] sm:$0xff] %v8736_v46  ;;  %v8737_v32 = vmul.f32 %v11848_v52, %v18471_v13  ;;  %11875 = vpow2.f32 %v9910_v2  ;;  %v9918_v13 = vmul.f32 -1.442695, %v18600_v33  ;;  %v6303_v8 = vadd.f32 %v6302_v54, %v20265_v19  ;;  %v6308_v46 = vpop.f32.mrf.mxu0 }
 0x69c   : > { %v11852_v0 = vpop.eup %11851  ;;  %8991 = vst [vmem:[%s17111_s23 + $0x468] sm:$0xff] %v8735_v25  ;;  %v7983_v34 = vadd.f32 1.0, %v11850_v21  ;;  %11877 = vpow2.f32 %v9909_v59  ;;  %v6560_v35 = vadd.f32 %v6559_v43, %v20266_v37  ;;  %v9924_v52 = vmul.f32 -1.442695, %v18625_v48 }
 0x69d   : > { %v11854_v23 = vpop.eup %11853  ;;  %8993 = vst [vmem:[%s17111_s23 + $0x478] sm:$0xff] %v8737_v32  ;;  %v7985_v41 = vadd.f32 1.0, %v11852_v0  ;;  %11879 = vpow2.f32 %v9911_v29 }
 0x69e   : > { %v11856_v26 = vpop.eup %11855  ;;  %v8742_v9 = vmul.f32 %v11854_v23, %v18483_v12  ;;  %11881 = vrcp.f32 %v7983_v34  ;;  %v6563_v12 = vpop.f32.mrf.mxu1  ;;  %v18644_v43 = vadd.f32 %v17706_v3, %v6560_v35 }
 0x69f   : > { %v11858_v28 = vpop.eup %11857  ;;  %v8744_v56 = vmul.f32 %v11856_v26, %v18488_v16  ;;  %11883 = vrcp.f32 %v7985_v41  ;;  %v18630_v16 = vadd.f32 %v17706_v3, %v6558_v61  ;;  %v6312_v23 = vpop.f32.mrf.mxu0  ;;  %v6307_v61 = vadd.f32 %v6306_v44, %v20267_v39 }
 0x6a0   : > { %v11860_v6 = vpop.eup %11859  ;;  %8998 = vst [vmem:[%s17111_s23 + $0x4a0] sm:$0xff] %v8742_v9  ;;  %v8743_v49 = vmul.f32 %v11858_v28, %v18493_v62  ;;  %11885 = vpow2.f32 %v9916_v38  ;;  %v6565_v25 = vpop.f32.mrf.mxu1  ;;  %v18640_v38 = vadd.f32 %v17706_v3, %v6303_v8  ;;  %v9927_v44 = vmul.f32 -1.442695, %v18644_v43 }
 0x6a1   : > { %v11862_v2 = vpop.eup %11861  ;;  %9000 = vst [vmem:[%s17111_s23 + $0x4b0] sm:$0xff] %v8744_v56  ;;  %v8745_v20 = vmul.f32 %v11860_v6, %v18498_v24  ;;  %11887 = vpow2.f32 %v9918_v13  ;;  %v9926_v0 = vmul.f32 -1.442695, %v18630_v16  ;;  %v18656_v8 = vadd.f32 %v17740_v31, %v6307_v61 }
 0x6a2   : > { %v11864_v27 = vpop.eup %11863  ;;  %8999 = vst [vmem:[%s17111_s23 + $0x4a8] sm:$0xff] %v8743_v49  ;;  %v7990_v45 = vadd.f32 1.0, %v11862_v2  ;;  %11889 = vpow2.f32 %v9917_v55  ;;  %v6569_v26 = vpop.f32.mrf.mxu1  ;;  %v20268_v55 = vld [vmem:[#allocation211_spill] sm:$0xff]  ;;  %v9925_v3 = vmul.f32 -1.442695, %v18640_v38 }
 0x6a3   : > { %v11866_v62 = vpop.eup %11865  ;;  %9001 = vst [vmem:[%s17111_s23 + $0x4b8] sm:$0xff] %v8745_v20  ;;  %v7992_v59 = vadd.f32 1.0, %v11864_v27  ;;  %11891 = vpow2.f32 %v9919_v22  ;;  %v6564_v28 = vadd.f32 %v6563_v12, %v20268_v55  ;;  %v20269_v22 = vld [vmem:[#allocation212_spill] sm:$0xff]  ;;  %v20270_v20 = vld [vmem:[#allocation213_spill] sm:$0xff] }
 0x6a4   : > { %v11868_v29 = vpop.eup %11867  ;;  %11893 = vrcp.f32 %v7990_v45  ;;  %v7991_v24 = vadd.f32 1.0, %v11866_v62  ;;  %v6309_v6 = vadd.f32 %v6308_v46, %v20269_v22  ;;  %v6566_v27 = vadd.f32 %v6565_v25, %v20270_v20  ;;  %v6314_v45 = vpop.f32.mrf.mxu0  ;;  %v20275_v20 = vld [vmem:[#allocation218_spill] sm:$0xff] }
 0x6a5   : > { %v11870_v21 = vpop.eup %11869  ;;  %11895 = vrcp.f32 %v7992_v59  ;;  %v7993_v32 = vadd.f32 1.0, %v11868_v29  ;;  %v6571_v62 = vpop.f32.mrf.mxu1  ;;  %v18660_v35 = vadd.f32 %v17740_v31, %v6564_v28 }
 0x6a6   : > { %v11872_v54 = vpop.eup %11871  ;;  %v8750_v34 = vmul.f32 %v11870_v21, %v18513_v42  ;;  %11897 = vrcp.f32 %v7991_v24  ;;  %v18664_v24 = vadd.f32 %v17740_v31, %v6309_v6 }
 0x6a7   : > { %v11874_v30 = vpop.eup %11873  ;;  %v8752_v60 = vmul.f32 %v11872_v54, %v18518_v5  ;;  %11899 = vrcp.f32 %v7993_v32  ;;  %v18669_v32 = vadd.f32 %v17740_v31, %v6566_v27  ;;  %v6318_v54 = vpop.f32.mrf.mxu0 }
 0x6a8   : > { %v11876_v41 = vpop.eup %11875  ;;  %9006 = vst [vmem:[%s17111_s23 + $0x4e0] sm:$0xff] %v8750_v34  ;;  %v7998_v13 = vadd.f32 1.0, %v11874_v30  ;;  %11901 = vpow2.f32 %v9924_v52  ;;  %v6575_v39 = vpop.f32.mrf.mxu1  ;;  %v9933_v28 = vmul.f32 -1.442695, %v18664_v24  ;;  %v6319_v27 = vadd.f32 %v6318_v54, %v20275_v20 }
 0x6a9   : > { %v11878_v42 = vpop.eup %11877  ;;  %9008 = vst [vmem:[%s17111_s23 + $0x4f0] sm:$0xff] %v8752_v60  ;;  %v8000_v9 = vadd.f32 1.0, %v11876_v41  ;;  %11903 = vpow2.f32 %v9926_v0  ;;  %v9932_v60 = vmul.f32 -1.442695, %v18656_v8  ;;  %v20273_v41 = vld [vmem:[#allocation216_spill] sm:$0xff] }
 0x6aa   : > { %v11880_v56 = vpop.eup %11879  ;;  %11905 = vrcp.f32 %v7998_v13  ;;  %v7999_v5 = vadd.f32 1.0, %v11878_v42  ;;  %v6315_v13 = vadd.f32 %v6314_v45, %v20273_v41  ;;  %v9934_v42 = vmul.f32 -1.442695, %v18660_v35 }
 0x6ab   : > { %v11882_v49 = vpop.eup %11881  ;;  %11907 = vrcp.f32 %v8000_v9  ;;  %v8001_v2 = vadd.f32 1.0, %v11880_v56  ;;  %v20274_v9 = vld [vmem:[#allocation217_spill] sm:$0xff]  ;;  %v9935_v22 = vmul.f32 -1.442695, %v18669_v32 }
 0x6ac   : > { %v11884_v19 = vpop.eup %11883  ;;  %v8751_v12 = vmul.f32 %v11882_v49, %v18528_v57  ;;  %11909 = vrcp.f32 %v7999_v5  ;;  %v20271_v57 = vld [vmem:[#allocation214_spill] sm:$0xff]  ;;  %v6572_v31 = vadd.f32 %v6571_v62, %v20274_v9  ;;  %v6320_v49 = vpop.f32.mrf.mxu0  ;;  %v20276_v62 = vld [vmem:[#allocation219_spill] sm:$0xff] }
 0x6ad   : > { %v11886_v59 = vpop.eup %11885  ;;  %v8753_v37 = vmul.f32 %v11884_v19, %v18532_v1  ;;  %11911 = vrcp.f32 %v8001_v2  ;;  %v6313_v52 = vadd.f32 %v6312_v23, %v20271_v57  ;;  %v20272_v1 = vld [vmem:[#allocation215_spill] sm:$0xff] }
 0x6ae   : > { %v11888_v46 = vpop.eup %11887  ;;  %9007 = vst [vmem:[%s17111_s23 + $0x4e8] sm:$0xff] %v8751_v12  ;;  %v8006_v29 = vadd.f32 1.0, %v11886_v59  ;;  %11913 = vpow2.f32 %v9925_v3  ;;  %v6570_v0 = vadd.f32 %v6569_v26, %v20272_v1  ;;  %v18695_v12 = vadd.f32 %v17764_v50, %v6572_v31  ;;  %v6324_v1 = vpop.f32.mrf.mxu0 }
 0x6af   : > { %v11890_v25 = vpop.eup %11889  ;;  %9009 = vst [vmem:[%s17111_s23 + $0x4f8] sm:$0xff] %v8753_v37  ;;  %v8008_v21 = vadd.f32 1.0, %v11888_v46  ;;  %11915 = vpow2.f32 %v9927_v44  ;;  %v18679_v56 = vadd.f32 %v17764_v50, %v6313_v52  ;;  %v18689_v44 = vadd.f32 %v17764_v50, %v6315_v13 }
 0x6b0   : > { %v11892_v34 = vpop.eup %11891  ;;  %11917 = vrcp.f32 %v8006_v29  ;;  %v8007_v30 = vadd.f32 1.0, %v11890_v25  ;;  %v18684_v6 = vadd.f32 %v17764_v50, %v6570_v0  ;;  %v6576_v59 = vadd.f32 %v6575_v39, %v20276_v62  ;;  %v20277_v29 = vld [vmem:[#allocation220_spill] sm:$0xff] }
 0x6b1   : > { %v11894_v61 = vpop.eup %11893  ;;  %11919 = vrcp.f32 %v8008_v21  ;;  %v8009_v23 = vadd.f32 1.0, %v11892_v34  ;;  %v9940_v46 = vmul.f32 -1.442695, %v18679_v56  ;;  %v6321_v57 = vadd.f32 %v6320_v49, %v20277_v29  ;;  %v20278_v21 = vld [vmem:[#allocation221_spill] sm:$0xff] }
 0x6b2   : > { %v11896_v55 = vpop.eup %11895  ;;  %v8758_v26 = vmul.f32 %v11894_v61, %v18544_v4  ;;  %11921 = vrcp.f32 %v8007_v30  ;;  %v9941_v34 = vmul.f32 -1.442695, %v18689_v44  ;;  %v18707_v30 = vadd.f32 %v17793_v14, %v6319_v27 }
 0x6b3   : > { %v11898_v5 = vpop.eup %11897  ;;  %v8760_v3 = vmul.f32 %v11896_v55, %v18548_v58  ;;  %11923 = vrcp.f32 %v8009_v23  ;;  %v6577_v58 = vpop.f32.mrf.mxu1  ;;  %v9943_v39 = vmul.f32 -1.442695, %v18695_v12  ;;  %v18712_v61 = vadd.f32 %v17793_v14, %v6576_v59 }
 0x6b4   : > { %v11900_v2 = vpop.eup %11899  ;;  %9014 = vst [vmem:[%s17111_s23 + $0x520] sm:$0xff] %v8758_v26  ;;  %v8759_v4 = vmul.f32 %v11898_v5, %v18552_v53  ;;  %11925 = vpow2.f32 %v9932_v60  ;;  %v6578_v50 = vadd.f32 %v6577_v58, %v20278_v21  ;;  %v6326_v55 = vpop.f32.mrf.mxu0  ;;  %v20279_v5 = vld [vmem:[#allocation222_spill] sm:$0xff] }
 0x6b5   : > { %v11902_v45 = vpop.eup %11901  ;;  %9016 = vst [vmem:[%s17111_s23 + $0x530] sm:$0xff] %v8760_v3  ;;  %v8761_v19 = vmul.f32 %v11900_v2, %v18557_v18  ;;  %11927 = vpow2.f32 %v9934_v42  ;;  %v9942_v18 = vmul.f32 -1.442695, %v18684_v6  ;;  %v6581_v60 = vpop.f32.mrf.mxu1  ;;  %v18717_v42 = vadd.f32 %v17793_v14, %v6321_v57 }
 0x6b6   : > { %v11904_v37 = vpop.eup %11903  ;;  %9015 = vst [vmem:[%s17111_s23 + $0x528] sm:$0xff] %v8759_v4  ;;  %v8014_v53 = vadd.f32 1.0, %v11902_v45  ;;  %11929 = vpow2.f32 %v9933_v28  ;;  %v18722_v31 = vadd.f32 %v17793_v14, %v6578_v50  ;;  %v6325_v3 = vadd.f32 %v6324_v1, %v20279_v5  ;;  %v20280_v4 = vld [vmem:[#allocation223_spill] sm:$0xff]  ;;  %v6330_v59 = vpop.f32.mrf.mxu0  ;;  %v20282_v1 = vld [vmem:[#allocation225_spill] sm:$0xff] }
 0x6b7   : > { %v11906_v52 = vpop.eup %11905  ;;  %9017 = vst [vmem:[%s17111_s23 + $0x538] sm:$0xff] %v8761_v19  ;;  %v8016_v25 = vadd.f32 1.0, %v11904_v37  ;;  %11931 = vpow2.f32 %v9935_v22  ;;  %v6583_v22 = vpop.f32.mrf.mxu1  ;;  %v6582_v14 = vadd.f32 %v6581_v60, %v20280_v4  ;;  %v9949_v58 = vmul.f32 -1.442695, %v18717_v42  ;;  %v20284_v4 = vld [vmem:[#allocation227_spill] sm:$0xff] }
 0x6b8   : > { %v11908_v0 = vpop.eup %11907  ;;  %v8766_v54 = vmul.f32 %v11906_v52, %v18567_v15  ;;  %11933 = vrcp.f32 %v8014_v53  ;;  %v9951_v62 = vmul.f32 -1.442695, %v18722_v31 }
 0x6b9   : > { %v11910_v41 = vpop.eup %11909  ;;  %v8768_v13 = vmul.f32 %v11908_v0, %v18572_v40  ;;  %11935 = vrcp.f32 %v8016_v25  ;;  %v6584_v0 = vadd.f32 %v6583_v22, %v20282_v1  ;;  %v20283_v22 = vld [vmem:[#allocation226_spill] sm:$0xff] }
 0x6ba   : > { %v11912_v23 = vpop.eup %11911  ;;  %9022 = vst [vmem:[%s17111_s23 + $0x560] sm:$0xff] %v8766_v54  ;;  %v8767_v15 = vmul.f32 %v11910_v41, %v18577_v51  ;;  %11937 = vpow2.f32 %v9940_v46  ;;  %v9948_v51 = vmul.f32 -1.442695, %v18707_v30  ;;  %v18737_v46 = vadd.f32 %v17826_v10, %v6325_v3  ;;  %v6332_v54 = vpop.f32.mrf.mxu0 }
 0x6bb   : > { %v11914_v9 = vpop.eup %11913  ;;  %9024 = vst [vmem:[%s17111_s23 + $0x570] sm:$0xff] %v8768_v13  ;;  %v8769_v40 = vmul.f32 %v11912_v23, %v18583_v36  ;;  %11939 = vpow2.f32 %v9942_v18  ;;  %v9950_v36 = vmul.f32 -1.442695, %v18712_v61  ;;  %v20281_v18 = vld [vmem:[#allocation224_spill] sm:$0xff] }
 0x6bc   : > { %v11916_v26 = vpop.eup %11915  ;;  %9023 = vst [vmem:[%s17111_s23 + $0x568] sm:$0xff] %v8767_v15  ;;  %v8015_v28 = vadd.f32 1.0, %v11914_v9  ;;  %11941 = vpow2.f32 %v9941_v34  ;;  %v6327_v21 = vadd.f32 %v6326_v55, %v20281_v18  ;;  %v9956_v60 = vmul.f32 -1.442695, %v18737_v46 }
 0x6bd   : > { %v11918_v49 = vpop.eup %11917  ;;  %9025 = vst [vmem:[%s17111_s23 + $0x578] sm:$0xff] %v8769_v40  ;;  %v8017_v2 = vadd.f32 1.0, %v11916_v26  ;;  %11943 = vpow2.f32 %v9943_v39 }
 0x6be   : > { %v11920_v20 = vpop.eup %11919  ;;  %v8774_v27 = vmul.f32 %v11918_v49, %v18595_v17  ;;  %11945 = vrcp.f32 %v8015_v28  ;;  %v6587_v17 = vpop.f32.mrf.mxu1  ;;  %v18752_v40 = vadd.f32 %v17826_v10, %v6327_v21  ;;  %v18756_v28 = vadd.f32 %v17826_v10, %v6584_v0 }
 0x6bf   : > { %v11922_v45 = vpop.eup %11921  ;;  %v8776_v19 = vmul.f32 %v11920_v20, %v18600_v33  ;;  %11947 = vrcp.f32 %v8017_v2  ;;  %v18742_v33 = vadd.f32 %v17826_v10, %v6582_v14  ;;  %v6331_v49 = vadd.f32 %v6330_v59, %v20283_v22  ;;  %v20286_v59 = vld [vmem:[#allocation229_spill] sm:$0xff] }
 0x6c0   : > { %v11924_v37 = vpop.eup %11923  ;;  %9030 = vst [vmem:[%s17111_s23 + $0x5a0] sm:$0xff] %v8774_v27  ;;  %v8775_v53 = vmul.f32 %v11922_v45, %v18605_v63  ;;  %11949 = vpow2.f32 %v9948_v51  ;;  %v6589_v41 = vpop.f32.mrf.mxu1  ;;  %v6588_v14 = vadd.f32 %v6587_v17, %v20284_v4  ;;  %v9957_v10 = vmul.f32 -1.442695, %v18752_v40  ;;  %v20285_v27 = vld [vmem:[#allocation228_spill] sm:$0xff] }
 0x6c1   : > { %v11926_v29 = vpop.eup %11925  ;;  %9032 = vst [vmem:[%s17111_s23 + $0x5b0] sm:$0xff] %v8776_v19  ;;  %v8777_v57 = vmul.f32 %v11924_v37, %v18610_v7  ;;  %11951 = vpow2.f32 %v9950_v36  ;;  %v9958_v23 = vmul.f32 -1.442695, %v18742_v33  ;;  %v6336_v51 = vpop.f32.mrf.mxu0  ;;  %v6590_v37 = vadd.f32 %v6589_v41, %v20286_v59 }
 0x6c2   : > { %v11928_v52 = vpop.eup %11927  ;;  %9031 = vst [vmem:[%s17111_s23 + $0x5a8] sm:$0xff] %v8775_v53  ;;  %v8022_v25 = vadd.f32 1.0, %v11926_v29  ;;  %11953 = vpow2.f32 %v9949_v58  ;;  %v6593_v2 = vpop.f32.mrf.mxu1  ;;  %v6333_v58 = vadd.f32 %v6332_v54, %v20285_v27  ;;  %v18772_v21 = vadd.f32 %v17860_v47, %v6588_v14 }
 0x6c3   : > { %v11930_v63 = vpop.eup %11929  ;;  %9033 = vst [vmem:[%s17111_s23 + $0x5b8] sm:$0xff] %v8777_v57  ;;  %v8024_v50 = vadd.f32 1.0, %v11928_v52  ;;  %11955 = vpow2.f32 %v9951_v62  ;;  %v9959_v62 = vmul.f32 -1.442695, %v18756_v28  ;;  %v6338_v53 = vpop.f32.mrf.mxu0  ;;  %v18768_v57 = vadd.f32 %v17860_v47, %v6331_v49 }
 0x6c4   : > { %v11932_v34 = vpop.eup %11931  ;;  %11957 = vrcp.f32 %v8022_v25  ;;  %v8023_v7 = vadd.f32 1.0, %v11930_v63  ;;  %v6595_v52 = vpop.f32.mrf.mxu1  ;;  %v18776_v1 = vadd.f32 %v17860_v47, %v6333_v58  ;;  %v20291_v58 = vld [vmem:[#allocation234_spill] sm:$0xff] }
 0x6c5   : > { %v11934_v13 = vpop.eup %11933  ;;  %11959 = vrcp.f32 %v8024_v50  ;;  %v8025_v39 = vadd.f32 1.0, %v11932_v34  ;;  %v6342_v41 = vpop.f32.mrf.mxu0 }
 0x6c6   : > { %v11936_v15 = vpop.eup %11935  ;;  %v8782_v9 = vmul.f32 %v11934_v13, %v18625_v48  ;;  %11961 = vrcp.f32 %v8023_v7  ;;  %v18781_v7 = vadd.f32 %v17860_v47, %v6590_v37  ;;  %v20292_v37 = vld [vmem:[#allocation235_spill] sm:$0xff] }
 0x6c7   : > { %v11938_v55 = vpop.eup %11937  ;;  %v8784_v26 = vmul.f32 %v11936_v15, %v18630_v16  ;;  %11963 = vrcp.f32 %v8025_v39  ;;  %v20289_v15 = vld [vmem:[#allocation232_spill] sm:$0xff] }
 0x6c8   : > { %v11940_v5 = vpop.eup %11939  ;;  %9038 = vst [vmem:[%s17111_s23 + $0x5e0] sm:$0xff] %v8782_v9  ;;  %v8030_v3 = vadd.f32 1.0, %v11938_v55  ;;  %11965 = vpow2.f32 %v9956_v60  ;;  %v6339_v9 = vadd.f32 %v6338_v53, %v20289_v15  ;;  %v6599_v55 = vpop.f32.mrf.mxu1  ;;  %v9967_v14 = vmul.f32 -1.442695, %v18781_v7 }
 0x6c9   : > { %v11942_v48 = vpop.eup %11941  ;;  %9040 = vst [vmem:[%s17111_s23 + $0x5f0] sm:$0xff] %v8784_v26  ;;  %v8032_v36 = vadd.f32 1.0, %v11940_v5  ;;  %11967 = vpow2.f32 %v9958_v23  ;;  %v9964_v23 = vmul.f32 -1.442695, %v18768_v57  ;;  %v9966_v5 = vmul.f32 -1.442695, %v18772_v21 }
 0x6ca   : > { %v11944_v20 = vpop.eup %11943  ;;  %11969 = vrcp.f32 %v8030_v3  ;;  %v8031_v16 = vadd.f32 1.0, %v11942_v48  ;;  %v20290_v3 = vld [vmem:[#allocation233_spill] sm:$0xff]  ;;  %v18801_v27 = vadd.f32 %v17884_v11, %v6339_v9  ;;  %v6600_v53 = vadd.f32 %v6599_v55, %v20292_v37 }
 0x6cb   : > { %v11946_v45 = vpop.eup %11945  ;;  %11971 = vrcp.f32 %v8032_v36  ;;  %v8033_v19 = vadd.f32 1.0, %v11944_v20  ;;  %v6596_v47 = vadd.f32 %v6595_v52, %v20290_v3  ;;  %v20293_v52 = vld [vmem:[#allocation236_spill] sm:$0xff]  ;;  %v20298_v37 = vld [vmem:[#allocation105_spill] sm:$0xff] }
 0x6cc   : > { %v11948_v29 = vpop.eup %11947  ;;  %v8783_v17 = vmul.f32 %v11946_v45, %v18640_v38  ;;  %11973 = vrcp.f32 %v8031_v16  ;;  %v20287_v38 = vld [vmem:[#allocation230_spill] sm:$0xff]  ;;  %v6344_v16 = vpop.f32.mrf.mxu0  ;;  %v6343_v45 = vadd.f32 %v6342_v41, %v20291_v58 }
 0x6cd   : > { %v11950_v25 = vpop.eup %11949  ;;  %v8785_v18 = vmul.f32 %v11948_v29, %v18644_v43  ;;  %11975 = vrcp.f32 %v8033_v19  ;;  %v6337_v0 = vadd.f32 %v6336_v51, %v20287_v38  ;;  %v20288_v43 = vld [vmem:[#allocation231_spill] sm:$0xff]  ;;  %v18807_v59 = vadd.f32 %v17884_v11, %v6596_v47  ;;  %v20296_v47 = vld [vmem:[#allocation238_spill] sm:$0xff] }
 0x6ce   : > { %v11952_v63 = vpop.eup %11951  ;;  %9039 = vst [vmem:[%s17111_s23 + $0x5e8] sm:$0xff] %v8783_v17  ;;  %v8038_v50 = vadd.f32 1.0, %v11950_v25  ;;  %11977 = vpow2.f32 %v9957_v10  ;;  %v6594_v60 = vadd.f32 %v6593_v2, %v20288_v43  ;;  %v9965_v2 = vmul.f32 -1.442695, %v18776_v1 }
 0x6cf   : > { %v11954_v54 = vpop.eup %11953  ;;  %9041 = vst [vmem:[%s17111_s23 + $0x5f8] sm:$0xff] %v8785_v18  ;;  %v8040_v34 = vadd.f32 1.0, %v11952_v63  ;;  %11979 = vpow2.f32 %v9959_v62  ;;  %v18791_v48 = vadd.f32 %v17884_v11, %v6337_v0  ;;  %v6345_v25 = vadd.f32 %v6344_v16, %v20293_v52 }
 0x6d0   : > { %v11956_v13 = vpop.eup %11955  ;;  %11981 = vrcp.f32 %v8038_v50  ;;  %v8039_v39 = vadd.f32 1.0, %v11954_v54  ;;  %v18796_v20 = vadd.f32 %v17884_v11, %v6594_v60  ;;  %v20294_v50 = vld [vmem:[#allocation237_spill] sm:$0xff]  ;;  %v9973_v54 = vmul.f32 -1.442695, %v18801_v27 }
 0x6d1   : > { %v11958_v26 = vpop.eup %11957  ;;  %11983 = vrcp.f32 %v8040_v34  ;;  %v8041_v51 = vadd.f32 1.0, %v11956_v13  ;;  %v9972_v17 = vmul.f32 -1.442695, %v18791_v48  ;;  %v20295_v34 = vld [vmem:[#allocation144_spill] sm:$0xff]  ;;  %v9975_v13 = vmul.f32 -1.442695, %v18807_v59 }
 0x6d2   : > { %v11960_v22 = vpop.eup %11959  ;;  %v8790_v49 = vmul.f32 %v11958_v26, %v18656_v8  ;;  %11985 = vrcp.f32 %v8039_v39  ;;  %v18819_v43 = vadd.f32 %v20295_v34, %v6343_v45  ;;  %v18824_v39 = vadd.f32 %v20295_v34, %v6600_v53 }
 0x6d3   : > { %v11962_v36 = vpop.eup %11961  ;;  %v8792_v4 = vmul.f32 %v11960_v22, %v18660_v35  ;;  %11987 = vrcp.f32 %v8041_v51  ;;  %v6601_v35 = vpop.f32.mrf.mxu1  ;;  %v18829_v9 = vadd.f32 %v20295_v34, %v6345_v25  ;;  %v20299_v25 = vld [vmem:[#allocation240_spill] sm:$0xff] }
 0x6d4   : > { %v11964_v10 = vpop.eup %11963  ;;  %9046 = vst [vmem:[%s17111_s23 + $0x620] sm:$0xff] %v8790_v49  ;;  %v8791_v8 = vmul.f32 %v11962_v36, %v18664_v24  ;;  %11989 = vpow2.f32 %v9964_v23  ;;  %v6602_v11 = vadd.f32 %v6601_v35, %v20294_v50  ;;  %v6348_v23 = vpop.f32.mrf.mxu0  ;;  %v9982_v36 = vmul.f32 -1.442695, %v18824_v39 }
 0x6d5   : > { %v11966_v19 = vpop.eup %11965  ;;  %9048 = vst [vmem:[%s17111_s23 + $0x630] sm:$0xff] %v8792_v4  ;;  %v8793_v62 = vmul.f32 %v11964_v10, %v18669_v32  ;;  %11991 = vpow2.f32 %v9966_v5  ;;  %v9974_v32 = vmul.f32 -1.442695, %v18796_v20  ;;  %v6605_v55 = vpop.f32.mrf.mxu1  ;;  %v6349_v22 = vadd.f32 %v6348_v23, %v20296_v47 }
 0x6d6   : > { %v11968_v29 = vpop.eup %11967  ;;  %9047 = vst [vmem:[%s17111_s23 + $0x628] sm:$0xff] %v8791_v8  ;;  %v8046_v24 = vadd.f32 1.0, %v11966_v19  ;;  %11993 = vpow2.f32 %v9965_v2  ;;  %v18834_v51 = vadd.f32 %v20295_v34, %v6602_v11  ;;  %v9981_v10 = vmul.f32 -1.442695, %v18829_v9  ;;  %v6350_v35 = vpop.f32.mrf.mxu0 }
 0x6d7   : > { %v11970_v18 = vpop.eup %11969  ;;  %9049 = vst [vmem:[%s17111_s23 + $0x638] sm:$0xff] %v8793_v62  ;;  %v8048_v63 = vadd.f32 1.0, %v11968_v29  ;;  %11995 = vpow2.f32 %v9967_v14  ;;  %v18849_v53 = vadd.f32 %v20298_v37, %v6349_v22 }
 0x6d8   : > { %v11972_v38 = vpop.eup %11971  ;;  %v8798_v0 = vmul.f32 %v11970_v18, %v18679_v56  ;;  %11997 = vrcp.f32 %v8046_v24  ;;  %v9983_v45 = vmul.f32 -1.442695, %v18834_v51  ;;  %v6351_v18 = vadd.f32 %v6350_v35, %v20299_v25 }
 0x6d9   : > { %v11974_v60 = vpop.eup %11973  ;;  %v8800_v41 = vmul.f32 %v11972_v38, %v18684_v6  ;;  %11999 = vrcp.f32 %v8048_v63  ;;  %v9988_v38 = vmul.f32 -1.442695, %v18849_v53 }
 0x6da   : > { %v11976_v15 = vpop.eup %11975  ;;  %9054 = vst [vmem:[%s17111_s23 + $0x660] sm:$0xff] %v8798_v0  ;;  %v8799_v56 = vmul.f32 %v11974_v60, %v18689_v44  ;;  %12001 = vpow2.f32 %v9972_v17  ;;  %v9980_v44 = vmul.f32 -1.442695, %v18819_v43 }
 0x6db   : > { %v11978_v26 = vpop.eup %11977  ;;  %9056 = vst [vmem:[%s17111_s23 + $0x670] sm:$0xff] %v8800_v41  ;;  %v8801_v6 = vmul.f32 %v11976_v15, %v18695_v12  ;;  %12003 = vpow2.f32 %v9974_v32  ;;  %v20297_v12 = vld [vmem:[#allocation239_spill] sm:$0xff]  ;;  %v20300_v32 = vld [vmem:[#allocation241_spill] sm:$0xff] }
 0x6dc   : > { %v11980_v5 = vpop.eup %11979  ;;  %9055 = vst [vmem:[%s17111_s23 + $0x668] sm:$0xff] %v8799_v56  ;;  %v8047_v3 = vadd.f32 1.0, %v11978_v26  ;;  %12005 = vpow2.f32 %v9973_v54  ;;  %v6606_v4 = vadd.f32 %v6605_v55, %v20297_v12 }
 0x6dd   : > { %v11982_v49 = vpop.eup %11981  ;;  %9057 = vst [vmem:[%s17111_s23 + $0x678] sm:$0xff] %v8801_v6  ;;  %v8049_v2 = vadd.f32 1.0, %v11980_v5  ;;  %12007 = vpow2.f32 %v9975_v13  ;;  %v18864_v13 = vadd.f32 %v20298_v37, %v6351_v18 }
 0x6de   : > { %v11984_v14 = vpop.eup %11983  ;;  %v8806_v16 = vmul.f32 %v11982_v49, %v18707_v30  ;;  %12009 = vrcp.f32 %v8047_v3  ;;  %v6607_v30 = vpop.f32.mrf.mxu1 }
 0x6df   : > { %v11986_v8 = vpop.eup %11985  ;;  %v8808_v58 = vmul.f32 %v11984_v14, %v18712_v61  ;;  %12011 = vrcp.f32 %v8049_v2  ;;  %v18854_v61 = vadd.f32 %v20298_v37, %v6606_v4  ;;  %v6608_v50 = vadd.f32 %v6607_v30, %v20300_v32 }
 0x6e0   : > { %v11988_v19 = vpop.eup %11987  ;;  %9062 = vst [vmem:[%s17111_s23 + $0x6a0] sm:$0xff] %v8806_v16  ;;  %v8807_v62 = vmul.f32 %v11986_v8, %v18717_v42  ;;  %12013 = vpow2.f32 %v9980_v44  ;;  %v9989_v44 = vmul.f32 -1.442695, %v18864_v13 }
 0x6e1   : > { %v11990_v29 = vpop.eup %11989  ;;  %9064 = vst [vmem:[%s17111_s23 + $0x6b0] sm:$0xff] %v8808_v58  ;;  %v8809_v24 = vmul.f32 %v11988_v19, %v18722_v31  ;;  %12015 = vpow2.f32 %v9982_v36  ;;  %v9990_v34 = vmul.f32 -1.442695, %v18854_v61  ;;  %v18868_v56 = vadd.f32 %v20298_v37, %v6608_v50 }
 0x6e2   : > { %v11992_v17 = vpop.eup %11991  ;;  %9063 = vst [vmem:[%s17111_s23 + $0x6a8] sm:$0xff] %v8807_v62  ;;  %v8054_v52 = vadd.f32 1.0, %v11990_v29  ;;  %12017 = vpow2.f32 %v9981_v10 }
 0x6e3   : > { %v11994_v42 = vpop.eup %11993  ;;  %9065 = vst [vmem:[%s17111_s23 + $0x6b8] sm:$0xff] %v8809_v24  ;;  %v8056_v63 = vadd.f32 1.0, %v11992_v17  ;;  %12019 = vpow2.f32 %v9983_v45  ;;  %v9991_v22 = vmul.f32 -1.442695, %v18868_v56 }
 0x6e4   : > { %v11996_v11 = vpop.eup %11995  ;;  %12021 = vrcp.f32 %v8054_v52  ;;  %v8055_v31 = vadd.f32 1.0, %v11994_v42 }
 0x6e5   : > { %v11998_v0 = vpop.eup %11997  ;;  %12023 = vrcp.f32 %v8056_v63  ;;  %v8057_v54 = vadd.f32 1.0, %v11996_v11 }
 0x6e6   : > { %v12000_v60 = vpop.eup %11999  ;;  %v8814_v41 = vmul.f32 %v11998_v0, %v18737_v46  ;;  %12025 = vrcp.f32 %v8055_v31 }
 0x6e7   : > { %v12002_v23 = vpop.eup %12001  ;;  %v8816_v15 = vmul.f32 %v12000_v60, %v18742_v33  ;;  %12027 = vrcp.f32 %v8057_v54 }
 0x6e8   : > { %v12004_v55 = vpop.eup %12003  ;;  %9070 = vst [vmem:[%s17111_s23 + $0x6e0] sm:$0xff] %v8814_v41  ;;  %v8062_v26 = vadd.f32 1.0, %v12002_v23  ;;  %12029 = vpow2.f32 %v9988_v38 }
 0x6e9   : > { %v12006_v6 = vpop.eup %12005  ;;  %9072 = vst [vmem:[%s17111_s23 + $0x6f0] sm:$0xff] %v8816_v15  ;;  %v8064_v5 = vadd.f32 1.0, %v12004_v55  ;;  %12031 = vpow2.f32 %v9990_v34 }
 0x6ea   : > { %v12008_v46 = vpop.eup %12007  ;;  %12033 = vrcp.f32 %v8062_v26  ;;  %v8063_v3 = vadd.f32 1.0, %v12006_v6 }
 0x6eb   : > { %v12010_v33 = vpop.eup %12009  ;;  %12035 = vrcp.f32 %v8064_v5  ;;  %v8065_v47 = vadd.f32 1.0, %v12008_v46 }
 0x6ec   : > { %v12012_v49 = vpop.eup %12011  ;;  %v8815_v2 = vmul.f32 %v12010_v33, %v18752_v40  ;;  %12037 = vrcp.f32 %v8063_v3 }
 0x6ed   : > { %v12014_v36 = vpop.eup %12013  ;;  %v8817_v12 = vmul.f32 %v12012_v49, %v18756_v28  ;;  %12039 = vrcp.f32 %v8065_v47 }
 0x6ee   : > { %v12016_v4 = vpop.eup %12015  ;;  %9071 = vst [vmem:[%s17111_s23 + $0x6e8] sm:$0xff] %v8815_v2  ;;  %v8070_v14 = vadd.f32 1.0, %v12014_v36  ;;  %12041 = vpow2.f32 %v9989_v44 }
 0x6ef   : > { %v12018_v16 = vpop.eup %12017  ;;  %9073 = vst [vmem:[%s17111_s23 + $0x6f8] sm:$0xff] %v8817_v12  ;;  %v8072_v10 = vadd.f32 1.0, %v12016_v4  ;;  %12043 = vpow2.f32 %v9991_v22 }
 0x6f0   : > { %v12020_v8 = vpop.eup %12019  ;;  %12045 = vrcp.f32 %v8070_v14  ;;  %v8071_v58 = vadd.f32 1.0, %v12018_v16 }
 0x6f1   : > { %v12022_v45 = vpop.eup %12021  ;;  %12047 = vrcp.f32 %v8072_v10  ;;  %v8073_v40 = vadd.f32 1.0, %v12020_v8 }
 0x6f2   : > { %v12024_v35 = vpop.eup %12023  ;;  %v8822_v28 = vmul.f32 %v12022_v45, %v18768_v57  ;;  %12049 = vrcp.f32 %v8071_v58 }
 0x6f3   : > { %v12026_v19 = vpop.eup %12025  ;;  %v8824_v62 = vmul.f32 %v12024_v35, %v18772_v21  ;;  %12051 = vrcp.f32 %v8073_v40 }
 0x6f4   : > { %v12028_v37 = vpop.eup %12027  ;;  %9078 = vst [vmem:[%s17111_s23 + $0x720] sm:$0xff] %v8822_v28  ;;  %v8823_v30 = vmul.f32 %v12026_v19, %v18776_v1 }
 0x6f5   : > { %v12030_v29 = vpop.eup %12029  ;;  %9080 = vst [vmem:[%s17111_s23 + $0x730] sm:$0xff] %v8824_v62  ;;  %v8825_v24 = vmul.f32 %v12028_v37, %v18781_v7 }
 0x6f6   : > { %v12032_v17 = vpop.eup %12031  ;;  %9079 = vst [vmem:[%s17111_s23 + $0x728] sm:$0xff] %v8823_v30  ;;  %v8078_v52 = vadd.f32 1.0, %v12030_v29 }
 0x6f7   : > { %v12034_v25 = vpop.eup %12033  ;;  %9081 = vst [vmem:[%s17111_s23 + $0x738] sm:$0xff] %v8825_v24  ;;  %v8080_v57 = vadd.f32 1.0, %v12032_v17 }
 0x6f8   : > { %v12036_v18 = vpop.eup %12035  ;;  %v8830_v21 = vmul.f32 %v12034_v25, %v18791_v48  ;;  %12053 = vrcp.f32 %v8078_v52 }
 0x6f9   : > { %v12038_v42 = vpop.eup %12037  ;;  %v8832_v1 = vmul.f32 %v12036_v18, %v18796_v20  ;;  %12055 = vrcp.f32 %v8080_v57 }
 0x6fa   : > { %v12040_v63 = vpop.eup %12039  ;;  %9086 = vst [vmem:[%s17111_s23 + $0x760] sm:$0xff] %v8830_v21  ;;  %v8831_v7 = vmul.f32 %v12038_v42, %v18801_v27 }
 0x6fb   : > { %v12042_v32 = vpop.eup %12041  ;;  %9088 = vst [vmem:[%s17111_s23 + $0x770] sm:$0xff] %v8832_v1  ;;  %v8833_v50 = vmul.f32 %v12040_v63, %v18807_v59 }
 0x6fc   : > { %v12044_v11 = vpop.eup %12043  ;;  %9087 = vst [vmem:[%s17111_s23 + $0x768] sm:$0xff] %v8831_v7  ;;  %v8079_v31 = vadd.f32 1.0, %v12042_v32 }
 0x6fd   : > { %v12046_v48 = vpop.eup %12045  ;;  %9089 = vst [vmem:[%s17111_s23 + $0x778] sm:$0xff] %v8833_v50  ;;  %v8081_v38 = vadd.f32 1.0, %v12044_v11 }
 0x6fe   : > { %v12048_v20 = vpop.eup %12047  ;;  %v8838_v0 = vmul.f32 %v12046_v48, %v18819_v43  ;;  %12057 = vrcp.f32 %v8079_v31 }
 0x6ff   : > { %v12050_v27 = vpop.eup %12049  ;;  %v8840_v54 = vmul.f32 %v12048_v20, %v18824_v39  ;;  %12059 = vrcp.f32 %v8081_v38 }
 0x700   : > { %v12052_v59 = vpop.eup %12051  ;;  %9094 = vst [vmem:[%s17111_s23 + $0x7a0] sm:$0xff] %v8838_v0  ;;  %v8839_v34 = vmul.f32 %v12050_v27, %v18829_v9 }
 0x701   : > { %9096 = vst [vmem:[%s17111_s23 + $0x7b0] sm:$0xff] %v8840_v54  ;;  %v8841_v60 = vmul.f32 %v12052_v59, %v18834_v51 }
 0x702   : > { %9095 = vst [vmem:[%s17111_s23 + $0x7a8] sm:$0xff] %v8839_v34 }
 0x703   : > { %9097 = vst [vmem:[%s17111_s23 + $0x7b8] sm:$0xff] %v8841_v60 }
 0x705   : > { %v12054_v41 = vpop.eup %12053 }
 0x706   : > { %v12056_v43 = vpop.eup %12055  ;;  %v8846_v23 = vmul.f32 %v12054_v41, %v18849_v53 }
 0x707   : > { %v8848_v15 = vmul.f32 %v12056_v43, %v18854_v61 }
 0x708   : > { %9102 = vst [vmem:[%s17111_s23 + $0x7e0] sm:$0xff] %v8846_v23 }
 0x709   : > { %9104 = vst [vmem:[%s17111_s23 + $0x7f0] sm:$0xff] %v8848_v15 }
 0x70b   : > { %v12058_v39 = vpop.eup %12057 }
 0x70c   : > { %v12060_v55 = vpop.eup %12059  ;;  %v8847_v26 = vmul.f32 %v12058_v39, %v18864_v13 }
 0x70d   : > { %v8849_v9 = vmul.f32 %v12060_v55, %v18868_v56 }
 0x70e   : > { %9103 = vst [vmem:[%s17111_s23 + $0x7e8] sm:$0xff] %v8847_v26 }
 0x70f   : > { %9105 = vst [vmem:[%s17111_s23 + $0x7f8] sm:$0xff] %v8849_v9 }
 0x710 PF: > { %s21_s17 = sadd.s32 1, %s12102_s17  }
 0x711   : > { %p18_p4 = scmp.ge.s32.totalorder %s21_s17, 4  }
 0x713   :  { %20 = sbr.rel (!%p18_p4) target bundleno = 1 (0x1), region = 97 }

</bundles_post_ra>
